<compile_context>
chip_gen: v6e
topology: v6e:2x2x1
jax: 0.10.0
libtpu: 0.0.40
codegen_flags: <defaults>
</compile_context>

<pallas_src>
import math

import jax
import jax.numpy as jnp
import numpy as np
from jax.experimental import pallas as pl
from jax.experimental.pallas import tpu as pltpu

# ----- HashEncoding hyper-parameters (PyTorch defaults) ----------------------
NUM_LEVELS = 16
MIN_RES = 16
MAX_RES = 2048
LOG2_HASHMAP_SIZE = 19
FPL = 2                                    # features_per_level
OUT_DIM = NUM_LEVELS * FPL

GROWTH = math.exp((math.log(MAX_RES) - math.log(MIN_RES)) / (NUM_LEVELS - 1))
RESOLUTIONS = [int(MIN_RES * GROWTH ** i) for i in range(NUM_LEVELS)]
HASHMAP_SIZES = [min(r ** 3, 2 ** LOG2_HASHMAP_SIZE) for r in RESOLUTIONS]

# Reference `_hash_coords` uses len(hash_tables[0].weight) as modulus for ALL
# levels (bug-for-bug reproduction): every level only touches rows [0, MOD).
MOD = HASHMAP_SIZES[0]                     # == 4096

# hash = hi * N_LO + lo.  hi lives on the 128-lane axis of the re-laid table
# (full MXU contraction depth / lane-dense tiles); lo on a 32-row mask.
N_HI = 128
N_LO = MOD // N_HI                         # == 32
LO_BITS = int(math.log2(N_LO))             # == 5

PRIMES = (1, 2654435761, 805459861)
# (c * p) % MOD == (c * (p % MOD)) % MOD  -> keeps all integer math in int32;
# identical to the reference int64 arithmetic mod 4096.
PRIMES_MOD = tuple(p % MOD for p in PRIMES)

TILE_N = 256                               # points per grid step (lane axis)

# --- static guards for the int32 hash shortcut (review: correctness) ---------
assert MOD & (MOD - 1) == 0, "MOD must be a power of two for the & (MOD-1) mask"
assert N_HI * N_LO == MOD and (1 << LO_BITS) == N_LO
assert max(RESOLUTIONS) <= MAX_RES
assert all(0 <= p < MOD for p in PRIMES_MOD)
# worst case sum_i coord_i * prime_mod_i must fit int32 before the & mask
assert 3 * (MAX_RES - 1) * (MOD - 1) < 2 ** 31


def _hash_encoding_kernel(pos_ref, tbl_ref, out_ref):
    # pos_ref: [3, T]                  f32   (points on the 128-lane axis)
    # tbl_ref: [L, FPL*N_LO, N_HI]     bf16  tbl[l, f*N_LO+lo, hi] = W_l[hi*N_LO+lo, f]
    # out_ref: [OUT_DIM, T]            f32   (lane-dense, transposed output)
    T = pos_ref.shape[1]
    pos = pos_ref[...]                                            # [3, T]
    rows_hi = jax.lax.broadcasted_iota(jnp.int32, (N_HI, T), 0)   # [128, T]
    rows_lo = jax.lax.broadcasted_iota(jnp.int32, (N_LO, T), 0)   # [32, T]

    for lvl in range(NUM_LEVELS):                                 # static unroll (16)
        res = RESOLUTIONS[lvl]
        scaled = pos * jnp.float32(res - 1)                       # [3, T]
        ci = jnp.clip(jnp.floor(scaled), 0.0, float(res - 1)).astype(jnp.int32)
        h = (ci[0:1, :] * PRIMES_MOD[0]
             + ci[1:2, :] * PRIMES_MOD[1]
             + ci[2:3, :] * PRIMES_MOD[2]) & (MOD - 1)            # [1, T] int32
        hi = h >> LO_BITS                                         # [1, T] in [0,128)
        lo = h & (N_LO - 1)                                       # [1, T] in [0,32)

        # One-hot over `hi` directly in the MXU dtype (selection stays exact);
        # the lo mask stays f32 (no bf16 VALU on v5e).
        onehot_hi = (rows_hi == hi).astype(jnp.bfloat16)          # [128, T]
        mask_lo = (rows_lo == lo).astype(jnp.float32)             # [32, T]

        # Fetch the 32-entry lo-block (both features) for each point's hi:
        # [FPL*32, 128] @ [128, T] -> [64, T].  bf16 MXU, f32 accumulation.
        block = jnp.dot(tbl_ref[lvl], onehot_hi,
                        preferred_element_type=jnp.float32)       # [64, T]

        # Select `lo` via mask-multiply + 32-row sublane reduce per feature,
        # then write both features of this level with a single 2-row store.
        feats = [jnp.sum(block[f * N_LO:(f + 1) * N_LO, :] * mask_lo,
                         axis=0, keepdims=True) for f in range(FPL)]
        out_ref[FPL * lvl:FPL * (lvl + 1), :] = jnp.concatenate(feats, axis=0)
        # NOTE: `weights = scaled - coords` exists in the reference but is
        # never used by `_trilinear_interpolation`, so it is omitted here.


def _hash_encoding_impl(positions, tables):
    """positions: [*batch, 3] float32 in [0,1]^3; tables: [NUM_LEVELS, MOD, FPL] f32."""
    batch_shape = positions.shape[:-1]
    pos = positions.reshape(-1, 3).astype(jnp.float32)
    n = pos.shape[0]

    # Even number of >= 2 grid steps so a v7x megacore splits the grid evenly.
    n_tiles = max(pl.cdiv(n, TILE_N), 1)
    n_tiles += n_tiles % 2
    n_pad = n_tiles * TILE_N
    # Padded tail points run through the full hash/lookup and are sliced away
    # below — do not remove the [:n] slice.
    pos_t = jnp.pad(pos, ((0, n_pad - n), (0, 0))).T              # [3, n_pad]

    # Re-layout tables lane-dense + bf16 for the MXU:
    #   tbl_k[lvl, f*N_LO + lo, hi] = tables[lvl, hi*N_LO + lo, f]
    tbl_k = (tables.astype(jnp.bfloat16)
             .reshape(NUM_LEVELS, N_HI, N_LO, FPL)
             .transpose(0, 3, 2, 1)
             .reshape(NUM_LEVELS, FPL * N_LO, N_HI))              # [16, 64, 128]

    out_t = pl.pallas_call(
        _hash_encoding_kernel,
        out_shape=jax.ShapeDtypeStruct((OUT_DIM, n_pad), jnp.float32),
        grid_spec=pltpu.PrefetchScalarGridSpec(
            num_scalar_prefetch=0,
            grid=(n_tiles,),
            in_specs=[
                pl.BlockSpec((3, TILE_N), lambda i: (0, i)),
                # Grid-invariant table block: Pallas skips the re-DMA when the
                # block index is unchanged, so it is fetched once (~256 KiB).
                pl.BlockSpec((NUM_LEVELS, FPL * N_LO, N_HI), lambda i: (0, 0, 0)),
            ],
            out_specs=pl.BlockSpec((OUT_DIM, TILE_N), lambda i: (0, i)),
        ),
        compiler_params=pltpu.CompilerParams(
            dimension_semantics=("parallel",)),
    )(pos_t, tbl_k)                                               # [OUT_DIM, n_pad]

    # TODO(synk): a fused consumer should take out_t ([OUT_DIM, N], lane-dense)
    # directly; this transpose costs an extra HBM round trip at large N.
    return out_t[:, :n].T.reshape(*batch_shape, OUT_DIM)


hash_encoding = jax.jit(_hash_encoding_impl)


def hash_encoding_ref(positions, tables):
    """Pure numpy reference mirroring the PyTorch forward (int64 hashing, f32 tables)."""
    pos = np.asarray(positions, dtype=np.float32).reshape(-1, 3)
    tabs = np.asarray(tables)
    primes = np.array(PRIMES, dtype=np.int64)
    feats = []
    for lvl in range(NUM_LEVELS):
        res = RESOLUTIONS[lvl]
        scaled = pos * np.float32(res - 1)
        coords = np.clip(np.floor(scaled).astype(np.int64), 0, res - 1)
        h = (coords * primes).sum(-1) % MOD
        feats.append(tabs[lvl][h])
    out = np.concatenate(feats, axis=-1)
    return out.reshape(*np.asarray(positions).shape[:-1], OUT_DIM)


if __name__ == "__main__":
    key = jax.random.PRNGKey(0)
    k_pos, k_tab = jax.random.split(key)

    # Deterministic synthetic parameters.  The PyTorch module allocates
    # min(res**3, 2**19) rows per level (uniform in [-1e-4, 1e-4]), but due to
    # the level-0 modulus only the first MOD=4096 rows of each level are ever
    # read, so only those are materialized.
    tables = jax.random.uniform(
        k_tab, (NUM_LEVELS, MOD, FPL), jnp.float32, minval=-1e-4, maxval=1e-4)

    # Small batch of 3D positions in [0, 1)^3: batch shape (2, 128).
    positions = jax.random.uniform(k_pos, (2, 128, 3), dtype=jnp.float32)

    out = jax.block_until_ready(hash_encoding(positions, tables))
    assert out.shape == (2, 128, OUT_DIM), out.shape

    # bf16 rounding of the ~1e-4-scale table entries (<~4e-7 abs) is the only
    # deviation from the f32 reference; the one-hot selection itself is exact.
    ref = hash_encoding_ref(np.asarray(positions), np.asarray(tables))
    np.testing.assert_allclose(np.asarray(out), ref, rtol=0.0, atol=1e-6)

    print("KERNEL_OK")
</pallas_src>

<mosaic_0001>
module attributes {stable_mosaic.version = 11 : i64} {
  func.func @_hash_encoding_kernel(%arg0: i32, %arg1: memref<3x256xf32, #tpu.memory_space<vmem>>, %arg2: memref<16x64x128xbf16, #tpu.memory_space<vmem>>, %arg3: memref<32x256xf32, #tpu.memory_space<vmem>>) attributes {dimension_semantics = [#tpu.dimension_semantics<parallel>], iteration_bounds = array<i64: 2>, scalar_prefetch = 0 : i64, scratch_operands = 0 : i64, tpu.core_type = #tpu.core_type<tc>, window_params = [{transform_indices = @transform_0, window_bounds = array<i64: 3, 256>}, {pipeline_mode = #tpu.pipeline_mode<synchronous>, transform_indices = @transform_1, window_bounds = array<i64: 16, 64, 128>}, {transform_indices = @transform_2, window_bounds = array<i64: 32, 256>}]} {
    %c0 = arith.constant 0 : index
    %c0_0 = arith.constant 0 : index
    %0 = vector.load %arg1[%c0, %c0_0] : memref<3x256xf32, #tpu.memory_space<vmem>>, vector<3x256xf32>
    %1 = tpu.iota {dimensions = array<i32: 0>} : vector<128x256xi32>
    %2 = tpu.iota {dimensions = array<i32: 0>} : vector<32x256xi32>
    %cst = arith.constant 1.500000e+01 : f32
    %3 = vector.broadcast %cst : f32 to vector<3x256xf32>
    %4 = arith.mulf %0, %3 : vector<3x256xf32>
    %5 = math.floor %4 : vector<3x256xf32>
    %cst_1 = arith.constant 0.000000e+00 : f32
    %cst_2 = arith.constant 1.500000e+01 : f32
    %6 = vector.broadcast %cst_1 : f32 to vector<3x256xf32>
    %7 = arith.maximumf %6, %5 : vector<3x256xf32>
    %8 = vector.broadcast %cst_2 : f32 to vector<3x256xf32>
    %9 = arith.minimumf %8, %7 : vector<3x256xf32>
    %10 = arith.fptosi %9 : vector<3x256xf32> to vector<3x256xi32>
    %11 = vector.extract_strided_slice %10 {offsets = [0, 0], sizes = [1, 256], strides = [1, 1]} : vector<3x256xi32> to vector<1x256xi32>
    %c1_i32 = arith.constant 1 : i32
    %12 = vector.broadcast %c1_i32 : i32 to vector<1x256xi32>
    %13 = arith.muli %11, %12 : vector<1x256xi32>
    %14 = vector.extract_strided_slice %10 {offsets = [1, 0], sizes = [1, 256], strides = [1, 1]} : vector<3x256xi32> to vector<1x256xi32>
    %c2481_i32 = arith.constant 2481 : i32
    %15 = vector.broadcast %c2481_i32 : i32 to vector<1x256xi32>
    %16 = arith.muli %14, %15 : vector<1x256xi32>
    %17 = arith.addi %13, %16 : vector<1x256xi32>
    %18 = vector.extract_strided_slice %10 {offsets = [2, 0], sizes = [1, 256], strides = [1, 1]} : vector<3x256xi32> to vector<1x256xi32>
    %c1941_i32 = arith.constant 1941 : i32
    %19 = vector.broadcast %c1941_i32 : i32 to vector<1x256xi32>
    %20 = arith.muli %18, %19 : vector<1x256xi32>
    %21 = arith.addi %17, %20 : vector<1x256xi32>
    %c4095_i32 = arith.constant 4095 : i32
    %22 = vector.broadcast %c4095_i32 : i32 to vector<1x256xi32>
    %23 = arith.andi %21, %22 : vector<1x256xi32>
    %c5_i32 = arith.constant 5 : i32
    %24 = vector.broadcast %c5_i32 : i32 to vector<1x256xi32>
    %25 = arith.shrsi %23, %24 : vector<1x256xi32>
    %c31_i32 = arith.constant 31 : i32
    %26 = vector.broadcast %c31_i32 : i32 to vector<1x256xi32>
    %27 = arith.andi %23, %26 : vector<1x256xi32>
    %28 = vector.broadcast %25 : vector<1x256xi32> to vector<128x256xi32>
    %29 = arith.cmpi eq, %1, %28 : vector<128x256xi32>
    %30 = arith.extui %29 : vector<128x256xi1> to vector<128x256xi32>
    %31 = arith.sitofp %30 : vector<128x256xi32> to vector<128x256xf32>
    %32 = arith.truncf %31 : vector<128x256xf32> to vector<128x256xbf16>
    %33 = vector.broadcast %27 : vector<1x256xi32> to vector<32x256xi32>
    %34 = arith.cmpi eq, %2, %33 : vector<32x256xi32>
    %35 = arith.extui %34 : vector<32x256xi1> to vector<32x256xi32>
    %36 = arith.sitofp %35 : vector<32x256xi32> to vector<32x256xf32>
    %c0_3 = arith.constant 0 : index
    %c0_4 = arith.constant 0 : index
    %c0_5 = arith.constant 0 : index
    %37 = vector.load %arg2[%c0_3, %c0_4, %c0_5] : memref<16x64x128xbf16, #tpu.memory_space<vmem>>, vector<1x64x128xbf16>
    %38 = vector.shape_cast %37 : vector<1x64x128xbf16> to vector<64x128xbf16>
    %cst_6 = arith.constant dense<0.000000e+00> : vector<64x256xf32>
    %39 = tpu.matmul %38, %32, %cst_6 {dimension_numbers = #tpu.dot_dimension_numbers<[1], [0], [0], [1], [0, 0, 1, 1], [], []>} : vector<64x128xbf16>, vector<128x256xbf16>, vector<64x256xf32> -> vector<64x256xf32>
    %40 = vector.extract_strided_slice %39 {offsets = [0, 0], sizes = [32, 256], strides = [1, 1]} : vector<64x256xf32> to vector<32x256xf32>
    %41 = arith.mulf %40, %36 : vector<32x256xf32>
    %cst_7 = arith.constant dense<0.000000e+00> : vector<256xf32>
    %42 = vector.multi_reduction <add>, %41, %cst_7 [0] : vector<32x256xf32> to vector<256xf32>
    %43 = vector.shape_cast %42 : vector<256xf32> to vector<1x256xf32>
    %44 = vector.extract_strided_slice %39 {offsets = [32, 0], sizes = [32, 256], strides = [1, 1]} : vector<64x256xf32> to vector<32x256xf32>
    %45 = arith.mulf %44, %36 : vector<32x256xf32>
    %cst_8 = arith.constant dense<0.000000e+00> : vector<256xf32>
    %46 = vector.multi_reduction <add>, %45, %cst_8 [0] : vector<32x256xf32> to vector<256xf32>
    %47 = vector.shape_cast %46 : vector<256xf32> to vector<1x256xf32>
    %48 = tpu.concatenate %43, %47 in 0 : vector<1x256xf32>, vector<1x256xf32> -> vector<2x256xf32>
    %c0_9 = arith.constant 0 : index
    %c0_10 = arith.constant 0 : index
    %49 = vector.load %arg3[%c0_9, %c0_10] : memref<32x256xf32, #tpu.memory_space<vmem>>, vector<2x256xf32>
    tpu.vector_store %arg3[%c0_9, %c0_10], %48 {strides = array<i32>} : memref<32x256xf32, #tpu.memory_space<vmem>>, vector<2x256xf32>,
    %cst_11 = arith.constant 2.100000e+01 : f32
    %50 = vector.broadcast %cst_11 : f32 to vector<3x256xf32>
    %51 = arith.mulf %0, %50 : vector<3x256xf32>
    %52 = math.floor %51 : vector<3x256xf32>
    %cst_12 = arith.constant 0.000000e+00 : f32
    %cst_13 = arith.constant 2.100000e+01 : f32
    %53 = vector.broadcast %cst_12 : f32 to vector<3x256xf32>
    %54 = arith.maximumf %53, %52 : vector<3x256xf32>
    %55 = vector.broadcast %cst_13 : f32 to vector<3x256xf32>
    %56 = arith.minimumf %55, %54 : vector<3x256xf32>
    %57 = arith.fptosi %56 : vector<3x256xf32> to vector<3x256xi32>
    %58 = vector.extract_strided_slice %57 {offsets = [0, 0], sizes = [1, 256], strides = [1, 1]} : vector<3x256xi32> to vector<1x256xi32>
    %c1_i32_14 = arith.constant 1 : i32
    %59 = vector.broadcast %c1_i32_14 : i32 to vector<1x256xi32>
    %60 = arith.muli %58, %59 : vector<1x256xi32>
    %61 = vector.extract_strided_slice %57 {offsets = [1, 0], sizes = [1, 256], strides = [1, 1]} : vector<3x256xi32> to vector<1x256xi32>
    %c2481_i32_15 = arith.constant 2481 : i32
    %62 = vector.broadcast %c2481_i32_15 : i32 to vector<1x256xi32>
    %63 = arith.muli %61, %62 : vector<1x256xi32>
    %64 = arith.addi %60, %63 : vector<1x256xi32>
    %65 = vector.extract_strided_slice %57 {offsets = [2, 0], sizes = [1, 256], strides = [1, 1]} : vector<3x256xi32> to vector<1x256xi32>
    %c1941_i32_16 = arith.constant 1941 : i32
    %66 = vector.broadcast %c1941_i32_16 : i32 to vector<1x256xi32>
    %67 = arith.muli %65, %66 : vector<1x256xi32>
    %68 = arith.addi %64, %67 : vector<1x256xi32>
    %c4095_i32_17 = arith.constant 4095 : i32
    %69 = vector.broadcast %c4095_i32_17 : i32 to vector<1x256xi32>
    %70 = arith.andi %68, %69 : vector<1x256xi32>
    %c5_i32_18 = arith.constant 5 : i32
    %71 = vector.broadcast %c5_i32_18 : i32 to vector<1x256xi32>
    %72 = arith.shrsi %70, %71 : vector<1x256xi32>
    %c31_i32_19 = arith.constant 31 : i32
    %73 = vector.broadcast %c31_i32_19 : i32 to vector<1x256xi32>
    %74 = arith.andi %70, %73 : vector<1x256xi32>
    %75 = vector.broadcast %72 : vector<1x256xi32> to vector<128x256xi32>
    %76 = arith.cmpi eq, %1, %75 : vector<128x256xi32>
    %77 = arith.extui %76 : vector<128x256xi1> to vector<128x256xi32>
    %78 = arith.sitofp %77 : vector<128x256xi32> to vector<128x256xf32>
    %79 = arith.truncf %78 : vector<128x256xf32> to vector<128x256xbf16>
    %80 = vector.broadcast %74 : vector<1x256xi32> to vector<32x256xi32>
    %81 = arith.cmpi eq, %2, %80 : vector<32x256xi32>
    %82 = arith.extui %81 : vector<32x256xi1> to vector<32x256xi32>
    %83 = arith.sitofp %82 : vector<32x256xi32> to vector<32x256xf32>
    %c1 = arith.constant 1 : index
    %c0_20 = arith.constant 0 : index
    %c0_21 = arith.constant 0 : index
    %84 = vector.load %arg2[%c1, %c0_20, %c0_21] : memref<16x64x128xbf16, #tpu.memory_space<vmem>>, vector<1x64x128xbf16>
    %85 = vector.shape_cast %84 : vector<1x64x128xbf16> to vector<64x128xbf16>
    %cst_22 = arith.constant dense<0.000000e+00> : vector<64x256xf32>
    %86 = tpu.matmul %85, %79, %cst_22 {dimension_numbers = #tpu.dot_dimension_numbers<[1], [0], [0], [1], [0, 0, 1, 1], [], []>} : vector<64x128xbf16>, vector<128x256xbf16>, vector<64x256xf32> -> vector<64x256xf32>
    %87 = vector.extract_strided_slice %86 {offsets = [0, 0], sizes = [32, 256], strides = [1, 1]} : vector<64x256xf32> to vector<32x256xf32>
    %88 = arith.mulf %87, %83 : vector<32x256xf32>
    %cst_23 = arith.constant dense<0.000000e+00> : vector<256xf32>
    %89 = vector.multi_reduction <add>, %88, %cst_23 [0] : vector<32x256xf32> to vector<256xf32>
    %90 = vector.shape_cast %89 : vector<256xf32> to vector<1x256xf32>
    %91 = vector.extract_strided_slice %86 {offsets = [32, 0], sizes = [32, 256], strides = [1, 1]} : vector<64x256xf32> to vector<32x256xf32>
    %92 = arith.mulf %91, %83 : vector<32x256xf32>
    %cst_24 = arith.constant dense<0.000000e+00> : vector<256xf32>
    %93 = vector.multi_reduction <add>, %92, %cst_24 [0] : vector<32x256xf32> to vector<256xf32>
    %94 = vector.shape_cast %93 : vector<256xf32> to vector<1x256xf32>
    %95 = tpu.concatenate %90, %94 in 0 : vector<1x256xf32>, vector<1x256xf32> -> vector<2x256xf32>
    %c2 = arith.constant 2 : index
    %c0_25 = arith.constant 0 : index
    %96 = vector.load %arg3[%c2, %c0_25] : memref<32x256xf32, #tpu.memory_space<vmem>>, vector<2x256xf32>
    tpu.vector_store %arg3[%c2, %c0_25], %95 {strides = array<i32>} : memref<32x256xf32, #tpu.memory_space<vmem>>, vector<2x256xf32>,
    %cst_26 = arith.constant 2.900000e+01 : f32
    %97 = vector.broadcast %cst_26 : f32 to vector<3x256xf32>
    %98 = arith.mulf %0, %97 : vector<3x256xf32>
    %99 = math.floor %98 : vector<3x256xf32>
    %cst_27 = arith.constant 0.000000e+00 : f32
    %cst_28 = arith.constant 2.900000e+01 : f32
    %100 = vector.broadcast %cst_27 : f32 to vector<3x256xf32>
    %101 = arith.maximumf %100, %99 : vector<3x256xf32>
    %102 = vector.broadcast %cst_28 : f32 to vector<3x256xf32>
    %103 = arith.minimumf %102, %101 : vector<3x256xf32>
    %104 = arith.fptosi %103 : vector<3x256xf32> to vector<3x256xi32>
    %105 = vector.extract_strided_slice %104 {offsets = [0, 0], sizes = [1, 256], strides = [1, 1]} : vector<3x256xi32> to vector<1x256xi32>
    %c1_i32_29 = arith.constant 1 : i32
    %106 = vector.broadcast %c1_i32_29 : i32 to vector<1x256xi32>
    %107 = arith.muli %105, %106 : vector<1x256xi32>
    %108 = vector.extract_strided_slice %104 {offsets = [1, 0], sizes = [1, 256], strides = [1, 1]} : vector<3x256xi32> to vector<1x256xi32>
    %c2481_i32_30 = arith.constant 2481 : i32
    %109 = vector.broadcast %c2481_i32_30 : i32 to vector<1x256xi32>
    %110 = arith.muli %108, %109 : vector<1x256xi32>
    %111 = arith.addi %107, %110 : vector<1x256xi32>
    %112 = vector.extract_strided_slice %104 {offsets = [2, 0], sizes = [1, 256], strides = [1, 1]} : vector<3x256xi32> to vector<1x256xi32>
    %c1941_i32_31 = arith.constant 1941 : i32
    %113 = vector.broadcast %c1941_i32_31 : i32 to vector<1x256xi32>
    %114 = arith.muli %112, %113 : vector<1x256xi32>
    %115 = arith.addi %111, %114 : vector<1x256xi32>
    %c4095_i32_32 = arith.constant 4095 : i32
    %116 = vector.broadcast %c4095_i32_32 : i32 to vector<1x256xi32>
    %117 = arith.andi %115, %116 : vector<1x256xi32>
    %c5_i32_33 = arith.constant 5 : i32
    %118 = vector.broadcast %c5_i32_33 : i32 to vector<1x256xi32>
    %119 = arith.shrsi %117, %118 : vector<1x256xi32>
    %c31_i32_34 = arith.constant 31 : i32
    %120 = vector.broadcast %c31_i32_34 : i32 to vector<1x256xi32>
    %121 = arith.andi %117, %120 : vector<1x256xi32>
    %122 = vector.broadcast %119 : vector<1x256xi32> to vector<128x256xi32>
    %123 = arith.cmpi eq, %1, %122 : vector<128x256xi32>
    %124 = arith.extui %123 : vector<128x256xi1> to vector<128x256xi32>
    %125 = arith.sitofp %124 : vector<128x256xi32> to vector<128x256xf32>
    %126 = arith.truncf %125 : vector<128x256xf32> to vector<128x256xbf16>
    %127 = vector.broadcast %121 : vector<1x256xi32> to vector<32x256xi32>
    %128 = arith.cmpi eq, %2, %127 : vector<32x256xi32>
    %129 = arith.extui %128 : vector<32x256xi1> to vector<32x256xi32>
    %130 = arith.sitofp %129 : vector<32x256xi32> to vector<32x256xf32>
    %c2_35 = arith.constant 2 : index
    %c0_36 = arith.constant 0 : index
    %c0_37 = arith.constant 0 : index
    %131 = vector.load %arg2[%c2_35, %c0_36, %c0_37] : memref<16x64x128xbf16, #tpu.memory_space<vmem>>, vector<1x64x128xbf16>
    %132 = vector.shape_cast %131 : vector<1x64x128xbf16> to vector<64x128xbf16>
    %cst_38 = arith.constant dense<0.000000e+00> : vector<64x256xf32>
    %133 = tpu.matmul %132, %126, %cst_38 {dimension_numbers = #tpu.dot_dimension_numbers<[1], [0], [0], [1], [0, 0, 1, 1], [], []>} : vector<64x128xbf16>, vector<128x256xbf16>, vector<64x256xf32> -> vector<64x256xf32>
    %134 = vector.extract_strided_slice %133 {offsets = [0, 0], sizes = [32, 256], strides = [1, 1]} : vector<64x256xf32> to vector<32x256xf32>
    %135 = arith.mulf %134, %130 : vector<32x256xf32>
    %cst_39 = arith.constant dense<0.000000e+00> : vector<256xf32>
    %136 = vector.multi_reduction <add>, %135, %cst_39 [0] : vector<32x256xf32> to vector<256xf32>
    %137 = vector.shape_cast %136 : vector<256xf32> to vector<1x256xf32>
    %138 = vector.extract_strided_slice %133 {offsets = [32, 0], sizes = [32, 256], strides = [1, 1]} : vector<64x256xf32> to vector<32x256xf32>
    %139 = arith.mulf %138, %130 : vector<32x256xf32>
    %cst_40 = arith.constant dense<0.000000e+00> : vector<256xf32>
    %140 = vector.multi_reduction <add>, %139, %cst_40 [0] : vector<32x256xf32> to vector<256xf32>
    %141 = vector.shape_cast %140 : vector<256xf32> to vector<1x256xf32>
    %142 = tpu.concatenate %137, %141 in 0 : vector<1x256xf32>, vector<1x256xf32> -> vector<2x256xf32>
    %c4 = arith.constant 4 : index
    %c0_41 = arith.constant 0 : index
    %143 = vector.load %arg3[%c4, %c0_41] : memref<32x256xf32, #tpu.memory_space<vmem>>, vector<2x256xf32>
    tpu.vector_store %arg3[%c4, %c0_41], %142 {strides = array<i32>} : memref<32x256xf32, #tpu.memory_space<vmem>>, vector<2x256xf32>,
    %cst_42 = arith.constant 4.100000e+01 : f32
    %144 = vector.broadcast %cst_42 : f32 to vector<3x256xf32>
    %145 = arith.mulf %0, %144 : vector<3x256xf32>
    %146 = math.floor %145 : vector<3x256xf32>
    %cst_43 = arith.constant 0.000000e+00 : f32
    %cst_44 = arith.constant 4.100000e+01 : f32
    %147 = vector.broadcast %cst_43 : f32 to vector<3x256xf32>
    %148 = arith.maximumf %147, %146 : vector<3x256xf32>
    %149 = vector.broadcast %cst_44 : f32 to vector<3x256xf32>
    %150 = arith.minimumf %149, %148 : vector<3x256xf32>
    %151 = arith.fptosi %150 : vector<3x256xf32> to vector<3x256xi32>
    %152 = vector.extract_strided_slice %151 {offsets = [0, 0], sizes = [1, 256], strides = [1, 1]} : vector<3x256xi32> to vector<1x256xi32>
    %c1_i32_45 = arith.constant 1 : i32
    %153 = vector.broadcast %c1_i32_45 : i32 to vector<1x256xi32>
    %154 = arith.muli %152, %153 : vector<1x256xi32>
    %155 = vector.extract_strided_slice %151 {offsets = [1, 0], sizes = [1, 256], strides = [1, 1]} : vector<3x256xi32> to vector<1x256xi32>
    %c2481_i32_46 = arith.constant 2481 : i32
    %156 = vector.broadcast %c2481_i32_46 : i32 to vector<1x256xi32>
    %157 = arith.muli %155, %156 : vector<1x256xi32>
    %158 = arith.addi %154, %157 : vector<1x256xi32>
    %159 = vector.extract_strided_slice %151 {offsets = [2, 0], sizes = [1, 256], strides = [1, 1]} : vector<3x256xi32> to vector<1x256xi32>
    %c1941_i32_47 = arith.constant 1941 : i32
    %160 = vector.broadcast %c1941_i32_47 : i32 to vector<1x256xi32>
    %161 = arith.muli %159, %160 : vector<1x256xi32>
    %162 = arith.addi %158, %161 : vector<1x256xi32>
    %c4095_i32_48 = arith.constant 4095 : i32
    %163 = vector.broadcast %c4095_i32_48 : i32 to vector<1x256xi32>
    %164 = arith.andi %162, %163 : vector<1x256xi32>
    %c5_i32_49 = arith.constant 5 : i32
    %165 = vector.broadcast %c5_i32_49 : i32 to vector<1x256xi32>
    %166 = arith.shrsi %164, %165 : vector<1x256xi32>
    %c31_i32_50 = arith.constant 31 : i32
    %167 = vector.broadcast %c31_i32_50 : i32 to vector<1x256xi32>
    %168 = arith.andi %164, %167 : vector<1x256xi32>
    %169 = vector.broadcast %166 : vector<1x256xi32> to vector<128x256xi32>
    %170 = arith.cmpi eq, %1, %169 : vector<128x256xi32>
    %171 = arith.extui %170 : vector<128x256xi1> to vector<128x256xi32>
    %172 = arith.sitofp %171 : vector<128x256xi32> to vector<128x256xf32>
    %173 = arith.truncf %172 : vector<128x256xf32> to vector<128x256xbf16>
    %174 = vector.broadcast %168 : vector<1x256xi32> to vector<32x256xi32>
    %175 = arith.cmpi eq, %2, %174 : vector<32x256xi32>
    %176 = arith.extui %175 : vector<32x256xi1> to vector<32x256xi32>
    %177 = arith.sitofp %176 : vector<32x256xi32> to vector<32x256xf32>
    %c3 = arith.constant 3 : index
    %c0_51 = arith.constant 0 : index
    %c0_52 = arith.constant 0 : index
    %178 = vector.load %arg2[%c3, %c0_51, %c0_52] : memref<16x64x128xbf16, #tpu.memory_space<vmem>>, vector<1x64x128xbf16>
    %179 = vector.shape_cast %178 : vector<1x64x128xbf16> to vector<64x128xbf16>
    %cst_53 = arith.constant dense<0.000000e+00> : vector<64x256xf32>
    %180 = tpu.matmul %179, %173, %cst_53 {dimension_numbers = #tpu.dot_dimension_numbers<[1], [0], [0], [1], [0, 0, 1, 1], [], []>} : vector<64x128xbf16>, vector<128x256xbf16>, vector<64x256xf32> -> vector<64x256xf32>
    %181 = vector.extract_strided_slice %180 {offsets = [0, 0], sizes = [32, 256], strides = [1, 1]} : vector<64x256xf32> to vector<32x256xf32>
    %182 = arith.mulf %181, %177 : vector<32x256xf32>
    %cst_54 = arith.constant dense<0.000000e+00> : vector<256xf32>
    %183 = vector.multi_reduction <add>, %182, %cst_54 [0] : vector<32x256xf32> to vector<256xf32>
    %184 = vector.shape_cast %183 : vector<256xf32> to vector<1x256xf32>
    %185 = vector.extract_strided_slice %180 {offsets = [32, 0], sizes = [32, 256], strides = [1, 1]} : vector<64x256xf32> to vector<32x256xf32>
    %186 = arith.mulf %185, %177 : vector<32x256xf32>
    %cst_55 = arith.constant dense<0.000000e+00> : vector<256xf32>
    %187 = vector.multi_reduction <add>, %186, %cst_55 [0] : vector<32x256xf32> to vector<256xf32>
    %188 = vector.shape_cast %187 : vector<256xf32> to vector<1x256xf32>
    %189 = tpu.concatenate %184, %188 in 0 : vector<1x256xf32>, vector<1x256xf32> -> vector<2x256xf32>
    %c6 = arith.constant 6 : index
    %c0_56 = arith.constant 0 : index
    %190 = vector.load %arg3[%c6, %c0_56] : memref<32x256xf32, #tpu.memory_space<vmem>>, vector<2x256xf32>
    tpu.vector_store %arg3[%c6, %c0_56], %189 {strides = array<i32>} : memref<32x256xf32, #tpu.memory_space<vmem>>, vector<2x256xf32>,
    %cst_57 = arith.constant 5.700000e+01 : f32
    %191 = vector.broadcast %cst_57 : f32 to vector<3x256xf32>
    %192 = arith.mulf %0, %191 : vector<3x256xf32>
    %193 = math.floor %192 : vector<3x256xf32>
    %cst_58 = arith.constant 0.000000e+00 : f32
    %cst_59 = arith.constant 5.700000e+01 : f32
    %194 = vector.broadcast %cst_58 : f32 to vector<3x256xf32>
    %195 = arith.maximumf %194, %193 : vector<3x256xf32>
    %196 = vector.broadcast %cst_59 : f32 to vector<3x256xf32>
    %197 = arith.minimumf %196, %195 : vector<3x256xf32>
    %198 = arith.fptosi %197 : vector<3x256xf32> to vector<3x256xi32>
    %199 = vector.extract_strided_slice %198 {offsets = [0, 0], sizes = [1, 256], strides = [1, 1]} : vector<3x256xi32> to vector<1x256xi32>
    %c1_i32_60 = arith.constant 1 : i32
    %200 = vector.broadcast %c1_i32_60 : i32 to vector<1x256xi32>
    %201 = arith.muli %199, %200 : vector<1x256xi32>
    %202 = vector.extract_strided_slice %198 {offsets = [1, 0], sizes = [1, 256], strides = [1, 1]} : vector<3x256xi32> to vector<1x256xi32>
    %c2481_i32_61 = arith.constant 2481 : i32
    %203 = vector.broadcast %c2481_i32_61 : i32 to vector<1x256xi32>
    %204 = arith.muli %202, %203 : vector<1x256xi32>
    %205 = arith.addi %201, %204 : vector<1x256xi32>
    %206 = vector.extract_strided_slice %198 {offsets = [2, 0], sizes = [1, 256], strides = [1, 1]} : vector<3x256xi32> to vector<1x256xi32>
    %c1941_i32_62 = arith.constant 1941 : i32
    %207 = vector.broadcast %c1941_i32_62 : i32 to vector<1x256xi32>
    %208 = arith.muli %206, %207 : vector<1x256xi32>
    %209 = arith.addi %205, %208 : vector<1x256xi32>
    %c4095_i32_63 = arith.constant 4095 : i32
    %210 = vector.broadcast %c4095_i32_63 : i32 to vector<1x256xi32>
    %211 = arith.andi %209, %210 : vector<1x256xi32>
    %c5_i32_64 = arith.constant 5 : i32
    %212 = vector.broadcast %c5_i32_64 : i32 to vector<1x256xi32>
    %213 = arith.shrsi %211, %212 : vector<1x256xi32>
    %c31_i32_65 = arith.constant 31 : i32
    %214 = vector.broadcast %c31_i32_65 : i32 to vector<1x256xi32>
    %215 = arith.andi %211, %214 : vector<1x256xi32>
    %216 = vector.broadcast %213 : vector<1x256xi32> to vector<128x256xi32>
    %217 = arith.cmpi eq, %1, %216 : vector<128x256xi32>
    %218 = arith.extui %217 : vector<128x256xi1> to vector<128x256xi32>
    %219 = arith.sitofp %218 : vector<128x256xi32> to vector<128x256xf32>
    %220 = arith.truncf %219 : vector<128x256xf32> to vector<128x256xbf16>
    %221 = vector.broadcast %215 : vector<1x256xi32> to vector<32x256xi32>
    %222 = arith.cmpi eq, %2, %221 : vector<32x256xi32>
    %223 = arith.extui %222 : vector<32x256xi1> to vector<32x256xi32>
    %224 = arith.sitofp %223 : vector<32x256xi32> to vector<32x256xf32>
    %c4_66 = arith.constant 4 : index
    %c0_67 = arith.constant 0 : index
    %c0_68 = arith.constant 0 : index
    %225 = vector.load %arg2[%c4_66, %c0_67, %c0_68] : memref<16x64x128xbf16, #tpu.memory_space<vmem>>, vector<1x64x128xbf16>
    %226 = vector.shape_cast %225 : vector<1x64x128xbf16> to vector<64x128xbf16>
    %cst_69 = arith.constant dense<0.000000e+00> : vector<64x256xf32>
    %227 = tpu.matmul %226, %220, %cst_69 {dimension_numbers = #tpu.dot_dimension_numbers<[1], [0], [0], [1], [0, 0, 1, 1], [], []>} : vector<64x128xbf16>, vector<128x256xbf16>, vector<64x256xf32> -> vector<64x256xf32>
    %228 = vector.extract_strided_slice %227 {offsets = [0, 0], sizes = [32, 256], strides = [1, 1]} : vector<64x256xf32> to vector<32x256xf32>
    %229 = arith.mulf %228, %224 : vector<32x256xf32>
    %cst_70 = arith.constant dense<0.000000e+00> : vector<256xf32>
    %230 = vector.multi_reduction <add>, %229, %cst_70 [0] : vector<32x256xf32> to vector<256xf32>
    %231 = vector.shape_cast %230 : vector<256xf32> to vector<1x256xf32>
    %232 = vector.extract_strided_slice %227 {offsets = [32, 0], sizes = [32, 256], strides = [1, 1]} : vector<64x256xf32> to vector<32x256xf32>
    %233 = arith.mulf %232, %224 : vector<32x256xf32>
    %cst_71 = arith.constant dense<0.000000e+00> : vector<256xf32>
    %234 = vector.multi_reduction <add>, %233, %cst_71 [0] : vector<32x256xf32> to vector<256xf32>
    %235 = vector.shape_cast %234 : vector<256xf32> to vector<1x256xf32>
    %236 = tpu.concatenate %231, %235 in 0 : vector<1x256xf32>, vector<1x256xf32> -> vector<2x256xf32>
    %c8 = arith.constant 8 : index
    %c0_72 = arith.constant 0 : index
    %237 = vector.load %arg3[%c8, %c0_72] : memref<32x256xf32, #tpu.memory_space<vmem>>, vector<2x256xf32>
    tpu.vector_store %arg3[%c8, %c0_72], %236 {strides = array<i32>} : memref<32x256xf32, #tpu.memory_space<vmem>>, vector<2x256xf32>,
    %cst_73 = arith.constant 7.900000e+01 : f32
    %238 = vector.broadcast %cst_73 : f32 to vector<3x256xf32>
    %239 = arith.mulf %0, %238 : vector<3x256xf32>
    %240 = math.floor %239 : vector<3x256xf32>
    %cst_74 = arith.constant 0.000000e+00 : f32
    %cst_75 = arith.constant 7.900000e+01 : f32
    %241 = vector.broadcast %cst_74 : f32 to vector<3x256xf32>
    %242 = arith.maximumf %241, %240 : vector<3x256xf32>
    %243 = vector.broadcast %cst_75 : f32 to vector<3x256xf32>
    %244 = arith.minimumf %243, %242 : vector<3x256xf32>
    %245 = arith.fptosi %244 : vector<3x256xf32> to vector<3x256xi32>
    %246 = vector.extract_strided_slice %245 {offsets = [0, 0], sizes = [1, 256], strides = [1, 1]} : vector<3x256xi32> to vector<1x256xi32>
    %c1_i32_76 = arith.constant 1 : i32
    %247 = vector.broadcast %c1_i32_76 : i32 to vector<1x256xi32>
    %248 = arith.muli %246, %247 : vector<1x256xi32>
    %249 = vector.extract_strided_slice %245 {offsets = [1, 0], sizes = [1, 256], strides = [1, 1]} : vector<3x256xi32> to vector<1x256xi32>
    %c2481_i32_77 = arith.constant 2481 : i32
    %250 = vector.broadcast %c2481_i32_77 : i32 to vector<1x256xi32>
    %251 = arith.muli %249, %250 : vector<1x256xi32>
    %252 = arith.addi %248, %251 : vector<1x256xi32>
    %253 = vector.extract_strided_slice %245 {offsets = [2, 0], sizes = [1, 256], strides = [1, 1]} : vector<3x256xi32> to vector<1x256xi32>
    %c1941_i32_78 = arith.constant 1941 : i32
    %254 = vector.broadcast %c1941_i32_78 : i32 to vector<1x256xi32>
    %255 = arith.muli %253, %254 : vector<1x256xi32>
    %256 = arith.addi %252, %255 : vector<1x256xi32>
    %c4095_i32_79 = arith.constant 4095 : i32
    %257 = vector.broadcast %c4095_i32_79 : i32 to vector<1x256xi32>
    %258 = arith.andi %256, %257 : vector<1x256xi32>
    %c5_i32_80 = arith.constant 5 : i32
    %259 = vector.broadcast %c5_i32_80 : i32 to vector<1x256xi32>
    %260 = arith.shrsi %258, %259 : vector<1x256xi32>
    %c31_i32_81 = arith.constant 31 : i32
    %261 = vector.broadcast %c31_i32_81 : i32 to vector<1x256xi32>
    %262 = arith.andi %258, %261 : vector<1x256xi32>
    %263 = vector.broadcast %260 : vector<1x256xi32> to vector<128x256xi32>
    %264 = arith.cmpi eq, %1, %263 : vector<128x256xi32>
    %265 = arith.extui %264 : vector<128x256xi1> to vector<128x256xi32>
    %266 = arith.sitofp %265 : vector<128x256xi32> to vector<128x256xf32>
    %267 = arith.truncf %266 : vector<128x256xf32> to vector<128x256xbf16>
    %268 = vector.broadcast %262 : vector<1x256xi32> to vector<32x256xi32>
    %269 = arith.cmpi eq, %2, %268 : vector<32x256xi32>
    %270 = arith.extui %269 : vector<32x256xi1> to vector<32x256xi32>
    %271 = arith.sitofp %270 : vector<32x256xi32> to vector<32x256xf32>
    %c5 = arith.constant 5 : index
    %c0_82 = arith.constant 0 : index
    %c0_83 = arith.constant 0 : index
    %272 = vector.load %arg2[%c5, %c0_82, %c0_83] : memref<16x64x128xbf16, #tpu.memory_space<vmem>>, vector<1x64x128xbf16>
    %273 = vector.shape_cast %272 : vector<1x64x128xbf16> to vector<64x128xbf16>
    %cst_84 = arith.constant dense<0.000000e+00> : vector<64x256xf32>
    %274 = tpu.matmul %273, %267, %cst_84 {dimension_numbers = #tpu.dot_dimension_numbers<[1], [0], [0], [1], [0, 0, 1, 1], [], []>} : vector<64x128xbf16>, vector<128x256xbf16>, vector<64x256xf32> -> vector<64x256xf32>
    %275 = vector.extract_strided_slice %274 {offsets = [0, 0], sizes = [32, 256], strides = [1, 1]} : vector<64x256xf32> to vector<32x256xf32>
    %276 = arith.mulf %275, %271 : vector<32x256xf32>
    %cst_85 = arith.constant dense<0.000000e+00> : vector<256xf32>
    %277 = vector.multi_reduction <add>, %276, %cst_85 [0] : vector<32x256xf32> to vector<256xf32>
    %278 = vector.shape_cast %277 : vector<256xf32> to vector<1x256xf32>
    %279 = vector.extract_strided_slice %274 {offsets = [32, 0], sizes = [32, 256], strides = [1, 1]} : vector<64x256xf32> to vector<32x256xf32>
    %280 = arith.mulf %279, %271 : vector<32x256xf32>
    %cst_86 = arith.constant dense<0.000000e+00> : vector<256xf32>
    %281 = vector.multi_reduction <add>, %280, %cst_86 [0] : vector<32x256xf32> to vector<256xf32>
    %282 = vector.shape_cast %281 : vector<256xf32> to vector<1x256xf32>
    %283 = tpu.concatenate %278, %282 in 0 : vector<1x256xf32>, vector<1x256xf32> -> vector<2x256xf32>
    %c10 = arith.constant 10 : index
    %c0_87 = arith.constant 0 : index
    %284 = vector.load %arg3[%c10, %c0_87] : memref<32x256xf32, #tpu.memory_space<vmem>>, vector<2x256xf32>
    tpu.vector_store %arg3[%c10, %c0_87], %283 {strides = array<i32>} : memref<32x256xf32, #tpu.memory_space<vmem>>, vector<2x256xf32>,
    %cst_88 = arith.constant 1.100000e+02 : f32
    %285 = vector.broadcast %cst_88 : f32 to vector<3x256xf32>
    %286 = arith.mulf %0, %285 : vector<3x256xf32>
    %287 = math.floor %286 : vector<3x256xf32>
    %cst_89 = arith.constant 0.000000e+00 : f32
    %cst_90 = arith.constant 1.100000e+02 : f32
    %288 = vector.broadcast %cst_89 : f32 to vector<3x256xf32>
    %289 = arith.maximumf %288, %287 : vector<3x256xf32>
    %290 = vector.broadcast %cst_90 : f32 to vector<3x256xf32>
    %291 = arith.minimumf %290, %289 : vector<3x256xf32>
    %292 = arith.fptosi %291 : vector<3x256xf32> to vector<3x256xi32>
    %293 = vector.extract_strided_slice %292 {offsets = [0, 0], sizes = [1, 256], strides = [1, 1]} : vector<3x256xi32> to vector<1x256xi32>
    %c1_i32_91 = arith.constant 1 : i32
    %294 = vector.broadcast %c1_i32_91 : i32 to vector<1x256xi32>
    %295 = arith.muli %293, %294 : vector<1x256xi32>
    %296 = vector.extract_strided_slice %292 {offsets = [1, 0], sizes = [1, 256], strides = [1, 1]} : vector<3x256xi32> to vector<1x256xi32>
    %c2481_i32_92 = arith.constant 2481 : i32
    %297 = vector.broadcast %c2481_i32_92 : i32 to vector<1x256xi32>
    %298 = arith.muli %296, %297 : vector<1x256xi32>
    %299 = arith.addi %295, %298 : vector<1x256xi32>
    %300 = vector.extract_strided_slice %292 {offsets = [2, 0], sizes = [1, 256], strides = [1, 1]} : vector<3x256xi32> to vector<1x256xi32>
    %c1941_i32_93 = arith.constant 1941 : i32
    %301 = vector.broadcast %c1941_i32_93 : i32 to vector<1x256xi32>
    %302 = arith.muli %300, %301 : vector<1x256xi32>
    %303 = arith.addi %299, %302 : vector<1x256xi32>
    %c4095_i32_94 = arith.constant 4095 : i32
    %304 = vector.broadcast %c4095_i32_94 : i32 to vector<1x256xi32>
    %305 = arith.andi %303, %304 : vector<1x256xi32>
    %c5_i32_95 = arith.constant 5 : i32
    %306 = vector.broadcast %c5_i32_95 : i32 to vector<1x256xi32>
    %307 = arith.shrsi %305, %306 : vector<1x256xi32>
    %c31_i32_96 = arith.constant 31 : i32
    %308 = vector.broadcast %c31_i32_96 : i32 to vector<1x256xi32>
    %309 = arith.andi %305, %308 : vector<1x256xi32>
    %310 = vector.broadcast %307 : vector<1x256xi32> to vector<128x256xi32>
    %311 = arith.cmpi eq, %1, %310 : vector<128x256xi32>
    %312 = arith.extui %311 : vector<128x256xi1> to vector<128x256xi32>
    %313 = arith.sitofp %312 : vector<128x256xi32> to vector<128x256xf32>
    %314 = arith.truncf %313 : vector<128x256xf32> to vector<128x256xbf16>
    %315 = vector.broadcast %309 : vector<1x256xi32> to vector<32x256xi32>
    %316 = arith.cmpi eq, %2, %315 : vector<32x256xi32>
    %317 = arith.extui %316 : vector<32x256xi1> to vector<32x256xi32>
    %318 = arith.sitofp %317 : vector<32x256xi32> to vector<32x256xf32>
    %c6_97 = arith.constant 6 : index
    %c0_98 = arith.constant 0 : index
    %c0_99 = arith.constant 0 : index
    %319 = vector.load %arg2[%c6_97, %c0_98, %c0_99] : memref<16x64x128xbf16, #tpu.memory_space<vmem>>, vector<1x64x128xbf16>
    %320 = vector.shape_cast %319 : vector<1x64x128xbf16> to vector<64x128xbf16>
    %cst_100 = arith.constant dense<0.000000e+00> : vector<64x256xf32>
    %321 = tpu.matmul %320, %314, %cst_100 {dimension_numbers = #tpu.dot_dimension_numbers<[1], [0], [0], [1], [0, 0, 1, 1], [], []>} : vector<64x128xbf16>, vector<128x256xbf16>, vector<64x256xf32> -> vector<64x256xf32>
    %322 = vector.extract_strided_slice %321 {offsets = [0, 0], sizes = [32, 256], strides = [1, 1]} : vector<64x256xf32> to vector<32x256xf32>
    %323 = arith.mulf %322, %318 : vector<32x256xf32>
    %cst_101 = arith.constant dense<0.000000e+00> : vector<256xf32>
    %324 = vector.multi_reduction <add>, %323, %cst_101 [0] : vector<32x256xf32> to vector<256xf32>
    %325 = vector.shape_cast %324 : vector<256xf32> to vector<1x256xf32>
    %326 = vector.extract_strided_slice %321 {offsets = [32, 0], sizes = [32, 256], strides = [1, 1]} : vector<64x256xf32> to vector<32x256xf32>
    %327 = arith.mulf %326, %318 : vector<32x256xf32>
    %cst_102 = arith.constant dense<0.000000e+00> : vector<256xf32>
    %328 = vector.multi_reduction <add>, %327, %cst_102 [0] : vector<32x256xf32> to vector<256xf32>
    %329 = vector.shape_cast %328 : vector<256xf32> to vector<1x256xf32>
    %330 = tpu.concatenate %325, %329 in 0 : vector<1x256xf32>, vector<1x256xf32> -> vector<2x256xf32>
    %c12 = arith.constant 12 : index
    %c0_103 = arith.constant 0 : index
    %331 = vector.load %arg3[%c12, %c0_103] : memref<32x256xf32, #tpu.memory_space<vmem>>, vector<2x256xf32>
    tpu.vector_store %arg3[%c12, %c0_103], %330 {strides = array<i32>} : memref<32x256xf32, #tpu.memory_space<vmem>>, vector<2x256xf32>,
    %cst_104 = arith.constant 1.520000e+02 : f32
    %332 = vector.broadcast %cst_104 : f32 to vector<3x256xf32>
    %333 = arith.mulf %0, %332 : vector<3x256xf32>
    %334 = math.floor %333 : vector<3x256xf32>
    %cst_105 = arith.constant 0.000000e+00 : f32
    %cst_106 = arith.constant 1.520000e+02 : f32
    %335 = vector.broadcast %cst_105 : f32 to vector<3x256xf32>
    %336 = arith.maximumf %335, %334 : vector<3x256xf32>
    %337 = vector.broadcast %cst_106 : f32 to vector<3x256xf32>
    %338 = arith.minimumf %337, %336 : vector<3x256xf32>
    %339 = arith.fptosi %338 : vector<3x256xf32> to vector<3x256xi32>
    %340 = vector.extract_strided_slice %339 {offsets = [0, 0], sizes = [1, 256], strides = [1, 1]} : vector<3x256xi32> to vector<1x256xi32>
    %c1_i32_107 = arith.constant 1 : i32
    %341 = vector.broadcast %c1_i32_107 : i32 to vector<1x256xi32>
    %342 = arith.muli %340, %341 : vector<1x256xi32>
    %343 = vector.extract_strided_slice %339 {offsets = [1, 0], sizes = [1, 256], strides = [1, 1]} : vector<3x256xi32> to vector<1x256xi32>
    %c2481_i32_108 = arith.constant 2481 : i32
    %344 = vector.broadcast %c2481_i32_108 : i32 to vector<1x256xi32>
    %345 = arith.muli %343, %344 : vector<1x256xi32>
    %346 = arith.addi %342, %345 : vector<1x256xi32>
    %347 = vector.extract_strided_slice %339 {offsets = [2, 0], sizes = [1, 256], strides = [1, 1]} : vector<3x256xi32> to vector<1x256xi32>
    %c1941_i32_109 = arith.constant 1941 : i32
    %348 = vector.broadcast %c1941_i32_109 : i32 to vector<1x256xi32>
    %349 = arith.muli %347, %348 : vector<1x256xi32>
    %350 = arith.addi %346, %349 : vector<1x256xi32>
    %c4095_i32_110 = arith.constant 4095 : i32
    %351 = vector.broadcast %c4095_i32_110 : i32 to vector<1x256xi32>
    %352 = arith.andi %350, %351 : vector<1x256xi32>
    %c5_i32_111 = arith.constant 5 : i32
    %353 = vector.broadcast %c5_i32_111 : i32 to vector<1x256xi32>
    %354 = arith.shrsi %352, %353 : vector<1x256xi32>
    %c31_i32_112 = arith.constant 31 : i32
    %355 = vector.broadcast %c31_i32_112 : i32 to vector<1x256xi32>
    %356 = arith.andi %352, %355 : vector<1x256xi32>
    %357 = vector.broadcast %354 : vector<1x256xi32> to vector<128x256xi32>
    %358 = arith.cmpi eq, %1, %357 : vector<128x256xi32>
    %359 = arith.extui %358 : vector<128x256xi1> to vector<128x256xi32>
    %360 = arith.sitofp %359 : vector<128x256xi32> to vector<128x256xf32>
    %361 = arith.truncf %360 : vector<128x256xf32> to vector<128x256xbf16>
    %362 = vector.broadcast %356 : vector<1x256xi32> to vector<32x256xi32>
    %363 = arith.cmpi eq, %2, %362 : vector<32x256xi32>
    %364 = arith.extui %363 : vector<32x256xi1> to vector<32x256xi32>
    %365 = arith.sitofp %364 : vector<32x256xi32> to vector<32x256xf32>
    %c7 = arith.constant 7 : index
    %c0_113 = arith.constant 0 : index
    %c0_114 = arith.constant 0 : index
    %366 = vector.load %arg2[%c7, %c0_113, %c0_114] : memref<16x64x128xbf16, #tpu.memory_space<vmem>>, vector<1x64x128xbf16>
    %367 = vector.shape_cast %366 : vector<1x64x128xbf16> to vector<64x128xbf16>
    %cst_115 = arith.constant dense<0.000000e+00> : vector<64x256xf32>
    %368 = tpu.matmul %367, %361, %cst_115 {dimension_numbers = #tpu.dot_dimension_numbers<[1], [0], [0], [1], [0, 0, 1, 1], [], []>} : vector<64x128xbf16>, vector<128x256xbf16>, vector<64x256xf32> -> vector<64x256xf32>
    %369 = vector.extract_strided_slice %368 {offsets = [0, 0], sizes = [32, 256], strides = [1, 1]} : vector<64x256xf32> to vector<32x256xf32>
    %370 = arith.mulf %369, %365 : vector<32x256xf32>
    %cst_116 = arith.constant dense<0.000000e+00> : vector<256xf32>
    %371 = vector.multi_reduction <add>, %370, %cst_116 [0] : vector<32x256xf32> to vector<256xf32>
    %372 = vector.shape_cast %371 : vector<256xf32> to vector<1x256xf32>
    %373 = vector.extract_strided_slice %368 {offsets = [32, 0], sizes = [32, 256], strides = [1, 1]} : vector<64x256xf32> to vector<32x256xf32>
    %374 = arith.mulf %373, %365 : vector<32x256xf32>
    %cst_117 = arith.constant dense<0.000000e+00> : vector<256xf32>
    %375 = vector.multi_reduction <add>, %374, %cst_117 [0] : vector<32x256xf32> to vector<256xf32>
    %376 = vector.shape_cast %375 : vector<256xf32> to vector<1x256xf32>
    %377 = tpu.concatenate %372, %376 in 0 : vector<1x256xf32>, vector<1x256xf32> -> vector<2x256xf32>
    %c14 = arith.constant 14 : index
    %c0_118 = arith.constant 0 : index
    %378 = vector.load %arg3[%c14, %c0_118] : memref<32x256xf32, #tpu.memory_space<vmem>>, vector<2x256xf32>
    tpu.vector_store %arg3[%c14, %c0_118], %377 {strides = array<i32>} : memref<32x256xf32, #tpu.memory_space<vmem>>, vector<2x256xf32>,
    %cst_119 = arith.constant 2.110000e+02 : f32
    %379 = vector.broadcast %cst_119 : f32 to vector<3x256xf32>
    %380 = arith.mulf %0, %379 : vector<3x256xf32>
    %381 = math.floor %380 : vector<3x256xf32>
    %cst_120 = arith.constant 0.000000e+00 : f32
    %cst_121 = arith.constant 2.110000e+02 : f32
    %382 = vector.broadcast %cst_120 : f32 to vector<3x256xf32>
    %383 = arith.maximumf %382, %381 : vector<3x256xf32>
    %384 = vector.broadcast %cst_121 : f32 to vector<3x256xf32>
    %385 = arith.minimumf %384, %383 : vector<3x256xf32>
    %386 = arith.fptosi %385 : vector<3x256xf32> to vector<3x256xi32>
    %387 = vector.extract_strided_slice %386 {offsets = [0, 0], sizes = [1, 256], strides = [1, 1]} : vector<3x256xi32> to vector<1x256xi32>
    %c1_i32_122 = arith.constant 1 : i32
    %388 = vector.broadcast %c1_i32_122 : i32 to vector<1x256xi32>
    %389 = arith.muli %387, %388 : vector<1x256xi32>
    %390 = vector.extract_strided_slice %386 {offsets = [1, 0], sizes = [1, 256], strides = [1, 1]} : vector<3x256xi32> to vector<1x256xi32>
    %c2481_i32_123 = arith.constant 2481 : i32
    %391 = vector.broadcast %c2481_i32_123 : i32 to vector<1x256xi32>
    %392 = arith.muli %390, %391 : vector<1x256xi32>
    %393 = arith.addi %389, %392 : vector<1x256xi32>
    %394 = vector.extract_strided_slice %386 {offsets = [2, 0], sizes = [1, 256], strides = [1, 1]} : vector<3x256xi32> to vector<1x256xi32>
    %c1941_i32_124 = arith.constant 1941 : i32
    %395 = vector.broadcast %c1941_i32_124 : i32 to vector<1x256xi32>
    %396 = arith.muli %394, %395 : vector<1x256xi32>
    %397 = arith.addi %393, %396 : vector<1x256xi32>
    %c4095_i32_125 = arith.constant 4095 : i32
    %398 = vector.broadcast %c4095_i32_125 : i32 to vector<1x256xi32>
    %399 = arith.andi %397, %398 : vector<1x256xi32>
    %c5_i32_126 = arith.constant 5 : i32
    %400 = vector.broadcast %c5_i32_126 : i32 to vector<1x256xi32>
    %401 = arith.shrsi %399, %400 : vector<1x256xi32>
    %c31_i32_127 = arith.constant 31 : i32
    %402 = vector.broadcast %c31_i32_127 : i32 to vector<1x256xi32>
    %403 = arith.andi %399, %402 : vector<1x256xi32>
    %404 = vector.broadcast %401 : vector<1x256xi32> to vector<128x256xi32>
    %405 = arith.cmpi eq, %1, %404 : vector<128x256xi32>
    %406 = arith.extui %405 : vector<128x256xi1> to vector<128x256xi32>
    %407 = arith.sitofp %406 : vector<128x256xi32> to vector<128x256xf32>
    %408 = arith.truncf %407 : vector<128x256xf32> to vector<128x256xbf16>
    %409 = vector.broadcast %403 : vector<1x256xi32> to vector<32x256xi32>
    %410 = arith.cmpi eq, %2, %409 : vector<32x256xi32>
    %411 = arith.extui %410 : vector<32x256xi1> to vector<32x256xi32>
    %412 = arith.sitofp %411 : vector<32x256xi32> to vector<32x256xf32>
    %c8_128 = arith.constant 8 : index
    %c0_129 = arith.constant 0 : index
    %c0_130 = arith.constant 0 : index
    %413 = vector.load %arg2[%c8_128, %c0_129, %c0_130] : memref<16x64x128xbf16, #tpu.memory_space<vmem>>, vector<1x64x128xbf16>
    %414 = vector.shape_cast %413 : vector<1x64x128xbf16> to vector<64x128xbf16>
    %cst_131 = arith.constant dense<0.000000e+00> : vector<64x256xf32>
    %415 = tpu.matmul %414, %408, %cst_131 {dimension_numbers = #tpu.dot_dimension_numbers<[1], [0], [0], [1], [0, 0, 1, 1], [], []>} : vector<64x128xbf16>, vector<128x256xbf16>, vector<64x256xf32> -> vector<64x256xf32>
    %416 = vector.extract_strided_slice %415 {offsets = [0, 0], sizes = [32, 256], strides = [1, 1]} : vector<64x256xf32> to vector<32x256xf32>
    %417 = arith.mulf %416, %412 : vector<32x256xf32>
    %cst_132 = arith.constant dense<0.000000e+00> : vector<256xf32>
    %418 = vector.multi_reduction <add>, %417, %cst_132 [0] : vector<32x256xf32> to vector<256xf32>
    %419 = vector.shape_cast %418 : vector<256xf32> to vector<1x256xf32>
    %420 = vector.extract_strided_slice %415 {offsets = [32, 0], sizes = [32, 256], strides = [1, 1]} : vector<64x256xf32> to vector<32x256xf32>
    %421 = arith.mulf %420, %412 : vector<32x256xf32>
    %cst_133 = arith.constant dense<0.000000e+00> : vector<256xf32>
    %422 = vector.multi_reduction <add>, %421, %cst_133 [0] : vector<32x256xf32> to vector<256xf32>
    %423 = vector.shape_cast %422 : vector<256xf32> to vector<1x256xf32>
    %424 = tpu.concatenate %419, %423 in 0 : vector<1x256xf32>, vector<1x256xf32> -> vector<2x256xf32>
    %c16 = arith.constant 16 : index
    %c0_134 = arith.constant 0 : index
    %425 = vector.load %arg3[%c16, %c0_134] : memref<32x256xf32, #tpu.memory_space<vmem>>, vector<2x256xf32>
    tpu.vector_store %arg3[%c16, %c0_134], %424 {strides = array<i32>} : memref<32x256xf32, #tpu.memory_space<vmem>>, vector<2x256xf32>,
    %cst_135 = arith.constant 2.930000e+02 : f32
    %426 = vector.broadcast %cst_135 : f32 to vector<3x256xf32>
    %427 = arith.mulf %0, %426 : vector<3x256xf32>
    %428 = math.floor %427 : vector<3x256xf32>
    %cst_136 = arith.constant 0.000000e+00 : f32
    %cst_137 = arith.constant 2.930000e+02 : f32
    %429 = vector.broadcast %cst_136 : f32 to vector<3x256xf32>
    %430 = arith.maximumf %429, %428 : vector<3x256xf32>
    %431 = vector.broadcast %cst_137 : f32 to vector<3x256xf32>
    %432 = arith.minimumf %431, %430 : vector<3x256xf32>
    %433 = arith.fptosi %432 : vector<3x256xf32> to vector<3x256xi32>
    %434 = vector.extract_strided_slice %433 {offsets = [0, 0], sizes = [1, 256], strides = [1, 1]} : vector<3x256xi32> to vector<1x256xi32>
    %c1_i32_138 = arith.constant 1 : i32
    %435 = vector.broadcast %c1_i32_138 : i32 to vector<1x256xi32>
    %436 = arith.muli %434, %435 : vector<1x256xi32>
    %437 = vector.extract_strided_slice %433 {offsets = [1, 0], sizes = [1, 256], strides = [1, 1]} : vector<3x256xi32> to vector<1x256xi32>
    %c2481_i32_139 = arith.constant 2481 : i32
    %438 = vector.broadcast %c2481_i32_139 : i32 to vector<1x256xi32>
    %439 = arith.muli %437, %438 : vector<1x256xi32>
    %440 = arith.addi %436, %439 : vector<1x256xi32>
    %441 = vector.extract_strided_slice %433 {offsets = [2, 0], sizes = [1, 256], strides = [1, 1]} : vector<3x256xi32> to vector<1x256xi32>
    %c1941_i32_140 = arith.constant 1941 : i32
    %442 = vector.broadcast %c1941_i32_140 : i32 to vector<1x256xi32>
    %443 = arith.muli %441, %442 : vector<1x256xi32>
    %444 = arith.addi %440, %443 : vector<1x256xi32>
    %c4095_i32_141 = arith.constant 4095 : i32
    %445 = vector.broadcast %c4095_i32_141 : i32 to vector<1x256xi32>
    %446 = arith.andi %444, %445 : vector<1x256xi32>
    %c5_i32_142 = arith.constant 5 : i32
    %447 = vector.broadcast %c5_i32_142 : i32 to vector<1x256xi32>
    %448 = arith.shrsi %446, %447 : vector<1x256xi32>
    %c31_i32_143 = arith.constant 31 : i32
    %449 = vector.broadcast %c31_i32_143 : i32 to vector<1x256xi32>
    %450 = arith.andi %446, %449 : vector<1x256xi32>
    %451 = vector.broadcast %448 : vector<1x256xi32> to vector<128x256xi32>
    %452 = arith.cmpi eq, %1, %451 : vector<128x256xi32>
    %453 = arith.extui %452 : vector<128x256xi1> to vector<128x256xi32>
    %454 = arith.sitofp %453 : vector<128x256xi32> to vector<128x256xf32>
    %455 = arith.truncf %454 : vector<128x256xf32> to vector<128x256xbf16>
    %456 = vector.broadcast %450 : vector<1x256xi32> to vector<32x256xi32>
    %457 = arith.cmpi eq, %2, %456 : vector<32x256xi32>
    %458 = arith.extui %457 : vector<32x256xi1> to vector<32x256xi32>
    %459 = arith.sitofp %458 : vector<32x256xi32> to vector<32x256xf32>
    %c9 = arith.constant 9 : index
    %c0_144 = arith.constant 0 : index
    %c0_145 = arith.constant 0 : index
    %460 = vector.load %arg2[%c9, %c0_144, %c0_145] : memref<16x64x128xbf16, #tpu.memory_space<vmem>>, vector<1x64x128xbf16>
    %461 = vector.shape_cast %460 : vector<1x64x128xbf16> to vector<64x128xbf16>
    %cst_146 = arith.constant dense<0.000000e+00> : vector<64x256xf32>
    %462 = tpu.matmul %461, %455, %cst_146 {dimension_numbers = #tpu.dot_dimension_numbers<[1], [0], [0], [1], [0, 0, 1, 1], [], []>} : vector<64x128xbf16>, vector<128x256xbf16>, vector<64x256xf32> -> vector<64x256xf32>
    %463 = vector.extract_strided_slice %462 {offsets = [0, 0], sizes = [32, 256], strides = [1, 1]} : vector<64x256xf32> to vector<32x256xf32>
    %464 = arith.mulf %463, %459 : vector<32x256xf32>
    %cst_147 = arith.constant dense<0.000000e+00> : vector<256xf32>
    %465 = vector.multi_reduction <add>, %464, %cst_147 [0] : vector<32x256xf32> to vector<256xf32>
    %466 = vector.shape_cast %465 : vector<256xf32> to vector<1x256xf32>
    %467 = vector.extract_strided_slice %462 {offsets = [32, 0], sizes = [32, 256], strides = [1, 1]} : vector<64x256xf32> to vector<32x256xf32>
    %468 = arith.mulf %467, %459 : vector<32x256xf32>
    %cst_148 = arith.constant dense<0.000000e+00> : vector<256xf32>
    %469 = vector.multi_reduction <add>, %468, %cst_148 [0] : vector<32x256xf32> to vector<256xf32>
    %470 = vector.shape_cast %469 : vector<256xf32> to vector<1x256xf32>
    %471 = tpu.concatenate %466, %470 in 0 : vector<1x256xf32>, vector<1x256xf32> -> vector<2x256xf32>
    %c18 = arith.constant 18 : index
    %c0_149 = arith.constant 0 : index
    %472 = vector.load %arg3[%c18, %c0_149] : memref<32x256xf32, #tpu.memory_space<vmem>>, vector<2x256xf32>
    tpu.vector_store %arg3[%c18, %c0_149], %471 {strides = array<i32>} : memref<32x256xf32, #tpu.memory_space<vmem>>, vector<2x256xf32>,
    %cst_150 = arith.constant 4.050000e+02 : f32
    %473 = vector.broadcast %cst_150 : f32 to vector<3x256xf32>
    %474 = arith.mulf %0, %473 : vector<3x256xf32>
    %475 = math.floor %474 : vector<3x256xf32>
    %cst_151 = arith.constant 0.000000e+00 : f32
    %cst_152 = arith.constant 4.050000e+02 : f32
    %476 = vector.broadcast %cst_151 : f32 to vector<3x256xf32>
    %477 = arith.maximumf %476, %475 : vector<3x256xf32>
    %478 = vector.broadcast %cst_152 : f32 to vector<3x256xf32>
    %479 = arith.minimumf %478, %477 : vector<3x256xf32>
    %480 = arith.fptosi %479 : vector<3x256xf32> to vector<3x256xi32>
    %481 = vector.extract_strided_slice %480 {offsets = [0, 0], sizes = [1, 256], strides = [1, 1]} : vector<3x256xi32> to vector<1x256xi32>
    %c1_i32_153 = arith.constant 1 : i32
    %482 = vector.broadcast %c1_i32_153 : i32 to vector<1x256xi32>
    %483 = arith.muli %481, %482 : vector<1x256xi32>
    %484 = vector.extract_strided_slice %480 {offsets = [1, 0], sizes = [1, 256], strides = [1, 1]} : vector<3x256xi32> to vector<1x256xi32>
    %c2481_i32_154 = arith.constant 2481 : i32
    %485 = vector.broadcast %c2481_i32_154 : i32 to vector<1x256xi32>
    %486 = arith.muli %484, %485 : vector<1x256xi32>
    %487 = arith.addi %483, %486 : vector<1x256xi32>
    %488 = vector.extract_strided_slice %480 {offsets = [2, 0], sizes = [1, 256], strides = [1, 1]} : vector<3x256xi32> to vector<1x256xi32>
    %c1941_i32_155 = arith.constant 1941 : i32
    %489 = vector.broadcast %c1941_i32_155 : i32 to vector<1x256xi32>
    %490 = arith.muli %488, %489 : vector<1x256xi32>
    %491 = arith.addi %487, %490 : vector<1x256xi32>
    %c4095_i32_156 = arith.constant 4095 : i32
    %492 = vector.broadcast %c4095_i32_156 : i32 to vector<1x256xi32>
    %493 = arith.andi %491, %492 : vector<1x256xi32>
    %c5_i32_157 = arith.constant 5 : i32
    %494 = vector.broadcast %c5_i32_157 : i32 to vector<1x256xi32>
    %495 = arith.shrsi %493, %494 : vector<1x256xi32>
    %c31_i32_158 = arith.constant 31 : i32
    %496 = vector.broadcast %c31_i32_158 : i32 to vector<1x256xi32>
    %497 = arith.andi %493, %496 : vector<1x256xi32>
    %498 = vector.broadcast %495 : vector<1x256xi32> to vector<128x256xi32>
    %499 = arith.cmpi eq, %1, %498 : vector<128x256xi32>
    %500 = arith.extui %499 : vector<128x256xi1> to vector<128x256xi32>
    %501 = arith.sitofp %500 : vector<128x256xi32> to vector<128x256xf32>
    %502 = arith.truncf %501 : vector<128x256xf32> to vector<128x256xbf16>
    %503 = vector.broadcast %497 : vector<1x256xi32> to vector<32x256xi32>
    %504 = arith.cmpi eq, %2, %503 : vector<32x256xi32>
    %505 = arith.extui %504 : vector<32x256xi1> to vector<32x256xi32>
    %506 = arith.sitofp %505 : vector<32x256xi32> to vector<32x256xf32>
    %c10_159 = arith.constant 10 : index
    %c0_160 = arith.constant 0 : index
    %c0_161 = arith.constant 0 : index
    %507 = vector.load %arg2[%c10_159, %c0_160, %c0_161] : memref<16x64x128xbf16, #tpu.memory_space<vmem>>, vector<1x64x128xbf16>
    %508 = vector.shape_cast %507 : vector<1x64x128xbf16> to vector<64x128xbf16>
    %cst_162 = arith.constant dense<0.000000e+00> : vector<64x256xf32>
    %509 = tpu.matmul %508, %502, %cst_162 {dimension_numbers = #tpu.dot_dimension_numbers<[1], [0], [0], [1], [0, 0, 1, 1], [], []>} : vector<64x128xbf16>, vector<128x256xbf16>, vector<64x256xf32> -> vector<64x256xf32>
    %510 = vector.extract_strided_slice %509 {offsets = [0, 0], sizes = [32, 256], strides = [1, 1]} : vector<64x256xf32> to vector<32x256xf32>
    %511 = arith.mulf %510, %506 : vector<32x256xf32>
    %cst_163 = arith.constant dense<0.000000e+00> : vector<256xf32>
    %512 = vector.multi_reduction <add>, %511, %cst_163 [0] : vector<32x256xf32> to vector<256xf32>
    %513 = vector.shape_cast %512 : vector<256xf32> to vector<1x256xf32>
    %514 = vector.extract_strided_slice %509 {offsets = [32, 0], sizes = [32, 256], strides = [1, 1]} : vector<64x256xf32> to vector<32x256xf32>
    %515 = arith.mulf %514, %506 : vector<32x256xf32>
    %cst_164 = arith.constant dense<0.000000e+00> : vector<256xf32>
    %516 = vector.multi_reduction <add>, %515, %cst_164 [0] : vector<32x256xf32> to vector<256xf32>
    %517 = vector.shape_cast %516 : vector<256xf32> to vector<1x256xf32>
    %518 = tpu.concatenate %513, %517 in 0 : vector<1x256xf32>, vector<1x256xf32> -> vector<2x256xf32>
    %c20 = arith.constant 20 : index
    %c0_165 = arith.constant 0 : index
    %519 = vector.load %arg3[%c20, %c0_165] : memref<32x256xf32, #tpu.memory_space<vmem>>, vector<2x256xf32>
    tpu.vector_store %arg3[%c20, %c0_165], %518 {strides = array<i32>} : memref<32x256xf32, #tpu.memory_space<vmem>>, vector<2x256xf32>,
    %cst_166 = arith.constant 5.600000e+02 : f32
    %520 = vector.broadcast %cst_166 : f32 to vector<3x256xf32>
    %521 = arith.mulf %0, %520 : vector<3x256xf32>
    %522 = math.floor %521 : vector<3x256xf32>
    %cst_167 = arith.constant 0.000000e+00 : f32
    %cst_168 = arith.constant 5.600000e+02 : f32
    %523 = vector.broadcast %cst_167 : f32 to vector<3x256xf32>
    %524 = arith.maximumf %523, %522 : vector<3x256xf32>
    %525 = vector.broadcast %cst_168 : f32 to vector<3x256xf32>
    %526 = arith.minimumf %525, %524 : vector<3x256xf32>
    %527 = arith.fptosi %526 : vector<3x256xf32> to vector<3x256xi32>
    %528 = vector.extract_strided_slice %527 {offsets = [0, 0], sizes = [1, 256], strides = [1, 1]} : vector<3x256xi32> to vector<1x256xi32>
    %c1_i32_169 = arith.constant 1 : i32
    %529 = vector.broadcast %c1_i32_169 : i32 to vector<1x256xi32>
    %530 = arith.muli %528, %529 : vector<1x256xi32>
    %531 = vector.extract_strided_slice %527 {offsets = [1, 0], sizes = [1, 256], strides = [1, 1]} : vector<3x256xi32> to vector<1x256xi32>
    %c2481_i32_170 = arith.constant 2481 : i32
    %532 = vector.broadcast %c2481_i32_170 : i32 to vector<1x256xi32>
    %533 = arith.muli %531, %532 : vector<1x256xi32>
    %534 = arith.addi %530, %533 : vector<1x256xi32>
    %535 = vector.extract_strided_slice %527 {offsets = [2, 0], sizes = [1, 256], strides = [1, 1]} : vector<3x256xi32> to vector<1x256xi32>
    %c1941_i32_171 = arith.constant 1941 : i32
    %536 = vector.broadcast %c1941_i32_171 : i32 to vector<1x256xi32>
    %537 = arith.muli %535, %536 : vector<1x256xi32>
    %538 = arith.addi %534, %537 : vector<1x256xi32>
    %c4095_i32_172 = arith.constant 4095 : i32
    %539 = vector.broadcast %c4095_i32_172 : i32 to vector<1x256xi32>
    %540 = arith.andi %538, %539 : vector<1x256xi32>
    %c5_i32_173 = arith.constant 5 : i32
    %541 = vector.broadcast %c5_i32_173 : i32 to vector<1x256xi32>
    %542 = arith.shrsi %540, %541 : vector<1x256xi32>
    %c31_i32_174 = arith.constant 31 : i32
    %543 = vector.broadcast %c31_i32_174 : i32 to vector<1x256xi32>
    %544 = arith.andi %540, %543 : vector<1x256xi32>
    %545 = vector.broadcast %542 : vector<1x256xi32> to vector<128x256xi32>
    %546 = arith.cmpi eq, %1, %545 : vector<128x256xi32>
    %547 = arith.extui %546 : vector<128x256xi1> to vector<128x256xi32>
    %548 = arith.sitofp %547 : vector<128x256xi32> to vector<128x256xf32>
    %549 = arith.truncf %548 : vector<128x256xf32> to vector<128x256xbf16>
    %550 = vector.broadcast %544 : vector<1x256xi32> to vector<32x256xi32>
    %551 = arith.cmpi eq, %2, %550 : vector<32x256xi32>
    %552 = arith.extui %551 : vector<32x256xi1> to vector<32x256xi32>
    %553 = arith.sitofp %552 : vector<32x256xi32> to vector<32x256xf32>
    %c11 = arith.constant 11 : index
    %c0_175 = arith.constant 0 : index
    %c0_176 = arith.constant 0 : index
    %554 = vector.load %arg2[%c11, %c0_175, %c0_176] : memref<16x64x128xbf16, #tpu.memory_space<vmem>>, vector<1x64x128xbf16>
    %555 = vector.shape_cast %554 : vector<1x64x128xbf16> to vector<64x128xbf16>
    %cst_177 = arith.constant dense<0.000000e+00> : vector<64x256xf32>
    %556 = tpu.matmul %555, %549, %cst_177 {dimension_numbers = #tpu.dot_dimension_numbers<[1], [0], [0], [1], [0, 0, 1, 1], [], []>} : vector<64x128xbf16>, vector<128x256xbf16>, vector<64x256xf32> -> vector<64x256xf32>
    %557 = vector.extract_strided_slice %556 {offsets = [0, 0], sizes = [32, 256], strides = [1, 1]} : vector<64x256xf32> to vector<32x256xf32>
    %558 = arith.mulf %557, %553 : vector<32x256xf32>
    %cst_178 = arith.constant dense<0.000000e+00> : vector<256xf32>
    %559 = vector.multi_reduction <add>, %558, %cst_178 [0] : vector<32x256xf32> to vector<256xf32>
    %560 = vector.shape_cast %559 : vector<256xf32> to vector<1x256xf32>
    %561 = vector.extract_strided_slice %556 {offsets = [32, 0], sizes = [32, 256], strides = [1, 1]} : vector<64x256xf32> to vector<32x256xf32>
    %562 = arith.mulf %561, %553 : vector<32x256xf32>
    %cst_179 = arith.constant dense<0.000000e+00> : vector<256xf32>
    %563 = vector.multi_reduction <add>, %562, %cst_179 [0] : vector<32x256xf32> to vector<256xf32>
    %564 = vector.shape_cast %563 : vector<256xf32> to vector<1x256xf32>
    %565 = tpu.concatenate %560, %564 in 0 : vector<1x256xf32>, vector<1x256xf32> -> vector<2x256xf32>
    %c22 = arith.constant 22 : index
    %c0_180 = arith.constant 0 : index
    %566 = vector.load %arg3[%c22, %c0_180] : memref<32x256xf32, #tpu.memory_space<vmem>>, vector<2x256xf32>
    tpu.vector_store %arg3[%c22, %c0_180], %565 {strides = array<i32>} : memref<32x256xf32, #tpu.memory_space<vmem>>, vector<2x256xf32>,
    %cst_181 = arith.constant 7.750000e+02 : f32
    %567 = vector.broadcast %cst_181 : f32 to vector<3x256xf32>
    %568 = arith.mulf %0, %567 : vector<3x256xf32>
    %569 = math.floor %568 : vector<3x256xf32>
    %cst_182 = arith.constant 0.000000e+00 : f32
    %cst_183 = arith.constant 7.750000e+02 : f32
    %570 = vector.broadcast %cst_182 : f32 to vector<3x256xf32>
    %571 = arith.maximumf %570, %569 : vector<3x256xf32>
    %572 = vector.broadcast %cst_183 : f32 to vector<3x256xf32>
    %573 = arith.minimumf %572, %571 : vector<3x256xf32>
    %574 = arith.fptosi %573 : vector<3x256xf32> to vector<3x256xi32>
    %575 = vector.extract_strided_slice %574 {offsets = [0, 0], sizes = [1, 256], strides = [1, 1]} : vector<3x256xi32> to vector<1x256xi32>
    %c1_i32_184 = arith.constant 1 : i32
    %576 = vector.broadcast %c1_i32_184 : i32 to vector<1x256xi32>
    %577 = arith.muli %575, %576 : vector<1x256xi32>
    %578 = vector.extract_strided_slice %574 {offsets = [1, 0], sizes = [1, 256], strides = [1, 1]} : vector<3x256xi32> to vector<1x256xi32>
    %c2481_i32_185 = arith.constant 2481 : i32
    %579 = vector.broadcast %c2481_i32_185 : i32 to vector<1x256xi32>
    %580 = arith.muli %578, %579 : vector<1x256xi32>
    %581 = arith.addi %577, %580 : vector<1x256xi32>
    %582 = vector.extract_strided_slice %574 {offsets = [2, 0], sizes = [1, 256], strides = [1, 1]} : vector<3x256xi32> to vector<1x256xi32>
    %c1941_i32_186 = arith.constant 1941 : i32
    %583 = vector.broadcast %c1941_i32_186 : i32 to vector<1x256xi32>
    %584 = arith.muli %582, %583 : vector<1x256xi32>
    %585 = arith.addi %581, %584 : vector<1x256xi32>
    %c4095_i32_187 = arith.constant 4095 : i32
    %586 = vector.broadcast %c4095_i32_187 : i32 to vector<1x256xi32>
    %587 = arith.andi %585, %586 : vector<1x256xi32>
    %c5_i32_188 = arith.constant 5 : i32
    %588 = vector.broadcast %c5_i32_188 : i32 to vector<1x256xi32>
    %589 = arith.shrsi %587, %588 : vector<1x256xi32>
    %c31_i32_189 = arith.constant 31 : i32
    %590 = vector.broadcast %c31_i32_189 : i32 to vector<1x256xi32>
    %591 = arith.andi %587, %590 : vector<1x256xi32>
    %592 = vector.broadcast %589 : vector<1x256xi32> to vector<128x256xi32>
    %593 = arith.cmpi eq, %1, %592 : vector<128x256xi32>
    %594 = arith.extui %593 : vector<128x256xi1> to vector<128x256xi32>
    %595 = arith.sitofp %594 : vector<128x256xi32> to vector<128x256xf32>
    %596 = arith.truncf %595 : vector<128x256xf32> to vector<128x256xbf16>
    %597 = vector.broadcast %591 : vector<1x256xi32> to vector<32x256xi32>
    %598 = arith.cmpi eq, %2, %597 : vector<32x256xi32>
    %599 = arith.extui %598 : vector<32x256xi1> to vector<32x256xi32>
    %600 = arith.sitofp %599 : vector<32x256xi32> to vector<32x256xf32>
    %c12_190 = arith.constant 12 : index
    %c0_191 = arith.constant 0 : index
    %c0_192 = arith.constant 0 : index
    %601 = vector.load %arg2[%c12_190, %c0_191, %c0_192] : memref<16x64x128xbf16, #tpu.memory_space<vmem>>, vector<1x64x128xbf16>
    %602 = vector.shape_cast %601 : vector<1x64x128xbf16> to vector<64x128xbf16>
    %cst_193 = arith.constant dense<0.000000e+00> : vector<64x256xf32>
    %603 = tpu.matmul %602, %596, %cst_193 {dimension_numbers = #tpu.dot_dimension_numbers<[1], [0], [0], [1], [0, 0, 1, 1], [], []>} : vector<64x128xbf16>, vector<128x256xbf16>, vector<64x256xf32> -> vector<64x256xf32>
    %604 = vector.extract_strided_slice %603 {offsets = [0, 0], sizes = [32, 256], strides = [1, 1]} : vector<64x256xf32> to vector<32x256xf32>
    %605 = arith.mulf %604, %600 : vector<32x256xf32>
    %cst_194 = arith.constant dense<0.000000e+00> : vector<256xf32>
    %606 = vector.multi_reduction <add>, %605, %cst_194 [0] : vector<32x256xf32> to vector<256xf32>
    %607 = vector.shape_cast %606 : vector<256xf32> to vector<1x256xf32>
    %608 = vector.extract_strided_slice %603 {offsets = [32, 0], sizes = [32, 256], strides = [1, 1]} : vector<64x256xf32> to vector<32x256xf32>
    %609 = arith.mulf %608, %600 : vector<32x256xf32>
    %cst_195 = arith.constant dense<0.000000e+00> : vector<256xf32>
    %610 = vector.multi_reduction <add>, %609, %cst_195 [0] : vector<32x256xf32> to vector<256xf32>
    %611 = vector.shape_cast %610 : vector<256xf32> to vector<1x256xf32>
    %612 = tpu.concatenate %607, %611 in 0 : vector<1x256xf32>, vector<1x256xf32> -> vector<2x256xf32>
    %c24 = arith.constant 24 : index
    %c0_196 = arith.constant 0 : index
    %613 = vector.load %arg3[%c24, %c0_196] : memref<32x256xf32, #tpu.memory_space<vmem>>, vector<2x256xf32>
    tpu.vector_store %arg3[%c24, %c0_196], %612 {strides = array<i32>} : memref<32x256xf32, #tpu.memory_space<vmem>>, vector<2x256xf32>,
    %cst_197 = arith.constant 1.071000e+03 : f32
    %614 = vector.broadcast %cst_197 : f32 to vector<3x256xf32>
    %615 = arith.mulf %0, %614 : vector<3x256xf32>
    %616 = math.floor %615 : vector<3x256xf32>
    %cst_198 = arith.constant 0.000000e+00 : f32
    %cst_199 = arith.constant 1.071000e+03 : f32
    %617 = vector.broadcast %cst_198 : f32 to vector<3x256xf32>
    %618 = arith.maximumf %617, %616 : vector<3x256xf32>
    %619 = vector.broadcast %cst_199 : f32 to vector<3x256xf32>
    %620 = arith.minimumf %619, %618 : vector<3x256xf32>
    %621 = arith.fptosi %620 : vector<3x256xf32> to vector<3x256xi32>
    %622 = vector.extract_strided_slice %621 {offsets = [0, 0], sizes = [1, 256], strides = [1, 1]} : vector<3x256xi32> to vector<1x256xi32>
    %c1_i32_200 = arith.constant 1 : i32
    %623 = vector.broadcast %c1_i32_200 : i32 to vector<1x256xi32>
    %624 = arith.muli %622, %623 : vector<1x256xi32>
    %625 = vector.extract_strided_slice %621 {offsets = [1, 0], sizes = [1, 256], strides = [1, 1]} : vector<3x256xi32> to vector<1x256xi32>
    %c2481_i32_201 = arith.constant 2481 : i32
    %626 = vector.broadcast %c2481_i32_201 : i32 to vector<1x256xi32>
    %627 = arith.muli %625, %626 : vector<1x256xi32>
    %628 = arith.addi %624, %627 : vector<1x256xi32>
    %629 = vector.extract_strided_slice %621 {offsets = [2, 0], sizes = [1, 256], strides = [1, 1]} : vector<3x256xi32> to vector<1x256xi32>
    %c1941_i32_202 = arith.constant 1941 : i32
    %630 = vector.broadcast %c1941_i32_202 : i32 to vector<1x256xi32>
    %631 = arith.muli %629, %630 : vector<1x256xi32>
    %632 = arith.addi %628, %631 : vector<1x256xi32>
    %c4095_i32_203 = arith.constant 4095 : i32
    %633 = vector.broadcast %c4095_i32_203 : i32 to vector<1x256xi32>
    %634 = arith.andi %632, %633 : vector<1x256xi32>
    %c5_i32_204 = arith.constant 5 : i32
    %635 = vector.broadcast %c5_i32_204 : i32 to vector<1x256xi32>
    %636 = arith.shrsi %634, %635 : vector<1x256xi32>
    %c31_i32_205 = arith.constant 31 : i32
    %637 = vector.broadcast %c31_i32_205 : i32 to vector<1x256xi32>
    %638 = arith.andi %634, %637 : vector<1x256xi32>
    %639 = vector.broadcast %636 : vector<1x256xi32> to vector<128x256xi32>
    %640 = arith.cmpi eq, %1, %639 : vector<128x256xi32>
    %641 = arith.extui %640 : vector<128x256xi1> to vector<128x256xi32>
    %642 = arith.sitofp %641 : vector<128x256xi32> to vector<128x256xf32>
    %643 = arith.truncf %642 : vector<128x256xf32> to vector<128x256xbf16>
    %644 = vector.broadcast %638 : vector<1x256xi32> to vector<32x256xi32>
    %645 = arith.cmpi eq, %2, %644 : vector<32x256xi32>
    %646 = arith.extui %645 : vector<32x256xi1> to vector<32x256xi32>
    %647 = arith.sitofp %646 : vector<32x256xi32> to vector<32x256xf32>
    %c13 = arith.constant 13 : index
    %c0_206 = arith.constant 0 : index
    %c0_207 = arith.constant 0 : index
    %648 = vector.load %arg2[%c13, %c0_206, %c0_207] : memref<16x64x128xbf16, #tpu.memory_space<vmem>>, vector<1x64x128xbf16>
    %649 = vector.shape_cast %648 : vector<1x64x128xbf16> to vector<64x128xbf16>
    %cst_208 = arith.constant dense<0.000000e+00> : vector<64x256xf32>
    %650 = tpu.matmul %649, %643, %cst_208 {dimension_numbers = #tpu.dot_dimension_numbers<[1], [0], [0], [1], [0, 0, 1, 1], [], []>} : vector<64x128xbf16>, vector<128x256xbf16>, vector<64x256xf32> -> vector<64x256xf32>
    %651 = vector.extract_strided_slice %650 {offsets = [0, 0], sizes = [32, 256], strides = [1, 1]} : vector<64x256xf32> to vector<32x256xf32>
    %652 = arith.mulf %651, %647 : vector<32x256xf32>
    %cst_209 = arith.constant dense<0.000000e+00> : vector<256xf32>
    %653 = vector.multi_reduction <add>, %652, %cst_209 [0] : vector<32x256xf32> to vector<256xf32>
    %654 = vector.shape_cast %653 : vector<256xf32> to vector<1x256xf32>
    %655 = vector.extract_strided_slice %650 {offsets = [32, 0], sizes = [32, 256], strides = [1, 1]} : vector<64x256xf32> to vector<32x256xf32>
    %656 = arith.mulf %655, %647 : vector<32x256xf32>
    %cst_210 = arith.constant dense<0.000000e+00> : vector<256xf32>
    %657 = vector.multi_reduction <add>, %656, %cst_210 [0] : vector<32x256xf32> to vector<256xf32>
    %658 = vector.shape_cast %657 : vector<256xf32> to vector<1x256xf32>
    %659 = tpu.concatenate %654, %658 in 0 : vector<1x256xf32>, vector<1x256xf32> -> vector<2x256xf32>
    %c26 = arith.constant 26 : index
    %c0_211 = arith.constant 0 : index
    %660 = vector.load %arg3[%c26, %c0_211] : memref<32x256xf32, #tpu.memory_space<vmem>>, vector<2x256xf32>
    tpu.vector_store %arg3[%c26, %c0_211], %659 {strides = array<i32>} : memref<32x256xf32, #tpu.memory_space<vmem>>, vector<2x256xf32>,
    %cst_212 = arith.constant 1.481000e+03 : f32
    %661 = vector.broadcast %cst_212 : f32 to vector<3x256xf32>
    %662 = arith.mulf %0, %661 : vector<3x256xf32>
    %663 = math.floor %662 : vector<3x256xf32>
    %cst_213 = arith.constant 0.000000e+00 : f32
    %cst_214 = arith.constant 1.481000e+03 : f32
    %664 = vector.broadcast %cst_213 : f32 to vector<3x256xf32>
    %665 = arith.maximumf %664, %663 : vector<3x256xf32>
    %666 = vector.broadcast %cst_214 : f32 to vector<3x256xf32>
    %667 = arith.minimumf %666, %665 : vector<3x256xf32>
    %668 = arith.fptosi %667 : vector<3x256xf32> to vector<3x256xi32>
    %669 = vector.extract_strided_slice %668 {offsets = [0, 0], sizes = [1, 256], strides = [1, 1]} : vector<3x256xi32> to vector<1x256xi32>
    %c1_i32_215 = arith.constant 1 : i32
    %670 = vector.broadcast %c1_i32_215 : i32 to vector<1x256xi32>
    %671 = arith.muli %669, %670 : vector<1x256xi32>
    %672 = vector.extract_strided_slice %668 {offsets = [1, 0], sizes = [1, 256], strides = [1, 1]} : vector<3x256xi32> to vector<1x256xi32>
    %c2481_i32_216 = arith.constant 2481 : i32
    %673 = vector.broadcast %c2481_i32_216 : i32 to vector<1x256xi32>
    %674 = arith.muli %672, %673 : vector<1x256xi32>
    %675 = arith.addi %671, %674 : vector<1x256xi32>
    %676 = vector.extract_strided_slice %668 {offsets = [2, 0], sizes = [1, 256], strides = [1, 1]} : vector<3x256xi32> to vector<1x256xi32>
    %c1941_i32_217 = arith.constant 1941 : i32
    %677 = vector.broadcast %c1941_i32_217 : i32 to vector<1x256xi32>
    %678 = arith.muli %676, %677 : vector<1x256xi32>
    %679 = arith.addi %675, %678 : vector<1x256xi32>
    %c4095_i32_218 = arith.constant 4095 : i32
    %680 = vector.broadcast %c4095_i32_218 : i32 to vector<1x256xi32>
    %681 = arith.andi %679, %680 : vector<1x256xi32>
    %c5_i32_219 = arith.constant 5 : i32
    %682 = vector.broadcast %c5_i32_219 : i32 to vector<1x256xi32>
    %683 = arith.shrsi %681, %682 : vector<1x256xi32>
    %c31_i32_220 = arith.constant 31 : i32
    %684 = vector.broadcast %c31_i32_220 : i32 to vector<1x256xi32>
    %685 = arith.andi %681, %684 : vector<1x256xi32>
    %686 = vector.broadcast %683 : vector<1x256xi32> to vector<128x256xi32>
    %687 = arith.cmpi eq, %1, %686 : vector<128x256xi32>
    %688 = arith.extui %687 : vector<128x256xi1> to vector<128x256xi32>
    %689 = arith.sitofp %688 : vector<128x256xi32> to vector<128x256xf32>
    %690 = arith.truncf %689 : vector<128x256xf32> to vector<128x256xbf16>
    %691 = vector.broadcast %685 : vector<1x256xi32> to vector<32x256xi32>
    %692 = arith.cmpi eq, %2, %691 : vector<32x256xi32>
    %693 = arith.extui %692 : vector<32x256xi1> to vector<32x256xi32>
    %694 = arith.sitofp %693 : vector<32x256xi32> to vector<32x256xf32>
    %c14_221 = arith.constant 14 : index
    %c0_222 = arith.constant 0 : index
    %c0_223 = arith.constant 0 : index
    %695 = vector.load %arg2[%c14_221, %c0_222, %c0_223] : memref<16x64x128xbf16, #tpu.memory_space<vmem>>, vector<1x64x128xbf16>
    %696 = vector.shape_cast %695 : vector<1x64x128xbf16> to vector<64x128xbf16>
    %cst_224 = arith.constant dense<0.000000e+00> : vector<64x256xf32>
    %697 = tpu.matmul %696, %690, %cst_224 {dimension_numbers = #tpu.dot_dimension_numbers<[1], [0], [0], [1], [0, 0, 1, 1], [], []>} : vector<64x128xbf16>, vector<128x256xbf16>, vector<64x256xf32> -> vector<64x256xf32>
    %698 = vector.extract_strided_slice %697 {offsets = [0, 0], sizes = [32, 256], strides = [1, 1]} : vector<64x256xf32> to vector<32x256xf32>
    %699 = arith.mulf %698, %694 : vector<32x256xf32>
    %cst_225 = arith.constant dense<0.000000e+00> : vector<256xf32>
    %700 = vector.multi_reduction <add>, %699, %cst_225 [0] : vector<32x256xf32> to vector<256xf32>
    %701 = vector.shape_cast %700 : vector<256xf32> to vector<1x256xf32>
    %702 = vector.extract_strided_slice %697 {offsets = [32, 0], sizes = [32, 256], strides = [1, 1]} : vector<64x256xf32> to vector<32x256xf32>
    %703 = arith.mulf %702, %694 : vector<32x256xf32>
    %cst_226 = arith.constant dense<0.000000e+00> : vector<256xf32>
    %704 = vector.multi_reduction <add>, %703, %cst_226 [0] : vector<32x256xf32> to vector<256xf32>
    %705 = vector.shape_cast %704 : vector<256xf32> to vector<1x256xf32>
    %706 = tpu.concatenate %701, %705 in 0 : vector<1x256xf32>, vector<1x256xf32> -> vector<2x256xf32>
    %c28 = arith.constant 28 : index
    %c0_227 = arith.constant 0 : index
    %707 = vector.load %arg3[%c28, %c0_227] : memref<32x256xf32, #tpu.memory_space<vmem>>, vector<2x256xf32>
    tpu.vector_store %arg3[%c28, %c0_227], %706 {strides = array<i32>} : memref<32x256xf32, #tpu.memory_space<vmem>>, vector<2x256xf32>,
    %cst_228 = arith.constant 2.047000e+03 : f32
    %708 = vector.broadcast %cst_228 : f32 to vector<3x256xf32>
    %709 = arith.mulf %0, %708 : vector<3x256xf32>
    %710 = math.floor %709 : vector<3x256xf32>
    %cst_229 = arith.constant 0.000000e+00 : f32
    %cst_230 = arith.constant 2.047000e+03 : f32
    %711 = vector.broadcast %cst_229 : f32 to vector<3x256xf32>
    %712 = arith.maximumf %711, %710 : vector<3x256xf32>
    %713 = vector.broadcast %cst_230 : f32 to vector<3x256xf32>
    %714 = arith.minimumf %713, %712 : vector<3x256xf32>
    %715 = arith.fptosi %714 : vector<3x256xf32> to vector<3x256xi32>
    %716 = vector.extract_strided_slice %715 {offsets = [0, 0], sizes = [1, 256], strides = [1, 1]} : vector<3x256xi32> to vector<1x256xi32>
    %c1_i32_231 = arith.constant 1 : i32
    %717 = vector.broadcast %c1_i32_231 : i32 to vector<1x256xi32>
    %718 = arith.muli %716, %717 : vector<1x256xi32>
    %719 = vector.extract_strided_slice %715 {offsets = [1, 0], sizes = [1, 256], strides = [1, 1]} : vector<3x256xi32> to vector<1x256xi32>
    %c2481_i32_232 = arith.constant 2481 : i32
    %720 = vector.broadcast %c2481_i32_232 : i32 to vector<1x256xi32>
    %721 = arith.muli %719, %720 : vector<1x256xi32>
    %722 = arith.addi %718, %721 : vector<1x256xi32>
    %723 = vector.extract_strided_slice %715 {offsets = [2, 0], sizes = [1, 256], strides = [1, 1]} : vector<3x256xi32> to vector<1x256xi32>
    %c1941_i32_233 = arith.constant 1941 : i32
    %724 = vector.broadcast %c1941_i32_233 : i32 to vector<1x256xi32>
    %725 = arith.muli %723, %724 : vector<1x256xi32>
    %726 = arith.addi %722, %725 : vector<1x256xi32>
    %c4095_i32_234 = arith.constant 4095 : i32
    %727 = vector.broadcast %c4095_i32_234 : i32 to vector<1x256xi32>
    %728 = arith.andi %726, %727 : vector<1x256xi32>
    %c5_i32_235 = arith.constant 5 : i32
    %729 = vector.broadcast %c5_i32_235 : i32 to vector<1x256xi32>
    %730 = arith.shrsi %728, %729 : vector<1x256xi32>
    %c31_i32_236 = arith.constant 31 : i32
    %731 = vector.broadcast %c31_i32_236 : i32 to vector<1x256xi32>
    %732 = arith.andi %728, %731 : vector<1x256xi32>
    %733 = vector.broadcast %730 : vector<1x256xi32> to vector<128x256xi32>
    %734 = arith.cmpi eq, %1, %733 : vector<128x256xi32>
    %735 = arith.extui %734 : vector<128x256xi1> to vector<128x256xi32>
    %736 = arith.sitofp %735 : vector<128x256xi32> to vector<128x256xf32>
    %737 = arith.truncf %736 : vector<128x256xf32> to vector<128x256xbf16>
    %738 = vector.broadcast %732 : vector<1x256xi32> to vector<32x256xi32>
    %739 = arith.cmpi eq, %2, %738 : vector<32x256xi32>
    %740 = arith.extui %739 : vector<32x256xi1> to vector<32x256xi32>
    %741 = arith.sitofp %740 : vector<32x256xi32> to vector<32x256xf32>
    %c15 = arith.constant 15 : index
    %c0_237 = arith.constant 0 : index
    %c0_238 = arith.constant 0 : index
    %742 = vector.load %arg2[%c15, %c0_237, %c0_238] : memref<16x64x128xbf16, #tpu.memory_space<vmem>>, vector<1x64x128xbf16>
    %743 = vector.shape_cast %742 : vector<1x64x128xbf16> to vector<64x128xbf16>
    %cst_239 = arith.constant dense<0.000000e+00> : vector<64x256xf32>
    %744 = tpu.matmul %743, %737, %cst_239 {dimension_numbers = #tpu.dot_dimension_numbers<[1], [0], [0], [1], [0, 0, 1, 1], [], []>} : vector<64x128xbf16>, vector<128x256xbf16>, vector<64x256xf32> -> vector<64x256xf32>
    %745 = vector.extract_strided_slice %744 {offsets = [0, 0], sizes = [32, 256], strides = [1, 1]} : vector<64x256xf32> to vector<32x256xf32>
    %746 = arith.mulf %745, %741 : vector<32x256xf32>
    %cst_240 = arith.constant dense<0.000000e+00> : vector<256xf32>
    %747 = vector.multi_reduction <add>, %746, %cst_240 [0] : vector<32x256xf32> to vector<256xf32>
    %748 = vector.shape_cast %747 : vector<256xf32> to vector<1x256xf32>
    %749 = vector.extract_strided_slice %744 {offsets = [32, 0], sizes = [32, 256], strides = [1, 1]} : vector<64x256xf32> to vector<32x256xf32>
    %750 = arith.mulf %749, %741 : vector<32x256xf32>
    %cst_241 = arith.constant dense<0.000000e+00> : vector<256xf32>
    %751 = vector.multi_reduction <add>, %750, %cst_241 [0] : vector<32x256xf32> to vector<256xf32>
    %752 = vector.shape_cast %751 : vector<256xf32> to vector<1x256xf32>
    %753 = tpu.concatenate %748, %752 in 0 : vector<1x256xf32>, vector<1x256xf32> -> vector<2x256xf32>
    %c30 = arith.constant 30 : index
    %c0_242 = arith.constant 0 : index
    %754 = vector.load %arg3[%c30, %c0_242] : memref<32x256xf32, #tpu.memory_space<vmem>>, vector<2x256xf32>
    tpu.vector_store %arg3[%c30, %c0_242], %753 {strides = array<i32>} : memref<32x256xf32, #tpu.memory_space<vmem>>, vector<2x256xf32>,
    return
  }
  func.func @transform_0(%arg0: i32) -> (i32, i32) {
    %c0_i32 = arith.constant 0 : i32
    %c0_i32_0 = arith.constant 0 : i32
    return %c0_i32, %arg0 : i32, i32
  }
  func.func @transform_1(%arg0: i32) -> (i32, i32, i32) {
    %c0_i32 = arith.constant 0 : i32
    %c0_i32_0 = arith.constant 0 : i32
    %c0_i32_1 = arith.constant 0 : i32
    %c0_i32_2 = arith.constant 0 : i32
    return %c0_i32, %c0_i32_0, %c0_i32_1 : i32, i32, i32
  }
  func.func @transform_2(%arg0: i32) -> (i32, i32) {
    %c0_i32 = arith.constant 0 : i32
    %c0_i32_0 = arith.constant 0 : i32
    return %c0_i32, %arg0 : i32, i32
  }
}

</mosaic_0001>

<bundles_post_ra>
// kernel: _hash_encoding_impl.1
= control target key start
LH: loop header
LB: loop body
LE: loop exit
PB: predicated region body
PF: predicated region fallthrough
CT: control target
= control target key end

     0   :  { %s7407_s9 = smov 0   ;;  %s7409_s10 = smov 0   ;;  %s12308_s0 = inlined_call_operand.vmem [shape: f32[3,512], index: 0, kind: input, shape index: {}]   ;;  %s12309_s1 = inlined_call_operand.vmem [shape: bf16[16,64,128], index: 1, kind: input, shape index: {}]   ;;  %s12310_s2 = inlined_call_operand.vmem [shape: f32[32,512], index: 2, kind: output, shape index: {}]  }
   0x1   :  { %s7411_s11 = smov 0  }
   0x2 LB: > { %s7420_s12 = sadd.s32 4294967295, %s7387_s11   ;;  %s7422_s13 = sadd.s32 1, %s7387_s11   ;;  %s7387_s11 = sphi %s7411_s11, %s12696_s11   ;;  %s7383_s10 = sphi %s7409_s10, %s12695_s10   ;;  %s7379_s9 = sphi %s7407_s9, %s12694_s9  }
   0x3   : > { %s63_s14 = ssub.s32 %s7387_s11, %s7422_s13  ;;  %s66_s15 = sadd.s32 1, %s7383_s10 }
   0x4   : > { %p64_p0 = scmp.eq.s32.totalorder %s63_s14, 0  ;;  %p76_p1 = scmp.ne.s32.totalorder %s7383_s10, %s7379_s9 }
   0x5   : > { %p77_p2 = scmp.eq.s32.totalorder %s7420_s12, 1  ;;  %p5863_p3 = scmp.ge.s32.totalorder %s7387_s11, 1 }
   0x6   : > { %s7430_s16 = scalar_select %p64_p0, %s7383_s10, %s66_s15  }
   0x7   : > { %p7432_p4 = por %p77_p2, %p76_p1  ;;  %p113_p5 = scmp.lt.s32.totalorder %s7387_s11, 3 }
   0x9   : > { %p114_p6 = pnand %p5863_p3, %p113_p5 }
   0xb   : > { %117 = sbr.rel (%p114_p6) target bundleno = 595 (0x253), region = 28 }
  0x10   : > { %s5865_s18 = sshll.u32 %s7420_s12, 1  ;;  %v12324_v0 = vmov 0   ;;  %v143_v20 = vlaneseq  ;;  %v12322_v62 = vmov 1.0|1.0   ;;  %s131_s3 = sand.u32 1, %s7379_s9  }
  0x11   : > { %p135_p7 = scmp.lt.s32.totalorder %s5865_s18, 3  ;;  %408 = vmatprep.mubr.bf16.mxu0 %v12324_v0  ;;  %755 = vmatprep.mubr.bf16.mxu1 %v12324_v0  ;;  %s11485_s9 = sshll.u32 %s131_s3, 6 }
  0x12   : > { %v7451_v29 = vshrl.u32 %v143_v20, 7  ;;  %s11506_s14 = scalar_lea.vmem [#allocation2], %s11485_s9  ;;  %s7240_s21 = sshll.u32 (%p7432_p4), %s7420_s12, 4 }
  0x13   : > { %s12698_s18 = smov (!%p135_p7, %s5865_s18), 3  ;;  %s5777_s24 = scalar_lea.vmem (%p7432_p4), %s12310_s2, %s7240_s21 }
  0x14   : > { %s5866_s19 = sshll.u32 %s12698_s18, 2  ;;  %12409 = vst [vmem:[#allocation3_spill] sm:$0xff] %v7451_v29  ;;  %v7456_v37 = vsub.s32 0, %v7451_v29  ;;  %v7462_v40 = vsub.s32 4, %v7451_v29  ;;  %v7468_v44 = vadd.s32 112, %v7451_v29  ;;  %v7473_v46 = vadd.s32 120, %v7451_v29 }
  0x15   : > { %s7442_s22 = scalar_lea.vmem %s12308_s0, %s5866_s19  ;;  %v7478_v48 = vadd.s32 96, %v7451_v29  ;;  %v7481_v49 = vadd.s32 104, %v7451_v29  ;;  %v7486_v52 = vadd.s32 80, %v7451_v29  ;;  %v7489_v53 = vadd.s32 88, %v7451_v29 }
  0x16   : > { %v7445_v1 = vld [vmem:[%s7442_s22] sm:$0x77]  ;;  %12410 = vst [vmem:[#allocation4_spill] sm:$0xff] %v7462_v40  ;;  %v7657_v20 = vadd.s32 40, %v7451_v29 }
  0x17   : > { %v160_v2 = vmul.f32 15.0, %v7445_v1  ;;  %v506_v3 = vmul.f32 21.0, %v7445_v1  ;;  %v858_v4 = vmul.f32 29.0, %v7445_v1  ;;  %v1210_v5 = vmul.f32 41.0, %v7445_v1 }
  0x19   : > { %v161_v6 = vfloor.f32 %v160_v2  ;;  %v507_v7 = vfloor.f32 %v506_v3  ;;  %v859_v8 = vfloor.f32 %v858_v4  ;;  %v1211_v9 = vfloor.f32 %v1210_v5 }
  0x1a   : > { %v7548_v5 = vadd.s32 64, %v7451_v29 }
  0x1b   : > { %v162_v10 = vmax.f32 %v161_v6, 0.0  ;;  %v508_v11 = vmax.f32 %v507_v7, 0.0  ;;  %v860_v14 = vmax.f32 %v859_v8, 0.0  ;;  %v1212_v15 = vmax.f32 %v1211_v9, 0.0 }
  0x1c   : > { %v7551_v6 = vadd.s32 72, %v7451_v29  ;;  %v1562_v7 = vmul.f32 57.0, %v7445_v1  ;;  %v1908_v8 = vmul.f32 79.0, %v7445_v1 }
  0x1d   : > { %v163_v12 = vmin.f32 %v162_v10, 15.0  ;;  %v509_v13 = vmin.f32 %v508_v11, 21.0  ;;  %v861_v23 = vmin.f32 %v860_v14, 29.0  ;;  %v1213_v24 = vmin.f32 %v1212_v15, 41.0 }
  0x1e   : > { %v7612_v14 = vadd.s32 56, %v7451_v29 }
  0x1f   : > { %v7241_v16 = vtrunc.f32 %v163_v12  ;;  %v7243_v17 = vtrunc.f32 %v509_v13  ;;  %v7245_v34 = vtrunc.f32 %v861_v23  ;;  %v7247_v35 = vtrunc.f32 %v1213_v24 }
  0x20   : > { %v7609_v13 = vadd.s32 48, %v7451_v29 }
  0x21   : > { %v7242_v18 = vcvt.f32.s32 %v7241_v16  ;;  %v7244_v19 = vcvt.f32.s32 %v7243_v17  ;;  %v7246_v42 = vcvt.f32.s32 %v7245_v34  ;;  %v7465_v43 = vcvt.f32.s32 %v7247_v35 }
  0x22   : > { %v1563_v16 = vfloor.f32 %v1562_v7 }
  0x23   : > { %v165_v21 = vmul.u32 2481, %v7242_v18  ;;  %v169_v22 = vmul.u32 1941, %v7242_v18 }
  0x24   : > { %v511_v25 = vmul.u32 2481, %v7244_v19  ;;  %v515_v26 = vmul.u32 1941, %v7244_v19 }
  0x25   : > { %v5867_v27 = vrot.slane %v165_v21, 9  ;;  %v5868_v28 = vrot.slane %v169_v22, 10  ;;  %v863_v56 = vmul.u32 2481, %v7246_v42  ;;  %v1215_v57 = vmul.u32 2481, %v7465_v43 }
  0x26   : > { %v5945_v30 = vrot.slane %v511_v25, 9  ;;  %v5946_v31 = vrot.slane %v515_v26, 10  ;;  %v867_v2 = vmul.u32 1941, %v7246_v42  ;;  %v1219_v4 = vmul.u32 1941, %v7465_v43 }
  0x27   : > { %v168_v32 = vadd.s32 %v7242_v18, %v5867_v27  ;;  %v6031_v63 = vrot.slane %v863_v56, 9  ;;  %v6117_v3 = vrot.slane %v1215_v57, 9  ;;  %v1909_v18 = vfloor.f32 %v1908_v8  ;;  %v7300_v56 = vld [vmem:[%s12309_s1] sm:$0xff]  }
  0x28   : > { %v514_v33 = vadd.s32 %v7244_v19, %v5945_v30  ;;  %v6032_v10 = vrot.slane %v867_v2, 10  ;;  %v6118_v12 = vrot.slane %v1219_v4, 10  ;;  %v7654_v19 = vadd.s32 32, %v7451_v29  ;;  %v7302_v4 = vld [vmem:[%s12309_s1 + $0x8] sm:$0xff]  }
  0x29   : > { %v7453_v36 = vadd.s32 %v5868_v28, %v168_v32  ;;  %v866_v9 = vadd.s32 %v7246_v42, %v6031_v63  ;;  %v1218_v11 = vadd.s32 %v7465_v43, %v6117_v3  ;;  %v1564_v22 = vmax.f32 %v1563_v16, 0.0 }
  0x2a   : > { %v7458_v38 = vadd.s32 %v5946_v31, %v514_v33  ;;  %v1910_v24 = vmax.f32 %v1909_v18, 0.0  ;;  %v7697_v25 = vadd.s32 16, %v7451_v29  ;;  %v7700_v26 = vadd.s32 24, %v7451_v29 }
  0x2b   : > { %v173_v39 = vand.u32 4095, %v7453_v36  ;;  %v7622_v15 = vadd.s32 %v6032_v10, %v866_v9  ;;  %v7632_v17 = vadd.s32 %v6118_v12, %v1218_v11  ;;  %v1565_v28 = vmin.f32 %v1564_v22, 57.0  ;;  %v7303_v9 = vld [vmem:[%s12309_s1 + $0x28] sm:$0xff]  }
  0x2c   : > { %v519_v41 = vand.u32 4095, %v7458_v38  ;;  %v1911_v31 = vmin.f32 %v1910_v24, 79.0  ;;  %v7742_v32 = vadd.s32 8, %v7451_v29  ;;  %v2260_v8 = vmul.f32 110.0, %v7445_v1 }
  0x2d   : > { %v174_v45 = vshra.s32 %v173_v39, 5  ;;  %v871_v21 = vand.u32 4095, %v7622_v15  ;;  %v1223_v23 = vand.u32 4095, %v7632_v17  ;;  %v7249_v34 = vtrunc.f32 %v1565_v28 }
  0x2e   : > { %v520_v47 = vshra.s32 %v519_v41, 5  ;;  %12411 = vst [vmem:[#allocation5_spill] sm:$0xff] %v7742_v32  ;;  %v7251_v42 = vtrunc.f32 %v1911_v31  ;;  %v2612_v16 = vmul.f32 152.0, %v7445_v1  ;;  %v2261_v18 = vfloor.f32 %v2260_v8 }
  0x2f   : > { %v183_v50 = vrot.slane %v174_v45, %v7462_v40  ;;  %v179_v51 = vrot.slane %v174_v45, %v7456_v37  ;;  %v872_v27 = vshra.s32 %v871_v21, 5  ;;  %v1224_v30 = vshra.s32 %v1223_v23, 5 }
  0x30   : > { %v529_v54 = vrot.slane %v520_v47, %v7462_v40  ;;  %v525_v55 = vrot.slane %v520_v47, %v7456_v37  ;;  %v2613_v24 = vfloor.f32 %v2612_v16  ;;  %v2262_v28 = vmax.f32 %v2261_v18, 0.0  ;;  %v8291_v18 = vld [vmem:[%s7442_s22] sm:$0x77] }
  0x31   : > { %v7495_v58 = vrot.slane %v183_v50, %v7456_v37  ;;  %v7498_v59 = vrot.slane %v179_v51, %v7456_v37  ;;  %v881_v33 = vrot.slane %v872_v27, %v7462_v40  ;;  %v1233_v35 = vrot.slane %v1224_v30, %v7462_v40 }
  0x32   : > { %v7501_v60 = vrot.slane %v529_v54, %v7456_v37  ;;  %v7504_v61 = vrot.slane %v525_v55, %v7456_v37  ;;  %v877_v43 = vrot.slane %v872_v27, %v7456_v37  ;;  %v1229_v45 = vrot.slane %v1224_v30, %v7456_v37  ;;  %v7304_v30 = vld [vmem:[%s12309_s1 + $0x10] sm:$0xff]  }
  0x33   : > { %vm221_vm0 = vcmp.eq.s32.totalorder %v7468_v44, %v7495_v58  ;;  %vm223_vm1 = vcmp.eq.s32.totalorder %v7473_v46, %v7495_v58  ;;  %vm220_vm2 = vcmp.eq.s32.totalorder %v7468_v44, %v7498_v59  ;;  %vm222_vm3 = vcmp.eq.s32.totalorder %v7473_v46, %v7498_v59 }
  0x34   : > { %vm5913_vm4 = vmpackc.low %vm223_vm1, %vm221_vm0  ;;  %vm567_vm5 = vcmp.eq.s32.totalorder %v7468_v44, %v7501_v60  ;;  %vm569_vm6 = vcmp.eq.s32.totalorder %v7473_v46, %v7501_v60  ;;  %vm566_vm7 = vcmp.eq.s32.totalorder %v7468_v44, %v7504_v61  ;;  %vm568_vm8 = vcmp.eq.s32.totalorder %v7473_v46, %v7504_v61 }
  0x35   : > { %5914 = vmatprep.subr.msk.bf16.mxu0 %vm5913_vm4, %v12322_v62  ;;  %vm5999_vm9 = vmpackc.low %vm569_vm6, %vm567_vm5  ;;  %vm217_vm10 = vcmp.eq.s32.totalorder %v7478_v48, %v7495_v58  ;;  %vm219_vm11 = vcmp.eq.s32.totalorder %v7481_v49, %v7495_v58  ;;  %vm563_vm13 = vcmp.eq.s32.totalorder %v7478_v48, %v7501_v60  ;;  %vm565_vm14 = vcmp.eq.s32.totalorder %v7481_v49, %v7501_v60 }
  0x36   : > { %6000 = vmatprep.subr.msk.bf16.mxu1 %vm5999_vm9, %v12322_v62  ;;  %vm5915_vm12 = vmpackc.low %vm222_vm3, %vm220_vm2  ;;  %vm216_vm0 = vcmp.eq.s32.totalorder %v7478_v48, %v7498_v59  ;;  %vm218_vm1 = vcmp.eq.s32.totalorder %v7481_v49, %v7498_v59  ;;  %vm562_vm3 = vcmp.eq.s32.totalorder %v7478_v48, %v7504_v61  ;;  %vm564_vm4 = vcmp.eq.s32.totalorder %v7481_v49, %v7504_v61 }
  0x37   : > { %5916 = vmatpush1.bf16.msk.msra.mxu0 %vm5915_vm12, %v12322_v62  ;;  %vm6001_vm15 = vmpackc.low %vm568_vm8, %vm566_vm7  ;;  %vm213_vm6 = vcmp.eq.s32.totalorder %v7486_v52, %v7495_v58  ;;  %vm215_vm7 = vcmp.eq.s32.totalorder %v7489_v53, %v7495_v58  ;;  %vm559_vm9 = vcmp.eq.s32.totalorder %v7486_v52, %v7501_v60  ;;  %vm212_vm12 = vcmp.eq.s32.totalorder %v7486_v52, %v7498_v59 }
  0x38   : > { %6002 = vmatpush1.bf16.msk.msra.mxu1 %vm6001_vm15, %v12322_v62  ;;  %vm5917_vm2 = vmpackc.low %vm219_vm11, %vm217_vm10  ;;  %vm561_vm10 = vcmp.eq.s32.totalorder %v7489_v53, %v7501_v60  ;;  %vm558_vm15 = vcmp.eq.s32.totalorder %v7486_v52, %v7504_v61  ;;  %v7789_v47 = vrot.slane %v881_v33, %v7456_v37  ;;  %v7791_v50 = vcvt.f32.s32 %v7249_v34  ;;  %v7305_v34 = vld [vmem:[%s12309_s1 + $0x30] sm:$0xff]  }
  0x39   : > { %5918 = vmatprep.subr.msk.bf16.mxu0 %vm5917_vm2, %v12322_v62  ;;  %vm6003_vm5 = vmpackc.low %vm565_vm14, %vm563_vm13  ;;  %vm214_vm13 = vcmp.eq.s32.totalorder %v7489_v53, %v7498_v59  ;;  %vm209_vm2 = vcmp.eq.s32.totalorder %v7548_v5, %v7495_v58  ;;  %v7802_v51 = vrot.slane %v1233_v35, %v7456_v37  ;;  %v7804_v54 = vcvt.f32.s32 %v7251_v42 }
  0x3a   : > { %6004 = vmatprep.subr.msk.bf16.mxu1 %vm6003_vm5, %v12322_v62  ;;  %vm5919_vm8 = vmpackc.low %vm218_vm1, %vm216_vm0  ;;  %vm560_vm0 = vcmp.eq.s32.totalorder %v7489_v53, %v7504_v61  ;;  %vm555_vm5 = vcmp.eq.s32.totalorder %v7548_v5, %v7501_v60  ;;  %v7818_v55 = vrot.slane %v877_v43, %v7456_v37  ;;  %v7835_v57 = vrot.slane %v1229_v45, %v7456_v37 }
  0x3b   : > { %5920 = vmatpush1.bf16.msk.msra.mxu0 %vm5919_vm8, %v12322_v62  ;;  %vm6005_vm11 = vmpackc.low %vm564_vm4, %vm562_vm3  ;;  %vm211_vm3 = vcmp.eq.s32.totalorder %v7551_v6, %v7495_v58  ;;  %vm208_vm8 = vcmp.eq.s32.totalorder %v7548_v5, %v7498_v59  ;;  %v1567_v63 = vmul.u32 2481, %v7791_v50  ;;  %v1917_v2 = vmul.u32 1941, %v7804_v54 }
  0x3c   : > { %6006 = vmatpush1.bf16.msk.msra.mxu1 %vm6005_vm11, %v12322_v62  ;;  %vm5921_vm14 = vmpackc.low %vm215_vm7, %vm213_vm6  ;;  %vm557_vm6 = vcmp.eq.s32.totalorder %v7551_v6, %v7501_v60  ;;  %vm554_vm11 = vcmp.eq.s32.totalorder %v7548_v5, %v7504_v61  ;;  %v2614_v33 = vmax.f32 %v2613_v24, 0.0  ;;  %v2263_v42 = vmin.f32 %v2262_v28, 110.0 }
  0x3d   : > { %5922 = vmatprep.subr.msk.bf16.mxu0 %vm5921_vm14, %v12322_v62  ;;  %vm6007_vm1 = vmpackc.low %vm561_vm10, %vm559_vm9  ;;  %vm210_vm9 = vcmp.eq.s32.totalorder %v7551_v6, %v7498_v59  ;;  %vm205_vm14 = vcmp.eq.s32.totalorder %v7609_v13, %v7495_v58  ;;  %v6290_v11 = vrot.slane %v1917_v2, 10  ;;  %v2964_v24 = vmul.f32 211.0, %v8291_v18 }
  0x3e   : > { %6008 = vmatprep.subr.msk.bf16.mxu1 %vm6007_vm1, %v12322_v62  ;;  %vm5923_vm4 = vmpackc.low %vm214_vm13, %vm212_vm12  ;;  %vm556_vm12 = vcmp.eq.s32.totalorder %v7551_v6, %v7504_v61  ;;  %vm551_vm1 = vcmp.eq.s32.totalorder %v7609_v13, %v7501_v60  ;;  %v2615_v45 = vmin.f32 %v2614_v33, 152.0  ;;  %v3310_v28 = vmul.f32 293.0, %v8291_v18 }
  0x3f   : > { %5924 = vmatpush1.bf16.msk.msra.mxu0 %vm5923_vm4, %v12322_v62  ;;  %vm6009_vm7 = vmpackc.low %vm560_vm0, %vm558_vm15  ;;  %vm207_vm15 = vcmp.eq.s32.totalorder %v7612_v14, %v7495_v58  ;;  %vm204_vm4 = vcmp.eq.s32.totalorder %v7609_v13, %v7498_v59  ;;  %v9966_v15 = vand.u32 31, %v1223_v23 }
  0x40   : > { %6010 = vmatpush1.bf16.msk.msra.mxu1 %vm6009_vm7, %v12322_v62  ;;  %vm5925_vm10 = vmpackc.low %vm211_vm3, %vm209_vm2  ;;  %vm553_vm2 = vcmp.eq.s32.totalorder %v7612_v14, %v7501_v60  ;;  %vm550_vm7 = vcmp.eq.s32.totalorder %v7609_v13, %v7504_v61 }
  0x41   : > { %5926 = vmatprep.subr.msk.bf16.mxu0 %vm5925_vm10, %v12322_v62  ;;  %vm6011_vm13 = vmpackc.low %vm557_vm6, %vm555_vm5  ;;  %vm206_vm5 = vcmp.eq.s32.totalorder %v7612_v14, %v7498_v59  ;;  %vm201_vm10 = vcmp.eq.s32.totalorder %v7654_v19, %v7495_v58 }
  0x42   : > { %6012 = vmatprep.subr.msk.bf16.mxu1 %vm6011_vm13, %v12322_v62  ;;  %vm5927_vm0 = vmpackc.low %vm210_vm9, %vm208_vm8  ;;  %vm552_vm8 = vcmp.eq.s32.totalorder %v7612_v14, %v7504_v61  ;;  %vm547_vm13 = vcmp.eq.s32.totalorder %v7654_v19, %v7501_v60 }
  0x43   : > { %5928 = vmatpush1.bf16.msk.msra.mxu0 %vm5927_vm0, %v12322_v62  ;;  %vm6013_vm3 = vmpackc.low %vm556_vm12, %vm554_vm11  ;;  %vm203_vm11 = vcmp.eq.s32.totalorder %v7657_v20, %v7495_v58  ;;  %vm200_vm0 = vcmp.eq.s32.totalorder %v7654_v19, %v7498_v59 }
  0x44   : > { %6014 = vmatpush1.bf16.msk.msra.mxu1 %vm6013_vm3, %v12322_v62  ;;  %vm5929_vm6 = vmpackc.low %vm207_vm15, %vm205_vm14  ;;  %vm549_vm14 = vcmp.eq.s32.totalorder %v7657_v20, %v7501_v60  ;;  %vm546_vm3 = vcmp.eq.s32.totalorder %v7654_v19, %v7504_v61 }
  0x45   : > { %5930 = vmatprep.subr.msk.bf16.mxu0 %vm5929_vm6, %v12322_v62  ;;  %vm6015_vm9 = vmpackc.low %vm553_vm2, %vm551_vm1  ;;  %vm202_vm1 = vcmp.eq.s32.totalorder %v7657_v20, %v7498_v59  ;;  %vm197_vm6 = vcmp.eq.s32.totalorder %v7697_v25, %v7495_v58 }
  0x46   : > { %6016 = vmatprep.subr.msk.bf16.mxu1 %vm6015_vm9, %v12322_v62  ;;  %vm5931_vm12 = vmpackc.low %vm206_vm5, %vm204_vm4  ;;  %vm548_vm4 = vcmp.eq.s32.totalorder %v7657_v20, %v7504_v61  ;;  %vm543_vm9 = vcmp.eq.s32.totalorder %v7697_v25, %v7501_v60 }
  0x47   : > { %5932 = vmatpush1.bf16.msk.msra.mxu0 %vm5931_vm12, %v12322_v62  ;;  %vm6017_vm15 = vmpackc.low %vm552_vm8, %vm550_vm7  ;;  %vm199_vm7 = vcmp.eq.s32.totalorder %v7700_v26, %v7495_v58  ;;  %vm196_vm12 = vcmp.eq.s32.totalorder %v7697_v25, %v7498_v59 }
  0x48   : > { %6018 = vmatpush1.bf16.msk.msra.mxu1 %vm6017_vm15, %v12322_v62  ;;  %vm5933_vm2 = vmpackc.low %vm203_vm11, %vm201_vm10  ;;  %vm545_vm10 = vcmp.eq.s32.totalorder %v7700_v26, %v7501_v60  ;;  %vm542_vm15 = vcmp.eq.s32.totalorder %v7697_v25, %v7504_v61 }
  0x49   : > { %5934 = vmatprep.subr.msk.bf16.mxu0 %vm5933_vm2, %v12322_v62  ;;  %vm6019_vm5 = vmpackc.low %vm549_vm14, %vm547_vm13  ;;  %vm198_vm13 = vcmp.eq.s32.totalorder %v7700_v26, %v7498_v59  ;;  %vm193_vm2 = vcmp.eq.s32.totalorder %v7451_v29, %v7495_v58 }
  0x4a   : > { %6020 = vmatprep.subr.msk.bf16.mxu1 %vm6019_vm5, %v12322_v62  ;;  %vm5935_vm8 = vmpackc.low %vm202_vm1, %vm200_vm0  ;;  %vm544_vm0 = vcmp.eq.s32.totalorder %v7700_v26, %v7504_v61  ;;  %vm539_vm5 = vcmp.eq.s32.totalorder %v7451_v29, %v7501_v60 }
  0x4b   : > { %5936 = vmatpush1.bf16.msk.msra.mxu0 %vm5935_vm8, %v12322_v62  ;;  %vm6021_vm11 = vmpackc.low %vm548_vm4, %vm546_vm3  ;;  %vm195_vm3 = vcmp.eq.s32.totalorder %v7742_v32, %v7495_v58  ;;  %vm192_vm8 = vcmp.eq.s32.totalorder %v7451_v29, %v7498_v59  ;;  %v7301_v58 = vld [vmem:[%s12309_s1 + $0x20] sm:$0xff]  }
  0x4c   : > { %6022 = vmatpush1.bf16.msk.msra.mxu1 %vm6021_vm11, %v12322_v62  ;;  %vm5937_vm14 = vmpackc.low %vm199_vm7, %vm197_vm6  ;;  %vm541_vm6 = vcmp.eq.s32.totalorder %v7742_v32, %v7501_v60  ;;  %vm538_vm11 = vcmp.eq.s32.totalorder %v7451_v29, %v7504_v61  ;;  %v1913_v60 = vmul.u32 2481, %v7804_v54 }
  0x4d   : > { %5938 = vmatprep.subr.msk.bf16.mxu0 %vm5937_vm14, %v12322_v62  ;;  %vm6023_vm1 = vmpackc.low %vm545_vm10, %vm543_vm9  ;;  %vm194_vm9 = vcmp.eq.s32.totalorder %v7742_v32, %v7498_v59  ;;  %vm919_vm14 = vcmp.eq.s32.totalorder %v7468_v44, %v7789_v47  ;;  %v1571_v59 = vmul.u32 1941, %v7791_v50 }
  0x4e   : > { %6024 = vmatprep.subr.msk.bf16.mxu1 %vm6023_vm1, %v12322_v62  ;;  %vm5939_vm4 = vmpackc.low %vm198_vm13, %vm196_vm12  ;;  %vm540_vm12 = vcmp.eq.s32.totalorder %v7742_v32, %v7504_v61  ;;  %vm1271_vm1 = vcmp.eq.s32.totalorder %v7468_v44, %v7802_v51  ;;  %v6203_v61 = vrot.slane %v1567_v63, 9  ;;  %v6289_v3 = vrot.slane %v1913_v60, 9  ;;  %v7307_v60 = vld [vmem:[%s12309_s1 + $0x38] sm:$0xff]  }
  0x4f   : > { %5940 = vmatpush1.bf16.msk.msra.mxu0 %vm5939_vm4, %v12322_v62  ;;  %vm6025_vm7 = vmpackc.low %vm544_vm0, %vm542_vm15  ;;  %vm921_vm15 = vcmp.eq.s32.totalorder %v7473_v46, %v7789_v47  ;;  %vm918_vm4 = vcmp.eq.s32.totalorder %v7468_v44, %v7818_v55  ;;  %v6204_v7 = vrot.slane %v1571_v59, 10  ;;  %v7255_v63 = vtrunc.f32 %v2615_v45 }
  0x50   : > { %6026 = vmatpush1.bf16.msk.msra.mxu1 %vm6025_vm7, %v12322_v62  ;;  %vm5941_vm10 = vmpackc.low %vm195_vm3, %vm193_vm2  ;;  %vm1273_vm2 = vcmp.eq.s32.totalorder %v7473_v46, %v7802_v51  ;;  %vm1270_vm7 = vcmp.eq.s32.totalorder %v7468_v44, %v7835_v57  ;;  %v1570_v10 = vadd.s32 %v7791_v50, %v6203_v61  ;;  %v1916_v12 = vadd.s32 %v7804_v54, %v6289_v3 }
  0x51   : > { %5942 = vmatprep.subr.msk.bf16.mxu0 %vm5941_vm10, %v12322_v62  ;;  %vm6027_vm13 = vmpackc.low %vm541_vm6, %vm539_vm5  ;;  %vm920_vm5 = vcmp.eq.s32.totalorder %v7473_v46, %v7818_v55  ;;  %vm915_vm10 = vcmp.eq.s32.totalorder %v7478_v48, %v7789_v47  ;;  %v7253_v54 = vtrunc.f32 %v2263_v42 }
  0x52   : > { %6028 = vmatprep.subr.msk.bf16.mxu1 %vm6027_vm13, %v12322_v62  ;;  %vm5943_vm0 = vmpackc.low %vm194_vm9, %vm192_vm8  ;;  %vm1272_vm8 = vcmp.eq.s32.totalorder %v7473_v46, %v7835_v57  ;;  %vm1267_vm13 = vcmp.eq.s32.totalorder %v7478_v48, %v7802_v51  ;;  %v7975_v1 = vadd.s32 %v6204_v7, %v1570_v10  ;;  %v7982_v22 = vadd.s32 %v6290_v11, %v1916_v12 }
  0x53   : > { %5944 = vmatpush1.bf16.msk.msra.mxu0 %vm5943_vm0, %v12322_v62  ;;  %vm6029_vm3 = vmpackc.low %vm540_vm12, %vm538_vm11  ;;  %vm917_vm11 = vcmp.eq.s32.totalorder %v7481_v49, %v7789_v47  ;;  %vm914_vm0 = vcmp.eq.s32.totalorder %v7478_v48, %v7818_v55  ;;  %v8158_v3 = vcvt.f32.s32 %v7253_v54  ;;  %v8174_v7 = vcvt.f32.s32 %v7255_v63 }
  0x54   : > { %6030 = vmatpush1.bf16.msk.msra.mxu1 %vm6029_vm3, %v12322_v62  ;;  %vm6085_vm6 = vmpackc.low %vm921_vm15, %vm919_vm14  ;;  %vm1269_vm14 = vcmp.eq.s32.totalorder %v7481_v49, %v7802_v51  ;;  %vm1266_vm3 = vcmp.eq.s32.totalorder %v7478_v48, %v7835_v57  ;;  %v1575_v27 = vand.u32 4095, %v7975_v1  ;;  %v1921_v31 = vand.u32 4095, %v7982_v22 }
  0x55   : > { %6086 = vmatprep.subr.msk.bf16.mxu0 %vm6085_vm6, %v12322_v62  ;;  %vm6171_vm9 = vmpackc.low %vm1273_vm2, %vm1271_vm1  ;;  %vm916_vm1 = vcmp.eq.s32.totalorder %v7481_v49, %v7818_v55  ;;  %vm911_vm6 = vcmp.eq.s32.totalorder %v7486_v52, %v7789_v47  ;;  %v2617_v10 = vmul.u32 2481, %v8174_v7  ;;  %v2269_v11 = vmul.u32 1941, %v8158_v3 }
  0x56   : > { %409 = vmatmul.mubr.bf16.vlgmr.msra.gmra.mxu0 %v7300_v56  ;;  %6172 = vmatprep.subr.msk.bf16.mxu1 %vm6171_vm9, %v12322_v62  ;;  %vm6087_vm12 = vmpackc.low %vm920_vm5, %vm918_vm4  ;;  %vm1268_vm4 = vcmp.eq.s32.totalorder %v7481_v49, %v7835_v57  ;;  %vm1263_vm9 = vcmp.eq.s32.totalorder %v7486_v52, %v7802_v51  ;;  %v8061_v35 = vshra.s32 %v1575_v27, 5  ;;  %v1922_v43 = vshra.s32 %v1921_v31, 5  ;;  %v7306_v56 = vld [vmem:[%s12309_s1 + $0x18] sm:$0xff]  }
  0x57   : > { %756 = vmatmul.mubr.bf16.vlgmr.msra.gmra.mxu1 %v7301_v58  ;;  %6088 = vmatpush1.bf16.msk.msra.mxu0 %vm6087_vm12, %v12322_v62  ;;  %vm6173_vm15 = vmpackc.low %vm1272_vm8, %vm1270_vm7  ;;  %vm913_vm7 = vcmp.eq.s32.totalorder %v7489_v53, %v7789_v47  ;;  %vm910_vm12 = vcmp.eq.s32.totalorder %v7486_v52, %v7818_v55  ;;  %v6461_v12 = vrot.slane %v2617_v10, 9  ;;  %v2621_v16 = vmul.u32 1941, %v8174_v7 }
  0x58   : > { %6174 = vmatpush1.bf16.msk.msra.mxu1 %vm6173_vm15, %v12322_v62  ;;  %vm6089_vm2 = vmpackc.low %vm917_vm11, %vm915_vm10  ;;  %418 = vmatprep.mubr.bf16.mxu0 %v12324_v0  ;;  %vm1265_vm10 = vcmp.eq.s32.totalorder %v7489_v53, %v7802_v51  ;;  %vm1262_vm15 = vcmp.eq.s32.totalorder %v7486_v52, %v7835_v57  ;;  %v1585_v50 = vrot.slane %v8061_v35, %v7462_v40  ;;  %v6376_v33 = vrot.slane %v2269_v11, 10  ;;  %v7314_v11 = vld [vmem:[%s12309_s1 + $0x58] sm:$0xff]  }
  0x59   : > { %6090 = vmatprep.subr.msk.bf16.mxu0 %vm6089_vm2, %v12322_v62  ;;  %vm6175_vm5 = vmpackc.low %vm1269_vm14, %vm1267_vm13  ;;  %765 = vmatprep.mubr.bf16.mxu1 %v12324_v0  ;;  %vm912_vm13 = vcmp.eq.s32.totalorder %v7489_v53, %v7818_v55  ;;  %vm907_vm2 = vcmp.eq.s32.totalorder %v7548_v5, %v7789_v47  ;;  %v1931_v58 = vrot.slane %v1922_v43, %v7462_v40  ;;  %v6462_v42 = vrot.slane %v2621_v16, 10 }
  0x5a   : > { %6176 = vmatprep.subr.msk.bf16.mxu1 %vm6175_vm5, %v12322_v62  ;;  %vm6091_vm8 = vmpackc.low %vm916_vm1, %vm914_vm0  ;;  %vm1264_vm0 = vcmp.eq.s32.totalorder %v7489_v53, %v7835_v57  ;;  %vm1259_vm5 = vcmp.eq.s32.totalorder %v7548_v5, %v7802_v51  ;;  %v1581_v59 = vrot.slane %v8061_v35, %v7456_v37  ;;  %v1927_v61 = vrot.slane %v1922_v43, %v7456_v37  ;;  %v7311_v43 = vld [vmem:[%s12309_s1 + $0x68] sm:$0xff]  }
  0x5b   : > { %6092 = vmatpush1.bf16.msk.msra.mxu0 %vm6091_vm8, %v12322_v62  ;;  %vm6177_vm11 = vmpackc.low %vm1268_vm4, %vm1266_vm3  ;;  %vm909_vm3 = vcmp.eq.s32.totalorder %v7551_v6, %v7789_v47  ;;  %vm906_vm8 = vcmp.eq.s32.totalorder %v7548_v5, %v7818_v55  ;;  %v8156_v2 = vrot.slane %v1585_v50, %v7456_v37  ;;  %v2620_v35 = vadd.s32 %v8174_v7, %v6461_v12 }
  0x5c   : > { %6178 = vmatpush1.bf16.msk.msra.mxu1 %vm6177_vm11, %v12322_v62  ;;  %vm6093_vm14 = vmpackc.low %vm913_vm7, %vm911_vm6  ;;  %vm1261_vm6 = vcmp.eq.s32.totalorder %v7551_v6, %v7802_v51  ;;  %vm1258_vm11 = vcmp.eq.s32.totalorder %v7548_v5, %v7835_v57  ;;  %v8188_v8 = vrot.slane %v1581_v59, %v7456_v37  ;;  %v2965_v50 = vfloor.f32 %v2964_v24  ;;  %v7315_v24 = vld [vmem:[%s12309_s1 + $0x78] sm:$0xff]  }
  0x5d   : > { %6094 = vmatprep.subr.msk.bf16.mxu0 %vm6093_vm14, %v12322_v62  ;;  %vm6179_vm1 = vmpackc.low %vm1265_vm10, %vm1263_vm9  ;;  %vm908_vm9 = vcmp.eq.s32.totalorder %v7551_v6, %v7818_v55  ;;  %vm903_vm14 = vcmp.eq.s32.totalorder %v7609_v13, %v7789_v47  ;;  %v8360_v54 = vadd.s32 %v6462_v42, %v2620_v35 }
  0x5e   : > { %419 = vmatmul.mubr.bf16.gmra.mxu0 %v7302_v4  ;;  %6180 = vmatprep.subr.msk.bf16.mxu1 %vm6179_vm1, %v12322_v62  ;;  %vm6095_vm4 = vmpackc.low %vm912_vm13, %vm910_vm12  ;;  %vm1260_vm12 = vcmp.eq.s32.totalorder %v7551_v6, %v7835_v57  ;;  %vm1255_vm1 = vcmp.eq.s32.totalorder %v7609_v13, %v7802_v51  ;;  %v8172_v4 = vrot.slane %v1931_v58, %v7456_v37  ;;  %v2966_v63 = vmax.f32 %v2965_v50, 0.0 }
  0x5f   : > { %766 = vmatmul.mubr.bf16.gmra.mxu1 %v7303_v9  ;;  %6096 = vmatpush1.bf16.msk.msra.mxu0 %vm6095_vm4, %v12322_v62  ;;  %vm6181_vm7 = vmpackc.low %vm1264_vm0, %vm1262_vm15  ;;  %vm905_vm15 = vcmp.eq.s32.totalorder %v7612_v14, %v7789_v47  ;;  %vm902_vm4 = vcmp.eq.s32.totalorder %v7609_v13, %v7818_v55  ;;  %v8203_v9 = vrot.slane %v1927_v61, %v7456_v37  ;;  %v12319_v59 = vand.u32 4095, %v8360_v54 }
  0x60   : > { %6182 = vmatpush1.bf16.msk.msra.mxu1 %vm6181_vm7, %v12322_v62  ;;  %vm6097_vm10 = vmpackc.low %vm909_vm3, %vm907_vm2  ;;  %428 = vmatprep.mubr.bf16.mxu0 %v12324_v0  ;;  %vm1257_vm2 = vcmp.eq.s32.totalorder %v7612_v14, %v7802_v51  ;;  %vm1254_vm7 = vcmp.eq.s32.totalorder %v7609_v13, %v7835_v57 }
  0x61   : > { %6098 = vmatprep.subr.msk.bf16.mxu0 %vm6097_vm10, %v12322_v62  ;;  %vm6183_vm13 = vmpackc.low %vm1261_vm6, %vm1259_vm5  ;;  %775 = vmatprep.mubr.bf16.mxu1 %v12324_v0  ;;  %vm904_vm5 = vcmp.eq.s32.totalorder %v7612_v14, %v7818_v55  ;;  %vm899_vm10 = vcmp.eq.s32.totalorder %v7654_v19, %v7789_v47 }
  0x62   : > { %6184 = vmatprep.subr.msk.bf16.mxu1 %vm6183_vm13, %v12322_v62  ;;  %vm6099_vm0 = vmpackc.low %vm908_vm9, %vm906_vm8  ;;  %vm1256_vm8 = vcmp.eq.s32.totalorder %v7612_v14, %v7835_v57  ;;  %vm1251_vm13 = vcmp.eq.s32.totalorder %v7654_v19, %v7802_v51 }
  0x63   : > { %6100 = vmatpush1.bf16.msk.msra.mxu0 %vm6099_vm0, %v12322_v62  ;;  %vm6185_vm3 = vmpackc.low %vm1260_vm12, %vm1258_vm11  ;;  %vm901_vm11 = vcmp.eq.s32.totalorder %v7657_v20, %v7789_v47  ;;  %vm898_vm0 = vcmp.eq.s32.totalorder %v7654_v19, %v7818_v55 }
  0x64   : > { %6186 = vmatpush1.bf16.msk.msra.mxu1 %vm6185_vm3, %v12322_v62  ;;  %vm6101_vm6 = vmpackc.low %vm905_vm15, %vm903_vm14  ;;  %vm1253_vm14 = vcmp.eq.s32.totalorder %v7657_v20, %v7802_v51  ;;  %vm1250_vm3 = vcmp.eq.s32.totalorder %v7654_v19, %v7835_v57 }
  0x65   : > { %6102 = vmatprep.subr.msk.bf16.mxu0 %vm6101_vm6, %v12322_v62  ;;  %vm6187_vm9 = vmpackc.low %vm1257_vm2, %vm1255_vm1  ;;  %vm900_vm1 = vcmp.eq.s32.totalorder %v7657_v20, %v7818_v55  ;;  %vm895_vm6 = vcmp.eq.s32.totalorder %v7697_v25, %v7789_v47 }
  0x66   : > { %429 = vmatmul.mubr.bf16.gmra.mxu0 %v7304_v30  ;;  %6188 = vmatprep.subr.msk.bf16.mxu1 %vm6187_vm9, %v12322_v62  ;;  %vm6103_vm12 = vmpackc.low %vm904_vm5, %vm902_vm4  ;;  %vm1252_vm4 = vcmp.eq.s32.totalorder %v7657_v20, %v7835_v57  ;;  %vm1247_vm9 = vcmp.eq.s32.totalorder %v7697_v25, %v7802_v51 }
  0x67   : > { %776 = vmatmul.mubr.bf16.gmra.mxu1 %v7305_v34  ;;  %6104 = vmatpush1.bf16.msk.msra.mxu0 %vm6103_vm12, %v12322_v62  ;;  %vm6189_vm15 = vmpackc.low %vm1256_vm8, %vm1254_vm7  ;;  %vm897_vm7 = vcmp.eq.s32.totalorder %v7700_v26, %v7789_v47  ;;  %vm894_vm12 = vcmp.eq.s32.totalorder %v7697_v25, %v7818_v55  ;;  %v7310_v34 = vld [vmem:[%s12309_s1 + $0x48] sm:$0xff]  }
  0x68   : > { %6190 = vmatpush1.bf16.msk.msra.mxu1 %vm6189_vm15, %v12322_v62  ;;  %vm6105_vm2 = vmpackc.low %vm901_vm11, %vm899_vm10  ;;  %438 = vmatprep.mubr.bf16.mxu0 %v12324_v0  ;;  %vm1249_vm10 = vcmp.eq.s32.totalorder %v7700_v26, %v7802_v51  ;;  %vm1246_vm15 = vcmp.eq.s32.totalorder %v7697_v25, %v7835_v57 }
  0x69   : > { %6106 = vmatprep.subr.msk.bf16.mxu0 %vm6105_vm2, %v12322_v62  ;;  %vm6191_vm5 = vmpackc.low %vm1253_vm14, %vm1251_vm13  ;;  %785 = vmatprep.mubr.bf16.mxu1 %v12324_v0  ;;  %vm896_vm13 = vcmp.eq.s32.totalorder %v7700_v26, %v7818_v55  ;;  %vm891_vm2 = vcmp.eq.s32.totalorder %v7451_v29, %v7789_v47 }
  0x6a   : > { %6192 = vmatprep.subr.msk.bf16.mxu1 %vm6191_vm5, %v12322_v62  ;;  %vm6107_vm8 = vmpackc.low %vm900_vm1, %vm898_vm0  ;;  %vm1248_vm0 = vcmp.eq.s32.totalorder %v7700_v26, %v7835_v57  ;;  %vm1243_vm5 = vcmp.eq.s32.totalorder %v7451_v29, %v7802_v51 }
  0x6b   : > { %6108 = vmatpush1.bf16.msk.msra.mxu0 %vm6107_vm8, %v12322_v62  ;;  %vm6193_vm11 = vmpackc.low %vm1252_vm4, %vm1250_vm3  ;;  %vm893_vm3 = vcmp.eq.s32.totalorder %v7742_v32, %v7789_v47  ;;  %vm890_vm8 = vcmp.eq.s32.totalorder %v7451_v29, %v7818_v55  ;;  %v2265_v47 = vmul.u32 2481, %v8158_v3 }
  0x6c   : > { %6194 = vmatpush1.bf16.msk.msra.mxu1 %vm6193_vm11, %v12322_v62  ;;  %vm6109_vm14 = vmpackc.low %vm897_vm7, %vm895_vm6  ;;  %vm1245_vm6 = vcmp.eq.s32.totalorder %v7742_v32, %v7802_v51  ;;  %vm1242_vm11 = vcmp.eq.s32.totalorder %v7451_v29, %v7835_v57  ;;  %v7308_v51 = vld [vmem:[%s12309_s1 + $0x40] sm:$0xff]  }
  0x6d   : > { %6110 = vmatprep.subr.msk.bf16.mxu0 %vm6109_vm14, %v12322_v62  ;;  %vm6195_vm1 = vmpackc.low %vm1249_vm10, %vm1247_vm9  ;;  %vm892_vm9 = vcmp.eq.s32.totalorder %v7742_v32, %v7818_v55  ;;  %vm1623_vm14 = vcmp.eq.s32.totalorder %v7468_v44, %v8156_v2  ;;  %v7309_v55 = vld [vmem:[%s12309_s1 + $0x60] sm:$0xff]  }
  0x6e   : > { %439 = vmatmul.mubr.bf16.gmra.mxu0 %v7306_v56  ;;  %6196 = vmatprep.subr.msk.bf16.mxu1 %vm6195_vm1, %v12322_v62  ;;  %vm6111_vm4 = vmpackc.low %vm896_vm13, %vm894_vm12  ;;  %vm1244_vm12 = vcmp.eq.s32.totalorder %v7742_v32, %v7835_v57  ;;  %vm1969_vm1 = vcmp.eq.s32.totalorder %v7468_v44, %v8172_v4  ;;  %v6375_v57 = vrot.slane %v2265_v47, 9  ;;  %v3311_v56 = vfloor.f32 %v3310_v28 }
  0x6f   : > { %786 = vmatmul.mubr.bf16.gmra.mxu1 %v7307_v60  ;;  %6112 = vmatpush1.bf16.msk.msra.mxu0 %vm6111_vm4, %v12322_v62  ;;  %vm6197_vm7 = vmpackc.low %vm1248_vm0, %vm1246_vm15  ;;  %vm1625_vm15 = vcmp.eq.s32.totalorder %v7473_v46, %v8156_v2  ;;  %vm1622_vm4 = vcmp.eq.s32.totalorder %v7468_v44, %v8188_v8  ;;  %v7312_v60 = vld [vmem:[%s12309_s1 + $0x50] sm:$0xff]   ;;  %v2967_v47 = vmin.f32 %v2966_v63, 211.0 }
  0x70   : > { %6198 = vmatpush1.bf16.msk.msra.mxu1 %vm6197_vm7, %v12322_v62  ;;  %vm6113_vm10 = vmpackc.low %vm893_vm3, %vm891_vm2  ;;  %1107 = vmatprep.mubr.bf16.mxu0 %v12324_v0  ;;  %vm1971_vm2 = vcmp.eq.s32.totalorder %v7473_v46, %v8172_v4  ;;  %vm1968_vm7 = vcmp.eq.s32.totalorder %v7468_v44, %v8203_v9  ;;  %v2268_v30 = vadd.s32 %v8158_v3, %v6375_v57  ;;  %v3312_v61 = vmax.f32 %v3311_v56, 0.0  ;;  %v7313_v3 = vld [vmem:[%s12309_s1 + $0x70] sm:$0xff]  }
  0x71   : > { %6114 = vmatprep.subr.msk.bf16.mxu0 %vm6113_vm10, %v12322_v62  ;;  %vm6199_vm13 = vmpackc.low %vm1245_vm6, %vm1243_vm5  ;;  %1459 = vmatprep.mubr.bf16.mxu1 %v12324_v0  ;;  %vm1624_vm5 = vcmp.eq.s32.totalorder %v7473_v46, %v8188_v8  ;;  %vm1619_vm10 = vcmp.eq.s32.totalorder %v7478_v48, %v8156_v2  ;;  %v7257_v57 = vtrunc.f32 %v2967_v47 }
  0x72   : > { %6200 = vmatprep.subr.msk.bf16.mxu1 %vm6199_vm13, %v12322_v62  ;;  %vm6115_vm0 = vmpackc.low %vm892_vm9, %vm890_vm8  ;;  %vm1970_vm8 = vcmp.eq.s32.totalorder %v7473_v46, %v8203_v9  ;;  %vm1965_vm13 = vcmp.eq.s32.totalorder %v7478_v48, %v8172_v4  ;;  %v8353_v45 = vadd.s32 %v6376_v33, %v2268_v30  ;;  %v3313_v10 = vmin.f32 %v3312_v61, 293.0 }
  0x73   : > { %6116 = vmatpush1.bf16.msk.msra.mxu0 %vm6115_vm0, %v12322_v62  ;;  %vm6201_vm3 = vmpackc.low %vm1244_vm12, %vm1242_vm11  ;;  %vm1621_vm11 = vcmp.eq.s32.totalorder %v7481_v49, %v8156_v2  ;;  %vm1618_vm0 = vcmp.eq.s32.totalorder %v7478_v48, %v8188_v8 }
  0x74   : > { %6202 = vmatpush1.bf16.msk.msra.mxu1 %vm6201_vm3, %v12322_v62  ;;  %vm6257_vm6 = vmpackc.low %vm1625_vm15, %vm1623_vm14  ;;  %vm1967_vm14 = vcmp.eq.s32.totalorder %v7481_v49, %v8172_v4  ;;  %vm1964_vm3 = vcmp.eq.s32.totalorder %v7478_v48, %v8203_v9  ;;  %v2273_v58 = vand.u32 4095, %v8353_v45  ;;  %v7259_v16 = vtrunc.f32 %v3313_v10  ;;  %v7318_v10 = vld [vmem:[%s12309_s1 + $0x88] sm:$0xff]  }
  0x75   : > { %6258 = vmatprep.subr.msk.bf16.mxu0 %vm6257_vm6, %v12322_v62  ;;  %vm6343_vm9 = vmpackc.low %vm1971_vm2, %vm1969_vm1  ;;  %vm1620_vm1 = vcmp.eq.s32.totalorder %v7481_v49, %v8188_v8  ;;  %vm1615_vm6 = vcmp.eq.s32.totalorder %v7486_v52, %v8156_v2  ;;  %v12453_v45 = vmov 0.0  }
  0x76   : > { %1108 = vmatmul.mubr.bf16.vlgmr.msra.gmra.mxu0 %v7308_v51  ;;  %6344 = vmatprep.subr.msk.bf16.mxu1 %vm6343_vm9, %v12322_v62  ;;  %vm6259_vm12 = vmpackc.low %vm1624_vm5, %vm1622_vm4  ;;  %vm1966_vm4 = vcmp.eq.s32.totalorder %v7481_v49, %v8203_v9  ;;  %vm1961_vm9 = vcmp.eq.s32.totalorder %v7486_v52, %v8172_v4  ;;  %v8439_v7 = vshra.s32 %v2273_v58, 5  ;;  %v2626_v51 = vshra.s32 %v12319_v59, 5 }
  0x77   : > { %1460 = vmatmul.mubr.bf16.vlgmr.msra.gmra.mxu1 %v7309_v55  ;;  %6260 = vmatpush1.bf16.msk.msra.mxu0 %vm6259_vm12, %v12322_v62  ;;  %vm6345_vm15 = vmpackc.low %vm1970_vm8, %vm1968_vm7  ;;  %vm1617_vm7 = vcmp.eq.s32.totalorder %v7489_v53, %v8156_v2  ;;  %vm1614_vm12 = vcmp.eq.s32.totalorder %v7486_v52, %v8188_v8  ;;  %v8552_v42 = vcvt.f32.s32 %v7259_v16 }
  0x78   : > { %6346 = vmatpush1.bf16.msk.msra.mxu1 %vm6345_vm15, %v12322_v62  ;;  %vm6261_vm2 = vmpackc.low %vm1621_vm11, %vm1619_vm10  ;;  %1117 = vmatprep.mubr.bf16.mxu0 %v12324_v0  ;;  %vm1963_vm10 = vcmp.eq.s32.totalorder %v7489_v53, %v8172_v4  ;;  %vm1960_vm15 = vcmp.eq.s32.totalorder %v7486_v52, %v8203_v9  ;;  %v2283_v55 = vrot.slane %v8439_v7, %v7462_v40 }
  0x79   : > { %6262 = vmatprep.subr.msk.bf16.mxu0 %vm6261_vm2, %v12322_v62  ;;  %vm6347_vm5 = vmpackc.low %vm1967_vm14, %vm1965_vm13  ;;  %1469 = vmatprep.mubr.bf16.mxu1 %v12324_v0  ;;  %vm1616_vm13 = vcmp.eq.s32.totalorder %v7489_v53, %v8188_v8  ;;  %vm1611_vm2 = vcmp.eq.s32.totalorder %v7548_v5, %v8156_v2  ;;  %v2635_v12 = vrot.slane %v2626_v51, %v7462_v40  ;;  %v3315_v56 = vmul.u32 2481, %v8552_v42 }
  0x7a   : > { %6348 = vmatprep.subr.msk.bf16.mxu1 %vm6347_vm5, %v12322_v62  ;;  %vm6263_vm8 = vmpackc.low %vm1620_vm1, %vm1618_vm0  ;;  %vm1962_vm0 = vcmp.eq.s32.totalorder %v7489_v53, %v8203_v9  ;;  %vm1957_vm5 = vcmp.eq.s32.totalorder %v7548_v5, %v8172_v4  ;;  %v2279_v28 = vrot.slane %v8439_v7, %v7456_v37  ;;  %v2631_v30 = vrot.slane %v2626_v51, %v7456_v37 }
  0x7b   : > { %6264 = vmatpush1.bf16.msk.msra.mxu0 %vm6263_vm8, %v12322_v62  ;;  %vm6349_vm11 = vmpackc.low %vm1966_vm4, %vm1964_vm3  ;;  %vm1613_vm3 = vcmp.eq.s32.totalorder %v7551_v6, %v8156_v2  ;;  %vm1610_vm8 = vcmp.eq.s32.totalorder %v7548_v5, %v8188_v8  ;;  %v8534_v33 = vrot.slane %v2283_v55, %v7456_v37  ;;  %v8550_v35 = vrot.slane %v2635_v12, %v7456_v37 }
  0x7c   : > { %6350 = vmatpush1.bf16.msk.msra.mxu1 %vm6349_vm11, %v12322_v62  ;;  %vm6265_vm14 = vmpackc.low %vm1617_vm7, %vm1615_vm6  ;;  %vm1959_vm6 = vcmp.eq.s32.totalorder %v7551_v6, %v8172_v4  ;;  %vm1956_vm11 = vcmp.eq.s32.totalorder %v7548_v5, %v8203_v9  ;;  %v8581_v50 = vrot.slane %v2631_v30, %v7456_v37  ;;  %v3319_v61 = vmul.u32 1941, %v8552_v42 }
  0x7d   : > { %6266 = vmatprep.subr.msk.bf16.mxu0 %vm6265_vm14, %v12322_v62  ;;  %vm6351_vm1 = vmpackc.low %vm1963_vm10, %vm1961_vm9  ;;  %vm1612_vm9 = vcmp.eq.s32.totalorder %v7551_v6, %v8188_v8  ;;  %vm1607_vm14 = vcmp.eq.s32.totalorder %v7609_v13, %v8156_v2  ;;  %v4014_v7 = vmul.f32 560.0, %v8291_v18 }
  0x7e   : > { %1118 = vmatmul.mubr.bf16.gmra.mxu0 %v7310_v34  ;;  %6352 = vmatprep.subr.msk.bf16.mxu1 %vm6351_vm1, %v12322_v62  ;;  %vm6267_vm4 = vmpackc.low %vm1616_vm13, %vm1614_vm12  ;;  %vm1958_vm12 = vcmp.eq.s32.totalorder %v7551_v6, %v8203_v9  ;;  %vm1953_vm1 = vcmp.eq.s32.totalorder %v7609_v13, %v8172_v4  ;;  %v8536_v34 = vcvt.f32.s32 %v7257_v57  ;;  %v6634_v57 = vrot.slane %v3319_v61, 10 }
  0x7f   : > { %1470 = vmatmul.mubr.bf16.gmra.mxu1 %v7311_v43  ;;  %6268 = vmatpush1.bf16.msk.msra.mxu0 %vm6267_vm4, %v12322_v62  ;;  %vm6353_vm7 = vmpackc.low %vm1962_vm0, %vm1960_vm15  ;;  %vm1609_vm15 = vcmp.eq.s32.totalorder %v7612_v14, %v8156_v2  ;;  %vm1606_vm4 = vcmp.eq.s32.totalorder %v7609_v13, %v8188_v8  ;;  %v8566_v43 = vrot.slane %v2279_v28, %v7456_v37  ;;  %v4015_v28 = vfloor.f32 %v4014_v7  ;;  %v7322_v7 = vld [vmem:[%s12309_s1 + $0x98] sm:$0xff]  }
  0x80   : > { %6354 = vmatpush1.bf16.msk.msra.mxu1 %vm6353_vm7, %v12322_v62  ;;  %vm6269_vm10 = vmpackc.low %vm1613_vm3, %vm1611_vm2  ;;  %1127 = vmatprep.mubr.bf16.mxu0 %v12324_v0  ;;  %vm1955_vm2 = vcmp.eq.s32.totalorder %v7612_v14, %v8172_v4  ;;  %vm1952_vm7 = vcmp.eq.s32.totalorder %v7609_v13, %v8203_v9  ;;  %v2973_v63 = vmul.u32 1941, %v8536_v34 }
  0x81   : > { %6270 = vmatprep.subr.msk.bf16.mxu0 %vm6269_vm10, %v12322_v62  ;;  %vm6355_vm13 = vmpackc.low %vm1959_vm6, %vm1957_vm5  ;;  %1479 = vmatprep.mubr.bf16.mxu1 %v12324_v0  ;;  %vm1608_vm5 = vcmp.eq.s32.totalorder %v7612_v14, %v8188_v8  ;;  %vm1603_vm10 = vcmp.eq.s32.totalorder %v7654_v19, %v8156_v2 }
  0x82   : > { %6356 = vmatprep.subr.msk.bf16.mxu1 %vm6355_vm13, %v12322_v62  ;;  %vm6271_vm0 = vmpackc.low %vm1612_vm9, %vm1610_vm8  ;;  %vm1954_vm8 = vcmp.eq.s32.totalorder %v7612_v14, %v8203_v9  ;;  %vm1949_vm13 = vcmp.eq.s32.totalorder %v7654_v19, %v8172_v4  ;;  %v6548_v51 = vrot.slane %v2973_v63, 10 }
  0x83   : > { %6272 = vmatpush1.bf16.msk.msra.mxu0 %vm6271_vm0, %v12322_v62  ;;  %vm6357_vm3 = vmpackc.low %vm1958_vm12, %vm1956_vm11  ;;  %vm1605_vm11 = vcmp.eq.s32.totalorder %v7657_v20, %v8156_v2  ;;  %vm1602_vm0 = vcmp.eq.s32.totalorder %v7654_v19, %v8188_v8 }
  0x84   : > { %6358 = vmatpush1.bf16.msk.msra.mxu1 %vm6357_vm3, %v12322_v62  ;;  %vm6273_vm6 = vmpackc.low %vm1609_vm15, %vm1607_vm14  ;;  %vm1951_vm14 = vcmp.eq.s32.totalorder %v7657_v20, %v8172_v4  ;;  %vm1948_vm3 = vcmp.eq.s32.totalorder %v7654_v19, %v8203_v9 }
  0x85   : > { %6274 = vmatprep.subr.msk.bf16.mxu0 %vm6273_vm6, %v12322_v62  ;;  %vm6359_vm9 = vmpackc.low %vm1955_vm2, %vm1953_vm1  ;;  %vm1604_vm1 = vcmp.eq.s32.totalorder %v7657_v20, %v8188_v8  ;;  %vm1599_vm6 = vcmp.eq.s32.totalorder %v7697_v25, %v8156_v2 }
  0x86   : > { %1128 = vmatmul.mubr.bf16.gmra.mxu0 %v7312_v60  ;;  %6360 = vmatprep.subr.msk.bf16.mxu1 %vm6359_vm9, %v12322_v62  ;;  %vm6275_vm12 = vmpackc.low %vm1608_vm5, %vm1606_vm4  ;;  %vm1950_vm4 = vcmp.eq.s32.totalorder %v7657_v20, %v8203_v9  ;;  %vm1945_vm9 = vcmp.eq.s32.totalorder %v7697_v25, %v8172_v4  ;;  %v6633_v60 = vrot.slane %v3315_v56, 9  ;;  %v7321_v56 = vld [vmem:[%s12309_s1 + $0xb0] sm:$0xff]  }
  0x87   : > { %1480 = vmatmul.mubr.bf16.gmra.mxu1 %v7313_v3  ;;  %6276 = vmatpush1.bf16.msk.msra.mxu0 %vm6275_vm12, %v12322_v62  ;;  %vm6361_vm15 = vmpackc.low %vm1954_vm8, %vm1952_vm7  ;;  %vm1601_vm7 = vcmp.eq.s32.totalorder %v7700_v26, %v8156_v2  ;;  %vm1598_vm12 = vcmp.eq.s32.totalorder %v7697_v25, %v8188_v8  ;;  %v3662_v3 = vmul.f32 405.0, %v8291_v18 }
  0x88   : > { %6362 = vmatpush1.bf16.msk.msra.mxu1 %vm6361_vm15, %v12322_v62  ;;  %vm6277_vm2 = vmpackc.low %vm1605_vm11, %vm1603_vm10  ;;  %1137 = vmatprep.mubr.bf16.mxu0 %v12324_v0  ;;  %vm1947_vm10 = vcmp.eq.s32.totalorder %v7700_v26, %v8172_v4  ;;  %vm1944_vm15 = vcmp.eq.s32.totalorder %v7697_v25, %v8203_v9  ;;  %v3318_v55 = vadd.s32 %v8552_v42, %v6633_v60  ;;  %v7320_v42 = vld [vmem:[%s12309_s1 + $0x90] sm:$0xff]  }
  0x89   : > { %6278 = vmatprep.subr.msk.bf16.mxu0 %vm6277_vm2, %v12322_v62  ;;  %vm6363_vm5 = vmpackc.low %vm1951_vm14, %vm1949_vm13  ;;  %1489 = vmatprep.mubr.bf16.mxu1 %v12324_v0  ;;  %vm1600_vm13 = vcmp.eq.s32.totalorder %v7700_v26, %v8188_v8  ;;  %vm1595_vm2 = vcmp.eq.s32.totalorder %v7451_v29, %v8156_v2  ;;  %v3663_v16 = vfloor.f32 %v3662_v3 }
  0x8a   : > { %6364 = vmatprep.subr.msk.bf16.mxu1 %vm6363_vm5, %v12322_v62  ;;  %vm6279_vm8 = vmpackc.low %vm1604_vm1, %vm1602_vm0  ;;  %vm1946_vm0 = vcmp.eq.s32.totalorder %v7700_v26, %v8203_v9  ;;  %vm1941_vm5 = vcmp.eq.s32.totalorder %v7451_v29, %v8172_v4 }
  0x8b   : > { %6280 = vmatpush1.bf16.msk.msra.mxu0 %vm6279_vm8, %v12322_v62  ;;  %vm6365_vm11 = vmpackc.low %vm1950_vm4, %vm1948_vm3  ;;  %vm1597_vm3 = vcmp.eq.s32.totalorder %v7742_v32, %v8156_v2  ;;  %vm1594_vm8 = vcmp.eq.s32.totalorder %v7451_v29, %v8188_v8  ;;  %v2969_v2 = vmul.u32 2481, %v8536_v34 }
  0x8c   : > { %6366 = vmatpush1.bf16.msk.msra.mxu1 %vm6365_vm11, %v12322_v62  ;;  %vm6281_vm14 = vmpackc.low %vm1601_vm7, %vm1599_vm6  ;;  %vm1943_vm6 = vcmp.eq.s32.totalorder %v7742_v32, %v8172_v4  ;;  %vm1940_vm11 = vcmp.eq.s32.totalorder %v7451_v29, %v8203_v9  ;;  %v7316_v4 = vld [vmem:[%s12309_s1 + $0x80] sm:$0xff]  }
  0x8d   : > { %6282 = vmatprep.subr.msk.bf16.mxu0 %vm6281_vm14, %v12322_v62  ;;  %vm6367_vm1 = vmpackc.low %vm1947_vm10, %vm1945_vm9  ;;  %vm1596_vm9 = vcmp.eq.s32.totalorder %v7742_v32, %v8188_v8  ;;  %vm2321_vm14 = vcmp.eq.s32.totalorder %v7468_v44, %v8534_v33  ;;  %v7317_v8 = vld [vmem:[%s12309_s1 + $0xa0] sm:$0xff]  }
  0x8e   : > { %1138 = vmatmul.mubr.bf16.gmra.mxu0 %v7314_v11  ;;  %6368 = vmatprep.subr.msk.bf16.mxu1 %vm6367_vm1, %v12322_v62  ;;  %vm6283_vm4 = vmpackc.low %vm1600_vm13, %vm1598_vm12  ;;  %vm1942_vm12 = vcmp.eq.s32.totalorder %v7742_v32, %v8203_v9  ;;  %vm2673_vm1 = vcmp.eq.s32.totalorder %v7468_v44, %v8550_v35  ;;  %v6547_v9 = vrot.slane %v2969_v2, 9  ;;  %v7319_v11 = vld [vmem:[%s12309_s1 + $0xa8] sm:$0xff]  }
  0x8f   : > { %1490 = vmatmul.mubr.bf16.gmra.mxu1 %v7315_v24  ;;  %6284 = vmatpush1.bf16.msk.msra.mxu0 %vm6283_vm4, %v12322_v62  ;;  %vm6369_vm7 = vmpackc.low %vm1946_vm0, %vm1944_vm15  ;;  %vm2323_vm15 = vcmp.eq.s32.totalorder %v7473_v46, %v8534_v33  ;;  %vm2320_vm4 = vcmp.eq.s32.totalorder %v7468_v44, %v8566_v43  ;;  %v8735_v24 = vadd.s32 %v6634_v57, %v3318_v55  ;;  %v4366_v57 = vmul.f32 775.0, %v8291_v18 }
  0x90   : > { %6370 = vmatpush1.bf16.msk.msra.mxu1 %vm6369_vm7, %v12322_v62  ;;  %vm6285_vm10 = vmpackc.low %vm1597_vm3, %vm1595_vm2  ;;  %1811 = vmatprep.mubr.bf16.mxu0 %v12324_v0  ;;  %vm2675_vm2 = vcmp.eq.s32.totalorder %v7473_v46, %v8550_v35  ;;  %vm2672_vm7 = vcmp.eq.s32.totalorder %v7468_v44, %v8581_v50  ;;  %v2972_v47 = vadd.s32 %v8536_v34, %v6547_v9  ;;  %v3664_v34 = vmax.f32 %v3663_v16, 0.0 }
  0x91   : > { %6286 = vmatprep.subr.msk.bf16.mxu0 %vm6285_vm10, %v12322_v62  ;;  %vm6371_vm13 = vmpackc.low %vm1943_vm6, %vm1941_vm5  ;;  %2157 = vmatprep.mubr.bf16.mxu1 %v12324_v0  ;;  %vm2322_vm5 = vcmp.eq.s32.totalorder %v7473_v46, %v8566_v43  ;;  %vm2317_vm10 = vcmp.eq.s32.totalorder %v7478_v48, %v8534_v33  ;;  %v12317_v2 = vand.u32 4095, %v8735_v24 }
  0x92   : > { %6372 = vmatprep.subr.msk.bf16.mxu1 %vm6371_vm13, %v12322_v62  ;;  %vm6287_vm0 = vmpackc.low %vm1596_vm9, %vm1594_vm8  ;;  %vm2674_vm8 = vcmp.eq.s32.totalorder %v7473_v46, %v8581_v50  ;;  %vm2669_vm13 = vcmp.eq.s32.totalorder %v7478_v48, %v8550_v35  ;;  %v8728_v12 = vadd.s32 %v6548_v51, %v2972_v47  ;;  %v3665_v9 = vmin.f32 %v3664_v34, 405.0 }
  0x93   : > { %6288 = vmatpush1.bf16.msk.msra.mxu0 %vm6287_vm0, %v12322_v62  ;;  %vm6373_vm3 = vmpackc.low %vm1942_vm12, %vm1940_vm11  ;;  %vm2319_vm11 = vcmp.eq.s32.totalorder %v7481_v49, %v8534_v33  ;;  %vm2316_vm0 = vcmp.eq.s32.totalorder %v7478_v48, %v8566_v43  ;;  %v8823_v63 = vshra.s32 %v12317_v2, 5 }
  0x94   : > { %6374 = vmatpush1.bf16.msk.msra.mxu1 %vm6373_vm3, %v12322_v62  ;;  %vm6429_vm6 = vmpackc.low %vm2323_vm15, %vm2321_vm14  ;;  %vm2671_vm14 = vcmp.eq.s32.totalorder %v7481_v49, %v8550_v35  ;;  %vm2668_vm3 = vcmp.eq.s32.totalorder %v7478_v48, %v8581_v50  ;;  %v12318_v30 = vand.u32 4095, %v8728_v12  ;;  %v7261_v3 = vtrunc.f32 %v3665_v9 }
  0x95   : > { %6430 = vmatprep.subr.msk.bf16.mxu0 %vm6429_vm6, %v12322_v62  ;;  %vm6515_vm9 = vmpackc.low %vm2675_vm2, %vm2673_vm1  ;;  %vm2318_vm1 = vcmp.eq.s32.totalorder %v7481_v49, %v8566_v43  ;;  %vm2313_vm6 = vcmp.eq.s32.totalorder %v7486_v52, %v8534_v33  ;;  %v3333_v47 = vrot.slane %v8823_v63, %v7462_v40 }
  0x96   : > { %1812 = vmatmul.mubr.bf16.vlgmr.msra.gmra.mxu0 %v7316_v4  ;;  %6516 = vmatprep.subr.msk.bf16.mxu1 %vm6515_vm9, %v12322_v62  ;;  %vm6431_vm12 = vmpackc.low %vm2322_vm5, %vm2320_vm4  ;;  %vm2670_vm4 = vcmp.eq.s32.totalorder %v7481_v49, %v8581_v50  ;;  %vm2665_vm9 = vcmp.eq.s32.totalorder %v7486_v52, %v8550_v35  ;;  %v4016_v4 = vmax.f32 %v4015_v28, 0.0  ;;  %v8916_v28 = vcvt.f32.s32 %v7261_v3 }
  0x97   : > { %2158 = vmatmul.mubr.bf16.vlgmr.msra.gmra.mxu1 %v7317_v8  ;;  %6432 = vmatpush1.bf16.msk.msra.mxu0 %vm6431_vm12, %v12322_v62  ;;  %vm6517_vm15 = vmpackc.low %vm2674_vm8, %vm2672_vm7  ;;  %vm2315_vm7 = vcmp.eq.s32.totalorder %v7489_v53, %v8534_v33  ;;  %vm2312_vm12 = vcmp.eq.s32.totalorder %v7486_v52, %v8566_v43  ;;  %v8814_v8 = vshra.s32 %v12318_v30, 5  ;;  %v8930_v34 = vrot.slane %v3333_v47, %v7456_v37 }
  0x98   : > { %6518 = vmatpush1.bf16.msk.msra.mxu1 %vm6517_vm15, %v12322_v62  ;;  %vm6433_vm2 = vmpackc.low %vm2319_vm11, %vm2317_vm10  ;;  %1821 = vmatprep.mubr.bf16.mxu0 %v12324_v0  ;;  %vm2667_vm10 = vcmp.eq.s32.totalorder %v7489_v53, %v8550_v35  ;;  %vm2664_vm15 = vcmp.eq.s32.totalorder %v7486_v52, %v8581_v50  ;;  %v4017_v60 = vmin.f32 %v4016_v4, 560.0 }
  0x99   : > { %6434 = vmatprep.subr.msk.bf16.mxu0 %vm6433_vm2, %v12322_v62  ;;  %vm6519_vm5 = vmpackc.low %vm2671_vm14, %vm2669_vm13  ;;  %2167 = vmatprep.mubr.bf16.mxu1 %v12324_v0  ;;  %vm2314_vm13 = vcmp.eq.s32.totalorder %v7489_v53, %v8566_v43  ;;  %vm2309_vm2 = vcmp.eq.s32.totalorder %v7548_v5, %v8534_v33  ;;  %v2987_v61 = vrot.slane %v8814_v8, %v7462_v40 }
  0x9a   : > { %6520 = vmatprep.subr.msk.bf16.mxu1 %vm6519_vm5, %v12322_v62  ;;  %vm6435_vm8 = vmpackc.low %vm2318_vm1, %vm2316_vm0  ;;  %vm2666_vm0 = vcmp.eq.s32.totalorder %v7489_v53, %v8581_v50  ;;  %vm2661_vm5 = vcmp.eq.s32.totalorder %v7548_v5, %v8550_v35  ;;  %v7263_v51 = vtrunc.f32 %v4017_v60  ;;  %v2983_v55 = vrot.slane %v8814_v8, %v7456_v37 }
  0x9b   : > { %6436 = vmatpush1.bf16.msk.msra.mxu0 %vm6435_vm8, %v12322_v62  ;;  %vm6521_vm11 = vmpackc.low %vm2670_vm4, %vm2668_vm3  ;;  %vm2311_vm3 = vcmp.eq.s32.totalorder %v7551_v6, %v8534_v33  ;;  %vm2308_vm8 = vcmp.eq.s32.totalorder %v7548_v5, %v8566_v43  ;;  %v8914_v16 = vrot.slane %v2987_v61, %v7456_v37  ;;  %v3671_v61 = vmul.u32 1941, %v8916_v28 }
  0x9c   : > { %6522 = vmatpush1.bf16.msk.msra.mxu1 %vm6521_vm11, %v12322_v62  ;;  %vm6437_vm14 = vmpackc.low %vm2315_vm7, %vm2313_vm6  ;;  %vm2663_vm6 = vcmp.eq.s32.totalorder %v7551_v6, %v8550_v35  ;;  %vm2660_vm11 = vcmp.eq.s32.totalorder %v7548_v5, %v8581_v50  ;;  %v8946_v4 = vrot.slane %v2983_v55, %v7456_v37 }
  0x9d   : > { %6438 = vmatprep.subr.msk.bf16.mxu0 %vm6437_vm14, %v12322_v62  ;;  %vm6523_vm1 = vmpackc.low %vm2667_vm10, %vm2665_vm9  ;;  %vm2310_vm9 = vcmp.eq.s32.totalorder %v7551_v6, %v8566_v43  ;;  %vm2305_vm14 = vcmp.eq.s32.totalorder %v7609_v13, %v8534_v33  ;;  %v6720_v55 = vrot.slane %v3671_v61, 10  ;;  %v7328_v61 = vld [vmem:[%s12309_s1 + $0xd0] sm:$0xff]  }
  0x9e   : > { %1822 = vmatmul.mubr.bf16.gmra.mxu0 %v7318_v10  ;;  %6524 = vmatprep.subr.msk.bf16.mxu1 %vm6523_vm1, %v12322_v62  ;;  %vm6439_vm4 = vmpackc.low %vm2314_vm13, %vm2312_vm12  ;;  %vm2662_vm12 = vcmp.eq.s32.totalorder %v7551_v6, %v8581_v50  ;;  %vm2657_vm1 = vcmp.eq.s32.totalorder %v7609_v13, %v8550_v35  ;;  %v7323_v10 = vld [vmem:[%s12309_s1 + $0xb8] sm:$0xff]  }
  0x9f   : > { %2168 = vmatmul.mubr.bf16.gmra.mxu1 %v7319_v11  ;;  %6440 = vmatpush1.bf16.msk.msra.mxu0 %vm6439_vm4, %v12322_v62  ;;  %vm6525_vm7 = vmpackc.low %vm2666_vm0, %vm2664_vm15  ;;  %vm2307_vm15 = vcmp.eq.s32.totalorder %v7612_v14, %v8534_v33  ;;  %vm2304_vm4 = vcmp.eq.s32.totalorder %v7609_v13, %v8566_v43  ;;  %v3329_v11 = vrot.slane %v8823_v63, %v7456_v37 }
  0xa0   : > { %6526 = vmatpush1.bf16.msk.msra.mxu1 %vm6525_vm7, %v12322_v62  ;;  %vm6441_vm10 = vmpackc.low %vm2311_vm3, %vm2309_vm2  ;;  %1831 = vmatprep.mubr.bf16.mxu0 %v12324_v0  ;;  %vm2659_vm2 = vcmp.eq.s32.totalorder %v7612_v14, %v8550_v35  ;;  %vm2656_vm7 = vcmp.eq.s32.totalorder %v7609_v13, %v8581_v50 }
  0xa1   : > { %6442 = vmatprep.subr.msk.bf16.mxu0 %vm6441_vm10, %v12322_v62  ;;  %vm6527_vm13 = vmpackc.low %vm2663_vm6, %vm2661_vm5  ;;  %2177 = vmatprep.mubr.bf16.mxu1 %v12324_v0  ;;  %vm2306_vm5 = vcmp.eq.s32.totalorder %v7612_v14, %v8566_v43  ;;  %vm2301_vm10 = vcmp.eq.s32.totalorder %v7654_v19, %v8534_v33  ;;  %v8961_v8 = vrot.slane %v3329_v11, %v7456_v37 }
  0xa2   : > { %6528 = vmatprep.subr.msk.bf16.mxu1 %vm6527_vm13, %v12322_v62  ;;  %vm6443_vm0 = vmpackc.low %vm2310_vm9, %vm2308_vm8  ;;  %vm2658_vm8 = vcmp.eq.s32.totalorder %v7612_v14, %v8581_v50  ;;  %vm2653_vm13 = vcmp.eq.s32.totalorder %v7654_v19, %v8550_v35 }
  0xa3   : > { %6444 = vmatpush1.bf16.msk.msra.mxu0 %vm6443_vm0, %v12322_v62  ;;  %vm6529_vm3 = vmpackc.low %vm2662_vm12, %vm2660_vm11  ;;  %vm2303_vm11 = vcmp.eq.s32.totalorder %v7657_v20, %v8534_v33  ;;  %vm2300_vm0 = vcmp.eq.s32.totalorder %v7654_v19, %v8566_v43 }
  0xa4   : > { %6530 = vmatpush1.bf16.msk.msra.mxu1 %vm6529_vm3, %v12322_v62  ;;  %vm6445_vm6 = vmpackc.low %vm2307_vm15, %vm2305_vm14  ;;  %vm2655_vm14 = vcmp.eq.s32.totalorder %v7657_v20, %v8550_v35  ;;  %vm2652_vm3 = vcmp.eq.s32.totalorder %v7654_v19, %v8581_v50 }
  0xa5   : > { %6446 = vmatprep.subr.msk.bf16.mxu0 %vm6445_vm6, %v12322_v62  ;;  %vm6531_vm9 = vmpackc.low %vm2659_vm2, %vm2657_vm1  ;;  %vm2302_vm1 = vcmp.eq.s32.totalorder %v7657_v20, %v8566_v43  ;;  %vm2297_vm6 = vcmp.eq.s32.totalorder %v7697_v25, %v8534_v33 }
  0xa6   : > { %1832 = vmatmul.mubr.bf16.gmra.mxu0 %v7320_v42  ;;  %6532 = vmatprep.subr.msk.bf16.mxu1 %vm6531_vm9, %v12322_v62  ;;  %vm6447_vm12 = vmpackc.low %vm2306_vm5, %vm2304_vm4  ;;  %vm2654_vm4 = vcmp.eq.s32.totalorder %v7657_v20, %v8581_v50  ;;  %vm2649_vm9 = vcmp.eq.s32.totalorder %v7697_v25, %v8550_v35  ;;  %v8932_v42 = vcvt.f32.s32 %v7263_v51 }
  0xa7   : > { %2178 = vmatmul.mubr.bf16.gmra.mxu1 %v7321_v56  ;;  %6448 = vmatpush1.bf16.msk.msra.mxu0 %vm6447_vm12, %v12322_v62  ;;  %vm6533_vm15 = vmpackc.low %vm2658_vm8, %vm2656_vm7  ;;  %vm2299_vm7 = vcmp.eq.s32.totalorder %v7700_v26, %v8534_v33  ;;  %vm2296_vm12 = vcmp.eq.s32.totalorder %v7697_v25, %v8566_v43  ;;  %v4367_v56 = vfloor.f32 %v4366_v57  ;;  %v7326_v57 = vld [vmem:[%s12309_s1 + $0xc8] sm:$0xff]  }
  0xa8   : > { %6534 = vmatpush1.bf16.msk.msra.mxu1 %vm6533_vm15, %v12322_v62  ;;  %vm6449_vm2 = vmpackc.low %vm2303_vm11, %vm2301_vm10  ;;  %1841 = vmatprep.mubr.bf16.mxu0 %v12324_v0  ;;  %vm2651_vm10 = vcmp.eq.s32.totalorder %v7700_v26, %v8550_v35  ;;  %vm2648_vm15 = vcmp.eq.s32.totalorder %v7697_v25, %v8581_v50  ;;  %v4019_v9 = vmul.u32 2481, %v8932_v42 }
  0xa9   : > { %6450 = vmatprep.subr.msk.bf16.mxu0 %vm6449_vm2, %v12322_v62  ;;  %vm6535_vm5 = vmpackc.low %vm2655_vm14, %vm2653_vm13  ;;  %2187 = vmatprep.mubr.bf16.mxu1 %v12324_v0  ;;  %vm2298_vm13 = vcmp.eq.s32.totalorder %v7700_v26, %v8566_v43  ;;  %vm2293_vm2 = vcmp.eq.s32.totalorder %v7451_v29, %v8534_v33  ;;  %v4368_v63 = vmax.f32 %v4367_v56, 0.0  ;;  %v7327_v56 = vld [vmem:[%s12309_s1 + $0xe8] sm:$0xff]  }
  0xaa   : > { %6536 = vmatprep.subr.msk.bf16.mxu1 %vm6535_vm5, %v12322_v62  ;;  %vm6451_vm8 = vmpackc.low %vm2302_vm1, %vm2300_vm0  ;;  %vm2650_vm0 = vcmp.eq.s32.totalorder %v7700_v26, %v8581_v50  ;;  %vm2645_vm5 = vcmp.eq.s32.totalorder %v7451_v29, %v8550_v35  ;;  %v6805_v3 = vrot.slane %v4019_v9, 9 }
  0xab   : > { %6452 = vmatpush1.bf16.msk.msra.mxu0 %vm6451_vm8, %v12322_v62  ;;  %vm6537_vm11 = vmpackc.low %vm2654_vm4, %vm2652_vm3  ;;  %vm2295_vm3 = vcmp.eq.s32.totalorder %v7742_v32, %v8534_v33  ;;  %vm2292_vm8 = vcmp.eq.s32.totalorder %v7451_v29, %v8566_v43  ;;  %v3667_v33 = vmul.u32 2481, %v8916_v28  ;;  %v4369_v47 = vmin.f32 %v4368_v63, 775.0 }
  0xac   : > { %6538 = vmatpush1.bf16.msk.msra.mxu1 %vm6537_vm11, %v12322_v62  ;;  %vm6453_vm14 = vmpackc.low %vm2299_vm7, %vm2297_vm6  ;;  %vm2647_vm6 = vcmp.eq.s32.totalorder %v7742_v32, %v8550_v35  ;;  %vm2644_vm11 = vcmp.eq.s32.totalorder %v7451_v29, %v8581_v50  ;;  %v7324_v35 = vld [vmem:[%s12309_s1 + $0xc0] sm:$0xff]   ;;  %v4022_v11 = vadd.s32 %v8932_v42, %v6805_v3 }
  0xad   : > { %6454 = vmatprep.subr.msk.bf16.mxu0 %vm6453_vm14, %v12322_v62  ;;  %vm6539_vm1 = vmpackc.low %vm2651_vm10, %vm2649_vm9  ;;  %vm2294_vm9 = vcmp.eq.s32.totalorder %v7742_v32, %v8566_v43  ;;  %vm3025_vm14 = vcmp.eq.s32.totalorder %v7468_v44, %v8914_v16  ;;  %v7325_v43 = vld [vmem:[%s12309_s1 + $0xe0] sm:$0xff]   ;;  %v6719_v60 = vrot.slane %v3667_v33, 9 }
  0xae   : > { %1842 = vmatmul.mubr.bf16.gmra.mxu0 %v7322_v7  ;;  %6540 = vmatprep.subr.msk.bf16.mxu1 %vm6539_vm1, %v12322_v62  ;;  %vm6455_vm4 = vmpackc.low %vm2298_vm13, %vm2296_vm12  ;;  %vm2646_vm12 = vcmp.eq.s32.totalorder %v7742_v32, %v8581_v50  ;;  %vm3371_vm1 = vcmp.eq.s32.totalorder %v7468_v44, %v8930_v34  ;;  %v4712_v50 = vmul.f32 1071.0, %v8291_v18  ;;  %v4023_v7 = vmul.u32 1941, %v8932_v42 }
  0xaf   : > { %2188 = vmatmul.mubr.bf16.gmra.mxu1 %v7323_v10  ;;  %6456 = vmatpush1.bf16.msk.msra.mxu0 %vm6455_vm4, %v12322_v62  ;;  %vm6541_vm7 = vmpackc.low %vm2650_vm0, %vm2648_vm15  ;;  %vm3027_vm15 = vcmp.eq.s32.totalorder %v7473_v46, %v8914_v16  ;;  %vm3024_vm4 = vcmp.eq.s32.totalorder %v7468_v44, %v8946_v4  ;;  %v3670_v10 = vadd.s32 %v8916_v28, %v6719_v60  ;;  %v7265_v42 = vtrunc.f32 %v4369_v47 }
  0xb0   : > { %6542 = vmatpush1.bf16.msk.msra.mxu1 %vm6541_vm7, %v12322_v62  ;;  %vm6457_vm10 = vmpackc.low %vm2295_vm3, %vm2293_vm2  ;;  %2509 = vmatprep.mubr.bf16.mxu0 %v12324_v0  ;;  %vm3373_vm2 = vcmp.eq.s32.totalorder %v7473_v46, %v8930_v34  ;;  %vm3370_vm7 = vcmp.eq.s32.totalorder %v7468_v44, %v8961_v8  ;;  %v4713_v51 = vfloor.f32 %v4712_v50  ;;  %v6806_v28 = vrot.slane %v4023_v7, 10  ;;  %v7329_v7 = vld [vmem:[%s12309_s1 + $0xf0] sm:$0xff]  }
  0xb1   : > { %6458 = vmatprep.subr.msk.bf16.mxu0 %vm6457_vm10, %v12322_v62  ;;  %vm6543_vm13 = vmpackc.low %vm2647_vm6, %vm2645_vm5  ;;  %2861 = vmatprep.mubr.bf16.mxu1 %v12324_v0  ;;  %vm3026_vm5 = vcmp.eq.s32.totalorder %v7473_v46, %v8946_v4  ;;  %vm3021_vm10 = vcmp.eq.s32.totalorder %v7478_v48, %v8914_v16  ;;  %v5064_v60 = vmul.f32 1481.0, %v8291_v18 }
  0xb2   : > { %6544 = vmatprep.subr.msk.bf16.mxu1 %vm6543_vm13, %v12322_v62  ;;  %vm6459_vm0 = vmpackc.low %vm2294_vm9, %vm2292_vm8  ;;  %vm3372_vm8 = vcmp.eq.s32.totalorder %v7473_v46, %v8961_v8  ;;  %vm3367_vm13 = vcmp.eq.s32.totalorder %v7478_v48, %v8930_v34  ;;  %v4714_v33 = vmax.f32 %v4713_v51, 0.0  ;;  %v9135_v9 = vadd.s32 %v6806_v28, %v4022_v11 }
  0xb3   : > { %6460 = vmatpush1.bf16.msk.msra.mxu0 %vm6459_vm0, %v12322_v62  ;;  %vm6545_vm3 = vmpackc.low %vm2646_vm12, %vm2644_vm11  ;;  %vm3023_vm11 = vcmp.eq.s32.totalorder %v7481_v49, %v8914_v16  ;;  %vm3020_vm0 = vcmp.eq.s32.totalorder %v7478_v48, %v8946_v4  ;;  %v5416_v28 = vmul.f32 2047.0, %v8291_v18 }
  0xb4   : > { %6546 = vmatpush1.bf16.msk.msra.mxu1 %vm6545_vm3, %v12322_v62  ;;  %vm6601_vm6 = vmpackc.low %vm3027_vm15, %vm3025_vm14  ;;  %vm3369_vm14 = vcmp.eq.s32.totalorder %v7481_v49, %v8930_v34  ;;  %vm3366_vm3 = vcmp.eq.s32.totalorder %v7478_v48, %v8961_v8  ;;  %v4715_v63 = vmin.f32 %v4714_v33, 1071.0  ;;  %v12315_v3 = vand.u32 4095, %v9135_v9 }
  0xb5   : > { %6602 = vmatprep.subr.msk.bf16.mxu0 %vm6601_vm6, %v12322_v62  ;;  %vm6687_vm9 = vmpackc.low %vm3373_vm2, %vm3371_vm1  ;;  %vm3022_vm1 = vcmp.eq.s32.totalorder %v7481_v49, %v8946_v4  ;;  %vm3017_vm6 = vcmp.eq.s32.totalorder %v7486_v52, %v8914_v16 }
  0xb6   : > { %2510 = vmatmul.mubr.bf16.vlgmr.msra.gmra.mxu0 %v7324_v35  ;;  %6688 = vmatprep.subr.msk.bf16.mxu1 %vm6687_vm9, %v12322_v62  ;;  %vm6603_vm12 = vmpackc.low %vm3026_vm5, %vm3024_vm4  ;;  %vm3368_vm4 = vcmp.eq.s32.totalorder %v7481_v49, %v8961_v8  ;;  %vm3363_vm9 = vcmp.eq.s32.totalorder %v7486_v52, %v8930_v34  ;;  %v9125_v35 = vadd.s32 %v6720_v55, %v3670_v10  ;;  %v7267_v10 = vtrunc.f32 %v4715_v63 }
  0xb7   : > { %2862 = vmatmul.mubr.bf16.vlgmr.msra.gmra.mxu1 %v7325_v43  ;;  %6604 = vmatpush1.bf16.msk.msra.mxu0 %vm6603_vm12, %v12322_v62  ;;  %vm6689_vm15 = vmpackc.low %vm3372_vm8, %vm3370_vm7  ;;  %vm3019_vm7 = vcmp.eq.s32.totalorder %v7489_v53, %v8914_v16  ;;  %vm3016_vm12 = vcmp.eq.s32.totalorder %v7486_v52, %v8946_v4  ;;  %v9148_v43 = vcvt.f32.s32 %v7265_v42  ;;  %v9246_v11 = vshra.s32 %v12315_v3, 5 }
  0xb8   : > { %6690 = vmatpush1.bf16.msk.msra.mxu1 %vm6689_vm15, %v12322_v62  ;;  %vm6605_vm2 = vmpackc.low %vm3023_vm11, %vm3021_vm10  ;;  %2519 = vmatprep.mubr.bf16.mxu0 %v12324_v0  ;;  %vm3365_vm10 = vcmp.eq.s32.totalorder %v7489_v53, %v8930_v34  ;;  %vm3362_vm15 = vcmp.eq.s32.totalorder %v7486_v52, %v8961_v8  ;;  %v12316_v50 = vand.u32 4095, %v9125_v35  ;;  %v9274_v42 = vcvt.f32.s32 %v7267_v10 }
  0xb9   : > { %6606 = vmatprep.subr.msk.bf16.mxu0 %vm6605_vm2, %v12322_v62  ;;  %vm6691_vm5 = vmpackc.low %vm3369_vm14, %vm3367_vm13  ;;  %2871 = vmatprep.mubr.bf16.mxu1 %v12324_v0  ;;  %vm3018_vm13 = vcmp.eq.s32.totalorder %v7489_v53, %v8946_v4  ;;  %vm3013_vm2 = vcmp.eq.s32.totalorder %v7548_v5, %v8914_v16  ;;  %v4371_v47 = vmul.u32 2481, %v9148_v43  ;;  %v4375_v51 = vmul.u32 1941, %v9148_v43 }
  0xba   : > { %6692 = vmatprep.subr.msk.bf16.mxu1 %vm6691_vm5, %v12322_v62  ;;  %vm6607_vm8 = vmpackc.low %vm3022_vm1, %vm3020_vm0  ;;  %vm3364_vm0 = vcmp.eq.s32.totalorder %v7489_v53, %v8961_v8  ;;  %vm3359_vm5 = vcmp.eq.s32.totalorder %v7548_v5, %v8930_v34  ;;  %v9231_v55 = vshra.s32 %v12316_v50, 5  ;;  %v10067_v3 = vand.u32 31, %v1575_v27 }
  0xbb   : > { %6608 = vmatpush1.bf16.msk.msra.mxu0 %vm6607_vm8, %v12322_v62  ;;  %vm6693_vm11 = vmpackc.low %vm3368_vm4, %vm3366_vm3  ;;  %vm3015_vm3 = vcmp.eq.s32.totalorder %v7551_v6, %v8914_v16  ;;  %vm3012_vm8 = vcmp.eq.s32.totalorder %v7548_v5, %v8946_v4  ;;  %v9272_v18 = vrot.slane %v4375_v51, 10 }
  0xbc   : > { %6694 = vmatpush1.bf16.msk.msra.mxu1 %vm6693_vm11, %v12322_v62  ;;  %vm6609_vm14 = vmpackc.low %vm3019_vm7, %vm3017_vm6  ;;  %vm3361_vm6 = vcmp.eq.s32.totalorder %v7551_v6, %v8930_v34  ;;  %vm3358_vm11 = vcmp.eq.s32.totalorder %v7548_v5, %v8961_v8  ;;  %v3685_v33 = vrot.slane %v9231_v55, %v7462_v40  ;;  %v3681_v51 = vrot.slane %v9231_v55, %v7456_v37 }
  0xbd   : > { %6610 = vmatprep.subr.msk.bf16.mxu0 %vm6609_vm14, %v12322_v62  ;;  %vm6695_vm1 = vmpackc.low %vm3365_vm10, %vm3363_vm9  ;;  %vm3014_vm9 = vcmp.eq.s32.totalorder %v7551_v6, %v8946_v4  ;;  %vm3009_vm14 = vcmp.eq.s32.totalorder %v7609_v13, %v8914_v16  ;;  %v4033_v55 = vrot.slane %v9246_v11, %v7456_v37 }
  0xbe   : > { %2520 = vmatmul.mubr.bf16.gmra.mxu0 %v7326_v57  ;;  %6696 = vmatprep.subr.msk.bf16.mxu1 %vm6695_vm1, %v12322_v62  ;;  %vm6611_vm4 = vmpackc.low %vm3018_vm13, %vm3016_vm12  ;;  %vm3360_vm12 = vcmp.eq.s32.totalorder %v7551_v6, %v8961_v8  ;;  %vm3355_vm1 = vcmp.eq.s32.totalorder %v7609_v13, %v8930_v34  ;;  %v5065_v57 = vfloor.f32 %v5064_v60  ;;  %v7330_v60 = vld [vmem:[%s12309_s1 + $0xd8] sm:$0xff]  }
  0xbf   : > { %2872 = vmatmul.mubr.bf16.gmra.mxu1 %v7327_v56  ;;  %6612 = vmatpush1.bf16.msk.msra.mxu0 %vm6611_vm4, %v12322_v62  ;;  %vm6697_vm7 = vmpackc.low %vm3364_vm0, %vm3362_vm15  ;;  %vm3011_vm15 = vcmp.eq.s32.totalorder %v7612_v14, %v8914_v16  ;;  %vm3008_vm4 = vcmp.eq.s32.totalorder %v7609_v13, %v8946_v4  ;;  %v6891_v56 = vrot.slane %v4371_v47, 9  ;;  %v7331_v47 = vld [vmem:[%s12309_s1 + $0xf8] sm:$0xff]  }
  0xc0   : > { %6698 = vmatpush1.bf16.msk.msra.mxu1 %vm6697_vm7, %v12322_v62  ;;  %vm6613_vm10 = vmpackc.low %vm3015_vm3, %vm3013_vm2  ;;  %2529 = vmatprep.mubr.bf16.mxu0 %v12324_v0  ;;  %vm3357_vm2 = vcmp.eq.s32.totalorder %v7612_v14, %v8930_v34  ;;  %vm3354_vm7 = vcmp.eq.s32.totalorder %v7609_v13, %v8961_v8  ;;  %v5066_v63 = vmax.f32 %v5065_v57, 0.0  ;;  %v9349_v57 = vrot.slane %v3685_v33, %v7456_v37 }
  0xc1   : > { %6614 = vmatprep.subr.msk.bf16.mxu0 %vm6613_vm10, %v12322_v62  ;;  %vm6699_vm13 = vmpackc.low %vm3361_vm6, %vm3359_vm5  ;;  %2881 = vmatprep.mubr.bf16.mxu1 %v12324_v0  ;;  %vm3010_vm5 = vcmp.eq.s32.totalorder %v7612_v14, %v8946_v4  ;;  %vm3005_vm10 = vcmp.eq.s32.totalorder %v7654_v19, %v8914_v16  ;;  %v4374_v10 = vadd.s32 %v9148_v43, %v6891_v56  ;;  %v4717_v43 = vmul.u32 2481, %v9274_v42 }
  0xc2   : > { %6700 = vmatprep.subr.msk.bf16.mxu1 %vm6699_vm13, %v12322_v62  ;;  %vm6615_vm0 = vmpackc.low %vm3014_vm9, %vm3012_vm8  ;;  %vm3356_vm8 = vcmp.eq.s32.totalorder %v7612_v14, %v8961_v8  ;;  %vm3351_vm13 = vcmp.eq.s32.totalorder %v7654_v19, %v8930_v34  ;;  %v9377_v33 = vrot.slane %v3681_v51, %v7456_v37 }
  0xc3   : > { %6616 = vmatpush1.bf16.msk.msra.mxu0 %vm6615_vm0, %v12322_v62  ;;  %vm6701_vm3 = vmpackc.low %vm3360_vm12, %vm3358_vm11  ;;  %vm3007_vm11 = vcmp.eq.s32.totalorder %v7657_v20, %v8914_v16  ;;  %vm3004_vm0 = vcmp.eq.s32.totalorder %v7654_v19, %v8946_v4 }
  0xc4   : > { %6702 = vmatpush1.bf16.msk.msra.mxu1 %vm6701_vm3, %v12322_v62  ;;  %vm6617_vm6 = vmpackc.low %vm3011_vm15, %vm3009_vm14  ;;  %vm3353_vm14 = vcmp.eq.s32.totalorder %v7657_v20, %v8930_v34  ;;  %vm3350_vm3 = vcmp.eq.s32.totalorder %v7654_v19, %v8961_v8 }
  0xc5   : > { %6618 = vmatprep.subr.msk.bf16.mxu0 %vm6617_vm6, %v12322_v62  ;;  %vm6703_vm9 = vmpackc.low %vm3357_vm2, %vm3355_vm1  ;;  %vm3006_vm1 = vcmp.eq.s32.totalorder %v7657_v20, %v8946_v4  ;;  %vm3001_vm6 = vcmp.eq.s32.totalorder %v7697_v25, %v8914_v16 }
  0xc6   : > { %2530 = vmatmul.mubr.bf16.gmra.mxu0 %v7328_v61  ;;  %6704 = vmatprep.subr.msk.bf16.mxu1 %vm6703_vm9, %v12322_v62  ;;  %vm6619_vm12 = vmpackc.low %vm3010_vm5, %vm3008_vm4  ;;  %vm3352_vm4 = vcmp.eq.s32.totalorder %v7657_v20, %v8961_v8  ;;  %vm3347_vm9 = vcmp.eq.s32.totalorder %v7697_v25, %v8930_v34  ;;  %v4037_v61 = vrot.slane %v9246_v11, %v7462_v40  ;;  %v5067_v11 = vmin.f32 %v5066_v63, 1481.0 }
  0xc7   : > { %2882 = vmatmul.mubr.bf16.gmra.mxu1 %v7329_v7  ;;  %6620 = vmatpush1.bf16.msk.msra.mxu0 %vm6619_vm12, %v12322_v62  ;;  %vm6705_vm15 = vmpackc.low %vm3356_vm8, %vm3354_vm7  ;;  %vm3003_vm7 = vcmp.eq.s32.totalorder %v7700_v26, %v8914_v16  ;;  %v5417_v7 = vfloor.f32 %v5416_v28  ;;  %vm3000_vm12 = vcmp.eq.s32.totalorder %v7697_v25, %v8946_v4  ;;  %v4721_v63 = vmul.u32 1941, %v9274_v42 }
  0xc8   : > { %6706 = vmatpush1.bf16.msk.msra.mxu1 %vm6705_vm15, %v12322_v62  ;;  %vm6621_vm2 = vmpackc.low %vm3007_vm11, %vm3005_vm10  ;;  %2539 = vmatprep.mubr.bf16.mxu0 %v12324_v0  ;;  %vm3349_vm10 = vcmp.eq.s32.totalorder %v7700_v26, %v8930_v34  ;;  %vm3346_vm15 = vcmp.eq.s32.totalorder %v7697_v25, %v8961_v8  ;;  %v9363_v28 = vrot.slane %v4037_v61, %v7456_v37  ;;  %v6977_v61 = vrot.slane %v4717_v43, 9 }
  0xc9   : > { %6622 = vmatprep.subr.msk.bf16.mxu0 %vm6621_vm2, %v12322_v62  ;;  %vm6707_vm5 = vmpackc.low %vm3353_vm14, %vm3351_vm13  ;;  %2891 = vmatprep.mubr.bf16.mxu1 %v12324_v0  ;;  %vm3002_vm13 = vcmp.eq.s32.totalorder %v7700_v26, %v8946_v4  ;;  %vm2997_vm2 = vcmp.eq.s32.totalorder %v7451_v29, %v8914_v16  ;;  %v5418_v56 = vmax.f32 %v5417_v7, 0.0  ;;  %v6978_v51 = vrot.slane %v4721_v63, 10 }
  0xca   : > { %6708 = vmatprep.subr.msk.bf16.mxu1 %vm6707_vm5, %v12322_v62  ;;  %vm6623_vm8 = vmpackc.low %vm3006_vm1, %vm3004_vm0  ;;  %vm3348_vm0 = vcmp.eq.s32.totalorder %v7700_v26, %v8961_v8  ;;  %vm3343_vm5 = vcmp.eq.s32.totalorder %v7451_v29, %v8930_v34 }
  0xcb   : > { %6624 = vmatpush1.bf16.msk.msra.mxu0 %vm6623_vm8, %v12322_v62  ;;  %vm6709_vm11 = vmpackc.low %vm3352_vm4, %vm3350_vm3  ;;  %vm2999_vm3 = vcmp.eq.s32.totalorder %v7742_v32, %v8914_v16  ;;  %vm2996_vm8 = vcmp.eq.s32.totalorder %v7451_v29, %v8946_v4  ;;  %v7269_v16 = vtrunc.f32 %v5067_v11  ;;  %v5419_v7 = vmin.f32 %v5418_v56, 2047.0  ;;  %v7335_v56 = vld [vmem:[%s12309_s1 + $0x128] sm:$0xff]  }
  0xcc   : > { %6710 = vmatpush1.bf16.msk.msra.mxu1 %vm6709_vm11, %v12322_v62  ;;  %vm6625_vm14 = vmpackc.low %vm3003_vm7, %vm3001_vm6  ;;  %vm3345_vm6 = vcmp.eq.s32.totalorder %v7742_v32, %v8930_v34  ;;  %vm3342_vm11 = vcmp.eq.s32.totalorder %v7451_v29, %v8961_v8  ;;  %v7332_v34 = vld [vmem:[%s12309_s1 + $0x100] sm:$0xff]  }
  0xcd   : > { %6626 = vmatprep.subr.msk.bf16.mxu0 %vm6625_vm14, %v12322_v62  ;;  %vm6711_vm1 = vmpackc.low %vm3349_vm10, %vm3347_vm9  ;;  %vm2998_vm9 = vcmp.eq.s32.totalorder %v7742_v32, %v8946_v4  ;;  %vm3723_vm14 = vcmp.eq.s32.totalorder %v7468_v44, %v9349_v57  ;;  %v7333_v4 = vld [vmem:[%s12309_s1 + $0x120] sm:$0xff]  }
  0xce   : > { %2540 = vmatmul.mubr.bf16.gmra.mxu0 %v7330_v60  ;;  %6712 = vmatprep.subr.msk.bf16.mxu1 %vm6711_vm1, %v12322_v62  ;;  %vm6627_vm4 = vmpackc.low %vm3002_vm13, %vm3000_vm12  ;;  %vm3344_vm12 = vcmp.eq.s32.totalorder %v7742_v32, %v8961_v8  ;;  %v9393_v60 = vrot.slane %v4033_v55, %v7456_v37  ;;  %vm4075_vm1 = vcmp.eq.s32.totalorder %v7468_v44, %v9363_v28  ;;  %v9466_v8 = vcvt.f32.s32 %v7269_v16  ;;  %v7334_v55 = vld [vmem:[%s12309_s1 + $0x108] sm:$0xff]  }
  0xcf   : > { %2892 = vmatmul.mubr.bf16.gmra.mxu1 %v7331_v47  ;;  %6628 = vmatpush1.bf16.msk.msra.mxu0 %vm6627_vm4, %v12322_v62  ;;  %vm6713_vm7 = vmpackc.low %vm3348_vm0, %vm3346_vm15  ;;  %vm3725_vm15 = vcmp.eq.s32.totalorder %v7473_v46, %v9349_v57  ;;  %vm3722_vm4 = vcmp.eq.s32.totalorder %v7468_v44, %v9377_v33  ;;  %v9436_v47 = vadd.s32 %v9272_v18, %v4374_v10  ;;  %v7271_v10 = vtrunc.f32 %v5419_v7 }
  0xd0   : > { %6714 = vmatpush1.bf16.msk.msra.mxu1 %vm6713_vm7, %v12322_v62  ;;  %vm6629_vm10 = vmpackc.low %vm2999_vm3, %vm2997_vm2  ;;  %3213 = vmatprep.mubr.bf16.mxu0 %v12324_v0  ;;  %vm4077_vm2 = vcmp.eq.s32.totalorder %v7473_v46, %v9363_v28  ;;  %vm4074_vm7 = vcmp.eq.s32.totalorder %v7468_v44, %v9393_v60  ;;  %v4720_v18 = vadd.s32 %v9274_v42, %v6977_v61  ;;  %v9495_v42 = vand.u32 31, %v173_v39 }
  0xd1   : > { %6630 = vmatprep.subr.msk.bf16.mxu0 %vm6629_vm10, %v12322_v62  ;;  %vm6715_vm13 = vmpackc.low %vm3345_vm6, %vm3343_vm5  ;;  %3559 = vmatprep.mubr.bf16.mxu1 %v12324_v0  ;;  %vm3724_vm5 = vcmp.eq.s32.totalorder %v7473_v46, %v9377_v33  ;;  %12412 = vst [vmem:[#allocation6_spill] sm:$0xff] %v9436_v47  ;;  %vm3721_vm10 = vcmp.eq.s32.totalorder %v7481_v49, %v9349_v57  ;;  %v12314_v36 = vand.u32 4095, %v9436_v47  ;;  %v5069_v39 = vmul.u32 2481, %v9466_v8 }
  0xd2   : > { %6716 = vmatprep.subr.msk.bf16.mxu1 %vm6715_vm13, %v12322_v62  ;;  %vm6631_vm0 = vmpackc.low %vm2998_vm9, %vm2996_vm8  ;;  %vm4076_vm8 = vcmp.eq.s32.totalorder %v7473_v46, %v9393_v60  ;;  %vm3719_vm9 = vcmp.eq.s32.totalorder %v7478_v48, %v9349_v57  ;;  %vm3718_vm13 = vcmp.eq.s32.totalorder %v7478_v48, %v9377_v33  ;;  %v9541_v43 = vadd.s32 %v6978_v51, %v4720_v18  ;;  %v7336_v51 = vld [vmem:[%s12309_s1 + $0x110] sm:$0xff]  }
  0xd3   : > { %6632 = vmatpush1.bf16.msk.msra.mxu0 %vm6631_vm0, %v12322_v62  ;;  %vm6717_vm3 = vmpackc.low %vm3344_vm12, %vm3342_vm11  ;;  %vm4071_vm12 = vcmp.eq.s32.totalorder %v7478_v48, %v9363_v28  ;;  %vm4073_vm0 = vcmp.eq.s32.totalorder %v7481_v49, %v9363_v28  ;;  %v9543_v11 = vcvt.f32.s32 %v7271_v10  ;;  %v7063_v63 = vrot.slane %v5069_v39, 9  ;;  %v7337_v39 = vld [vmem:[%s12309_s1 + $0x130] sm:$0xff]  }
  0xd4   : > { %6718 = vmatpush1.bf16.msk.msra.mxu1 %vm6717_vm3, %v12322_v62  ;;  %vm6773_vm6 = vmpackc.low %vm3725_vm15, %vm3723_vm14  ;;  %vm3720_vm14 = vcmp.eq.s32.totalorder %v7481_v49, %v9377_v33  ;;  %vm4072_vm3 = vcmp.eq.s32.totalorder %v7481_v49, %v9393_v60  ;;  %12413 = vst [vmem:[#allocation7_spill] sm:$0xff] %v9541_v43  ;;  %v5073_v16 = vmul.u32 1941, %v9466_v8  ;;  %v9618_v7 = vshra.s32 %v12314_v36, 5 }
  0xd5   : > { %6774 = vmatprep.subr.msk.bf16.mxu0 %vm6773_vm6, %v12322_v62  ;;  %vm6859_vm11 = vmpackc.low %vm4077_vm2, %vm4075_vm1  ;;  %vm4070_vm1 = vcmp.eq.s32.totalorder %v7478_v48, %v9393_v60  ;;  %v5421_v61 = vmul.u32 2481, %v9543_v11  ;;  %v5072_v38 = vadd.s32 %v9466_v8, %v7063_v63  ;;  %v5425_v10 = vmul.u32 1941, %v9543_v11 }
  0xd6   : > { %3214 = vmatmul.mubr.bf16.vlgmr.msra.gmra.mxu0 %v7332_v34  ;;  %6860 = vmatprep.subr.msk.bf16.mxu1 %vm6859_vm11, %v12322_v62  ;;  %vm6775_vm15 = vmpackc.low %vm3724_vm5, %vm3722_vm4  ;;  %vm3715_vm4 = vcmp.eq.s32.totalorder %v7486_v52, %v9349_v57  ;;  %vm3717_vm5 = vcmp.eq.s32.totalorder %v7489_v53, %v9349_v57  ;;  %vm3714_vm11 = vcmp.eq.s32.totalorder %v7486_v52, %v9377_v33  ;;  %v12313_v34 = vand.u32 4095, %v9541_v43 }
  0xd7   : > { %3560 = vmatmul.mubr.bf16.vlgmr.msra.gmra.mxu1 %v7333_v4  ;;  %6776 = vmatpush1.bf16.msk.msra.mxu0 %vm6775_vm15, %v12322_v62  ;;  %vm6861_vm2 = vmpackc.low %vm4076_vm8, %vm4074_vm7  ;;  %vm4067_vm7 = vcmp.eq.s32.totalorder %v7486_v52, %v9363_v28  ;;  %vm4069_vm8 = vcmp.eq.s32.totalorder %v7489_v53, %v9363_v28  ;;  %vm4066_vm15 = vcmp.eq.s32.totalorder %v7486_v52, %v9393_v60  ;;  %v9636_v4 = vand.u32 31, %v519_v41 }
  0xd8   : > { %6862 = vmatpush1.bf16.msk.msra.mxu1 %vm6861_vm2, %v12322_v62  ;;  %vm6777_vm6 = vmpackc.low %vm3721_vm10, %vm3719_vm9  ;;  %3223 = vmatprep.mubr.bf16.mxu0 %v12324_v0  ;;  %vm3716_vm10 = vcmp.eq.s32.totalorder %v7489_v53, %v9377_v33  ;;  %vm4068_vm2 = vcmp.eq.s32.totalorder %v7489_v53, %v9393_v60  ;;  %v7064_v41 = vrot.slane %v5073_v16, 10  ;;  %v4726_v8 = vshra.s32 %v12313_v34, 5 }
  0xd9   : > { %6778 = vmatprep.subr.msk.bf16.mxu0 %vm6777_vm6, %v12322_v62  ;;  %vm6863_vm9 = vmpackc.low %vm4073_vm0, %vm4071_vm12  ;;  %3569 = vmatprep.mubr.bf16.mxu1 %v12324_v0  ;;  %vm3711_vm0 = vcmp.eq.s32.totalorder %v7548_v5, %v9349_v57  ;;  %vm3709_vm6 = vcmp.eq.s32.totalorder %v7612_v14, %v9349_v57  ;;  %v7149_v18 = vrot.slane %v5421_v61, 9  ;;  %v1361_v36 = vrot.slane %v9966_v15, %v7462_v40 }
  0xda   : > { %6864 = vmatprep.subr.msk.bf16.mxu1 %vm6863_vm9, %v12322_v62  ;;  %vm6779_vm12 = vmpackc.low %vm3720_vm14, %vm3718_vm13  ;;  %vm4063_vm14 = vcmp.eq.s32.totalorder %v7548_v5, %v9363_v28  ;;  %vm4064_vm9 = vcmp.eq.s32.totalorder %v7551_v6, %v9393_v60  ;;  %v9712_v63 = vadd.s32 %v7064_v41, %v5072_v38  ;;  %v4735_v16 = vrot.slane %v4726_v8, %v7462_v40 }
  0xdb   : > { %6780 = vmatpush1.bf16.msk.msra.mxu0 %vm6779_vm12, %v12322_v62  ;;  %vm6865_vm13 = vmpackc.low %vm4072_vm3, %vm4070_vm1  ;;  %vm4062_vm3 = vcmp.eq.s32.totalorder %v7548_v5, %v9393_v60  ;;  %vm3707_vm12 = vcmp.eq.s32.totalorder %v7609_v13, %v9349_v57  ;;  %v5424_v61 = vadd.s32 %v9543_v11, %v7149_v18  ;;  %v4731_v38 = vrot.slane %v4726_v8, %v7456_v37 }
  0xdc   : > { %6866 = vmatpush1.bf16.msk.msra.mxu1 %vm6865_vm13, %v12322_v62  ;;  %vm6781_vm1 = vmpackc.low %vm3717_vm5, %vm3715_vm4  ;;  %vm4059_vm5 = vcmp.eq.s32.totalorder %v7609_v13, %v9363_v28  ;;  %vm4061_vm13 = vcmp.eq.s32.totalorder %v7612_v14, %v9363_v28  ;;  %12418 = vst [vmem:[#allocation8_spill] sm:$0xff] %v9712_v63  ;;  %v307_v41 = vrot.slane %v9495_v42, %v7456_v37 }
  0xdd   : > { %6782 = vmatprep.subr.msk.bf16.mxu0 %vm6781_vm1, %v12322_v62  ;;  %vm6867_vm4 = vmpackc.low %vm4069_vm8, %vm4067_vm7  ;;  %vm3706_vm7 = vcmp.eq.s32.totalorder %v7609_v13, %v9377_v33  ;;  %vm12417_vm8 = vcmp.eq.s32.totalorder %v7551_v6, %v9377_v33  ;;  %v311_v8 = vrot.slane %v9495_v42, %v7462_v40  ;;  %v12312_v42 = vand.u32 4095, %v9712_v63  ;;  %v7345_v63 = vld [vmem:[%s12309_s1 + $0x170] sm:$0xff]  }
  0xde   : > { %3224 = vmatmul.mubr.bf16.gmra.mxu0 %v7334_v55  ;;  %6868 = vmatprep.subr.msk.bf16.mxu1 %vm6867_vm4, %v12322_v62  ;;  %vm6783_vm1 = vmpackc.low %vm3716_vm10, %vm3714_vm11  ;;  %vm4058_vm10 = vcmp.eq.s32.totalorder %v7609_v13, %v9393_v60  ;;  %vm3704_vm4 = vcmp.eq.s32.totalorder %v7657_v20, %v9377_v33  ;;  %v4389_v55 = vrot.slane %v9618_v7, %v7462_v40 }
  0xdf   : > { %3570 = vmatmul.mubr.bf16.gmra.mxu1 %v7335_v56  ;;  %6784 = vmatpush1.bf16.msk.msra.mxu0 %vm6783_vm1, %v12322_v62  ;;  %vm6869_vm11 = vmpackc.low %vm4068_vm2, %vm4066_vm15  ;;  %vm12414_vm15 = vcmp.eq.s32.totalorder %v7551_v6, %v9349_v57  ;;  %vm3705_vm1 = vcmp.eq.s32.totalorder %v7657_v20, %v9349_v57  ;;  %v4385_v56 = vrot.slane %v9618_v7, %v7456_v37  ;;  %v7150_v7 = vrot.slane %v5425_v10, 10  ;;  %v7338_v10 = vld [vmem:[%s12309_s1 + $0x118] sm:$0xff]  }
  0xe0   : > { %6870 = vmatpush1.bf16.msk.msra.mxu1 %vm6869_vm11, %v12322_v62  ;;  %vm6785_vm2 = vmpackc.low %vm12414_vm15, %vm3711_vm0  ;;  %3233 = vmatprep.mubr.bf16.mxu0 %v12324_v0  ;;  %vm12415_vm0 = vcmp.eq.s32.totalorder %v7551_v6, %v9363_v28  ;;  %vm3702_vm15 = vcmp.eq.s32.totalorder %v7654_v19, %v9377_v33  ;;  %v9746_v11 = vrot.slane %v4389_v55, %v7456_v37 }
  0xe1   : > { %6786 = vmatprep.subr.msk.bf16.mxu0 %vm6785_vm2, %v12322_v62  ;;  %vm6871_vm11 = vmpackc.low %vm12415_vm0, %vm4063_vm14  ;;  %3579 = vmatprep.mubr.bf16.mxu1 %v12324_v0  ;;  %vm12416_vm2 = vcmp.eq.s32.totalorder %v7548_v5, %v9377_v33  ;;  %vm4051_vm0 = vcmp.eq.s32.totalorder %v7697_v25, %v9363_v28  ;;  %v9765_v18 = vrot.slane %v4385_v56, %v7456_v37  ;;  %v7339_v56 = vld [vmem:[%s12309_s1 + $0x138] sm:$0xff]  }
  0xe2   : > { %6872 = vmatprep.subr.msk.bf16.mxu1 %vm6871_vm11, %v12322_v62  ;;  %vm6787_vm14 = vmpackc.low %vm12417_vm8, %vm12416_vm2  ;;  %vm4056_vm11 = vcmp.eq.s32.totalorder %v7657_v20, %v9393_v60  ;;  %vm3698_vm2 = vcmp.eq.s32.totalorder %v7697_v25, %v9377_v33  ;;  %v9785_v55 = vadd.s32 %v7150_v7, %v5424_v61  ;;  %v9805_v61 = vrot.slane %v307_v41, %v7456_v37 }
  0xe3   : > { %6788 = vmatpush1.bf16.msk.msra.mxu0 %vm6787_vm14, %v12322_v62  ;;  %vm6873_vm8 = vmpackc.low %vm4064_vm9, %vm4062_vm3  ;;  %vm4053_vm3 = vcmp.eq.s32.totalorder %v7700_v26, %v9363_v28  ;;  %vm3700_vm14 = vcmp.eq.s32.totalorder %v7700_v26, %v9377_v33  ;;  %v9837_v41 = vshra.s32 %v12312_v42, 5  ;;  %v10167_v59 = vrot.slane %v1361_v36, %v7456_v37 }
  0xe4   : > { %6874 = vmatpush1.bf16.msk.msra.mxu1 %vm6873_vm8, %v12322_v62  ;;  %vm6789_vm9 = vmpackc.low %vm3709_vm6, %vm3707_vm12  ;;  %vm4050_vm12 = vcmp.eq.s32.totalorder %v7697_v25, %v9393_v60  ;;  %12424 = vst [vmem:[#allocation9_spill] sm:$0xff] %v9785_v55 }
  0xe5   : > { %6790 = vmatprep.subr.msk.bf16.mxu0 %vm6789_vm9, %v12322_v62  ;;  %vm6875_vm6 = vmpackc.low %vm4061_vm13, %vm4059_vm5  ;;  %vm12419_vm5 = vcmp.eq.s32.totalorder %v7612_v14, %v9377_v33  ;;  %vm3695_vm9 = vcmp.eq.s32.totalorder %v7451_v29, %v9349_v57 }
  0xe6   : > { %3234 = vmatmul.mubr.bf16.gmra.mxu0 %v7336_v51  ;;  %6876 = vmatprep.subr.msk.bf16.mxu1 %vm6875_vm6, %v12322_v62  ;;  %vm6791_vm13 = vmpackc.low %vm12419_vm5, %vm3706_vm7  ;;  %vm12420_vm6 = vcmp.eq.s32.totalorder %v7612_v14, %v9393_v60  ;;  %vm3697_vm7 = vcmp.eq.s32.totalorder %v7742_v32, %v9349_v57  ;;  %vm12421_vm5 = vcmp.eq.s32.totalorder %v7654_v19, %v9349_v57 }
  0xe7   : > { %3580 = vmatmul.mubr.bf16.gmra.mxu1 %v7337_v39  ;;  %6792 = vmatpush1.bf16.msk.msra.mxu0 %vm6791_vm13, %v12322_v62  ;;  %vm6877_vm8 = vmpackc.low %vm12420_vm6, %vm4058_vm10  ;;  %v653_v51 = vrot.slane %v9636_v4, %v7456_v37  ;;  %vm12422_vm10 = vcmp.eq.s32.totalorder %v7654_v19, %v9363_v28  ;;  %vm4047_vm6 = vcmp.eq.s32.totalorder %v7451_v29, %v9363_v28 }
  0xe8   : > { %6878 = vmatpush1.bf16.msk.msra.mxu1 %vm6877_vm8, %v12322_v62  ;;  %vm6793_vm13 = vmpackc.low %vm3705_vm1, %vm12421_vm5  ;;  %3243 = vmatprep.mubr.bf16.mxu0 %v12324_v0  ;;  %vm12423_vm8 = vcmp.eq.s32.totalorder %v7657_v20, %v9363_v28  ;;  %vm4049_vm5 = vcmp.eq.s32.totalorder %v7742_v32, %v9363_v28  ;;  %v9783_v39 = vrot.slane %v4735_v16, %v7456_v37  ;;  %v7340_v28 = vld [vmem:[%s12309_s1 + $0x140] sm:$0xff]  }
  0xe9   : > { %6794 = vmatprep.subr.msk.bf16.mxu0 %vm6793_vm13, %v12322_v62  ;;  %vm6879_vm1 = vmpackc.low %vm12423_vm8, %vm12422_vm10  ;;  %3589 = vmatprep.mubr.bf16.mxu1 %v12324_v0  ;;  %vm3694_vm10 = vcmp.eq.s32.totalorder %v7451_v29, %v9377_v33  ;;  %v9802_v16 = vrot.slane %v4731_v38, %v7456_v37  ;;  %vm4429_vm8 = vcmp.eq.s32.totalorder %v7473_v46, %v9746_v11 }
  0xea   : > { %6880 = vmatprep.subr.msk.bf16.mxu1 %vm6879_vm1, %v12322_v62  ;;  %vm6795_vm13 = vmpackc.low %vm3704_vm4, %vm3702_vm15  ;;  %vm12425_vm4 = vcmp.eq.s32.totalorder %v7654_v19, %v9393_v60  ;;  %vm4427_vm1 = vcmp.eq.s32.totalorder %v7468_v44, %v9746_v11  ;;  %v9819_v7 = vrot.slane %v653_v51, %v7456_v37  ;;  %v9822_v38 = vrot.slane %v311_v8, %v7456_v37 }
  0xeb   : > { %6796 = vmatpush1.bf16.msk.msra.mxu0 %vm6795_vm13, %v12322_v62  ;;  %vm6881_vm15 = vmpackc.low %vm4056_vm11, %vm12425_vm4  ;;  %vm12426_vm11 = vcmp.eq.s32.totalorder %v7697_v25, %v9349_v57  ;;  %vm12427_vm13 = vcmp.eq.s32.totalorder %v7700_v26, %v9349_v57  ;;  %v657_v51 = vrot.slane %v9636_v4, %v7462_v40  ;;  %v12311_v4 = vand.u32 4095, %v9785_v55  ;;  %v7344_v55 = vld [vmem:[%s12309_s1 + $0x150] sm:$0xff]  }
  0xec   : > { %6882 = vmatpush1.bf16.msk.msra.mxu1 %vm6881_vm15, %v12322_v62  ;;  %vm6797_vm4 = vmpackc.low %vm12427_vm13, %vm12426_vm11  ;;  %vm4774_vm13 = vcmp.eq.s32.totalorder %v7473_v46, %v9802_v16  ;;  %v5087_v57 = vrot.slane %v9837_v41, %v7462_v40  ;;  %vm321_vm11 = vcmp.eq.s32.totalorder %v7451_v29, %v9822_v38 }
  0xed   : > { %6798 = vmatprep.subr.msk.bf16.mxu0 %vm6797_vm4, %v12322_v62  ;;  %vm6883_vm15 = vmpackc.low %vm4053_vm3, %vm4051_vm0  ;;  %vm4773_vm3 = vcmp.eq.s32.totalorder %v7468_v44, %v9783_v39  ;;  %vm4772_vm4 = vcmp.eq.s32.totalorder %v7468_v44, %v9802_v16  ;;  %v9903_v8 = vrot.slane %v657_v51, %v7456_v37 }
  0xee   : > { %3244 = vmatmul.mubr.bf16.gmra.mxu0 %v7338_v10  ;;  %6884 = vmatprep.subr.msk.bf16.mxu1 %vm6883_vm15, %v12322_v62  ;;  %vm6799_vm0 = vmpackc.low %vm3700_vm14, %vm3698_vm2  ;;  %vm12428_vm2 = vcmp.eq.s32.totalorder %v7700_v26, %v9393_v60  ;;  %vm4775_vm15 = vcmp.eq.s32.totalorder %v7473_v46, %v9783_v39  ;;  %v9923_v10 = vshra.s32 %v12311_v4, 5 }
  0xef   : > { %3590 = vmatmul.mubr.bf16.gmra.mxu1 %v7339_v56  ;;  %6800 = vmatpush1.bf16.msk.msra.mxu0 %vm6799_vm0, %v12322_v62  ;;  %vm6885_vm14 = vmpackc.low %vm12428_vm2, %vm4050_vm12  ;;  %vm4769_vm2 = vcmp.eq.s32.totalorder %v7478_v48, %v9783_v39  ;;  %vm320_vm0 = vcmp.eq.s32.totalorder %v7451_v29, %v9805_v61  ;;  %v5083_v56 = vrot.slane %v9837_v41, %v7456_v37 }
  0xf0   : > { %6886 = vmatpush1.bf16.msk.msra.mxu1 %vm6885_vm14, %v12322_v62  ;;  %vm6801_vm12 = vmpackc.low %vm3697_vm7, %vm3695_vm9  ;;  %3911 = vmatprep.mubr.bf16.mxu0 %v12324_v0  ;;  %vm322_vm7 = vcmp.eq.s32.totalorder %v7742_v32, %v9805_v61  ;;  %v9992_v41 = vrot.slane %v5087_v57, %v7456_v37  ;;  %v5439_v51 = vrot.slane %v9923_v10, %v7462_v40 }
  0xf1   : > { %6802 = vmatprep.subr.msk.bf16.mxu0 %vm6801_vm12, %v12322_v62  ;;  %vm6887_vm9 = vmpackc.low %vm4049_vm5, %vm4047_vm6  ;;  %4263 = vmatprep.mubr.bf16.mxu1 %v12324_v0  ;;  %vm12429_vm6 = vcmp.eq.s32.totalorder %v7742_v32, %v9377_v33  ;;  %v7341_v33 = vld [vmem:[%s12309_s1 + $0x160] sm:$0xff]   ;;  %vm668_vm12 = vcmp.eq.s32.totalorder %v7742_v32, %v9819_v7  ;;  %v5435_v1 = vrot.slane %v9923_v10, %v7456_v37  ;;  %v7342_v10 = vld [vmem:[%s12309_s1 + $0x148] sm:$0xff]  }
  0xf2   : > { %6888 = vmatprep.subr.msk.bf16.mxu1 %vm6887_vm9, %v12322_v62  ;;  %vm6803_vm5 = vmpackc.low %vm12429_vm6, %vm3694_vm10  ;;  %vm666_vm9 = vcmp.eq.s32.totalorder %v7451_v29, %v9819_v7  ;;  %vm12430_vm10 = vcmp.eq.s32.totalorder %v7451_v29, %v9393_v60  ;;  %vm12431_vm6 = vcmp.eq.s32.totalorder %v7742_v32, %v9393_v60  ;;  %v9947_v60 = vand.u32 31, %v871_v21 }
  0xf3   : > { %6804 = vmatpush1.bf16.msk.msra.mxu0 %vm6803_vm5, %v12322_v62  ;;  %vm6889_vm14 = vmpackc.low %vm12431_vm6, %vm12430_vm10  ;;  %vm4764_vm6 = vcmp.eq.s32.totalorder %v7486_v52, %v9802_v16  ;;  %vm4766_vm5 = vcmp.eq.s32.totalorder %v7489_v53, %v9802_v16  ;;  %v12320_v21 = vmov 0.0   ;;  %v10116_v50 = vrot.slane %v5439_v51, %v7456_v37  ;;  %v7343_v51 = vld [vmem:[%s12309_s1 + $0x168] sm:$0xff]  }
  0xf4   : > { %6890 = vmatpush1.bf16.msk.msra.mxu1 %vm6889_vm14, %v12322_v62  ;;  %vm6945_vm10 = vmpackc.low %vm4429_vm8, %vm4427_vm1  ;;  %vm4415_vm1 = vcmp.eq.s32.totalorder %v7548_v5, %v9746_v11  ;;  %v9983_v17 = vsel %vm320_vm0, 1.0, %v12320_v21  ;;  %v9989_v23 = vsel %vm666_vm9, 1.0, %v12320_v21  ;;  %vm12433_vm0 = vcmp.eq.s32.totalorder %v7473_v46, %v9765_v18 }
  0xf5   : > { %6946 = vmatprep.subr.msk.bf16.mxu0 %vm6945_vm10, %v12322_v62  ;;  %vm7031_vm8 = vmpackc.low %vm4775_vm15, %vm4773_vm3  ;;  %vm667_vm3 = vcmp.eq.s32.totalorder %v7451_v29, %v9903_v8  ;;  %vm12432_vm15 = vcmp.eq.s32.totalorder %v7468_v44, %v9765_v18  ;;  %v10013_v57 = vsel %vm321_vm11, 1.0, %v12320_v21  ;;  %v10043_v4 = vsel %vm668_vm12, 1.0, %v12320_v21 }
  0xf6   : > { %3912 = vmatmul.mubr.bf16.vlgmr.msra.gmra.mxu0 %v7340_v28  ;;  %7032 = vmatprep.subr.msk.bf16.mxu1 %vm7031_vm8, %v12322_v62  ;;  %vm6947_vm10 = vmpackc.low %vm12433_vm0, %vm12432_vm15  ;;  %vm323_vm8 = vcmp.eq.s32.totalorder %v7742_v32, %v9822_v38  ;;  %vm669_vm15 = vcmp.eq.s32.totalorder %v7742_v32, %v9903_v8  ;;  %v10031_v28 = vrot.slane %v5083_v56, %v7456_v37  ;;  %v10087_v27 = vsel %vm667_vm3, 1.0, %v12320_v21 }
  0xf7   : > { %4264 = vmatmul.mubr.bf16.vlgmr.msra.gmra.mxu1 %v7341_v33  ;;  %6948 = vmatpush1.bf16.msk.msra.mxu0 %vm6947_vm10, %v12322_v62  ;;  %vm7033_vm0 = vmpackc.low %vm4774_vm13, %vm4772_vm4  ;;  %v10037_v33 = vsel %vm322_vm7, 1.0, %v12320_v21  ;;  %v1005_v42 = vrot.slane %v9947_v60, %v7456_v37  ;;  %vm12434_vm13 = vcmp.eq.s32.totalorder %v7478_v48, %v9746_v11  ;;  %vm12435_vm4 = vcmp.eq.s32.totalorder %v7481_v49, %v9746_v11 }
  0xf8   : > { %7034 = vmatpush1.bf16.msk.msra.mxu1 %vm7033_vm0, %v12322_v62  ;;  %vm6949_vm10 = vmpackc.low %vm12435_vm4, %vm12434_vm13  ;;  %3921 = vmatprep.mubr.bf16.mxu0 %v12324_v0  ;;  %v1357_v56 = vrot.slane %v9966_v15, %v7456_v37  ;;  %v1009_v34 = vrot.slane %v9947_v60, %v7462_v40  ;;  %vm12436_vm0 = vcmp.eq.s32.totalorder %v7481_v49, %v9783_v39  ;;  %v10093_v60 = vsel %vm323_vm8, 1.0, %v12320_v21 }
  0xf9   : > { %6950 = vmatprep.subr.msk.bf16.mxu0 %vm6949_vm10, %v12322_v62  ;;  %vm7035_vm13 = vmpackc.low %vm12436_vm0, %vm4769_vm2  ;;  %4273 = vmatprep.mubr.bf16.mxu1 %v12324_v0  ;;  %v10099_v15 = vsel %vm669_vm15, 1.0, %v12320_v21  ;;  %vm12437_vm2 = vcmp.eq.s32.totalorder %v7478_v48, %v9765_v18  ;;  %vm12438_vm3 = vcmp.eq.s32.totalorder %v7481_v49, %v9765_v18  ;;  %vm324_vm0 = vcmp.eq.s32.totalorder %v7697_v25, %v9805_v61 }
  0xfa   : > { %7036 = vmatprep.subr.msk.bf16.mxu1 %vm7035_vm13, %v12322_v62  ;;  %vm6951_vm10 = vmpackc.low %vm12438_vm3, %vm12437_vm2  ;;  %vm670_vm13 = vcmp.eq.s32.totalorder %v7697_v25, %v9819_v7  ;;  %vm325_vm2 = vcmp.eq.s32.totalorder %v7697_v25, %v9822_v38  ;;  %vm12439_vm3 = vcmp.eq.s32.totalorder %v7478_v48, %v9802_v16  ;;  %vm12440_vm15 = vcmp.eq.s32.totalorder %v7481_v49, %v9802_v16 }
  0xfb   : > { %6952 = vmatpush1.bf16.msk.msra.mxu0 %vm6951_vm10, %v12322_v62  ;;  %vm7037_vm8 = vmpackc.low %vm12440_vm15, %vm12439_vm3  ;;  %vm671_vm10 = vcmp.eq.s32.totalorder %v7697_v25, %v9903_v8  ;;  %vm326_vm7 = vcmp.eq.s32.totalorder %v7700_v26, %v9805_v61  ;;  %vm672_vm14 = vcmp.eq.s32.totalorder %v7700_v26, %v9819_v7  ;;  %v10145_v2 = vrot.slane %v1005_v42, %v7456_v37 }
  0xfc   : > { %7038 = vmatpush1.bf16.msk.msra.mxu1 %vm7037_vm8, %v12322_v62  ;;  %vm12441_vm15 = vcmp.eq.s32.totalorder %v7486_v52, %v9746_v11  ;;  %vm12442_vm3 = vcmp.eq.s32.totalorder %v7489_v53, %v9746_v11  ;;  %vm327_vm9 = vcmp.eq.s32.totalorder %v7700_v26, %v9822_v38  ;;  %v10161_v42 = vrot.slane %v1357_v56, %v7456_v37 }
  0xfd   : > { %vm6953_vm4 = vmpackc.low %vm12442_vm3, %vm12441_vm15  ;;  %v10164_v30 = vrot.slane %v1009_v34, %v7456_v37  ;;  %vm12443_vm8 = vcmp.eq.s32.totalorder %v7486_v52, %v9783_v39  ;;  %vm12444_vm15 = vcmp.eq.s32.totalorder %v7489_v53, %v9783_v39  ;;  %v10181_v34 = vrot.slane %v5435_v1, %v7456_v37 }
  0xfe   : > { %6954 = vmatprep.subr.msk.bf16.mxu0 %vm6953_vm4, %v12322_v62  ;;  %vm7039_vm3 = vmpackc.low %vm12444_vm15, %vm12443_vm8  ;;  %v10187_v36 = vsel %vm324_vm0, 1.0, %v12320_v21  ;;  %vm673_vm4 = vcmp.eq.s32.totalorder %v7700_v26, %v9903_v8  ;;  %v10193_v56 = vand.u32 31, %v1921_v31  ;;  %3922 = vmatmul.mubr.bf16.gmra.mxu0 %v7342_v10  ;;  %vm12445_vm8 = vcmp.eq.s32.totalorder %v7486_v52, %v9765_v18 }
  0xff   : > { %7040 = vmatprep.subr.msk.bf16.mxu1 %vm7039_vm3, %v12322_v62  ;;  %vm12446_vm15 = vcmp.eq.s32.totalorder %v7489_v53, %v9765_v18  ;;  %vm4753_vm0 = vcmp.eq.s32.totalorder %v7654_v19, %v9783_v39  ;;  %vm4755_vm11 = vcmp.eq.s32.totalorder %v7657_v20, %v9783_v39  ;;  %v10210_v22 = vsel %vm670_vm13, 1.0, %v12320_v21  ;;  %4274 = vmatmul.mubr.bf16.gmra.mxu1 %v7343_v51  ;;  %vm7041_vm13 = vmpackc.low %vm4766_vm5, %vm4764_vm6 }
 0x100   : > { %vm6955_vm12 = vmpackc.low %vm12446_vm15, %vm12445_vm8  ;;  %v10216_v31 = vsel %vm325_vm2, 1.0, %v12320_v21  ;;  %v10222_v1 = vsel %vm671_vm10, 1.0, %v12320_v21  ;;  %v10228_v10 = vsel %vm326_vm7, 1.0, %v12320_v21  ;;  %v10245_v61 = vsel %vm672_vm14, 1.0, %v12320_v21  ;;  %7042 = vmatpush1.bf16.msk.msra.mxu1 %vm7041_vm13, %v12322_v62  ;;  %3931 = vmatprep.mubr.bf16.mxu0 %v12324_v0 }
 0x101   : > { %6956 = vmatpush1.bf16.msk.msra.mxu0 %vm6955_vm12, %v12322_v62  ;;  %v10251_v51 = vsel %vm327_vm9, 1.0, %v12320_v21  ;;  %vm1018_vm5 = vcmp.eq.s32.totalorder %v7451_v29, %v10145_v2  ;;  %vm1020_vm6 = vcmp.eq.s32.totalorder %v7742_v32, %v10145_v2  ;;  %vm12447_vm14 = vcmp.eq.s32.totalorder %v7551_v6, %v9746_v11  ;;  %4283 = vmatprep.mubr.bf16.mxu1 %v12324_v0 }
 0x102   : > { %vm6957_vm7 = vmpackc.low %vm12447_vm14, %vm4415_vm1  ;;  %v10273_v7 = vsel %vm673_vm4, 1.0, %v12320_v21  ;;  %vm1370_vm3 = vcmp.eq.s32.totalorder %v7451_v29, %v10161_v42  ;;  %vm1019_vm1 = vcmp.eq.s32.totalorder %v7451_v29, %v10164_v30  ;;  %vm1371_vm8 = vcmp.eq.s32.totalorder %v7451_v29, %v10167_v59 }
 0x103   : > { %6958 = vmatprep.subr.msk.bf16.mxu0 %vm6957_vm7, %v12322_v62  ;;  %vm12448_vm15 = vcmp.eq.s32.totalorder %v7548_v5, %v9783_v39  ;;  %vm12449_vm13 = vcmp.eq.s32.totalorder %v7551_v6, %v9783_v39  ;;  %v1709_v38 = vrot.slane %v10067_v3, %v7456_v37  ;;  %v2055_v8 = vrot.slane %v10193_v56, %v7456_v37 }
 0x104   : > { %vm7043_vm14 = vmpackc.low %vm12449_vm13, %vm12448_vm15  ;;  %v1713_v21 = vrot.slane %v10067_v3, %v7462_v40  ;;  %v10301_v62 = vand.u32 31, %v2273_v58  ;;  %v12450_v0 = vmov 1.0|1.0   ;;  %vm12451_vm7 = vcmp.eq.s32.totalorder %v7548_v5, %v9765_v18 }
 0x105   : > { %7044 = vmatprep.subr.msk.bf16.mxu1 %vm7043_vm14, %v12450_v0  ;;  %vm12452_vm15 = vcmp.eq.s32.totalorder %v7551_v6, %v9765_v18  ;;  %v10321_v58 = vsel %vm1018_vm5, 1.0, %v12453_v45  ;;  %vm1022_vm14 = vcmp.eq.s32.totalorder %v7697_v25, %v10145_v2  ;;  %v2059_v3 = vrot.slane %v10193_v56, %v7462_v40 }
 0x106   : > { %vm6959_vm13 = vmpackc.low %vm12452_vm15, %vm12451_vm7  ;;  %12454 = vst [vmem:[#allocation10_spill] sm:$0xff] %v10321_v58  ;;  %vm1024_vm7 = vcmp.eq.s32.totalorder %v7700_v26, %v10145_v2  ;;  %vm12455_vm15 = vcmp.eq.s32.totalorder %v7548_v5, %v9802_v16  ;;  %vm12456_vm4 = vcmp.eq.s32.totalorder %v7551_v6, %v9802_v16  ;;  %v10347_v56 = vsel %vm1370_vm3, 1.0, %v12453_v45  ;;  %3932 = vmatmul.mubr.bf16.gmra.mxu0 %v7344_v55 }
 0x107   : > { %6960 = vmatpush1.bf16.msk.msra.mxu0 %vm6959_vm13, %v12450_v0  ;;  %vm7045_vm12 = vmpackc.low %vm12456_vm4, %vm12455_vm15  ;;  %v10353_v43 = vsel %vm1019_vm1, 1.0, %v12453_v45  ;;  %v10359_v47 = vsel %vm1371_vm8, 1.0, %v12453_v45  ;;  %v10365_v58 = vsel %vm1020_vm6, 1.0, %v12453_v45  ;;  %vm12460_vm3 = vcmp.eq.s32.totalorder %v7609_v13, %v9746_v11  ;;  %4284 = vmatmul.mubr.bf16.gmra.mxu1 %v7345_v63 }
 0x108   : > { %12457 = vst [vmem:[#allocation11_spill] sm:$0xff] %v10353_v43  ;;  %12458 = vst [vmem:[#allocation12_spill] sm:$0xff] %v10359_v47  ;;  %7046 = vmatpush1.bf16.msk.msra.mxu1 %vm7045_vm12, %v12450_v0  ;;  %vm12461_vm1 = vcmp.eq.s32.totalorder %v7612_v14, %v9746_v11  ;;  %vm1372_vm15 = vcmp.eq.s32.totalorder %v7742_v32, %v10161_v42  ;;  %vm1021_vm6 = vcmp.eq.s32.totalorder %v7742_v32, %v10164_v30 }
 0x109   : > { %12459 = vst [vmem:[#allocation13_spill] sm:$0xff] %v10365_v58  ;;  %vm6961_vm4 = vmpackc.low %vm12461_vm1, %vm12460_vm3  ;;  %vm1373_vm12 = vcmp.eq.s32.totalorder %v7742_v32, %v10167_v59  ;;  %vm1374_vm9 = vcmp.eq.s32.totalorder %v7697_v25, %v10161_v42  ;;  %vm12462_vm3 = vcmp.eq.s32.totalorder %v7609_v13, %v9783_v39  ;;  %vm12463_vm1 = vcmp.eq.s32.totalorder %v7612_v14, %v9783_v39 }
 0x10a   : > { %6962 = vmatprep.subr.msk.bf16.mxu0 %vm6961_vm4, %v12450_v0  ;;  %vm7047_vm8 = vmpackc.low %vm12463_vm1, %vm12462_vm3  ;;  %vm1023_vm10 = vcmp.eq.s32.totalorder %v7697_v25, %v10164_v30  ;;  %vm1376_vm4 = vcmp.eq.s32.totalorder %v7700_v26, %v10161_v42  ;;  %v10404_v47 = vrot.slane %v1709_v38, %v7456_v37  ;;  %vm12464_vm3 = vcmp.eq.s32.totalorder %v7609_v13, %v9765_v18  ;;  %v7346_v42 = vld [vmem:[%s12309_s1 + $0x158] sm:$0xff]  }
 0x10b   : > { %7048 = vmatprep.subr.msk.bf16.mxu1 %vm7047_vm8, %v12450_v0  ;;  %vm12465_vm1 = vcmp.eq.s32.totalorder %v7612_v14, %v9765_v18  ;;  %v10421_v55 = vsel %vm1022_vm14, 1.0, %v12453_v45  ;;  %vm1025_vm8 = vcmp.eq.s32.totalorder %v7700_v26, %v10164_v30  ;;  %v10426_v38 = vrot.slane %v2055_v8, %v7456_v37 }
 0x10c   : > { %vm6963_vm5 = vmpackc.low %vm12465_vm1, %vm12464_vm3  ;;  %12466 = vst [vmem:[#allocation14_spill] sm:$0xff] %v10421_v55  ;;  %v10429_v43 = vrot.slane %v1713_v21, %v7456_v37  ;;  %vm12467_vm3 = vcmp.eq.s32.totalorder %v7609_v13, %v9802_v16  ;;  %vm12468_vm1 = vcmp.eq.s32.totalorder %v7612_v14, %v9802_v16  ;;  %vm4398_vm2 = vcmp.eq.s32.totalorder %v7451_v29, %v9765_v18 }
 0x10d   : > { %6964 = vmatpush1.bf16.msk.msra.mxu0 %vm6963_vm5, %v12450_v0  ;;  %vm7049_vm14 = vmpackc.low %vm12468_vm1, %vm12467_vm3  ;;  %v10446_v63 = vsel %vm1372_vm15, 1.0, %v12453_v45  ;;  %v10452_v21 = vsel %vm1021_vm6, 1.0, %v12453_v45  ;;  %vm1377_vm5 = vcmp.eq.s32.totalorder %v7700_v26, %v10167_v59  ;;  %v10457_v8 = vrot.slane %v2059_v3, %v7456_v37 }
 0x10e   : > { %12469 = vst [vmem:[#allocation15_spill] sm:$0xff] %v10446_v63  ;;  %12470 = vst [vmem:[#allocation16_spill] sm:$0xff] %v10452_v21  ;;  %7050 = vmatpush1.bf16.msk.msra.mxu1 %vm7049_vm14, %v12450_v0  ;;  %vm12471_vm3 = vcmp.eq.s32.totalorder %v7654_v19, %v9746_v11  ;;  %vm12472_vm15 = vcmp.eq.s32.totalorder %v7657_v20, %v9746_v11  ;;  %v12473_v55 = vmov 0   ;;  %vm4744_vm6 = vcmp.eq.s32.totalorder %v7451_v29, %v9802_v16 }
 0x10f   : > { %vm6965_vm1 = vmpackc.low %vm12472_vm15, %vm12471_vm3  ;;  %3941 = vmatprep.mubr.bf16.mxu0 %v12473_v55  ;;  %vm4746_vm13 = vcmp.eq.s32.totalorder %v7742_v32, %v9802_v16  ;;  %v10475_v3 = vsel %vm1373_vm12, 1.0, %v12453_v45  ;;  %v10481_v21 = vsel %vm1374_vm9, 1.0, %v12453_v45  ;;  %v10487_v63 = vsel %vm1023_vm10, 1.0, %v12453_v45  ;;  %4293 = vmatprep.mubr.bf16.mxu1 %v12473_v55 }
 0x110   : > { %12474 = vst [vmem:[#allocation17_spill] sm:$0xff] %v10487_v63  ;;  %v10493_v58 = vsel %vm1024_vm7, 1.0, %v12453_v45  ;;  %6966 = vmatprep.subr.msk.bf16.mxu0 %vm6965_vm1, %v12450_v0  ;;  %vm7051_vm9 = vmpackc.low %vm4755_vm11, %vm4753_vm0  ;;  %vm12476_vm7 = vcmp.eq.s32.totalorder %v7697_v25, %v10167_v59  ;;  %v10523_v63 = vsel %vm1025_vm8, 1.0, %v12453_v45  ;;  %vm1722_vm11 = vcmp.eq.s32.totalorder %v7451_v29, %v10404_v47  ;;  %v7347_v59 = vld [vmem:[%s12309_s1 + $0x178] sm:$0xff]   ;;  %3942 = vmatmul.mubr.bf16.gmra.mxu0 %v7346_v42 }
 0x111   : > { %12475 = vst [vmem:[#allocation18_spill] sm:$0xff] %v10493_v58  ;;  %v10511_v2 = vsel %vm12476_vm7, 1.0, %v12453_v45  ;;  %v10517_v58 = vsel %vm1376_vm4, 1.0, %v12453_v45  ;;  %12479 = vst [vmem:[#allocation21_spill] sm:$0xff] %v10523_v63  ;;  %7052 = vmatprep.subr.msk.bf16.mxu1 %vm7051_vm9, %v12450_v0  ;;  %vm12480_vm0 = vcmp.eq.s32.totalorder %v7654_v19, %v9765_v18  ;;  %vm12481_vm14 = vcmp.eq.s32.totalorder %v7657_v20, %v9765_v18 }
 0x112   : > { %12477 = vst [vmem:[#allocation19_spill] sm:$0xff] %v10511_v2  ;;  %12478 = vst [vmem:[#allocation20_spill] sm:$0xff] %v10517_v58  ;;  %v10545_v30 = vsel %vm1377_vm5, 1.0, %v12453_v45  ;;  %vm2068_vm15 = vcmp.eq.s32.totalorder %v7451_v29, %v10426_v38  ;;  %vm1723_vm1 = vcmp.eq.s32.totalorder %v7451_v29, %v10429_v43  ;;  %v12483_v63 = vand.u32 4095, %v8360_v54  ;;  %4294 = vmatmul.mubr.bf16.gmra.mxu1 %v7347_v59 }
 0x113   : > { %vm6967_vm3 = vmpackc.low %vm12481_vm14, %vm12480_vm0  ;;  %12482 = vst [vmem:[#allocation22_spill] sm:$0xff] %v10545_v30  ;;  %vm12484_vm9 = vcmp.eq.s32.totalorder %v7654_v19, %v9802_v16  ;;  %vm12485_vm7 = vcmp.eq.s32.totalorder %v7657_v20, %v9802_v16  ;;  %vm1724_vm8 = vcmp.eq.s32.totalorder %v7742_v32, %v10404_v47  ;;  %vm1726_vm4 = vcmp.eq.s32.totalorder %v7697_v25, %v10404_v47 }
 0x114   : > { %v10553_v58 = vand.u32 31, %v12483_v63  ;;  %6968 = vmatpush1.bf16.msk.msra.mxu0 %vm6967_vm3, %v12450_v0  ;;  %vm7053_vm5 = vmpackc.low %vm12485_vm7, %vm12484_vm9  ;;  %vm2069_vm3 = vcmp.eq.s32.totalorder %v7451_v29, %v10457_v8  ;;  %v2407_v54 = vrot.slane %v10301_v62, %v7456_v37  ;;  %vm12486_vm9 = vcmp.eq.s32.totalorder %v7697_v25, %v9746_v11  ;;  %4615 = vmatprep.mubr.bf16.mxu0 %v12473_v55 }
 0x115   : > { %7054 = vmatpush1.bf16.msk.msra.mxu1 %vm7053_vm5, %v12450_v0  ;;  %vm12487_vm7 = vcmp.eq.s32.totalorder %v7700_v26, %v9746_v11  ;;  %v10592_v63 = vsel %vm1722_vm11, 1.0, %v12453_v45  ;;  %vm2070_vm5 = vcmp.eq.s32.totalorder %v7742_v32, %v10426_v38  ;;  %vm1728_vm10 = vcmp.eq.s32.totalorder %v7700_v26, %v10404_v47  ;;  %4961 = vmatprep.mubr.bf16.mxu1 %v12473_v55  ;;  %v7349_v47 = vld [vmem:[%s12309_s1 + $0x1a0] sm:$0xff]  }
 0x116   : > { %vm6969_vm14 = vmpackc.low %vm12487_vm7, %vm12486_vm9  ;;  %12488 = vst [vmem:[#allocation23_spill] sm:$0xff] %v10592_v63  ;;  %v2411_v30 = vrot.slane %v10301_v62, %v7462_v40  ;;  %vm12489_vm9 = vcmp.eq.s32.totalorder %v7697_v25, %v9783_v39  ;;  %vm12490_vm7 = vcmp.eq.s32.totalorder %v7700_v26, %v9783_v39  ;;  %v10615_v62 = vsel %vm2068_vm15, 1.0, %v12453_v45 }
 0x117   : > { %6970 = vmatprep.subr.msk.bf16.mxu0 %vm6969_vm14, %v12450_v0  ;;  %vm7055_vm12 = vmpackc.low %vm12490_vm7, %vm12489_vm9  ;;  %12491 = vst [vmem:[#allocation24_spill] sm:$0xff] %v10615_v62  ;;  %v10621_v63 = vsel %vm1723_vm1, 1.0, %v12453_v45  ;;  %vm1725_vm14 = vcmp.eq.s32.totalorder %v7742_v32, %v10429_v43  ;;  %vm2071_vm9 = vcmp.eq.s32.totalorder %v7742_v32, %v10457_v8  ;;  %vm12493_vm7 = vcmp.eq.s32.totalorder %v7697_v25, %v9765_v18 }
 0x118   : > { %12492 = vst [vmem:[#allocation25_spill] sm:$0xff] %v10621_v63  ;;  %7056 = vmatprep.subr.msk.bf16.mxu1 %vm7055_vm12, %v12450_v0  ;;  %vm12494_vm15 = vcmp.eq.s32.totalorder %v7700_v26, %v9765_v18  ;;  %vm5473_vm1 = vcmp.eq.s32.totalorder %v7478_v48, %v10116_v50  ;;  %v10642_v42 = vsel %vm2069_vm3, 1.0, %v12453_v45  ;;  %v10648_v63 = vsel %vm1724_vm8, 1.0, %v12453_v45 }
 0x119   : > { %vm6971_vm0 = vmpackc.low %vm12494_vm15, %vm12493_vm7  ;;  %12495 = vst [vmem:[#allocation26_spill] sm:$0xff] %v10642_v42  ;;  %vm2072_vm12 = vcmp.eq.s32.totalorder %v7697_v25, %v10426_v38  ;;  %v2759_v62 = vrot.slane %v10553_v58, %v7456_v37  ;;  %vm12497_vm7 = vcmp.eq.s32.totalorder %v7697_v25, %v9802_v16  ;;  %vm12498_vm3 = vcmp.eq.s32.totalorder %v7700_v26, %v9802_v16 }
 0x11a   : > { %12496 = vst [vmem:[#allocation27_spill] sm:$0xff] %v10648_v63  ;;  %6972 = vmatpush1.bf16.msk.msra.mxu0 %vm6971_vm0, %v12450_v0  ;;  %vm7057_vm15 = vmpackc.low %vm12498_vm3, %vm12497_vm7  ;;  %vm5120_vm8 = vcmp.eq.s32.totalorder %v7478_v48, %v10031_v28  ;;  %vm5122_vm11 = vcmp.eq.s32.totalorder %v7481_v49, %v10031_v28  ;;  %v10669_v59 = vsel %vm2070_vm5, 1.0, %v12453_v45  ;;  %v10675_v42 = vsel %vm1726_vm4, 1.0, %v12453_v45 }
 0x11b   : > { %12499 = vst [vmem:[#allocation28_spill] sm:$0xff] %v10669_v59  ;;  %12500 = vst [vmem:[#allocation29_spill] sm:$0xff] %v10675_v42  ;;  %v10678_v63 = vrot.slane %v2407_v54, %v7456_v37  ;;  %v2763_v2 = vrot.slane %v10553_v58, %v7462_v40  ;;  %7058 = vmatpush1.bf16.msk.msra.mxu1 %vm7057_vm15, %v12450_v0  ;;  %vm12501_vm0 = vcmp.eq.s32.totalorder %v7451_v29, %v9746_v11 }
 0x11c   : > { %vm12502_vm5 = vcmp.eq.s32.totalorder %v7742_v32, %v9746_v11  ;;  %vm5472_vm4 = vcmp.eq.s32.totalorder %v7478_v48, %v10181_v34  ;;  %v10698_v58 = vsel %vm1725_vm14, 1.0, %v12453_v45  ;;  %v10704_v11 = vsel %vm2071_vm9, 1.0, %v12453_v45 }
 0x11d   : > { %vm6973_vm7 = vmpackc.low %vm12502_vm5, %vm12501_vm0  ;;  %12503 = vst [vmem:[#allocation30_spill] sm:$0xff] %v10698_v58  ;;  %vm1727_vm15 = vcmp.eq.s32.totalorder %v7697_v25, %v10429_v43  ;;  %v10709_v54 = vrot.slane %v2411_v30, %v7456_v37  ;;  %vm12505_vm0 = vcmp.eq.s32.totalorder %v7451_v29, %v9783_v39  ;;  %vm12506_vm14 = vcmp.eq.s32.totalorder %v7742_v32, %v9783_v39 }
 0x11e   : > { %12504 = vst [vmem:[#allocation31_spill] sm:$0xff] %v10704_v11  ;;  %6974 = vmatprep.subr.msk.bf16.mxu0 %vm6973_vm7, %v12450_v0  ;;  %vm7059_vm5 = vmpackc.low %vm12506_vm14, %vm12505_vm0  ;;  %v10727_v30 = vsel %vm2072_vm12, 1.0, %v12453_v45  ;;  %vm2073_vm7 = vcmp.eq.s32.totalorder %v7697_v25, %v10457_v8  ;;  %vm2074_vm0 = vcmp.eq.s32.totalorder %v7700_v26, %v10426_v38  ;;  %v12508_v39 = vand.u32 4095, %v8728_v12 }
 0x11f   : > { %12507 = vst [vmem:[#allocation32_spill] sm:$0xff] %v10727_v30  ;;  %7060 = vmatprep.subr.msk.bf16.mxu1 %vm7059_vm5, %v12450_v0  ;;  %vm12509_vm14 = vcmp.eq.s32.totalorder %v7742_v32, %v9765_v18  ;;  %v7348_v30 = vld [vmem:[%s12309_s1 + $0x180] sm:$0xff]   ;;  %v10755_v12 = vsel %vm1728_vm10, 1.0, %v12453_v45  ;;  %vm1729_vm5 = vcmp.eq.s32.totalorder %v7700_v26, %v10429_v43  ;;  %v10760_v18 = vrot.slane %v2759_v62, %v7456_v37 }
 0x120   : > { %v10735_v42 = vand.u32 31, %v12508_v39  ;;  %vm6975_vm12 = vmpackc.low %vm12509_vm14, %vm4398_vm2  ;;  %12510 = vst [vmem:[#allocation33_spill] sm:$0xff] %v10755_v12  ;;  %v12511_v39 = vand.u32 4095, %v8735_v24  ;;  %v10784_v24 = vsel %vm1727_vm15, 1.0, %v12453_v45  ;;  %v10791_v16 = vrot.slane %v2763_v2, %v7456_v37  ;;  %v10872_v12 = vpop.f32.mrf.mxu1 }
 0x121   : > { %6976 = vmatpush1.bf16.msk.msra.mxu0 %vm6975_vm12, %v12450_v0  ;;  %vm7061_vm2 = vmpackc.low %vm4746_vm13, %vm4744_vm6  ;;  %12512 = vst [vmem:[#allocation34_spill] sm:$0xff] %v10784_v24  ;;  %vm2075_vm12 = vcmp.eq.s32.totalorder %v7700_v26, %v10457_v8  ;;  %vm2420_vm13 = vcmp.eq.s32.totalorder %v7451_v29, %v10678_v63  ;;  %vm12513_vm6 = vcmp.eq.s32.totalorder %v7468_v44, %v9992_v41  ;;  %v10808_v2 = vsel %vm2073_vm7, 1.0, %v12453_v45 }
 0x122   : > { %v10764_v11 = vand.u32 31, %v12511_v39  ;;  %7062 = vmatpush1.bf16.msk.msra.mxu1 %vm7061_vm2, %v12450_v0  ;;  %vm12514_vm14 = vcmp.eq.s32.totalorder %v7473_v46, %v9992_v41  ;;  %12515 = vst [vmem:[#allocation35_spill] sm:$0xff] %v10808_v2  ;;  %v10814_v62 = vsel %vm2074_vm0, 1.0, %v12453_v45  ;;  %vm2421_vm2 = vcmp.eq.s32.totalorder %v7451_v29, %v10709_v54 }
 0x123   : > { %vm7117_vm10 = vmpackc.low %vm12514_vm14, %vm12513_vm6  ;;  %12516 = vst [vmem:[#allocation36_spill] sm:$0xff] %v10814_v62  ;;  %vm2422_vm14 = vcmp.eq.s32.totalorder %v7742_v32, %v10678_v63  ;;  %vm12517_vm6 = vcmp.eq.s32.totalorder %v7468_v44, %v10116_v50  ;;  %vm12518_vm7 = vcmp.eq.s32.totalorder %v7473_v46, %v10116_v50  ;;  %v10835_v38 = vsel %vm1729_vm5, 1.0, %v12453_v45  ;;  %v10843_v62 = vpop.f32.mrf.mxu0 }
 0x124   : > { %7118 = vmatprep.subr.msk.bf16.mxu0 %vm7117_vm10, %v12450_v0  ;;  %vm7203_vm9 = vmpackc.low %vm12518_vm7, %vm12517_vm6  ;;  %12519 = vst [vmem:[#allocation37_spill] sm:$0xff] %v10835_v38  ;;  %vm2423_vm10 = vcmp.eq.s32.totalorder %v7742_v32, %v10709_v54  ;;  %vm2424_vm3 = vcmp.eq.s32.totalorder %v7697_v25, %v10678_v63  ;;  %v3111_v39 = vrot.slane %v10735_v42, %v7456_v37  ;;  %v10860_v43 = vsel %vm2075_vm12, 1.0, %v12453_v45 }
 0x125   : > { %4616 = vmatmul.mubr.bf16.vlgmr.msra.gmra.mxu0 %v7348_v30  ;;  %7204 = vmatprep.subr.msk.bf16.mxu1 %vm7203_vm9, %v12450_v0  ;;  %vm12520_vm6 = vcmp.eq.s32.totalorder %v7468_v44, %v10031_v28  ;;  %vm12521_vm5 = vcmp.eq.s32.totalorder %v7473_v46, %v10031_v28  ;;  %vm5465_vm0 = vcmp.eq.s32.totalorder %v7548_v5, %v10116_v50  ;;  %v10866_v30 = vsel %vm2420_vm13, 1.0, %v12453_v45 }
 0x126   : > { %vm7119_vm7 = vmpackc.low %vm12521_vm5, %vm12520_vm6  ;;  %12522 = vst [vmem:[#allocation38_spill] sm:$0xff] %v10860_v43  ;;  %vm2772_vm9 = vcmp.eq.s32.totalorder %v7451_v29, %v10760_v18  ;;  %v3457_v38 = vrot.slane %v10764_v11, %v7456_v37  ;;  %4962 = vmatmul.mubr.bf16.vlgmr.msra.gmra.mxu1 %v7349_v47  ;;  %vm12524_vm12 = vcmp.eq.s32.totalorder %v7468_v44, %v10181_v34  ;;  %v10889_v8 = vsel %vm2421_vm2, 1.0, %v12453_v45 }
 0x127   : > { %12523 = vst [vmem:[#allocation39_spill] sm:$0xff] %v10866_v30  ;;  %7120 = vmatpush1.bf16.msk.msra.mxu0 %vm7119_vm7, %v12450_v0  ;;  %vm12525_vm6 = vcmp.eq.s32.totalorder %v7473_v46, %v10181_v34  ;;  %12526 = vst [vmem:[#allocation40_spill] sm:$0xff] %v10889_v8  ;;  %vm2773_vm7 = vcmp.eq.s32.totalorder %v7451_v29, %v10791_v16  ;;  %v10897_v44 = vsel %vm2422_vm14, 1.0, %v12453_v45  ;;  %v10902_v46 = vpop.f32.mrf.mxu0  ;;  %4625 = vmatprep.mubr.bf16.mxu0 %v12473_v55  ;;  %v10931_v8 = vpop.f32.mrf.mxu1 }
 0x128   : > { %vm7205_vm5 = vmpackc.low %vm12525_vm6, %vm12524_vm12  ;;  %12527 = vst [vmem:[#allocation41_spill] sm:$0xff] %v10897_v44  ;;  %vm2774_vm12 = vcmp.eq.s32.totalorder %v7742_v32, %v10760_v18  ;;  %vm12528_vm2 = vcmp.eq.s32.totalorder %v7478_v48, %v9992_v41  ;;  %vm12529_vm6 = vcmp.eq.s32.totalorder %v7481_v49, %v9992_v41  ;;  %vm5464_vm14 = vcmp.eq.s32.totalorder %v7548_v5, %v10181_v34 }
 0x129   : > { %7206 = vmatpush1.bf16.msk.msra.mxu1 %vm7205_vm5, %v12450_v0  ;;  %vm7121_vm15 = vmpackc.low %vm12529_vm6, %vm12528_vm2  ;;  %v10919_v47 = vsel %vm2423_vm10, 1.0, %v12453_v45  ;;  %vm2775_vm5 = vcmp.eq.s32.totalorder %v7742_v32, %v10791_v16  ;;  %v10927_v44 = vsel %vm2424_vm3, 1.0, %v12453_v45  ;;  %vm2776_vm2 = vcmp.eq.s32.totalorder %v7697_v25, %v10760_v18  ;;  %4971 = vmatprep.mubr.bf16.mxu1 %v12473_v55  ;;  %v414_v30 = vpop.f32.mrf.mxu0  ;;  %v761_v58 = vpop.f32.mrf.mxu1 }
 0x12a   : > { %12530 = vst [vmem:[#allocation42_spill] sm:$0xff] %v10919_v47  ;;  %12531 = vst [vmem:[#allocation43_spill] sm:$0xff] %v10927_v44  ;;  %7122 = vmatprep.subr.msk.bf16.mxu0 %vm7121_vm15, %v12450_v0  ;;  %vm12532_vm10 = vcmp.eq.s32.totalorder %v7481_v49, %v10116_v50  ;;  %vm5109_vm3 = vcmp.eq.s32.totalorder %v7609_v13, %v9992_v41  ;;  %v10949_v44 = vsel %vm2772_vm9, 1.0, %v12453_v45  ;;  %v10982_v43 = vsel %vm2774_vm12, 1.0, %v12453_v45 }
 0x12b   : > { %vm7207_vm6 = vmpackc.low %vm12532_vm10, %vm5473_vm1  ;;  %12533 = vst [vmem:[#allocation44_spill] sm:$0xff] %v10949_v44  ;;  %vm2425_vm15 = vcmp.eq.s32.totalorder %v7697_v25, %v10709_v54  ;;  %vm2777_vm1 = vcmp.eq.s32.totalorder %v7697_v25, %v10791_v16  ;;  %v10956_v47 = vrot.slane %v3111_v39, %v7456_v37  ;;  %v7350_v44 = vld [vmem:[%s12309_s1 + $0x188] sm:$0xff]   ;;  %vm5461_vm10 = vcmp.eq.s32.totalorder %v7609_v13, %v10116_v50  ;;  %v763_v59 = vpop.f32.mrf.mxu1 }
 0x12c   : > { %7208 = vmatprep.subr.msk.bf16.mxu1 %vm7207_vm6, %v12450_v0  ;;  %vm7123_vm9 = vmpackc.low %vm5122_vm11, %vm5120_vm8  ;;  %vm5463_vm13 = vcmp.eq.s32.totalorder %v7612_v14, %v10116_v50  ;;  %v10976_v39 = vsel %vm2773_vm7, 1.0, %v12453_v45  ;;  %12535 = vst [vmem:[#allocation46_spill] sm:$0xff] %v10982_v43  ;;  %v10985_v2 = vrot.slane %v3457_v38, %v7456_v37  ;;  %v3115_v24 = vrot.slane %v10735_v42, %v7462_v40  ;;  %v416_v38 = vpop.f32.mrf.mxu0 }
 0x12d   : > { %12534 = vst [vmem:[#allocation45_spill] sm:$0xff] %v10976_v39  ;;  %7124 = vmatpush1.bf16.msk.msra.mxu0 %vm7123_vm9, %v12450_v0  ;;  %vm12536_vm11 = vcmp.eq.s32.totalorder %v7481_v49, %v10181_v34  ;;  %v7351_v39 = vld [vmem:[%s12309_s1 + $0x1a8] sm:$0xff]   ;;  %v11007_v42 = vsel %vm2775_vm5, 1.0, %v12453_v45  ;;  %v11013_v48 = vsel %vm2776_vm2, 1.0, %v12453_v45  ;;  %v3461_v49 = vrot.slane %v10764_v11, %v7462_v40  ;;  %v767_v40 = vpop.f32.mrf.mxu1 }
 0x12e   : > { %vm7209_vm8 = vmpackc.low %vm12536_vm11, %vm5472_vm4  ;;  %12537 = vst [vmem:[#allocation47_spill] sm:$0xff] %v11007_v42  ;;  %vm2426_vm4 = vcmp.eq.s32.totalorder %v7700_v26, %v10678_v63  ;;  %vm12539_vm6 = vcmp.eq.s32.totalorder %v7486_v52, %v9992_v41  ;;  %vm12540_vm5 = vcmp.eq.s32.totalorder %v7489_v53, %v9992_v41  ;;  %v11034_v11 = vsel %vm2425_vm15, 1.0, %v12453_v45  ;;  %4626 = vmatmul.mubr.bf16.gmra.mxu0 %v7350_v44 }
 0x12f   : > { %12538 = vst [vmem:[#allocation48_spill] sm:$0xff] %v11013_v48  ;;  %7210 = vmatpush1.bf16.msk.msra.mxu1 %vm7209_vm8, %v12450_v0  ;;  %vm7125_vm9 = vmpackc.low %vm12540_vm5, %vm12539_vm6  ;;  %v11040_v48 = vsel %vm2777_vm1, 1.0, %v12453_v45  ;;  %vm2778_vm8 = vcmp.eq.s32.totalorder %v7700_v26, %v10760_v18  ;;  %vm2427_vm6 = vcmp.eq.s32.totalorder %v7700_v26, %v10709_v54  ;;  %v449_v42 = vmul.f32 %v9983_v17, %v10843_v62 }
 0x130   : > { %12541 = vst [vmem:[#allocation49_spill] sm:$0xff] %v11034_v11  ;;  %12542 = vst [vmem:[#allocation50_spill] sm:$0xff] %v11040_v48  ;;  %v451_v43 = vmul.f32 %v10037_v33, %v414_v30  ;;  %7126 = vmatprep.subr.msk.bf16.mxu0 %vm7125_vm9, %v12450_v0  ;;  %vm12543_vm15 = vcmp.eq.s32.totalorder %v7486_v52, %v10116_v50  ;;  %vm12544_vm1 = vcmp.eq.s32.totalorder %v7489_v53, %v10116_v50  ;;  %v420_v30 = vpop.f32.mrf.mxu0 }
 0x131   : > { %vm7211_vm5 = vmpackc.low %vm12544_vm1, %vm12543_vm15  ;;  %vm2779_vm12 = vcmp.eq.s32.totalorder %v7700_v26, %v10791_v16  ;;  %vm3124_vm7 = vcmp.eq.s32.totalorder %v7451_v29, %v10956_v47  ;;  %v798_v62 = vmul.f32 %v10043_v4, %v761_v58  ;;  %vm12545_vm9 = vcmp.eq.s32.totalorder %v7486_v52, %v10031_v28  ;;  %4972 = vmatmul.mubr.bf16.gmra.mxu1 %v7351_v39  ;;  %v7352_v16 = vld [vmem:[%s12309_s1 + $0x190] sm:$0xff]  }
 0x132   : > { %7212 = vmatprep.subr.msk.bf16.mxu1 %vm7211_vm5, %v12450_v0  ;;  %vm12546_vm15 = vcmp.eq.s32.totalorder %v7489_v53, %v10031_v28  ;;  %v11080_v58 = vsel %vm2426_vm4, 1.0, %v12453_v45  ;;  %vm3470_vm5 = vcmp.eq.s32.totalorder %v7451_v29, %v10985_v2  ;;  %v11085_v44 = vrot.slane %v3115_v24, %v7456_v37  ;;  %4635 = vmatprep.mubr.bf16.mxu0 %v12473_v55 }
 0x133   : > { %vm7127_vm1 = vmpackc.low %vm12546_vm15, %vm12545_vm9  ;;  %v452_v48 = vmul.f32 %v10093_v60, %v416_v38  ;;  %v453_v11 = vmul.f32 %v10187_v36, %v420_v30  ;;  %vm12547_vm9 = vcmp.eq.s32.totalorder %v7486_v52, %v10181_v34  ;;  %vm12548_vm4 = vcmp.eq.s32.totalorder %v7489_v53, %v10181_v34  ;;  %v422_v38 = vpop.f32.mrf.mxu0  ;;  %4981 = vmatprep.mubr.bf16.mxu1 %v12473_v55 }
 0x134   : > { %7128 = vmatpush1.bf16.msk.msra.mxu0 %vm7127_vm1, %v12450_v0  ;;  %vm7213_vm15 = vmpackc.low %vm12548_vm4, %vm12547_vm9  ;;  %vm5104_vm11 = vcmp.eq.s32.totalorder %v7654_v19, %v10031_v28  ;;  %v11104_v63 = vsel %vm2778_vm8, 1.0, %v12453_v45  ;;  %v11107_v24 = vrot.slane %v3461_v49, %v7456_v37  ;;  %v796_v52 = vmul.f32 %v9989_v23, %v10872_v12  ;;  %v769_v49 = vpop.f32.mrf.mxu1 }
 0x135   : > { %v799_v53 = vmul.f32 %v10099_v15, %v763_v59  ;;  %v800_v39 = vmul.f32 %v10210_v22, %v767_v40  ;;  %7214 = vmatpush1.bf16.msk.msra.mxu1 %vm7213_vm15, %v12450_v0  ;;  %vm12549_vm1 = vcmp.eq.s32.totalorder %v7548_v5, %v9992_v41  ;;  %vm12550_vm8 = vcmp.eq.s32.totalorder %v7551_v6, %v9992_v41  ;;  %v424_v30 = vpop.f32.mrf.mxu0 }
 0x136   : > { %vm7129_vm9 = vmpackc.low %vm12550_vm8, %vm12549_vm1  ;;  %vm5456_vm4 = vcmp.eq.s32.totalorder %v7654_v19, %v10181_v34  ;;  %vm5458_vm2 = vcmp.eq.s32.totalorder %v7657_v20, %v10181_v34  ;;  %v11129_v40 = vsel %vm2427_vm6, 1.0, %v12453_v45  ;;  %v450_v59 = vmul.f32 %v10013_v57, %v10902_v46  ;;  %4636 = vmatmul.mubr.bf16.gmra.mxu0 %v7352_v16 }
 0x137   : > { %v457_v12 = vadd.f32 %v451_v43, %v449_v42  ;;  %v454_v18 = vmul.f32 %v10216_v31, %v422_v38  ;;  %7130 = vmatprep.subr.msk.bf16.mxu0 %vm7129_vm9, %v12450_v0  ;;  %vm12551_vm15 = vcmp.eq.s32.totalorder %v7551_v6, %v10116_v50  ;;  %v11150_v54 = vsel %vm2779_vm12, 1.0, %v12453_v45  ;;  %v771_v38 = vpop.f32.mrf.mxu1  ;;  %4645 = vmatprep.mubr.bf16.mxu0 %v12473_v55 }
 0x138   : > { %vm7215_vm1 = vmpackc.low %vm12551_vm15, %vm5465_vm0  ;;  %v797_v43 = vmul.f32 %v10087_v27, %v10931_v8  ;;  %v804_v46 = vadd.f32 %v798_v62, %v796_v52  ;;  %v801_v42 = vmul.f32 %v10222_v1, %v769_v49  ;;  %vm12552_vm0 = vcmp.eq.s32.totalorder %v7548_v5, %v10031_v28  ;;  %v7353_v49 = vld [vmem:[%s12309_s1 + $0x1b0] sm:$0xff]  }
 0x139   : > { %7216 = vmatprep.subr.msk.bf16.mxu1 %vm7215_vm1, %v12450_v0  ;;  %vm12553_vm9 = vcmp.eq.s32.totalorder %v7551_v6, %v10031_v28  ;;  %vm3125_vm1 = vcmp.eq.s32.totalorder %v7451_v29, %v11085_v44  ;;  %v466_v8 = vadd.f32 %v452_v48, %v450_v59  ;;  %v458_v62 = vadd.f32 %v457_v12, %v453_v11  ;;  %v773_v12 = vpop.f32.mrf.mxu1 }
 0x13a   : > { %vm7131_vm15 = vmpackc.low %vm12553_vm9, %vm12552_vm0  ;;  %v455_v52 = vmul.f32 %v10228_v10, %v424_v30  ;;  %vm12554_vm0 = vcmp.eq.s32.totalorder %v7551_v6, %v10181_v34  ;;  %v813_v48 = vadd.f32 %v799_v53, %v797_v43  ;;  %v805_v11 = vadd.f32 %v804_v46, %v800_v39  ;;  %v426_v6 = vpop.f32.mrf.mxu0  ;;  %4982 = vmatmul.mubr.bf16.gmra.mxu1 %v7353_v49 }
 0x13b   : > { %7132 = vmatpush1.bf16.msk.msra.mxu0 %vm7131_vm15, %v12450_v0  ;;  %vm7217_vm9 = vmpackc.low %vm12554_vm0, %vm5464_vm14  ;;  %vm3471_vm15 = vcmp.eq.s32.totalorder %v7451_v29, %v11107_v24  ;;  %v802_v5 = vmul.f32 %v10245_v61, %v771_v38  ;;  %vm12555_vm14 = vcmp.eq.s32.totalorder %v7612_v14, %v9992_v41  ;;  %vm5452_vm12 = vcmp.eq.s32.totalorder %v7697_v25, %v10181_v34 }
 0x13c   : > { %7218 = vmatpush1.bf16.msk.msra.mxu1 %vm7217_vm9, %v12450_v0  ;;  %vm7133_vm0 = vmpackc.low %vm12555_vm14, %vm5109_vm3  ;;  %vm3126_vm6 = vcmp.eq.s32.totalorder %v7742_v32, %v10956_v47  ;;  %v467_v53 = vadd.f32 %v466_v8, %v454_v18  ;;  %v459_v39 = vadd.f32 %v458_v62, %v455_v52  ;;  %v456_v59 = vmul.f32 %v10251_v51, %v426_v6  ;;  %v430_v30 = vpop.f32.mrf.mxu0  ;;  %v777_v62 = vpop.f32.mrf.mxu1 }
 0x13d   : > { %7134 = vmatprep.subr.msk.bf16.mxu0 %vm7133_vm0, %v12450_v0  ;;  %vm7219_vm3 = vmpackc.low %vm5463_vm13, %vm5461_vm10  ;;  %vm3472_vm8 = vcmp.eq.s32.totalorder %v7742_v32, %v10985_v2  ;;  %v814_v18 = vadd.f32 %v813_v48, %v801_v42  ;;  %v806_v43 = vadd.f32 %v805_v11, %v802_v5  ;;  %v803_v46 = vmul.f32 %v10273_v7, %v773_v12 }
 0x13e   : > { %7220 = vmatprep.subr.msk.bf16.mxu1 %vm7219_vm3, %v12450_v0  ;;  %vm12556_vm13 = vcmp.eq.s32.totalorder %v7609_v13, %v10031_v28  ;;  %vm12557_vm10 = vcmp.eq.s32.totalorder %v7612_v14, %v10031_v28  ;;  %vm5449_vm14 = vcmp.eq.s32.totalorder %v7451_v29, %v10116_v50  ;;  %v11232_v42 = vsel %vm3124_vm7, 1.0, %v12453_v45  ;;  %v779_v6 = vpop.f32.mrf.mxu1  ;;  %4991 = vmatprep.mubr.bf16.mxu1 %v12473_v55 }
 0x13f   : > { %vm7135_vm0 = vmpackc.low %vm12557_vm10, %vm12556_vm13  ;;  %v460_v16 = vrot.slane %v459_v39, 4  ;;  %v468_v8 = vadd.f32 %v467_v53, %v456_v59  ;;  %vm12558_vm3 = vcmp.eq.s32.totalorder %v7609_v13, %v10181_v34  ;;  %vm12559_vm13 = vcmp.eq.s32.totalorder %v7612_v14, %v10181_v34  ;;  %v432_v14 = vpop.f32.mrf.mxu0 }
 0x140   : > { %7136 = vmatpush1.bf16.msk.msra.mxu0 %vm7135_vm0, %v12450_v0  ;;  %vm7221_vm10 = vmpackc.low %vm12559_vm13, %vm12558_vm3  ;;  %v11249_v52 = vsel %vm3470_vm5, 1.0, %v12453_v45  ;;  %vm3127_vm0 = vcmp.eq.s32.totalorder %v7742_v32, %v11085_v44  ;;  %v807_v13 = vrot.slane %v806_v43, 4  ;;  %v815_v38 = vadd.f32 %v814_v18, %v803_v46  ;;  %v7354_v46 = vld [vmem:[%s12309_s1 + $0x198] sm:$0xff]  }
 0x141   : > { %12560 = vst [vmem:[#allocation51_spill] sm:$0xff] %v11249_v52  ;;  %7222 = vmatpush1.bf16.msk.msra.mxu1 %vm7221_vm10, %v12450_v0  ;;  %vm12561_vm3 = vcmp.eq.s32.totalorder %v7654_v19, %v9992_v41  ;;  %vm12562_vm13 = vcmp.eq.s32.totalorder %v7657_v20, %v9992_v41  ;;  %vm5448_vm5 = vcmp.eq.s32.totalorder %v7451_v29, %v10181_v34  ;;  %v11269_v49 = vsel %vm3125_vm1, 1.0, %v12453_v45  ;;  %v434_v18 = vpop.f32.mrf.mxu0 }
 0x142   : > { %vm7137_vm7 = vmpackc.low %vm12562_vm13, %vm12561_vm3  ;;  %vm5450_vm9 = vcmp.eq.s32.totalorder %v7742_v32, %v10181_v34  ;;  %12563 = vst [vmem:[#allocation52_spill] sm:$0xff] %v11269_v49  ;;  %v11275_v48 = vsel %vm3471_vm15, 1.0, %v12453_v45  ;;  %v461_v11 = vadd.f32 %v460_v16, %v459_v39  ;;  %v469_v5 = vrot.slane %v468_v8, 4  ;;  %4646 = vmatmul.mubr.bf16.gmra.mxu0 %v7354_v46 }
 0x143   : > { %12564 = vst [vmem:[#allocation53_spill] sm:$0xff] %v11275_v48  ;;  %7138 = vmatprep.subr.msk.bf16.mxu0 %vm7137_vm7, %v12450_v0  ;;  %vm12565_vm10 = vcmp.eq.s32.totalorder %v7654_v19, %v10116_v50  ;;  %vm12566_vm3 = vcmp.eq.s32.totalorder %v7657_v20, %v10116_v50  ;;  %v11289_v53 = vsel %vm3126_vm6, 1.0, %v12453_v45  ;;  %v11295_v39 = vsel %vm3472_vm8, 1.0, %v12453_v45  ;;  %v7355_v48 = vld [vmem:[%s12309_s1 + $0x1b8] sm:$0xff]   ;;  %5313 = vmatprep.mubr.bf16.mxu0 %v12473_v55 }
 0x144   : > { %vm7223_vm13 = vmpackc.low %vm12566_vm3, %vm12565_vm10  ;;  %12567 = vst [vmem:[#allocation54_spill] sm:$0xff] %v11289_v53  ;;  %v808_v59 = vadd.f32 %v807_v13, %v806_v43  ;;  %v816_v12 = vrot.slane %v815_v38, 4  ;;  %vm12569_vm1 = vcmp.eq.s32.totalorder %v7657_v20, %v10031_v28  ;;  %v11311_v43 = vsel %vm3127_vm0, 1.0, %v12453_v45  ;;  %v436_v20 = vpop.f32.mrf.mxu0  ;;  %4992 = vmatmul.mubr.bf16.gmra.mxu1 %v7355_v48 }
 0x145   : > { %12568 = vst [vmem:[#allocation55_spill] sm:$0xff] %v11295_v39  ;;  %7224 = vmatprep.subr.msk.bf16.mxu1 %vm7223_vm13, %v12450_v0  ;;  %vm7139_vm15 = vmpackc.low %vm12569_vm1, %vm5104_vm11  ;;  %vm3473_vm6 = vcmp.eq.s32.totalorder %v7742_v32, %v11107_v24  ;;  %v462_v16 = vrot.slane %v461_v11, 2  ;;  %v470_v13 = vadd.f32 %v469_v5, %v468_v8  ;;  %v781_v39 = vpop.f32.mrf.mxu1  ;;  %vm3128_vm8 = vcmp.eq.s32.totalorder %v7697_v25, %v10956_v47 }
 0x146   : > { %12570 = vst [vmem:[#allocation56_spill] sm:$0xff] %v11311_v43  ;;  %7140 = vmatpush1.bf16.msk.msra.mxu0 %vm7139_vm15, %v12450_v0  ;;  %vm7225_vm11 = vmpackc.low %vm5458_vm2, %vm5456_vm4  ;;  %vm3474_vm7 = vcmp.eq.s32.totalorder %v7697_v25, %v10985_v2  ;;  %v809_v8 = vrot.slane %v808_v59, 2  ;;  %v817_v5 = vadd.f32 %v816_v12, %v815_v38  ;;  %v475_v43 = vmul.f32 %v9983_v17, %v430_v30 }
 0x147   : > { %v822_v19 = vmul.f32 %v9989_v23, %v777_v62  ;;  %7226 = vmatpush1.bf16.msk.msra.mxu1 %vm7225_vm11, %v12450_v0  ;;  %vm12571_vm2 = vcmp.eq.s32.totalorder %v7697_v25, %v9992_v41  ;;  %vm12572_vm4 = vcmp.eq.s32.totalorder %v7700_v26, %v9992_v41  ;;  %vm3129_vm10 = vcmp.eq.s32.totalorder %v7697_v25, %v11085_v44  ;;  %v783_v30 = vpop.f32.mrf.mxu1 }
 0x148   : > { %vm7141_vm0 = vmpackc.low %vm12572_vm4, %vm12571_vm2  ;;  %v471_v53 = vrot.slane %v470_v13, 2  ;;  %v476_v38 = vmul.f32 %v10013_v57, %v432_v14  ;;  %v477_v17 = vmul.f32 %v10037_v33, %v434_v18  ;;  %v824_v23 = vmul.f32 %v10043_v4, %v781_v39  ;;  %v440_v33 = vpop.f32.mrf.mxu0  ;;  %5665 = vmatprep.mubr.bf16.mxu1 %v12473_v55 }
 0x149   : > { %7142 = vmatprep.subr.msk.bf16.mxu0 %vm7141_vm0, %v12450_v0  ;;  %vm12573_vm3 = vcmp.eq.s32.totalorder %v7697_v25, %v10116_v50  ;;  %vm12574_vm13 = vcmp.eq.s32.totalorder %v7700_v26, %v10116_v50  ;;  %v11350_v62 = vadd.f32 %v462_v16, %v461_v11  ;;  %v11352_v12 = vadd.f32 %v809_v8, %v808_v59  ;;  %v787_v39 = vpop.f32.mrf.mxu1 }
 0x14a   : > { %vm7227_vm1 = vmpackc.low %vm12574_vm13, %vm12573_vm3  ;;  %v818_v49 = vrot.slane %v817_v5, 2  ;;  %v478_v57 = vmul.f32 %v10093_v60, %v436_v20  ;;  %vm12575_vm15 = vcmp.eq.s32.totalorder %v7697_v25, %v10031_v28  ;;  %vm12576_vm11 = vcmp.eq.s32.totalorder %v7700_v26, %v10031_v28  ;;  %v442_v48 = vpop.f32.mrf.mxu0 }
 0x14b   : > { %7228 = vmatprep.subr.msk.bf16.mxu1 %vm7227_vm1, %v12450_v0  ;;  %vm7143_vm2 = vmpackc.low %vm12576_vm11, %vm12575_vm15  ;;  %v823_v4 = vmul.f32 %v10087_v27, %v779_v6  ;;  %v825_v14 = vmul.f32 %v10099_v15, %v783_v30  ;;  %v479_v11 = vmul.f32 %v10187_v36, %v440_v33  ;;  %vm12577_vm4 = vcmp.eq.s32.totalorder %v7700_v26, %v10181_v34  ;;  %v789_v59 = vpop.f32.mrf.mxu1 }
 0x14c   : > { %7144 = vmatpush1.bf16.msk.msra.mxu0 %vm7143_vm2, %v12450_v0  ;;  %vm7229_vm0 = vmpackc.low %vm12577_vm4, %vm5452_vm12  ;;  %v11376_v27 = vsel %vm3473_vm6, 1.0, %v12453_v45  ;;  %v472_v60 = vadd.f32 %v471_v53, %v470_v13  ;;  %v819_v15 = vadd.f32 %v818_v49, %v817_v5  ;;  %v826_v36 = vmul.f32 %v10210_v22, %v787_v39  ;;  %v444_v16 = vpop.f32.mrf.mxu0 }
 0x14d   : > { %12578 = vst [vmem:[#allocation57_spill] sm:$0xff] %v11376_v27  ;;  %7230 = vmatpush1.bf16.msk.msra.mxu1 %vm7229_vm0, %v12450_v0  ;;  %vm12579_vm3 = vcmp.eq.s32.totalorder %v7451_v29, %v9992_v41  ;;  %vm12580_vm13 = vcmp.eq.s32.totalorder %v7742_v32, %v9992_v41  ;;  %v11391_v6 = vsel %vm3128_vm8, 1.0, %v12453_v45  ;;  %v483_v49 = vadd.f32 %v477_v17, %v475_v43 }
 0x14e   : > { %vm7145_vm12 = vmpackc.low %vm12580_vm13, %vm12579_vm3  ;;  %12581 = vst [vmem:[#allocation58_spill] sm:$0xff] %v11391_v6  ;;  %v830_v22 = vadd.f32 %v824_v23, %v822_v19  ;;  %v480_v53 = vmul.f32 %v10216_v31, %v442_v48  ;;  %vm12582_vm6 = vcmp.eq.s32.totalorder %v7742_v32, %v10116_v50  ;;  %v11406_v41 = vsel %vm3474_vm7, 1.0, %v12453_v45  ;;  %v7356_v50 = vld [vmem:[%s12309_s1 + $0x1c0] sm:$0xff]   ;;  %v791_v19 = vpop.f32.mrf.mxu1  ;;  %v446_v30 = vpop.f32.mrf.mxu0 }
 0x14f   : > { %7146 = vmatprep.subr.msk.bf16.mxu0 %vm7145_vm12, %v12450_v0  ;;  %vm7231_vm1 = vmpackc.low %vm12582_vm6, %vm5449_vm14  ;;  %12583 = vst [vmem:[#allocation59_spill] sm:$0xff] %v11406_v41  ;;  %v464_v31 = vrot.slane %v11350_v62, 1  ;;  %v811_v18 = vrot.slane %v11352_v12, 1  ;;  %v492_v46 = vadd.f32 %v478_v57, %v476_v38  ;;  %v827_v43 = vmul.f32 %v10222_v1, %v789_v59  ;;  %v12597_v6 = vld [vmem:[#allocation19_spill] sm:$0xff] }
 0x150   : > { %7232 = vmatprep.subr.msk.bf16.mxu1 %vm7231_vm1, %v12450_v0  ;;  %vm12584_vm14 = vcmp.eq.s32.totalorder %v7451_v29, %v10031_v28  ;;  %vm12585_vm8 = vcmp.eq.s32.totalorder %v7742_v32, %v10031_v28  ;;  %v839_v13 = vadd.f32 %v825_v14, %v823_v4  ;;  %v484_v8 = vadd.f32 %v483_v49, %v479_v11  ;;  %vm7233_vm7 = vmpackc.low %vm5450_vm9, %vm5448_vm5  ;;  %v7357_v28 = vld [vmem:[%s12309_s1 + $0x1e0] sm:$0xff]   ;;  %v793_v4 = vpop.f32.mrf.mxu1  ;;  %v1109_v49 = vpop.f32.mrf.mxu0 }
 0x151   : > { %vm7147_vm15 = vmpackc.low %vm12585_vm8, %vm12584_vm14  ;;  %v481_v5 = vmul.f32 %v10228_v10, %v444_v16  ;;  %v12586_v1 = vand.u32 4095, %v9125_v35  ;;  %v473_v38 = vrot.slane %v472_v60, 1  ;;  %v820_v10 = vrot.slane %v819_v15, 1  ;;  %7234 = vmatpush1.bf16.msk.msra.mxu1 %vm7233_vm7, %v12450_v0 }
 0x152   : > { %7148 = vmatpush1.bf16.msk.msra.mxu0 %vm7147_vm15, %v12450_v0  ;;  %v831_v17 = vadd.f32 %v830_v22, %v826_v36  ;;  %v828_v23 = vmul.f32 %v10245_v61, %v791_v19  ;;  %v493_v57 = vadd.f32 %v492_v46, %v480_v53  ;;  %v482_v34 = vmul.f32 %v10251_v51, %v446_v30  ;;  %v1461_v51 = vpop.f32.mrf.mxu1  ;;  %v7358_v19 = vld [vmem:[%s12309_s1 + $0x1c8] sm:$0xff]  }
 0x153   : > { %v11434_v20 = vand.u32 31, %v12586_v1  ;;  %v485_v33 = vadd.f32 %v484_v8, %v481_v5  ;;  %v12587_v14 = vand.u32 4095, %v9135_v9  ;;  %v840_v35 = vadd.f32 %v839_v13, %v827_v43  ;;  %v7359_v30 = vld [vmem:[%s12309_s1 + $0x1e8] sm:$0xff]   ;;  %v12595_v13 = vld [vmem:[#allocation14_spill] sm:$0xff] }
 0x154   : > { %v832_v39 = vadd.f32 %v831_v17, %v828_v23  ;;  %v829_v48 = vmul.f32 %v10273_v7, %v793_v4  ;;  %v11447_v0 = vadd.f32 %v464_v31, %v11350_v62  ;;  %v494_v22 = vadd.f32 %v493_v57, %v482_v34  ;;  %5666 = vmatmul.mubr.bf16.vlgmr.msra.gmra.mxu1 %v7357_v28  ;;  %v1111_v31 = vpop.f32.mrf.mxu0  ;;  %v12591_v34 = vld [vmem:[#allocation11_spill] sm:$0xff] }
 0x155   : > { %v11441_v11 = vand.u32 31, %v12587_v14  ;;  %5314 = vmatmul.mubr.bf16.vlgmr.msra.gmra.mxu0 %v7356_v50  ;;  %v3809_v61 = vrot.slane %v11434_v20, %v7456_v37  ;;  %v486_v36 = vrot.slane %v485_v33, 4  ;;  %v11454_v9 = vsel %vm3129_vm10, 1.0, %v12453_v45  ;;  %5675 = vmatprep.mubr.bf16.mxu1 %v12473_v55  ;;  %v1463_v50 = vpop.f32.mrf.mxu1  ;;  %v12592_v14 = vld [vmem:[#allocation15_spill] sm:$0xff] }
 0x156   : > { %5323 = vmatprep.mubr.bf16.mxu0 %v12473_v55  ;;  %12588 = vst [vmem:[#allocation60_spill] sm:$0xff] %v11454_v9  ;;  %v11457_v7 = vadd.f32 %v811_v18, %v11352_v12  ;;  %v11459_v53 = vadd.f32 %v473_v38, %v472_v60  ;;  %vm501_vm9 = vcmask 1040384   ;;  %v833_v62 = vrot.slane %v832_v39, 4  ;;  %v12589_v18 = vld [vmem:[#allocation10_spill] sm:$0xff]  ;;  %v1113_v5 = vpop.f32.mrf.mxu0 }
 0x157   : > { %v841_v59 = vadd.f32 %v840_v35, %v829_v48  ;;  %v11462_v46 = vadd.f32 %v820_v10, %v819_v15  ;;  %v487_v43 = vadd.f32 %v486_v36, %v485_v33  ;;  %v495_v16 = vrot.slane %v494_v22, 4  ;;  %v12590_v10 = vld [vmem:[#allocation13_spill] sm:$0xff]  ;;  %v1465_v23 = vpop.f32.mrf.mxu1 }
 0x158   : > { %v834_v8 = vadd.f32 %v833_v62, %v832_v39  ;;  %v1148_v60 = vmul.f32 %v12589_v18, %v1109_v49  ;;  %v11471_v28 = vrot.slane %v3809_v61, %v7456_v37  ;;  %v1500_v38 = vmul.f32 %v10347_v56, %v1461_v51  ;;  %v1115_v39 = vpop.f32.mrf.mxu0  ;;  %v12593_v61 = vld [vmem:[#allocation12_spill] sm:$0xff] }
 0x159   : > { %v842_v12 = vrot.slane %v841_v59, 4  ;;  %v488_v15 = vrot.slane %v487_v43, 2  ;;  %v496_v1 = vadd.f32 %v495_v16, %v494_v22  ;;  %v1150_v17 = vmul.f32 %v12590_v10, %v1113_v5  ;;  %v12594_v22 = vld [vmem:[#allocation16_spill] sm:$0xff]  ;;  %v1467_v62 = vpop.f32.mrf.mxu1 }
 0x15a   : > { %v835_v57 = vrot.slane %v834_v8, 2  ;;  %v1149_v4 = vmul.f32 %v12591_v34, %v1111_v31  ;;  %v1502_v35 = vmul.f32 %v12592_v14, %v1465_v23  ;;  %vm3475_vm5 = vcmp.eq.s32.totalorder %v7697_v25, %v11107_v24 }
 0x15b   : > { %v843_v33 = vadd.f32 %v842_v12, %v841_v59  ;;  %v489_v48 = vadd.f32 %v488_v15, %v487_v43  ;;  %v497_v49 = vrot.slane %v496_v1, 2  ;;  %v1501_v36 = vmul.f32 %v12593_v61, %v1463_v50  ;;  %v1119_v12 = vpop.f32.mrf.mxu0  ;;  %v1471_v9 = vpop.f32.mrf.mxu1 }
 0x15c   : > { %v1151_v51 = vmul.f32 %v12594_v22, %v1115_v39  ;;  %v836_v16 = vadd.f32 %v835_v57, %v834_v8  ;;  %v1156_v59 = vadd.f32 %v1150_v17, %v1148_v60  ;;  %v1503_v31 = vmul.f32 %v10475_v3, %v1467_v62  ;;  %5676 = vmatmul.mubr.bf16.gmra.mxu1 %v7359_v30 }
 0x15d   : > { %v844_v5 = vrot.slane %v843_v33, 2  ;;  %5324 = vmatmul.mubr.bf16.gmra.mxu0 %v7358_v19  ;;  %vm3130_vm10 = vcmp.eq.s32.totalorder %v7700_v26, %v10956_v47  ;;  %v490_v23 = vrot.slane %v489_v48, 1  ;;  %v498_v43 = vadd.f32 %v497_v49, %v496_v1  ;;  %v1121_v17 = vpop.f32.mrf.mxu0  ;;  %5685 = vmatprep.mubr.bf16.mxu1 %v12473_v55  ;;  %v12596_v1 = vld [vmem:[#allocation17_spill] sm:$0xff] }
 0x15e   : > { %v1508_v15 = vadd.f32 %v1502_v35, %v1500_v38  ;;  %v1152_v50 = vmul.f32 %v12595_v13, %v1119_v12  ;;  %5333 = vmatprep.mubr.bf16.mxu0 %v12473_v55  ;;  %v837_v39 = vrot.slane %v836_v16, 1  ;;  %v1165_v57 = vadd.f32 %v1151_v51, %v1149_v4  ;;  %v1473_v35 = vpop.f32.mrf.mxu1  ;;  %v12598_v51 = vld [vmem:[#allocation18_spill] sm:$0xff] }
 0x15f   : > { %v845_v8 = vadd.f32 %v844_v5, %v843_v33  ;;  %v1504_v60 = vmul.f32 %v10481_v21, %v1471_v9  ;;  %v491_v19 = vadd.f32 %v490_v23, %v489_v48  ;;  %v499_v62 = vrot.slane %v498_v43, 1  ;;  %v1123_v52 = vpop.f32.mrf.mxu0  ;;  %v7360_v9 = vld [vmem:[%s12309_s1 + $0x1d0] sm:$0xff]   ;;  %v12599_v23 = vld [vmem:[#allocation20_spill] sm:$0xff] }
 0x160   : > { %v1517_v41 = vadd.f32 %v1503_v31, %v1501_v36  ;;  %v1153_v38 = vmul.f32 %v12596_v1, %v1121_v17  ;;  %v838_v49 = vadd.f32 %v837_v39, %v836_v16  ;;  %v1157_v30 = vadd.f32 %v1156_v59, %v1152_v50  ;;  %v1475_v5 = vpop.f32.mrf.mxu1  ;;  %v7361_v16 = vld [vmem:[%s12309_s1 + $0x1f0] sm:$0xff]  }
 0x161   : > { %v846_v12 = vrot.slane %v845_v8, 1  ;;  %v1505_v27 = vmul.f32 %v12597_v6, %v1473_v35  ;;  %v502_v33 = vsel %vm501_vm9, %v11447_v0, %v491_v19  ;;  %v500_v4 = vadd.f32 %v499_v62, %v498_v43 }
 0x162   : > { %v1509_v48 = vadd.f32 %v1508_v15, %v1504_v60  ;;  %v1154_v36 = vmul.f32 %v12598_v51, %v1123_v52  ;;  %504 = vst [vmem:[%s11506_s14] sm:$0x3] %v502_v33  ;;  %v848_v59 = vsel %vm501_vm9, %v11457_v7, %v838_v49  ;;  %v1166_v0 = vadd.f32 %v1165_v57, %v1153_v38  ;;  %v1125_v15 = vpop.f32.mrf.mxu0  ;;  %v12600_v60 = vld [vmem:[#allocation21_spill] sm:$0xff]  ;;  %v1477_v19 = vpop.f32.mrf.mxu1 }
 0x163   : > { %v847_v31 = vadd.f32 %v846_v12, %v845_v8  ;;  %v1506_v43 = vmul.f32 %v12599_v23, %v1475_v5  ;;  %v852_v52 = vrot.slane %v848_v59, 6  ;;  %v503_v50 = vsel %vm501_vm9, %v11459_v53, %v500_v4  ;;  %v12601_v8 = vld [vmem:[#allocation22_spill] sm:$0xff] }
 0x164   : > { %v1158_v39 = vadd.f32 %v1157_v30, %v1154_v36  ;;  %v1155_v17 = vmul.f32 %v12600_v60, %v1125_v15  ;;  %505 = vst [vmem:[%s11506_s14 + $0x8] sm:$0x3] %v503_v50  ;;  %v1518_v35 = vadd.f32 %v1517_v41, %v1505_v27  ;;  %v1507_v49 = vmul.f32 %v12601_v8, %v1477_v19  ;;  %v1129_v57 = vpop.f32.mrf.mxu0  ;;  %v1481_v53 = vpop.f32.mrf.mxu1  ;;  %v7362_v59 = vld [vmem:[%s12309_s1 + $0x1d8] sm:$0xff]  }
 0x165   : > { %v849_v62 = vsel %vm501_vm9, %v11462_v46, %v847_v31  ;;  %v1510_v7 = vadd.f32 %v1509_v48, %v1506_v43  ;;  %5334 = vmatmul.mubr.bf16.gmra.mxu0 %v7360_v9  ;;  %856 = vst [vmem:[%s11506_s14] sm:$0xc] %v852_v52  ;;  %5686 = vmatmul.mubr.bf16.gmra.mxu1 %v7361_v16  ;;  %v11525_v46 = vsel %vm3475_vm5, 1.0, %v12453_v45  ;;  %v11537_v36 = vsel %vm3130_vm10, 1.0, %v12453_v45  ;;  %v7363_v52 = vld [vmem:[%s12309_s1 + $0x1f8] sm:$0xff]  }
 0x166   : > { %v853_v38 = vrot.slane %v849_v62, 6  ;;  %v1159_v12 = vrot.slane %v1158_v39, 4  ;;  %v1167_v33 = vadd.f32 %v1166_v0, %v1155_v17  ;;  %5343 = vmatprep.mubr.bf16.mxu0 %v12473_v55  ;;  %v1519_v41 = vadd.f32 %v1518_v35, %v1507_v49  ;;  %v1131_v30 = vpop.f32.mrf.mxu0  ;;  %5695 = vmatprep.mubr.bf16.mxu1 %v12473_v55  ;;  %v1483_v48 = vpop.f32.mrf.mxu1  ;;  %12602 = vst [vmem:[#allocation10_spill] sm:$0xff] %v11537_v36 }
 0x167   : > { %v1511_v27 = vrot.slane %v1510_v7, 4  ;;  %vm3476_vm11 = vcmp.eq.s32.totalorder %v7700_v26, %v10985_v2  ;;  %vm3131_vm2 = vcmp.eq.s32.totalorder %v7700_v26, %v11085_v44  ;;  %vm3477_vm4 = vcmp.eq.s32.totalorder %v7700_v26, %v11107_v24 }
 0x168   : > { %857 = vst [vmem:[%s11506_s14 + $0x8] sm:$0xc] %v853_v38  ;;  %v1160_v9 = vadd.f32 %v1159_v12, %v1158_v39  ;;  %v1168_v4 = vrot.slane %v1167_v33, 4  ;;  %v1520_v5 = vrot.slane %v1519_v41, 4  ;;  %v1133_v16 = vpop.f32.mrf.mxu0  ;;  %vm3822_vm0 = vcmp.eq.s32.totalorder %v7451_v29, %v11471_v28  ;;  %v1485_v15 = vpop.f32.mrf.mxu1 }
 0x169   : > { %v1512_v55 = vadd.f32 %v1511_v27, %v1510_v7  ;;  %v12603_v31 = vrot.slane %v11441_v11, %v7456_v37  ;;  %v11559_v50 = vsel %vm3476_vm11, 1.0, %v12453_v45  ;;  %v11565_v39 = vsel %vm3131_vm2, 1.0, %v12453_v45  ;;  %v12607_v7 = vld [vmem:[#allocation4_spill] sm:$0xff] }
 0x16a   : > { %v1161_v0 = vrot.slane %v1160_v9, 2  ;;  %v1169_v43 = vadd.f32 %v1168_v4, %v1167_v33  ;;  %12604 = vst [vmem:[#allocation13_spill] sm:$0xff] %v11559_v50  ;;  %12605 = vst [vmem:[#allocation11_spill] sm:$0xff] %v11565_v39  ;;  %v1521_v19 = vadd.f32 %v1520_v5, %v1519_v41  ;;  %v1135_v62 = vpop.f32.mrf.mxu0  ;;  %v11571_v35 = vsel %vm3477_vm4, 1.0, %v12453_v45  ;;  %v1487_v12 = vpop.f32.mrf.mxu1 }
 0x16b   : > { %v11550_v47 = vrot.slane %v12603_v31, %v7456_v37  ;;  %v1513_v17 = vrot.slane %v1512_v55, 2  ;;  %12606 = vst [vmem:[#allocation15_spill] sm:$0xff] %v11571_v35  ;;  %v3813_v2 = vrot.slane %v11434_v20, %v12607_v7  ;;  %v1176_v38 = vmul.f32 %v12590_v10, %v1133_v16 }
 0x16c   : > { %v1170_v49 = vrot.slane %v1169_v43, 2  ;;  %v11580_v44 = vsel %vm3822_vm0, 1.0, %v12453_v45  ;;  %v4165_v33 = vrot.slane %v11441_v11, %v12607_v7  ;;  %v1162_v27 = vadd.f32 %v1161_v0, %v1160_v9  ;;  %v1139_v4 = vpop.f32.mrf.mxu0  ;;  %v1491_v31 = vpop.f32.mrf.mxu1 }
 0x16d   : > { %12608 = vst [vmem:[#allocation12_spill] sm:$0xff] %v11580_v44  ;;  %v1522_v24 = vrot.slane %v1521_v19, 2  ;;  %v1528_v41 = vmul.f32 %v12592_v14, %v1485_v15  ;;  %5344 = vmatmul.mubr.bf16.gmra.mxu0 %v7362_v59  ;;  %vm4174_vm3 = vcmp.eq.s32.totalorder %v7451_v29, %v11550_v47  ;;  %v1514_v20 = vadd.f32 %v1513_v17, %v1512_v55 }
 0x16e   : > { %v1174_v10 = vmul.f32 %v12589_v18, %v1129_v57  ;;  %v1177_v5 = vmul.f32 %v12594_v22, %v1135_v62  ;;  %v1178_v16 = vmul.f32 %v12595_v13, %v1139_v4  ;;  %5696 = vmatmul.mubr.bf16.gmra.mxu1 %v7363_v52  ;;  %v1171_v44 = vadd.f32 %v1170_v49, %v1169_v43  ;;  %v1141_v59 = vpop.f32.mrf.mxu0  ;;  %v1493_v57 = vpop.f32.mrf.mxu1 }
 0x16f   : > { %v1526_v11 = vmul.f32 %v10347_v56, %v1481_v53  ;;  %v1529_v9 = vmul.f32 %v10475_v3, %v1487_v12  ;;  %v1530_v14 = vmul.f32 %v10481_v21, %v1491_v31  ;;  %v1523_v0 = vadd.f32 %v1522_v24, %v1521_v19 }
 0x170   : > { %v1175_v15 = vmul.f32 %v12591_v34, %v1131_v30  ;;  %v1182_v55 = vadd.f32 %v1176_v38, %v1174_v10  ;;  %v1179_v18 = vmul.f32 %v12596_v1, %v1141_v59  ;;  %v1163_v22 = vrot.slane %v1162_v27, 1  ;;  %v1143_v52 = vpop.f32.mrf.mxu0  ;;  %v1495_v62 = vpop.f32.mrf.mxu1 }
 0x171   : > { %v1527_v13 = vmul.f32 %v12593_v61, %v1483_v48  ;;  %v1534_v17 = vadd.f32 %v1528_v41, %v1526_v11  ;;  %v1531_v43 = vmul.f32 %v12597_v6, %v1493_v57  ;;  %v1515_v56 = vrot.slane %v1514_v20, 1 }
 0x172   : > { %v1191_v53 = vadd.f32 %v1177_v5, %v1175_v15  ;;  %v1183_v3 = vadd.f32 %v1182_v55, %v1178_v16  ;;  %v1180_v21 = vmul.f32 %v12598_v51, %v1143_v52  ;;  %v1172_v19 = vrot.slane %v1171_v44, 1  ;;  %v1145_v1 = vpop.f32.mrf.mxu0  ;;  %v1497_v48 = vpop.f32.mrf.mxu1 }
 0x173   : > { %v1543_v49 = vadd.f32 %v1529_v9, %v1527_v13  ;;  %v1535_v34 = vadd.f32 %v1534_v17, %v1530_v14  ;;  %v1532_v30 = vmul.f32 %v12599_v23, %v1495_v62  ;;  %v1524_v38 = vrot.slane %v1523_v0, 1 }
 0x174   : > { %v1192_v12 = vadd.f32 %v1191_v53, %v1179_v18  ;;  %v1184_v24 = vadd.f32 %v1183_v3, %v1180_v21  ;;  %v1181_v61 = vmul.f32 %v12600_v60, %v1145_v1  ;;  %v1533_v4 = vmul.f32 %v12601_v8, %v1497_v48  ;;  %v1813_v10 = vpop.f32.mrf.mxu0  ;;  %v2159_v16 = vpop.f32.mrf.mxu1  ;;  %v12611_v53 = vld [vmem:[#allocation24_spill] sm:$0xff]  ;;  %v12613_v21 = vld [vmem:[#allocation27_spill] sm:$0xff]  ;;  %v12616_v48 = vld [vmem:[#allocation30_spill] sm:$0xff] }
 0x175   : > { %v1544_v6 = vadd.f32 %v1543_v49, %v1531_v43  ;;  %v1536_v41 = vadd.f32 %v1535_v34, %v1532_v30  ;;  %v11605_v51 = vsel %vm4174_vm3, 1.0, %v12453_v45  ;;  %v11608_v31 = vrot.slane %v3813_v2, %v7456_v37  ;;  %v12610_v2 = vld [vmem:[#allocation23_spill] sm:$0xff]  ;;  %v12614_v49 = vld [vmem:[#allocation26_spill] sm:$0xff]  ;;  %v12615_v30 = vld [vmem:[#allocation28_spill] sm:$0xff] }
 0x176   : > { %12609 = vst [vmem:[#allocation16_spill] sm:$0xff] %v11605_v51  ;;  %v1185_v5 = vrot.slane %v1184_v24, 4  ;;  %v1193_v23 = vadd.f32 %v1192_v12, %v1181_v61  ;;  %v11611_v60 = vrot.slane %v4165_v33, %v7456_v37  ;;  %v1164_v11 = vadd.f32 %v1163_v22, %v1162_v27  ;;  %v1815_v59 = vpop.f32.mrf.mxu0  ;;  %v2161_v13 = vpop.f32.mrf.mxu1  ;;  %v12612_v22 = vld [vmem:[#allocation25_spill] sm:$0xff] }
 0x177   : > { %v11613_v9 = vadd.f32 %v1515_v56, %v1514_v20  ;;  %v1537_v8 = vrot.slane %v1536_v41, 4  ;;  %v1545_v14 = vadd.f32 %v1544_v6, %v1533_v4  ;;  %v11615_v15 = vadd.f32 %v1172_v19, %v1171_v44 }
 0x178   : > { %v11617_v55 = vadd.f32 %v1524_v38, %v1523_v0  ;;  %v1186_v18 = vadd.f32 %v1185_v5, %v1184_v24  ;;  %v1194_v57 = vrot.slane %v1193_v23, 4  ;;  %v1852_v52 = vmul.f32 %v12610_v2, %v1813_v10  ;;  %v1817_v3 = vpop.f32.mrf.mxu0  ;;  %v2163_v44 = vpop.f32.mrf.mxu1 }
 0x179   : > { %v1538_v17 = vadd.f32 %v1537_v8, %v1536_v41  ;;  %v1546_v43 = vrot.slane %v1545_v14, 4  ;;  %v2198_v33 = vmul.f32 %v12611_v53, %v2159_v16  ;;  %v1853_v56 = vmul.f32 %v12612_v22, %v1815_v59 }
 0x17a   : > { %v1187_v27 = vrot.slane %v1186_v18, 2  ;;  %v1195_v20 = vadd.f32 %v1194_v57, %v1193_v23  ;;  %v1854_v62 = vmul.f32 %v12613_v21, %v1817_v3  ;;  %v2199_v34 = vmul.f32 %v12614_v49, %v2161_v13  ;;  %v1819_v38 = vpop.f32.mrf.mxu0  ;;  %v2165_v41 = vpop.f32.mrf.mxu1  ;;  %v12617_v23 = vld [vmem:[#allocation31_spill] sm:$0xff]  ;;  %v12618_v13 = vld [vmem:[#allocation29_spill] sm:$0xff] }
 0x17b   : > { %v1539_v19 = vrot.slane %v1538_v17, 2  ;;  %v1547_v0 = vadd.f32 %v1546_v43, %v1545_v14  ;;  %v2200_v1 = vmul.f32 %v12615_v30, %v2163_v44  ;;  %v1855_v6 = vmul.f32 %v12616_v48, %v1819_v38  ;;  %v12620_v38 = vld [vmem:[#allocation34_spill] sm:$0xff] }
 0x17c   : > { %v1188_v12 = vadd.f32 %v1187_v27, %v1186_v18  ;;  %v1196_v24 = vrot.slane %v1195_v20, 2  ;;  %v1860_v61 = vadd.f32 %v1854_v62, %v1852_v52  ;;  %v2201_v16 = vmul.f32 %v12617_v23, %v2165_v41  ;;  %v1823_v8 = vpop.f32.mrf.mxu0  ;;  %v2169_v18 = vpop.f32.mrf.mxu1  ;;  %v12619_v27 = vld [vmem:[#allocation32_spill] sm:$0xff] }
 0x17d   : > { %v1540_v4 = vadd.f32 %v1539_v19, %v1538_v17  ;;  %v1548_v10 = vrot.slane %v1547_v0, 2  ;;  %v2206_v5 = vadd.f32 %v2200_v1, %v2198_v33  ;;  %vm3823_vm13 = vcmp.eq.s32.totalorder %v7451_v29, %v11608_v31 }
 0x17e   : > { %v1189_v14 = vrot.slane %v1188_v12, 1  ;;  %v1197_v59 = vadd.f32 %v1196_v24, %v1195_v20  ;;  %v1869_v57 = vadd.f32 %v1855_v6, %v1853_v56  ;;  %v1856_v43 = vmul.f32 %v12618_v13, %v1823_v8  ;;  %v1825_v62 = vpop.f32.mrf.mxu0  ;;  %v2171_v51 = vpop.f32.mrf.mxu1  ;;  %v12621_v6 = vld [vmem:[#allocation35_spill] sm:$0xff] }
 0x17f   : > { %vm3824_vm12 = vcmp.eq.s32.totalorder %v7742_v32, %v11471_v28  ;;  %v1541_v52 = vrot.slane %v1540_v4, 1  ;;  %v1549_v3 = vadd.f32 %v1548_v10, %v1547_v0  ;;  %v2215_v17 = vadd.f32 %v2201_v16, %v2199_v34  ;;  %v12622_v10 = vld [vmem:[#allocation33_spill] sm:$0xff] }
 0x180   : > { %v2202_v33 = vmul.f32 %v12619_v27, %v2169_v18  ;;  %v1190_v44 = vadd.f32 %v1189_v14, %v1188_v12  ;;  %v1198_v19 = vrot.slane %v1197_v59, 1  ;;  %v1861_v1 = vadd.f32 %v1860_v61, %v1856_v43  ;;  %v1827_v35 = vpop.f32.mrf.mxu0  ;;  %v2173_v18 = vpop.f32.mrf.mxu1 }
 0x181   : > { %v1857_v41 = vmul.f32 %v12620_v38, %v1825_v62  ;;  %v1542_v20 = vadd.f32 %v1541_v52, %v1540_v4  ;;  %v1550_v56 = vrot.slane %v1549_v3, 1  ;;  %v2203_v8 = vmul.f32 %v12621_v6, %v2171_v51 }
 0x182   : > { %v2207_v24 = vadd.f32 %v2206_v5, %v2202_v33  ;;  %v1200_v39 = vsel %vm501_vm9, %v1164_v11, %v1190_v44  ;;  %v1199_v0 = vadd.f32 %v1198_v19, %v1197_v59  ;;  %v1858_v16 = vmul.f32 %v12622_v10, %v1827_v35  ;;  %v1829_v43 = vpop.f32.mrf.mxu0  ;;  %v12623_v11 = vld [vmem:[#allocation36_spill] sm:$0xff]  ;;  %v12624_v33 = vld [vmem:[#allocation37_spill] sm:$0xff] }
 0x183   : > { %v1870_v34 = vadd.f32 %v1869_v57, %v1857_v41  ;;  %v1204_v12 = vrot.slane %v1200_v39, 4  ;;  %v1552_v61 = vsel %vm501_vm9, %v11613_v9, %v1542_v20  ;;  %v1551_v14 = vadd.f32 %v1550_v56, %v1549_v3  ;;  %v2175_v57 = vpop.f32.mrf.mxu1  ;;  %v12625_v3 = vld [vmem:[#allocation38_spill] sm:$0xff] }
 0x184   : > { %v2216_v4 = vadd.f32 %v2215_v17, %v2203_v8  ;;  %v1556_v5 = vrot.slane %v1552_v61, 2  ;;  %v1201_v51 = vsel %vm501_vm9, %v11615_v15, %v1199_v0  ;;  %v1862_v52 = vadd.f32 %v1861_v1, %v1858_v16  ;;  %v1833_v62 = vpop.f32.mrf.mxu0 }
 0x185   : > { %v2204_v59 = vmul.f32 %v12623_v11, %v2173_v18  ;;  %1208 = vst [vmem:[%s11506_s14] sm:$0x30] %v1204_v12  ;;  %v1205_v35 = vrot.slane %v1201_v51, 4  ;;  %v1553_v39 = vsel %vm501_vm9, %v11617_v55, %v1551_v14  ;;  %v1859_v9 = vmul.f32 %v12624_v33, %v1829_v43  ;;  %v2179_v41 = vpop.f32.mrf.mxu1 }
 0x186   : > { %v2205_v17 = vmul.f32 %v12625_v3, %v2175_v57  ;;  %1560 = vst [vmem:[%s11506_s14] sm:$0xc0] %v1556_v5  ;;  %v1557_v44 = vrot.slane %v1553_v39, 2  ;;  %v1863_v19 = vrot.slane %v1862_v52, 4  ;;  %vm4175_vm6 = vcmp.eq.s32.totalorder %v7451_v29, %v11611_v60  ;;  %v1835_v56 = vpop.f32.mrf.mxu0 }
 0x187   : > { %v2208_v15 = vadd.f32 %v2207_v24, %v2204_v59  ;;  %1209 = vst [vmem:[%s11506_s14 + $0x8] sm:$0x30] %v1205_v35  ;;  %v1871_v1 = vadd.f32 %v1870_v34, %v1859_v9  ;;  %vm4176_vm1 = vcmp.eq.s32.totalorder %v7742_v32, %v11550_v47  ;;  %vm3825_vm14 = vcmp.eq.s32.totalorder %v7742_v32, %v11608_v31  ;;  %v2181_v0 = vpop.f32.mrf.mxu1 }
 0x188   : > { %v2217_v20 = vadd.f32 %v2216_v4, %v2205_v17  ;;  %1561 = vst [vmem:[%s11506_s14 + $0x8] sm:$0xc0] %v1557_v44  ;;  %v1864_v55 = vadd.f32 %v1863_v19, %v1862_v52  ;;  %v11660_v24 = vsel %vm3823_vm13, 1.0, %v12453_v45  ;;  %vm4177_vm8 = vcmp.eq.s32.totalorder %v7742_v32, %v11611_v60  ;;  %v1837_v18 = vpop.f32.mrf.mxu0 }
 0x189   : > { %v2209_v8 = vrot.slane %v2208_v15, 4  ;;  %12626 = vst [vmem:[#allocation14_spill] sm:$0xff] %v11660_v24  ;;  %v1872_v34 = vrot.slane %v1871_v1, 4  ;;  %v11668_v12 = vsel %vm4175_vm6, 1.0, %v12453_v45  ;;  %v11674_v61 = vsel %vm3824_vm12, 1.0, %v12453_v45  ;;  %v2183_v43 = vpop.f32.mrf.mxu1  ;;  %v12648_v24 = vld [vmem:[#allocation50_spill] sm:$0xff] }
 0x18a   : > { %v2218_v16 = vrot.slane %v2217_v20, 4  ;;  %12627 = vst [vmem:[#allocation17_spill] sm:$0xff] %v11668_v12  ;;  %12628 = vst [vmem:[#allocation19_spill] sm:$0xff] %v11674_v61  ;;  %v1865_v14 = vrot.slane %v1864_v55, 2  ;;  %v11680_v5 = vsel %vm4176_vm1, 1.0, %v12453_v45  ;;  %v11686_v51 = vsel %vm3825_vm14, 1.0, %v12453_v45  ;;  %v1839_v57 = vpop.f32.mrf.mxu0 }
 0x18b   : > { %v2210_v4 = vadd.f32 %v2209_v8, %v2208_v15  ;;  %12629 = vst [vmem:[#allocation18_spill] sm:$0xff] %v11680_v5  ;;  %12630 = vst [vmem:[#allocation20_spill] sm:$0xff] %v11686_v51  ;;  %v1873_v52 = vadd.f32 %v1872_v34, %v1871_v1  ;;  %v11689_v35 = vsel %vm4177_vm8, 1.0, %v12453_v45  ;;  %vm3826_vm15 = vcmp.eq.s32.totalorder %v7697_v25, %v11471_v28  ;;  %v2185_v44 = vpop.f32.mrf.mxu1 }
 0x18c   : > { %v2219_v59 = vadd.f32 %v2218_v16, %v2217_v20  ;;  %12631 = vst [vmem:[#allocation21_spill] sm:$0xff] %v11689_v35  ;;  %v1878_v9 = vmul.f32 %v12610_v2, %v1833_v62  ;;  %v1880_v17 = vmul.f32 %v12613_v21, %v1837_v18  ;;  %vm4178_vm7 = vcmp.eq.s32.totalorder %v7697_v25, %v11550_v47  ;;  %v1843_v8 = vpop.f32.mrf.mxu0 }
 0x18d   : > { %v2211_v39 = vrot.slane %v2210_v4, 2  ;;  %v1866_v19 = vadd.f32 %v1865_v14, %v1864_v55  ;;  %v1874_v15 = vrot.slane %v1873_v52, 2  ;;  %v2226_v20 = vmul.f32 %v12615_v30, %v2183_v43  ;;  %v2189_v62 = vpop.f32.mrf.mxu1 }
 0x18e   : > { %v2220_v1 = vrot.slane %v2219_v59, 2  ;;  %v2224_v34 = vmul.f32 %v12611_v53, %v2179_v41  ;;  %v1881_v16 = vmul.f32 %v12616_v48, %v1839_v57  ;;  %v2227_v35 = vmul.f32 %v12617_v23, %v2185_v44  ;;  %v1845_v14 = vpop.f32.mrf.mxu0 }
 0x18f   : > { %v1882_v2 = vmul.f32 %v12618_v13, %v1843_v8  ;;  %v2212_v21 = vadd.f32 %v2211_v39, %v2210_v4  ;;  %v1875_v18 = vadd.f32 %v1874_v15, %v1873_v52  ;;  %v1879_v51 = vmul.f32 %v12612_v22, %v1835_v56  ;;  %v2191_v41 = vpop.f32.mrf.mxu1 }
 0x190   : > { %v2228_v55 = vmul.f32 %v12619_v27, %v2189_v62  ;;  %v2221_v12 = vadd.f32 %v2220_v1, %v2219_v59  ;;  %v2225_v30 = vmul.f32 %v12614_v49, %v2181_v0  ;;  %v1886_v43 = vadd.f32 %v1880_v17, %v1878_v9  ;;  %v1847_v13 = vpop.f32.mrf.mxu0 }
 0x191   : > { %v1883_v53 = vmul.f32 %v12620_v38, %v1845_v14  ;;  %v1867_v48 = vrot.slane %v1866_v19, 1  ;;  %v2232_v57 = vadd.f32 %v2226_v20, %v2224_v34  ;;  %v2229_v23 = vmul.f32 %v12621_v6, %v2191_v41  ;;  %v2193_v52 = vpop.f32.mrf.mxu1 }
 0x192   : > { %vm3827_vm5 = vcmp.eq.s32.totalorder %v7697_v25, %v11608_v31  ;;  %v1895_v4 = vadd.f32 %v1881_v16, %v1879_v51  ;;  %v2241_v22 = vadd.f32 %v2227_v35, %v2225_v30  ;;  %v1887_v56 = vadd.f32 %v1886_v43, %v1882_v2  ;;  %v1849_v39 = vpop.f32.mrf.mxu0 }
 0x193   : > { %v1884_v27 = vmul.f32 %v12622_v10, %v1847_v13  ;;  %v2213_v59 = vrot.slane %v2212_v21, 1  ;;  %v1876_v49 = vrot.slane %v1875_v18, 1  ;;  %v2233_v0 = vadd.f32 %v2232_v57, %v2228_v55  ;;  %v2195_v15 = vpop.f32.mrf.mxu1 }
 0x194   : > { %v2230_v38 = vmul.f32 %v12623_v11, %v2193_v52  ;;  %v2222_v9 = vrot.slane %v2221_v12, 1  ;;  %v1896_v17 = vadd.f32 %v1895_v4, %v1883_v53  ;;  %v1885_v6 = vmul.f32 %v12624_v33, %v1849_v39  ;;  %v2511_v35 = vpop.f32.mrf.mxu0  ;;  %v12635_v4 = vld [vmem:[#allocation39_spill] sm:$0xff]  ;;  %v12639_v39 = vld [vmem:[#allocation46_spill] sm:$0xff] }
 0x195   : > { %v1888_v44 = vadd.f32 %v1887_v56, %v1884_v27  ;;  %v2242_v1 = vadd.f32 %v2241_v22, %v2229_v23  ;;  %v2231_v51 = vmul.f32 %v12625_v3, %v2195_v15  ;;  %v11717_v10 = vsel %vm3826_vm15, 1.0, %v12453_v45  ;;  %v2863_v34 = vpop.f32.mrf.mxu1  ;;  %v12636_v56 = vld [vmem:[#allocation44_spill] sm:$0xff] }
 0x196   : > { %v2234_v20 = vadd.f32 %v2233_v0, %v2230_v38  ;;  %12632 = vst [vmem:[#allocation22_spill] sm:$0xff] %v11717_v10  ;;  %v1897_v11 = vadd.f32 %v1896_v17, %v1885_v6  ;;  %v11723_v33 = vsel %vm4178_vm7, 1.0, %v12453_v45  ;;  %v11729_v3 = vsel %vm3827_vm5, 1.0, %v12453_v45  ;;  %v2513_v14 = vpop.f32.mrf.mxu0  ;;  %v12638_v0 = vld [vmem:[#allocation41_spill] sm:$0xff]  ;;  %v12645_v10 = vld [vmem:[#allocation43_spill] sm:$0xff] }
 0x197   : > { %v1889_v8 = vrot.slane %v1888_v44, 4  ;;  %12633 = vst [vmem:[#allocation4_spill] sm:$0xff] %v11723_v33  ;;  %12634 = vst [vmem:[#allocation23_spill] sm:$0xff] %v11729_v3  ;;  %v1868_v16 = vadd.f32 %v1867_v48, %v1866_v19  ;;  %v11731_v2 = vadd.f32 %v2213_v59, %v2212_v21  ;;  %v2243_v55 = vadd.f32 %v2242_v1, %v2231_v51  ;;  %v2865_v57 = vpop.f32.mrf.mxu1  ;;  %v12637_v48 = vld [vmem:[#allocation40_spill] sm:$0xff]  ;;  %v12642_v51 = vld [vmem:[#allocation45_spill] sm:$0xff] }
 0x198   : > { %v2235_v62 = vrot.slane %v2234_v20, 4  ;;  %v11733_v30 = vadd.f32 %v1876_v49, %v1875_v18  ;;  %v11735_v43 = vadd.f32 %v2222_v9, %v2221_v12  ;;  %v1898_v41 = vrot.slane %v1897_v11, 4  ;;  %v2515_v52 = vpop.f32.mrf.mxu0 }
 0x199   : > { %v1890_v53 = vadd.f32 %v1889_v8, %v1888_v44  ;;  %v2244_v13 = vrot.slane %v2243_v55, 4  ;;  %v2550_v22 = vmul.f32 %v12635_v4, %v2511_v35  ;;  %v2902_v27 = vmul.f32 %v12636_v56, %v2863_v34  ;;  %v2867_v18 = vpop.f32.mrf.mxu1  ;;  %v12640_v44 = vld [vmem:[#allocation6_spill] sm:$0xff] }
 0x19a   : > { %v2236_v23 = vadd.f32 %v2235_v62, %v2234_v20  ;;  %v1899_v21 = vadd.f32 %v1898_v41, %v1897_v11  ;;  %v2551_v59 = vmul.f32 %v12637_v48, %v2513_v14  ;;  %v2552_v38 = vmul.f32 %v12638_v0, %v2515_v52  ;;  %v2517_v17 = vpop.f32.mrf.mxu0  ;;  %v12643_v8 = vld [vmem:[#allocation42_spill] sm:$0xff]  ;;  %v12644_v52 = vld [vmem:[#allocation47_spill] sm:$0xff] }
 0x19b   : > { %v1891_v19 = vrot.slane %v1890_v53, 2  ;;  %v2245_v12 = vadd.f32 %v2244_v13, %v2243_v55  ;;  %v2904_v9 = vmul.f32 %v12639_v39, %v2867_v18  ;;  %v12641_v6 = vand.u32 4095, %v12640_v44  ;;  %v2869_v34 = vpop.f32.mrf.mxu1 }
 0x19c   : > { %v2237_v49 = vrot.slane %v2236_v23, 2  ;;  %v1900_v20 = vrot.slane %v1899_v21, 2  ;;  %v2903_v35 = vmul.f32 %v12642_v51, %v2865_v57  ;;  %v2553_v11 = vmul.f32 %v12643_v8, %v2517_v17  ;;  %v2521_v55 = vpop.f32.mrf.mxu0 }
 0x19d   : > { %v11744_v15 = vand.u32 31, %v12641_v6  ;;  %v1892_v1 = vadd.f32 %v1891_v19, %v1890_v53  ;;  %v2246_v14 = vrot.slane %v2245_v12, 2  ;;  %v2558_v41 = vadd.f32 %v2552_v38, %v2550_v22  ;;  %v2873_v6 = vpop.f32.mrf.mxu1  ;;  %v12646_v19 = vld [vmem:[#allocation48_spill] sm:$0xff] }
 0x19e   : > { %v2238_v62 = vadd.f32 %v2237_v49, %v2236_v23  ;;  %v2905_v3 = vmul.f32 %v12644_v52, %v2869_v34  ;;  %v1901_v18 = vadd.f32 %v1900_v20, %v1899_v21  ;;  %v2910_v33 = vadd.f32 %v2904_v9, %v2902_v27  ;;  %v2523_v38 = vpop.f32.mrf.mxu0  ;;  %v12647_v27 = vld [vmem:[#allocation49_spill] sm:$0xff] }
 0x19f   : > { %v1893_v13 = vrot.slane %v1892_v1, 1  ;;  %v2554_v44 = vmul.f32 %v12645_v10, %v2521_v55  ;;  %vm4179_vm10 = vcmp.eq.s32.totalorder %v7697_v25, %v11611_v60  ;;  %vm3828_vm11 = vcmp.eq.s32.totalorder %v7700_v26, %v11471_v28  ;;  %v2875_v20 = vpop.f32.mrf.mxu1 }
 0x1a0   : > { %v2239_v53 = vrot.slane %v2238_v62, 1  ;;  %v2247_v57 = vadd.f32 %v2246_v14, %v2245_v12  ;;  %v2567_v23 = vadd.f32 %v2553_v11, %v2551_v59  ;;  %v2906_v22 = vmul.f32 %v12646_v19, %v2873_v6  ;;  %v2525_v50 = vpop.f32.mrf.mxu0 }
 0x1a1   : > { %v1894_v49 = vadd.f32 %v1893_v13, %v1892_v1  ;;  %v1902_v17 = vrot.slane %v1901_v18, 1  ;;  %v2919_v21 = vadd.f32 %v2905_v3, %v2903_v35  ;;  %v2555_v9 = vmul.f32 %v12647_v27, %v2523_v38  ;;  %v2877_v14 = vpop.f32.mrf.mxu1 }
 0x1a2   : > { %v2240_v34 = vadd.f32 %v2239_v53, %v2238_v62  ;;  %v2248_v55 = vrot.slane %v2247_v57, 1  ;;  %v2559_v5 = vadd.f32 %v2558_v41, %v2554_v44  ;;  %v2907_v61 = vmul.f32 %v12648_v24, %v2875_v20  ;;  %v2527_v41 = vpop.f32.mrf.mxu0 }
 0x1a3   : > { %v1904_v36 = vsel %vm501_vm9, %v1868_v16, %v1894_v49  ;;  %v1903_v59 = vadd.f32 %v1902_v17, %v1901_v18  ;;  %v2911_v12 = vadd.f32 %v2910_v33, %v2906_v22  ;;  %v2556_v11 = vmul.f32 %v11080_v58, %v2525_v50  ;;  %v2879_v18 = vpop.f32.mrf.mxu1 }
 0x1a4   : > { %1906 = vst [vmem:[%s11506_s14 + $0x10] sm:$0x3] %v1904_v36  ;;  %v2250_v3 = vsel %vm501_vm9, %v11731_v2, %v2240_v34  ;;  %v2249_v1 = vadd.f32 %v2248_v55, %v2247_v57  ;;  %v2568_v35 = vadd.f32 %v2567_v23, %v2555_v9  ;;  %v2908_v62 = vmul.f32 %v11104_v63, %v2877_v14  ;;  %v2531_v53 = vpop.f32.mrf.mxu0 }
 0x1a5   : > { %v2254_v13 = vrot.slane %v2250_v3, 6  ;;  %v1905_v16 = vsel %vm501_vm9, %v11733_v30, %v1903_v59  ;;  %v2560_v44 = vadd.f32 %v2559_v5, %v2556_v11  ;;  %v2557_v33 = vmul.f32 %v11129_v40, %v2527_v41  ;;  %v2883_v38 = vpop.f32.mrf.mxu1 }
 0x1a6   : > { %1907 = vst [vmem:[%s11506_s14 + $0x18] sm:$0x3] %v1905_v16  ;;  %v2251_v36 = vsel %vm501_vm9, %v11735_v43, %v2249_v1  ;;  %v2920_v50 = vadd.f32 %v2919_v21, %v2907_v61  ;;  %v2912_v2 = vadd.f32 %v2911_v12, %v2908_v62  ;;  %v2909_v6 = vmul.f32 %v11150_v54, %v2879_v18  ;;  %v2533_v49 = vpop.f32.mrf.mxu0  ;;  %v12649_v43 = vld [vmem:[#allocation7_spill] sm:$0xff] }
 0x1a7   : > { %2258 = vst [vmem:[%s11506_s14 + $0x10] sm:$0xc] %v2254_v13  ;;  %v2255_v57 = vrot.slane %v2251_v36, 6  ;;  %v2561_v23 = vrot.slane %v2560_v44, 4  ;;  %v2569_v22 = vadd.f32 %v2568_v35, %v2557_v33  ;;  %vm4180_vm2 = vcmp.eq.s32.totalorder %v7700_v26, %v11550_v47  ;;  %v2885_v20 = vpop.f32.mrf.mxu1 }
 0x1a8   : > { %v2913_v5 = vrot.slane %v2912_v2, 4  ;;  %v2921_v30 = vadd.f32 %v2920_v50, %v2909_v6  ;;  %vm3829_vm4 = vcmp.eq.s32.totalorder %v7700_v26, %v11608_v31  ;;  %v12650_v61 = vand.u32 4095, %v12649_v43  ;;  %v2535_v12 = vpop.f32.mrf.mxu0 }
 0x1a9   : > { %2259 = vst [vmem:[%s11506_s14 + $0x18] sm:$0xc] %v2255_v57  ;;  %v2562_v21 = vadd.f32 %v2561_v23, %v2560_v44  ;;  %v2570_v9 = vrot.slane %v2569_v22, 4  ;;  %vm4181_vm0 = vcmp.eq.s32.totalorder %v7700_v26, %v11611_v60  ;;  %v4513_v34 = vrot.slane %v11744_v15, %v7456_v37  ;;  %v2887_v35 = vpop.f32.mrf.mxu1 }
 0x1aa   : > { %v11777_v17 = vand.u32 31, %v12650_v61  ;;  %v2914_v55 = vadd.f32 %v2913_v5, %v2912_v2  ;;  %v2922_v59 = vrot.slane %v2921_v30, 4  ;;  %v11788_v11 = vsel %vm4179_vm10, 1.0, %v12453_v45  ;;  %v2537_v28 = vpop.f32.mrf.mxu0 }
 0x1ab   : > { %v11794_v14 = vsel %vm3828_vm11, 1.0, %v12453_v45  ;;  %v2563_v3 = vrot.slane %v2562_v21, 2  ;;  %v2571_v1 = vadd.f32 %v2570_v9, %v2569_v22  ;;  %v11800_v62 = vsel %vm4180_vm2, 1.0, %v12453_v45  ;;  %v2889_v36 = vpop.f32.mrf.mxu1 }
 0x1ac   : > { %v11806_v60 = vsel %vm3829_vm4, 1.0, %v12453_v45  ;;  %v2915_v41 = vrot.slane %v2914_v55, 2  ;;  %v2923_v13 = vadd.f32 %v2922_v59, %v2921_v30  ;;  %v11809_v16 = vsel %vm4181_vm0, 1.0, %v12453_v45  ;;  %v2541_v23 = vpop.f32.mrf.mxu0 }
 0x1ad   : > { %v4859_v44 = vrot.slane %v11777_v17, %v7456_v37  ;;  %v2572_v33 = vrot.slane %v2571_v1, 2  ;;  %v2576_v47 = vmul.f32 %v12635_v4, %v2531_v53  ;;  %v2578_v18 = vmul.f32 %v12638_v0, %v2535_v12  ;;  %v2893_v53 = vpop.f32.mrf.mxu1 }
 0x1ae   : > { %v11816_v50 = vrot.slane %v4513_v34, %v7456_v37  ;;  %v2564_v31 = vadd.f32 %v2563_v3, %v2562_v21  ;;  %v2924_v2 = vrot.slane %v2923_v13, 2  ;;  %v2930_v6 = vmul.f32 %v12639_v39, %v2887_v35  ;;  %v2543_v9 = vpop.f32.mrf.mxu0 }
 0x1af   : > { %v2579_v57 = vmul.f32 %v12643_v8, %v2537_v28  ;;  %v2916_v22 = vadd.f32 %v2915_v41, %v2914_v55  ;;  %v2928_v5 = vmul.f32 %v12636_v56, %v2883_v38  ;;  %v2931_v30 = vmul.f32 %v12644_v52, %v2889_v36  ;;  %v2895_v55 = vpop.f32.mrf.mxu1 }
 0x1b0   : > { %v2580_v4 = vmul.f32 %v12645_v10, %v2541_v23  ;;  %v2573_v0 = vadd.f32 %v2572_v33, %v2571_v1  ;;  %v2925_v43 = vadd.f32 %v2924_v2, %v2923_v13  ;;  %v2577_v61 = vmul.f32 %v12637_v48, %v2533_v49  ;;  %v2545_v12 = vpop.f32.mrf.mxu0 }
 0x1b1   : > { %v2932_v21 = vmul.f32 %v12646_v19, %v2893_v53  ;;  %v2929_v39 = vmul.f32 %v12642_v51, %v2885_v20  ;;  %v2584_v34 = vadd.f32 %v2578_v18, %v2576_v47  ;;  %v2581_v8 = vmul.f32 %v12647_v27, %v2543_v9  ;;  %v2897_v1 = vpop.f32.mrf.mxu1 }
 0x1b2   : > { %v11828_v56 = vrot.slane %v4859_v44, %v7456_v37  ;;  %v2565_v52 = vrot.slane %v2564_v31, 1  ;;  %v2936_v38 = vadd.f32 %v2930_v6, %v2928_v5  ;;  %v2593_v10 = vadd.f32 %v2579_v57, %v2577_v61  ;;  %v2547_v41 = vpop.f32.mrf.mxu0 }
 0x1b3   : > { %v2933_v59 = vmul.f32 %v12648_v24, %v2895_v55  ;;  %v2917_v3 = vrot.slane %v2916_v22, 1  ;;  %v2945_v48 = vadd.f32 %v2931_v30, %v2929_v39  ;;  %v2585_v49 = vadd.f32 %v2584_v34, %v2580_v4  ;;  %v2899_v33 = vpop.f32.mrf.mxu1  ;;  %v12651_v39 = vld [vmem:[#allocation51_spill] sm:$0xff] }
 0x1b4   : > { %v2582_v19 = vmul.f32 %v11080_v58, %v2545_v12  ;;  %v2574_v51 = vrot.slane %v2573_v0, 1  ;;  %v2926_v20 = vrot.slane %v2925_v43, 1  ;;  %v2937_v35 = vadd.f32 %v2936_v38, %v2932_v21  ;;  %v3215_v58 = vpop.f32.mrf.mxu0 }
 0x1b5   : > { %v2934_v27 = vmul.f32 %v11104_v63, %v2897_v1  ;;  %v2594_v13 = vadd.f32 %v2593_v10, %v2581_v8  ;;  %v2583_v44 = vmul.f32 %v11129_v40, %v2547_v41  ;;  %v4517_v24 = vrot.slane %v11744_v15, %v12607_v7  ;;  %v3561_v5 = vpop.f32.mrf.mxu1  ;;  %v12653_v10 = vld [vmem:[#allocation54_spill] sm:$0xff]  ;;  %v12655_v1 = vld [vmem:[#allocation55_spill] sm:$0xff] }
 0x1b6   : > { %v2586_v28 = vadd.f32 %v2585_v49, %v2582_v19  ;;  %v2946_v47 = vadd.f32 %v2945_v48, %v2933_v59  ;;  %v2935_v36 = vmul.f32 %v11150_v54, %v2899_v33  ;;  %v4863_v2 = vrot.slane %v11777_v17, %v12607_v7  ;;  %v3217_v53 = vpop.f32.mrf.mxu0  ;;  %v12654_v49 = vld [vmem:[#allocation53_spill] sm:$0xff] }
 0x1b7   : > { %v2938_v18 = vadd.f32 %v2937_v35, %v2934_v27  ;;  %v11839_v6 = vadd.f32 %v2565_v52, %v2564_v31  ;;  %v11841_v63 = vadd.f32 %v2917_v3, %v2916_v22  ;;  %v2595_v23 = vadd.f32 %v2594_v13, %v2583_v44  ;;  %v3563_v9 = vpop.f32.mrf.mxu1  ;;  %v12652_v52 = vld [vmem:[#allocation52_spill] sm:$0xff] }
 0x1b8   : > { %v2587_v57 = vrot.slane %v2586_v28, 4  ;;  %v11843_v40 = vadd.f32 %v2574_v51, %v2573_v0  ;;  %v11845_v30 = vadd.f32 %v2926_v20, %v2925_v43  ;;  %v2947_v4 = vadd.f32 %v2946_v47, %v2935_v36  ;;  %v3219_v8 = vpop.f32.mrf.mxu0  ;;  %v12656_v13 = vld [vmem:[#allocation56_spill] sm:$0xff] }
 0x1b9   : > { %v2939_v15 = vrot.slane %v2938_v18, 4  ;;  %v2596_v54 = vrot.slane %v2595_v23, 4  ;;  %v3254_v21 = vmul.f32 %v11232_v42, %v3215_v58  ;;  %v11849_v17 = vrot.slane %v4517_v24, %v7456_v37  ;;  %v3565_v12 = vpop.f32.mrf.mxu1 }
 0x1ba   : > { %v2588_v61 = vadd.f32 %v2587_v57, %v2586_v28  ;;  %v2948_v22 = vrot.slane %v2947_v4, 4  ;;  %v3600_v34 = vmul.f32 %v12651_v39, %v3561_v5  ;;  %v11853_v0 = vrot.slane %v4863_v2, %v7456_v37  ;;  %v3221_v20 = vpop.f32.mrf.mxu0  ;;  %v12658_v5 = vld [vmem:[#allocation58_spill] sm:$0xff] }
 0x1bb   : > { %v2940_v31 = vadd.f32 %v2939_v15, %v2938_v18  ;;  %v2597_v55 = vadd.f32 %v2596_v54, %v2595_v23  ;;  %v3255_v38 = vmul.f32 %v12652_v52, %v3217_v53  ;;  %v3256_v59 = vmul.f32 %v12653_v10, %v3219_v8  ;;  %v3567_v44 = vpop.f32.mrf.mxu1  ;;  %v12657_v18 = vld [vmem:[#allocation57_spill] sm:$0xff] }
 0x1bc   : > { %v2589_v43 = vrot.slane %v2588_v61, 2  ;;  %v2949_v48 = vadd.f32 %v2948_v22, %v2947_v4  ;;  %v3601_v19 = vmul.f32 %v12654_v49, %v3563_v9  ;;  %v3602_v51 = vmul.f32 %v12655_v1, %v3565_v12  ;;  %v3225_v58 = vpop.f32.mrf.mxu0 }
 0x1bd   : > { %v2941_v3 = vrot.slane %v2940_v31, 2  ;;  %v2598_v27 = vrot.slane %v2597_v55, 2  ;;  %v3262_v41 = vadd.f32 %v3256_v59, %v3254_v21  ;;  %v3257_v28 = vmul.f32 %v12656_v13, %v3221_v20  ;;  %v3571_v4 = vpop.f32.mrf.mxu1  ;;  %v12659_v21 = vld [vmem:[#allocation59_spill] sm:$0xff] }
 0x1be   : > { %v2590_v35 = vadd.f32 %v2589_v43, %v2588_v61  ;;  %v2950_v24 = vrot.slane %v2949_v48, 2  ;;  %v3608_v47 = vadd.f32 %v3602_v51, %v3600_v34  ;;  %v3603_v36 = vmul.f32 %v12657_v18, %v3567_v44  ;;  %v12660_v43 = vld [vmem:[#allocation60_spill] sm:$0xff] }
 0x1bf   : > { %v2942_v33 = vadd.f32 %v2941_v3, %v2940_v31  ;;  %vm4526_vm3 = vcmp.eq.s32.totalorder %v7451_v29, %v11816_v50  ;;  %vm4872_vm13 = vcmp.eq.s32.totalorder %v7451_v29, %v11828_v56  ;;  %v2599_v57 = vadd.f32 %v2598_v27, %v2597_v55  ;;  %v3227_v31 = vpop.f32.mrf.mxu0  ;;  %v3573_v12 = vpop.f32.mrf.mxu1 }
 0x1c0   : > { %v2591_v2 = vrot.slane %v2590_v35, 1  ;;  %v3271_v23 = vadd.f32 %v3257_v28, %v3255_v38  ;;  %v3258_v15 = vmul.f32 %v12658_v5, %v3225_v58  ;;  %vm4528_vm12 = vcmp.eq.s32.totalorder %v7742_v32, %v11816_v50  ;;  %v12661_v28 = vld [vmem:[#allocation10_spill] sm:$0xff] }
 0x1c1   : > { %v2943_v53 = vrot.slane %v2942_v33, 1  ;;  %v2951_v61 = vadd.f32 %v2950_v24, %v2949_v48  ;;  %v3617_v54 = vadd.f32 %v3603_v36, %v3601_v19  ;;  %v3604_v9 = vmul.f32 %v12659_v21, %v3571_v4  ;;  %v3229_v20 = vpop.f32.mrf.mxu0 }
 0x1c2   : > { %v2592_v22 = vadd.f32 %v2591_v2, %v2590_v35  ;;  %v2600_v34 = vrot.slane %v2599_v57, 1  ;;  %v3263_v8 = vadd.f32 %v3262_v41, %v3258_v15  ;;  %v3259_v59 = vmul.f32 %v12660_v43, %v3227_v31  ;;  %v3575_v35 = vpop.f32.mrf.mxu1 }
 0x1c3   : > { %v2944_v55 = vadd.f32 %v2943_v53, %v2942_v33  ;;  %v2952_v38 = vrot.slane %v2951_v61, 1  ;;  %v3609_v3 = vadd.f32 %v3608_v47, %v3604_v9  ;;  %v3605_v51 = vmul.f32 %v11525_v46, %v3573_v12  ;;  %v3231_v47 = vpop.f32.mrf.mxu0  ;;  %v12663_v9 = vld [vmem:[#allocation11_spill] sm:$0xff] }
 0x1c4   : > { %v2602_v48 = vsel %vm501_vm9, %v11839_v6, %v2592_v22  ;;  %v2601_v19 = vadd.f32 %v2600_v34, %v2599_v57  ;;  %v3272_v27 = vadd.f32 %v3271_v23, %v3259_v59  ;;  %v3260_v44 = vmul.f32 %v12661_v28, %v3229_v20  ;;  %v12662_v6 = vld [vmem:[#allocation13_spill] sm:$0xff]  ;;  %v3577_v23 = vpop.f32.mrf.mxu1 }
 0x1c5   : > { %v2606_v24 = vrot.slane %v2602_v48, 4  ;;  %v2954_v41 = vsel %vm501_vm9, %v11841_v63, %v2944_v55  ;;  %v2953_v33 = vadd.f32 %v2952_v38, %v2951_v61  ;;  %v3618_v36 = vadd.f32 %v3617_v54, %v3605_v51  ;;  %v12664_v61 = vld [vmem:[#allocation15_spill] sm:$0xff]  ;;  %v3235_v31 = vpop.f32.mrf.mxu0 }
 0x1c6   : > { %v2958_v58 = vrot.slane %v2954_v41, 2  ;;  %v2603_v2 = vsel %vm501_vm9, %v11843_v40, %v2601_v19  ;;  %v3264_v15 = vadd.f32 %v3263_v8, %v3260_v44  ;;  %v3606_v57 = vmul.f32 %v12662_v6, %v3575_v35  ;;  %v3581_v59 = vpop.f32.mrf.mxu1 }
 0x1c7   : > { %2610 = vst [vmem:[%s11506_s14 + $0x10] sm:$0x30] %v2606_v24  ;;  %v2607_v4 = vrot.slane %v2603_v2, 4  ;;  %v2955_v53 = vsel %vm501_vm9, %v11845_v30, %v2953_v33  ;;  %v3261_v63 = vmul.f32 %v12663_v9, %v3231_v47  ;;  %v3607_v54 = vmul.f32 %v12664_v61, %v3577_v23  ;;  %v3237_v55 = vpop.f32.mrf.mxu0 }
 0x1c8   : > { %2962 = vst [vmem:[%s11506_s14 + $0x10] sm:$0xc0] %v2958_v58  ;;  %v2959_v22 = vrot.slane %v2955_v53, 2  ;;  %v3265_v34 = vrot.slane %v3264_v15, 4  ;;  %v3610_v40 = vadd.f32 %v3609_v3, %v3606_v57  ;;  %vm4527_vm6 = vcmp.eq.s32.totalorder %v7451_v29, %v11849_v17  ;;  %v3583_v51 = vpop.f32.mrf.mxu1 }
 0x1c9   : > { %2611 = vst [vmem:[%s11506_s14 + $0x18] sm:$0x30] %v2607_v4  ;;  %v3273_v8 = vadd.f32 %v3272_v27, %v3261_v63  ;;  %v3619_v12 = vadd.f32 %v3618_v36, %v3607_v54  ;;  %vm4873_vm1 = vcmp.eq.s32.totalorder %v7451_v29, %v11853_v0  ;;  %vm4874_vm14 = vcmp.eq.s32.totalorder %v7742_v32, %v11828_v56  ;;  %v3239_v27 = vpop.f32.mrf.mxu0 }
 0x1ca   : > { %2963 = vst [vmem:[%s11506_s14 + $0x18] sm:$0xc0] %v2959_v22  ;;  %v3266_v30 = vadd.f32 %v3265_v34, %v3264_v15  ;;  %v3611_v38 = vrot.slane %v3610_v40, 4  ;;  %v11897_v3 = vsel %vm4526_vm3, 1.0, %v12453_v45  ;;  %v11903_v20 = vsel %vm4872_vm13, 1.0, %v12453_v45  ;;  %v3585_v33 = vpop.f32.mrf.mxu1 }
 0x1cb   : > { %v3274_v48 = vrot.slane %v3273_v8, 4  ;;  %v3620_v19 = vrot.slane %v3619_v12, 4  ;;  %v11909_v44 = vsel %vm4527_vm6, 1.0, %v12453_v45  ;;  %v11915_v35 = vsel %vm4528_vm12, 1.0, %v12453_v45  ;;  %v3241_v57 = vpop.f32.mrf.mxu0 }
 0x1cc   : > { %12665 = vst [vmem:[#allocation24_spill] sm:$0xff] %v11915_v35  ;;  %v3267_v24 = vrot.slane %v3266_v30, 2  ;;  %v3612_v41 = vadd.f32 %v3611_v38, %v3610_v40  ;;  %v11921_v36 = vsel %vm4873_vm1, 1.0, %v12453_v45  ;;  %v11927_v47 = vsel %vm4874_vm14, 1.0, %v12453_v45  ;;  %v3587_v54 = vpop.f32.mrf.mxu1 }
 0x1cd   : > { %12666 = vst [vmem:[#allocation25_spill] sm:$0xff] %v11927_v47  ;;  %v3275_v58 = vadd.f32 %v3274_v48, %v3273_v8  ;;  %v3621_v2 = vadd.f32 %v3620_v19, %v3619_v12  ;;  %v3280_v15 = vmul.f32 %v11232_v42, %v3235_v31  ;;  %vm4529_vm8 = vcmp.eq.s32.totalorder %v7742_v32, %v11849_v17  ;;  %v3245_v12 = vpop.f32.mrf.mxu0 }
 0x1ce   : > { %v3613_v23 = vrot.slane %v3612_v41, 2  ;;  %v3626_v4 = vmul.f32 %v12651_v39, %v3581_v59  ;;  %v3281_v53 = vmul.f32 %v12652_v52, %v3237_v55  ;;  %v3282_v63 = vmul.f32 %v12653_v10, %v3239_v27  ;;  %v3591_v48 = vpop.f32.mrf.mxu1 }
 0x1cf   : > { %v3268_v22 = vadd.f32 %v3267_v24, %v3266_v30  ;;  %v3276_v34 = vrot.slane %v3275_v58, 2  ;;  %v3622_v40 = vrot.slane %v3621_v2, 2  ;;  %v3628_v8 = vmul.f32 %v12655_v1, %v3585_v33  ;;  %v3247_v30 = vpop.f32.mrf.mxu0 }
 0x1d0   : > { %v3283_v42 = vmul.f32 %v12656_v13, %v3241_v57  ;;  %v3629_v31 = vmul.f32 %v12657_v18, %v3587_v54  ;;  %v3284_v38 = vmul.f32 %v12658_v5, %v3245_v12  ;;  %v11940_v39 = vsel %vm4529_vm8, 1.0, %v12453_v45  ;;  %v3593_v13 = vpop.f32.mrf.mxu1 }
 0x1d1   : > { %12667 = vst [vmem:[#allocation27_spill] sm:$0xff] %v11940_v39  ;;  %v3614_v52 = vadd.f32 %v3613_v23, %v3612_v41  ;;  %v3277_v59 = vadd.f32 %v3276_v34, %v3275_v58  ;;  %v3627_v10 = vmul.f32 %v12654_v49, %v3583_v51  ;;  %v3630_v55 = vmul.f32 %v12659_v21, %v3591_v48  ;;  %v3249_v33 = vpop.f32.mrf.mxu0 }
 0x1d2   : > { %v3623_v19 = vadd.f32 %v3622_v40, %v3621_v2  ;;  %v3288_v1 = vadd.f32 %v3282_v63, %v3280_v15  ;;  %v3285_v27 = vmul.f32 %v12660_v43, %v3247_v30  ;;  %vm4875_vm15 = vcmp.eq.s32.totalorder %v7742_v32, %v11853_v0  ;;  %v3595_v58 = vpop.f32.mrf.mxu1 }
 0x1d3   : > { %v3269_v18 = vrot.slane %v3268_v22, 1  ;;  %v3634_v5 = vadd.f32 %v3628_v8, %v3626_v4  ;;  %v3631_v24 = vmul.f32 %v11525_v46, %v3593_v13  ;;  %vm4530_vm7 = vcmp.eq.s32.totalorder %v7697_v25, %v11816_v50  ;;  %v3251_v23 = vpop.f32.mrf.mxu0 }
 0x1d4   : > { %v3297_v49 = vadd.f32 %v3283_v42, %v3281_v53  ;;  %v3643_v51 = vadd.f32 %v3629_v31, %v3627_v10  ;;  %v3289_v21 = vadd.f32 %v3288_v1, %v3284_v38  ;;  %v3286_v41 = vmul.f32 %v12661_v28, %v3249_v33  ;;  %v3597_v34 = vpop.f32.mrf.mxu1 }
 0x1d5   : > { %v3615_v2 = vrot.slane %v3614_v52, 1  ;;  %v3278_v43 = vrot.slane %v3277_v59, 1  ;;  %v3635_v15 = vadd.f32 %v3634_v5, %v3630_v55  ;;  %v3632_v57 = vmul.f32 %v12662_v6, %v3595_v58  ;;  %v3913_v12 = vpop.f32.mrf.mxu0 }
 0x1d6   : > { %v3624_v63 = vrot.slane %v3623_v19, 1  ;;  %v3298_v4 = vadd.f32 %v3297_v49, %v3285_v27  ;;  %v3290_v54 = vadd.f32 %v3289_v21, %v3286_v41  ;;  %v3287_v46 = vmul.f32 %v12663_v9, %v3251_v23  ;;  %v4265_v38 = vpop.f32.mrf.mxu1  ;;  %v12672_v41 = vld [vmem:[#allocation16_spill] sm:$0xff] }
 0x1d7   : > { %v3644_v40 = vadd.f32 %v3643_v51, %v3631_v24  ;;  %v3636_v8 = vadd.f32 %v3635_v15, %v3632_v57  ;;  %v3633_v53 = vmul.f32 %v12664_v61, %v3597_v34  ;;  %v11958_v28 = vsel %vm4875_vm15, 1.0, %v12453_v45  ;;  %v3915_v61 = vpop.f32.mrf.mxu0  ;;  %v12674_v57 = vld [vmem:[#allocation14_spill] sm:$0xff] }
 0x1d8   : > { %12668 = vst [vmem:[#allocation26_spill] sm:$0xff] %v11958_v28  ;;  %v11960_v42 = vadd.f32 %v3269_v18, %v3268_v22  ;;  %v3291_v6 = vrot.slane %v3290_v54, 4  ;;  %v3299_v31 = vadd.f32 %v3298_v4, %v3287_v46  ;;  %vm4876_vm5 = vcmp.eq.s32.totalorder %v7697_v25, %v11828_v56  ;;  %v4267_v13 = vpop.f32.mrf.mxu1  ;;  %v12681_v28 = vld [vmem:[#allocation23_spill] sm:$0xff] }
 0x1d9   : > { %v11964_v9 = vadd.f32 %v3615_v2, %v3614_v52  ;;  %v3637_v48 = vrot.slane %v3636_v8, 4  ;;  %v3645_v10 = vadd.f32 %v3644_v40, %v3633_v53  ;;  %v11970_v55 = vsel %vm4530_vm7, 1.0, %v12453_v45  ;;  %v12670_v52 = vld [vmem:[#allocation12_spill] sm:$0xff]  ;;  %v3917_v33 = vpop.f32.mrf.mxu0  ;;  %v12673_v2 = vld [vmem:[#allocation19_spill] sm:$0xff]  ;;  %v12676_v40 = vld [vmem:[#allocation17_spill] sm:$0xff] }
 0x1da   : > { %12669 = vst [vmem:[#allocation28_spill] sm:$0xff] %v11970_v55  ;;  %v11972_v30 = vadd.f32 %v3278_v43, %v3277_v59  ;;  %v11974_v22 = vadd.f32 %v3624_v63, %v3623_v19  ;;  %v3292_v1 = vadd.f32 %v3291_v6, %v3290_v54  ;;  %v3300_v27 = vrot.slane %v3299_v31, 4  ;;  %v4269_v43 = vpop.f32.mrf.mxu1  ;;  %v12675_v63 = vld [vmem:[#allocation18_spill] sm:$0xff]  ;;  %v12677_v53 = vld [vmem:[#allocation20_spill] sm:$0xff] }
 0x1db   : > { %v3638_v18 = vadd.f32 %v3637_v48, %v3636_v8  ;;  %v3646_v5 = vrot.slane %v3645_v10, 4  ;;  %v3952_v24 = vmul.f32 %v12670_v52, %v3913_v12  ;;  %v11978_v49 = vsel %vm4876_vm5, 1.0, %v12453_v45  ;;  %v3919_v54 = vpop.f32.mrf.mxu0 }
 0x1dc   : > { %12671 = vst [vmem:[#allocation30_spill] sm:$0xff] %v11978_v49  ;;  %v3293_v51 = vrot.slane %v3292_v1, 2  ;;  %v3301_v21 = vadd.f32 %v3300_v27, %v3299_v31  ;;  %v4304_v58 = vmul.f32 %v12672_v41, %v4265_v38  ;;  %v3954_v59 = vmul.f32 %v12673_v2, %v3917_v33  ;;  %v4271_v6 = vpop.f32.mrf.mxu1  ;;  %v12679_v33 = vld [vmem:[#allocation22_spill] sm:$0xff] }
 0x1dd   : > { %v3639_v19 = vrot.slane %v3638_v18, 2  ;;  %v3647_v15 = vadd.f32 %v3646_v5, %v3645_v10  ;;  %v3953_v23 = vmul.f32 %v12674_v57, %v3915_v61  ;;  %v4306_v4 = vmul.f32 %v12675_v63, %v4269_v43  ;;  %v12678_v10 = vld [vmem:[#allocation21_spill] sm:$0xff]  ;;  %v3923_v27 = vpop.f32.mrf.mxu0 }
 0x1de   : > { %vm4531_vm10 = vcmp.eq.s32.totalorder %v7697_v25, %v11849_v17  ;;  %v3294_v46 = vadd.f32 %v3293_v51, %v3292_v1  ;;  %v3302_v34 = vrot.slane %v3301_v21, 2  ;;  %v4305_v8 = vmul.f32 %v12676_v40, %v4267_v13  ;;  %v4275_v43 = vpop.f32.mrf.mxu1 }
 0x1df   : > { %v3955_v12 = vmul.f32 %v12677_v53, %v3919_v54  ;;  %vm4877_vm11 = vcmp.eq.s32.totalorder %v7697_v25, %v11853_v0  ;;  %v3640_v31 = vadd.f32 %v3639_v19, %v3638_v18  ;;  %v3648_v38 = vrot.slane %v3647_v15, 2  ;;  %v12680_v19 = vld [vmem:[#allocation4_spill] sm:$0xff] }
 0x1e0   : > { %v3960_v48 = vadd.f32 %v3954_v59, %v3952_v24  ;;  %v4307_v61 = vmul.f32 %v12678_v10, %v4271_v6  ;;  %vm4532_vm2 = vcmp.eq.s32.totalorder %v7700_v26, %v11816_v50  ;;  %vm4878_vm4 = vcmp.eq.s32.totalorder %v7700_v26, %v11828_v56  ;;  %v3925_v59 = vpop.f32.mrf.mxu0  ;;  %v4277_v39 = vpop.f32.mrf.mxu1 }
 0x1e1   : > { %v3295_v1 = vrot.slane %v3294_v46, 1  ;;  %v3303_v13 = vadd.f32 %v3302_v34, %v3301_v21  ;;  %v4312_v5 = vadd.f32 %v4306_v4, %v4304_v58  ;;  %v3956_v51 = vmul.f32 %v12679_v33, %v3923_v27 }
 0x1e2   : > { %v3641_v54 = vrot.slane %v3640_v31, 1  ;;  %v3649_v32 = vadd.f32 %v3648_v38, %v3647_v15  ;;  %v3969_v18 = vadd.f32 %v3955_v12, %v3953_v23  ;;  %v4308_v24 = vmul.f32 %v12680_v19, %v4275_v43  ;;  %v3927_v4 = vpop.f32.mrf.mxu0 }
 0x1e3   : > { %v3296_v6 = vadd.f32 %v3295_v1, %v3294_v46  ;;  %v3304_v49 = vrot.slane %v3303_v13, 1  ;;  %v4321_v55 = vadd.f32 %v4307_v61, %v4305_v8  ;;  %v3957_v29 = vmul.f32 %v12681_v28, %v3925_v59  ;;  %v4279_v46 = vpop.f32.mrf.mxu1 }
 0x1e4   : > { %v3642_v47 = vadd.f32 %v3641_v54, %v3640_v31  ;;  %v3650_v35 = vrot.slane %v3649_v32, 1  ;;  %v3961_v21 = vadd.f32 %v3960_v48, %v3956_v51  ;;  %v4309_v58 = vmul.f32 %v11788_v11, %v4277_v39  ;;  %v3929_v39 = vpop.f32.mrf.mxu0 }
 0x1e5   : > { %v3306_v15 = vsel %vm501_vm9, %v11960_v42, %v3296_v6  ;;  %v3305_v23 = vadd.f32 %v3304_v49, %v3303_v13  ;;  %v4313_v34 = vadd.f32 %v4312_v5, %v4308_v24  ;;  %v3958_v12 = vmul.f32 %v11794_v14, %v3927_v4  ;;  %v4281_v1 = vpop.f32.mrf.mxu1 }
 0x1e6   : > { %3308 = vst [vmem:[%s11506_s14 + $0x20] sm:$0x3] %v3306_v15  ;;  %v3652_v8 = vsel %vm501_vm9, %v11964_v9, %v3642_v47  ;;  %v3651_v31 = vadd.f32 %v3650_v35, %v3649_v32  ;;  %v3970_v38 = vadd.f32 %v3969_v18, %v3957_v29  ;;  %v4310_v48 = vmul.f32 %v11800_v62, %v4279_v46  ;;  %v3933_v32 = vpop.f32.mrf.mxu0 }
 0x1e7   : > { %v3656_v61 = vrot.slane %v3652_v8, 6  ;;  %v3307_v42 = vsel %vm501_vm9, %v11972_v30, %v3305_v23  ;;  %v3962_v27 = vadd.f32 %v3961_v21, %v3958_v12  ;;  %v3959_v49 = vmul.f32 %v11806_v60, %v3929_v39  ;;  %v4285_v43 = vpop.f32.mrf.mxu1 }
 0x1e8   : > { %3309 = vst [vmem:[%s11506_s14 + $0x28] sm:$0x3] %v3307_v42  ;;  %v3653_v13 = vsel %vm501_vm9, %v11974_v22, %v3651_v31  ;;  %v4322_v47 = vadd.f32 %v4321_v55, %v4309_v58  ;;  %v4314_v9 = vadd.f32 %v4313_v34, %v4310_v48  ;;  %v4311_v29 = vmul.f32 %v11809_v16, %v4281_v1  ;;  %v3935_v22 = vpop.f32.mrf.mxu0 }
 0x1e9   : > { %3660 = vst [vmem:[%s11506_s14 + $0x20] sm:$0xc] %v3656_v61  ;;  %v3657_v35 = vrot.slane %v3653_v13, 6  ;;  %v3963_v5 = vrot.slane %v3962_v27, 4  ;;  %v3971_v51 = vadd.f32 %v3970_v38, %v3959_v49  ;;  %v12018_v30 = vsel %vm4531_vm10, 1.0, %v12453_v45  ;;  %v4287_v6 = vpop.f32.mrf.mxu1 }
 0x1ea   : > { %v4315_v54 = vrot.slane %v4314_v9, 4  ;;  %v4323_v18 = vadd.f32 %v4322_v47, %v4311_v29  ;;  %v12024_v55 = vsel %vm4877_vm11, 1.0, %v12453_v45  ;;  %vm4533_vm0 = vcmp.eq.s32.totalorder %v7700_v26, %v11849_v17  ;;  %v3937_v12 = vpop.f32.mrf.mxu0 }
 0x1eb   : > { %3661 = vst [vmem:[%s11506_s14 + $0x28] sm:$0xc] %v3657_v35  ;;  %v3964_v24 = vadd.f32 %v3963_v5, %v3962_v27  ;;  %v3972_v59 = vrot.slane %v3971_v51, 4  ;;  %v12033_v21 = vsel %vm4532_vm2, 1.0, %v12453_v45  ;;  %v12039_v58 = vsel %vm4878_vm4, 1.0, %v12453_v45  ;;  %v4289_v50 = vpop.f32.mrf.mxu1 }
 0x1ec   : > { %v4316_v4 = vadd.f32 %v4315_v54, %v4314_v9  ;;  %v4324_v15 = vrot.slane %v4323_v18, 4  ;;  %v3978_v23 = vmul.f32 %v12670_v52, %v3933_v32  ;;  %v4330_v34 = vmul.f32 %v12672_v41, %v4285_v43  ;;  %v3939_v61 = vpop.f32.mrf.mxu0  ;;  %v12682_v32 = vld [vmem:[#allocation8_spill] sm:$0xff] }
 0x1ed   : > { %v3965_v46 = vrot.slane %v3964_v24, 2  ;;  %v3973_v8 = vadd.f32 %v3972_v59, %v3971_v51  ;;  %v3979_v31 = vmul.f32 %v12674_v57, %v3935_v22  ;;  %v12048_v38 = vsel %vm4533_vm0, 1.0, %v12453_v45  ;;  %v4291_v27 = vpop.f32.mrf.mxu1 }
 0x1ee   : > { %v4317_v56 = vrot.slane %v4316_v4, 2  ;;  %v4325_v48 = vadd.f32 %v4324_v15, %v4323_v18  ;;  %v4331_v39 = vmul.f32 %v12676_v40, %v4287_v6  ;;  %vm4879_vm3 = vcmp.eq.s32.totalorder %v7700_v26, %v11853_v0  ;;  %v3943_v47 = vpop.f32.mrf.mxu0 }
 0x1ef   : > { %v3966_v52 = vadd.f32 %v3965_v46, %v3964_v24  ;;  %v3974_v41 = vrot.slane %v3973_v8, 2  ;;  %v3980_v42 = vmul.f32 %v12673_v2, %v3937_v12  ;;  %v4332_v57 = vmul.f32 %v12675_v63, %v4289_v50  ;;  %v4295_v29 = vpop.f32.mrf.mxu1 }
 0x1f0   : > { %v4318_v49 = vadd.f32 %v4317_v56, %v4316_v4  ;;  %v4326_v1 = vrot.slane %v4325_v48, 2  ;;  %v3981_v17 = vmul.f32 %v12677_v53, %v3939_v61  ;;  %v4333_v13 = vmul.f32 %v12678_v10, %v4291_v27  ;;  %v3945_v43 = vpop.f32.mrf.mxu0  ;;  %v12684_v53 = vld [vmem:[#allocation9_spill] sm:$0xff] }
 0x1f1   : > { %v3975_v9 = vadd.f32 %v3974_v41, %v3973_v8  ;;  %v3982_v40 = vmul.f32 %v12679_v33, %v3943_v47  ;;  %v12059_v0 = vsel %vm4879_vm3, 1.0, %v12453_v45  ;;  %v12683_v35 = vand.u32 4095, %v12682_v32  ;;  %v4297_v59 = vpop.f32.mrf.mxu1 }
 0x1f2   : > { %v3967_v63 = vrot.slane %v3966_v52, 1  ;;  %v4327_v5 = vadd.f32 %v4326_v1, %v4325_v48  ;;  %v4334_v51 = vmul.f32 %v12680_v19, %v4295_v29  ;;  %v12685_v54 = vand.u32 4095, %v12684_v53  ;;  %v3947_v46 = vpop.f32.mrf.mxu0 }
 0x1f3   : > { %v12063_v2 = vand.u32 31, %v12683_v35  ;;  %v4319_v18 = vrot.slane %v4318_v49, 1  ;;  %v3986_v22 = vadd.f32 %v3980_v42, %v3978_v23  ;;  %v4338_v33 = vadd.f32 %v4332_v57, %v4330_v34  ;;  %v4299_v56 = vpop.f32.mrf.mxu1 }
 0x1f4   : > { %v12068_v10 = vand.u32 31, %v12685_v54  ;;  %v3983_v24 = vmul.f32 %v12681_v28, %v3945_v43  ;;  %v3976_v6 = vrot.slane %v3975_v9, 1  ;;  %v3995_v4 = vadd.f32 %v3981_v17, %v3979_v31  ;;  %v3949_v34 = vpop.f32.mrf.mxu0 }
 0x1f5   : > { %v4347_v15 = vadd.f32 %v4333_v13, %v4331_v39  ;;  %v4335_v12 = vmul.f32 %v11788_v11, %v4297_v59  ;;  %v4328_v8 = vrot.slane %v4327_v5, 1  ;;  %v3987_v50 = vadd.f32 %v3986_v22, %v3982_v40 }
 0x1f6   : > { %v3984_v19 = vmul.f32 %v11794_v14, %v3947_v46  ;;  %v5211_v48 = vrot.slane %v12063_v2, %v7456_v37  ;;  %v12075_v61 = vadd.f32 %v3967_v63, %v3966_v52  ;;  %v4339_v23 = vadd.f32 %v4338_v33, %v4334_v51  ;;  %v4301_v14 = vpop.f32.mrf.mxu1  ;;  %v4617_v17 = vpop.f32.mrf.mxu0 }
 0x1f7   : > { %v4336_v28 = vmul.f32 %v11800_v62, %v4299_v56  ;;  %v5563_v31 = vrot.slane %v12068_v10, %v7456_v37  ;;  %v12080_v39 = vadd.f32 %v4319_v18, %v4318_v49  ;;  %v3996_v11 = vadd.f32 %v3995_v4, %v3983_v24 }
 0x1f8   : > { %v3988_v41 = vadd.f32 %v3987_v50, %v3984_v19  ;;  %v3985_v42 = vmul.f32 %v11806_v60, %v3949_v34  ;;  %v12083_v57 = vadd.f32 %v3976_v6, %v3975_v9  ;;  %v4348_v27 = vadd.f32 %v4347_v15, %v4335_v12  ;;  %v4963_v40 = vpop.f32.mrf.mxu1  ;;  %v4619_v35 = vpop.f32.mrf.mxu0  ;;  %v12688_v34 = vld [vmem:[#allocation27_spill] sm:$0xff] }
 0x1f9   : > { %v4340_v1 = vadd.f32 %v4339_v23, %v4336_v28  ;;  %v4337_v52 = vmul.f32 %v11809_v16, %v4301_v14  ;;  %v12086_v13 = vadd.f32 %v4328_v8, %v4327_v5  ;;  %v12089_v49 = vrot.slane %v5211_v48, %v7456_v37  ;;  %v12687_v8 = vld [vmem:[#allocation25_spill] sm:$0xff] }
 0x1fa   : > { %v3989_v62 = vrot.slane %v3988_v41, 4  ;;  %v3997_v47 = vadd.f32 %v3996_v11, %v3985_v42  ;;  %v12092_v60 = vrot.slane %v5563_v31, %v7456_v37  ;;  %v5215_v9 = vrot.slane %v12063_v2, %v12607_v7  ;;  %v4965_v51 = vpop.f32.mrf.mxu1  ;;  %v4621_v33 = vpop.f32.mrf.mxu0  ;;  %v12686_v2 = vld [vmem:[#allocation24_spill] sm:$0xff] }
 0x1fb   : > { %v4341_v29 = vrot.slane %v4340_v1, 4  ;;  %v4349_v32 = vadd.f32 %v4348_v27, %v4337_v52  ;;  %v4656_v5 = vmul.f32 %v11897_v3, %v4617_v17  ;;  %v5567_v43 = vrot.slane %v12068_v10, %v12607_v7 }
 0x1fc   : > { %v3990_v63 = vadd.f32 %v3989_v62, %v3988_v41  ;;  %v3998_v16 = vrot.slane %v3997_v47, 4  ;;  %v5002_v18 = vmul.f32 %v11903_v20, %v4963_v40  ;;  %v4657_v22 = vmul.f32 %v11909_v44, %v4619_v35  ;;  %v4967_v15 = vpop.f32.mrf.mxu1  ;;  %v4623_v19 = vpop.f32.mrf.mxu0  ;;  %v12689_v41 = vld [vmem:[#allocation3_spill] sm:$0xff] }
 0x1fd   : > { %v4342_v53 = vadd.f32 %v4341_v29, %v4340_v1  ;;  %v4350_v54 = vrot.slane %v4349_v32, 4  ;;  %v5003_v6 = vmul.f32 %v11921_v36, %v4965_v51  ;;  %v4658_v4 = vmul.f32 %v12686_v2, %v4621_v33  ;;  %v12690_v1 = vld [vmem:[#allocation26_spill] sm:$0xff]  ;;  %v12691_v29 = vld [vmem:[#allocation28_spill] sm:$0xff] }
 0x1fe   : > { %v3991_v24 = vrot.slane %v3990_v63, 2  ;;  %v3999_v59 = vadd.f32 %v3998_v16, %v3997_v47  ;;  %v5004_v50 = vmul.f32 %v12687_v8, %v4967_v15  ;;  %v12105_v56 = vrot.slane %v5215_v9, %v7456_v37  ;;  %v4969_v11 = vpop.f32.mrf.mxu1  ;;  %v4627_v17 = vpop.f32.mrf.mxu0 }
 0x1ff   : > { %v4343_v12 = vrot.slane %v4342_v53, 2  ;;  %v4351_v46 = vadd.f32 %v4350_v54, %v4349_v32  ;;  %v4664_v28 = vadd.f32 %v4658_v4, %v4656_v5  ;;  %v4659_v31 = vmul.f32 %v12688_v34, %v4623_v19  ;;  %v12692_v5 = vld [vmem:[#allocation30_spill] sm:$0xff] }
 0x200   : > { %v3992_v48 = vadd.f32 %v3991_v24, %v3990_v63  ;;  %v4000_v23 = vrot.slane %v3999_v59, 2  ;;  %vm5224_vm13 = vcmp.eq.s32.totalorder %v12689_v41, %v12089_v49  ;;  %v5010_v27 = vadd.f32 %v5004_v50, %v5002_v18  ;;  %v4973_v35 = vpop.f32.mrf.mxu1 }
 0x201   : > { %v4344_v42 = vadd.f32 %v4343_v12, %v4342_v53  ;;  %v4352_v14 = vrot.slane %v4351_v46, 2  ;;  %v5005_v52 = vmul.f32 %v12690_v1, %v4969_v11  ;;  %vm5576_vm12 = vcmp.eq.s32.totalorder %v12689_v41, %v12092_v60  ;;  %v4629_v53 = vpop.f32.mrf.mxu0 }
 0x202   : > { %v3993_v62 = vrot.slane %v3992_v48, 1  ;;  %v4001_v47 = vadd.f32 %v4000_v23, %v3999_v59  ;;  %v4673_v40 = vadd.f32 %v4659_v31, %v4657_v22  ;;  %v4660_v32 = vmul.f32 %v12691_v29, %v4627_v17  ;;  %v4975_v4 = vpop.f32.mrf.mxu1 }
 0x203   : > { %v4345_v9 = vrot.slane %v4344_v42, 1  ;;  %v4353_v63 = vadd.f32 %v4352_v14, %v4351_v46  ;;  %v5019_v16 = vadd.f32 %v5005_v52, %v5003_v6  ;;  %v5006_v51 = vmul.f32 %v12692_v5, %v4973_v35  ;;  %v4631_v59 = vpop.f32.mrf.mxu0 }
 0x204   : > { %v3994_v54 = vadd.f32 %v3993_v62, %v3992_v48  ;;  %v4002_v18 = vrot.slane %v4001_v47, 1  ;;  %v4665_v33 = vadd.f32 %v4664_v28, %v4660_v32  ;;  %v4661_v24 = vmul.f32 %v12018_v30, %v4629_v53  ;;  %v4977_v48 = vpop.f32.mrf.mxu1 }
 0x205   : > { %v4346_v15 = vadd.f32 %v4345_v9, %v4344_v42  ;;  %v4354_v12 = vrot.slane %v4353_v63, 1  ;;  %v5011_v50 = vadd.f32 %v5010_v27, %v5006_v51  ;;  %v5007_v22 = vmul.f32 %v12024_v55, %v4975_v4  ;;  %v4633_v14 = vpop.f32.mrf.mxu0 }
 0x206   : > { %v4004_v46 = vsel %vm501_vm9, %v12075_v61, %v3994_v54  ;;  %v4003_v6 = vadd.f32 %v4002_v18, %v4001_v47  ;;  %v4674_v19 = vadd.f32 %v4673_v40, %v4661_v24  ;;  %v4662_v23 = vmul.f32 %v12033_v21, %v4631_v59  ;;  %v4979_v62 = vpop.f32.mrf.mxu1 }
 0x207   : > { %v4008_v31 = vrot.slane %v4004_v46, 4  ;;  %v4356_v28 = vsel %vm501_vm9, %v12080_v39, %v4346_v15  ;;  %v4355_v11 = vadd.f32 %v4354_v12, %v4353_v63  ;;  %v5020_v42 = vadd.f32 %v5019_v16, %v5007_v22  ;;  %v4637_v35 = vpop.f32.mrf.mxu0 }
 0x208   : > { %v4360_v27 = vrot.slane %v4356_v28, 2  ;;  %v4005_v52 = vsel %vm501_vm9, %v12083_v57, %v4003_v6  ;;  %v4666_v17 = vadd.f32 %v4665_v33, %v4662_v23  ;;  %v5008_v61 = vmul.f32 %v12039_v58, %v4977_v48  ;;  %v4983_v16 = vpop.f32.mrf.mxu1 }
 0x209   : > { %4012 = vst [vmem:[%s11506_s14 + $0x20] sm:$0x30] %v4008_v31  ;;  %v4009_v47 = vrot.slane %v4005_v52, 4  ;;  %v4357_v40 = vsel %vm501_vm9, %v12086_v13, %v4355_v11  ;;  %v4663_v39 = vmul.f32 %v12048_v38, %v4633_v14  ;;  %v5009_v32 = vmul.f32 %v12059_v0, %v4979_v62  ;;  %v4639_v54 = vpop.f32.mrf.mxu0 }
 0x20a   : > { %4364 = vst [vmem:[%s11506_s14 + $0x20] sm:$0xc0] %v4360_v27  ;;  %v4361_v9 = vrot.slane %v4357_v40, 2  ;;  %v4667_v63 = vrot.slane %v4666_v17, 4  ;;  %v5012_v57 = vadd.f32 %v5011_v50, %v5008_v61  ;;  %v12135_v51 = vrot.slane %v5567_v43, %v7456_v37  ;;  %v4985_v37 = vpop.f32.mrf.mxu1 }
 0x20b   : > { %4013 = vst [vmem:[%s11506_s14 + $0x28] sm:$0x30] %v4009_v47  ;;  %v4675_v53 = vadd.f32 %v4674_v19, %v4663_v39  ;;  %v5021_v13 = vadd.f32 %v5020_v42, %v5009_v32  ;;  %v12142_v18 = vsel %vm5224_vm13, 1.0, %v12453_v45  ;;  %vm5225_vm6 = vcmp.eq.s32.totalorder %v12689_v41, %v12105_v56  ;;  %v4641_v50 = vpop.f32.mrf.mxu0  ;;  %v12693_v47 = vld [vmem:[#allocation5_spill] sm:$0xff] }
 0x20c   : > { %4365 = vst [vmem:[%s11506_s14 + $0x28] sm:$0xc0] %v4361_v9  ;;  %v4668_v33 = vadd.f32 %v4667_v63, %v4666_v17  ;;  %v5013_v24 = vrot.slane %v5012_v57, 4  ;;  %v4682_v7 = vmul.f32 %v11897_v3, %v4637_v35  ;;  %v12152_v10 = vsel %vm5576_vm12, 1.0, %v12453_v45  ;;  %v4987_v46 = vpop.f32.mrf.mxu1 }
 0x20d   : > { %v4676_v43 = vrot.slane %v4675_v53, 4  ;;  %v5022_v4 = vrot.slane %v5021_v13, 4  ;;  %v5028_v15 = vmul.f32 %v11903_v20, %v4983_v16  ;;  %v4683_v12 = vmul.f32 %v11909_v44, %v4639_v54  ;;  %v4643_v31 = vpop.f32.mrf.mxu0 }
 0x20e   : > { %v4669_v22 = vrot.slane %v4668_v33, 2  ;;  %v5014_v59 = vadd.f32 %v5013_v24, %v5012_v57  ;;  %v12157_v6 = vsel %vm5225_vm6, 1.0, %v12453_v45  ;;  %vm5577_vm1 = vcmp.eq.s32.totalorder %v12689_v41, %v12135_v51  ;;  %v4989_v42 = vpop.f32.mrf.mxu1 }
 0x20f   : > { %v4677_v3 = vadd.f32 %v4676_v43, %v4675_v53  ;;  %v5023_v19 = vadd.f32 %v5022_v4, %v5021_v13  ;;  %v5029_v23 = vmul.f32 %v11921_v36, %v4985_v37  ;;  %v4684_v48 = vmul.f32 %v12686_v2, %v4641_v50  ;;  %v4647_v17 = vpop.f32.mrf.mxu0 }
 0x210   : > { %v4670_v20 = vadd.f32 %v4669_v22, %v4668_v33  ;;  %v5015_v28 = vrot.slane %v5014_v59, 2  ;;  %v5030_v44 = vmul.f32 %v12687_v8, %v4987_v46  ;;  %v4685_v11 = vmul.f32 %v12688_v34, %v4643_v31  ;;  %v4993_v62 = vpop.f32.mrf.mxu1 }
 0x211   : > { %v4678_v14 = vrot.slane %v4677_v3, 2  ;;  %v5024_v27 = vrot.slane %v5023_v19, 2  ;;  %v5031_v52 = vmul.f32 %v12690_v1, %v4989_v42  ;;  %v12167_v41 = vsel %vm5577_vm1, 1.0, %v12453_v45  ;;  %v4649_v32 = vpop.f32.mrf.mxu0 }
 0x212   : > { %v4671_v61 = vrot.slane %v4670_v20, 1  ;;  %v5016_v36 = vadd.f32 %v5015_v28, %v5014_v59  ;;  %v4686_v2 = vmul.f32 %v12691_v29, %v4647_v17  ;;  %vm5226_vm14 = vcmp.eq.s32.totalorder %v12693_v47, %v12089_v49  ;;  %v4995_v57 = vpop.f32.mrf.mxu1 }
 0x213   : > { %v4679_v8 = vadd.f32 %v4678_v14, %v4677_v3  ;;  %v5025_v40 = vadd.f32 %v5024_v27, %v5023_v19  ;;  %v4690_v34 = vadd.f32 %v4684_v48, %v4682_v7  ;;  %v5032_v39 = vmul.f32 %v12692_v5, %v4993_v62  ;;  %v4651_v54 = vpop.f32.mrf.mxu0 }
 0x214   : > { %v5017_v35 = vrot.slane %v5016_v36, 1  ;;  %v5036_v1 = vadd.f32 %v5030_v44, %v5028_v15  ;;  %v4699_v9 = vadd.f32 %v4685_v11, %v4683_v12  ;;  %v4687_v63 = vmul.f32 %v12018_v30, %v4649_v32  ;;  %v4997_v5 = vpop.f32.mrf.mxu1 }
 0x215   : > { %v12174_v16 = vadd.f32 %v4671_v61, %v4670_v20  ;;  %v4680_v53 = vrot.slane %v4679_v8, 1  ;;  %v5045_v29 = vadd.f32 %v5031_v52, %v5029_v23  ;;  %v5033_v13 = vmul.f32 %v12024_v55, %v4995_v57  ;;  %v4653_v30 = vpop.f32.mrf.mxu0 }
 0x216   : > { %v5026_v33 = vrot.slane %v5025_v40, 1  ;;  %v4691_v24 = vadd.f32 %v4690_v34, %v4686_v2  ;;  %v5037_v37 = vadd.f32 %v5036_v1, %v5032_v39  ;;  %v4688_v7 = vmul.f32 %v12033_v21, %v4651_v54  ;;  %v4999_v22 = vpop.f32.mrf.mxu1 }
 0x217   : > { %v12178_v43 = vadd.f32 %v5017_v35, %v5016_v36  ;;  %v4700_v4 = vadd.f32 %v4699_v9, %v4687_v63  ;;  %v5034_v15 = vmul.f32 %v12039_v58, %v4997_v5  ;;  %v12185_v12 = vsel %vm5226_vm14, 1.0, %v12453_v45  ;;  %v5315_v3 = vpop.f32.mrf.mxu0 }
 0x218   : > { %v4692_v55 = vadd.f32 %v4691_v24, %v4688_v7  ;;  %v4689_v50 = vmul.f32 %v12048_v38, %v4653_v30  ;;  %vm5578_vm8 = vcmp.eq.s32.totalorder %v12693_v47, %v12092_v60  ;;  %vm5227_vm15 = vcmp.eq.s32.totalorder %v12693_v47, %v12105_v56  ;;  %v5667_v31 = vpop.f32.mrf.mxu1 }
 0x219   : > { %v12192_v21 = vadd.f32 %v4680_v53, %v4679_v8  ;;  %v5046_v58 = vadd.f32 %v5045_v29, %v5033_v13  ;;  %v5038_v59 = vadd.f32 %v5037_v37, %v5034_v15  ;;  %v5035_v46 = vmul.f32 %v12059_v0, %v4999_v22  ;;  %v5317_v28 = vpop.f32.mrf.mxu0 }
 0x21a   : > { %v12195_v19 = vadd.f32 %v5026_v33, %v5025_v40  ;;  %v4693_v23 = vrot.slane %v4692_v55, 4  ;;  %v4701_v48 = vadd.f32 %v4700_v4, %v4689_v50  ;;  %vm5579_vm7 = vcmp.eq.s32.totalorder %v12693_v47, %v12135_v51  ;;  %v5669_v52 = vpop.f32.mrf.mxu1 }
 0x21b   : > { %v5039_v38 = vrot.slane %v5038_v59, 4  ;;  %v5047_v20 = vadd.f32 %v5046_v58, %v5035_v46  ;;  %v12200_v44 = vsel %vm5578_vm8, 1.0, %v12453_v45  ;;  %v12203_v11 = vsel %vm5227_vm15, 1.0, %v12453_v45  ;;  %v5319_v2 = vpop.f32.mrf.mxu0 }
 0x21c   : > { %v4694_v42 = vadd.f32 %v4693_v23, %v4692_v55  ;;  %v4702_v0 = vrot.slane %v4701_v48, 4  ;;  %v5354_v14 = vmul.f32 %v12142_v18, %v5315_v3  ;;  %v5706_v27 = vmul.f32 %v12152_v10, %v5667_v31  ;;  %v5671_v34 = vpop.f32.mrf.mxu1 }
 0x21d   : > { %v5040_v17 = vadd.f32 %v5039_v38, %v5038_v59  ;;  %v5048_v61 = vrot.slane %v5047_v20, 4  ;;  %v5355_v36 = vmul.f32 %v12157_v6, %v5317_v28  ;;  %v12209_v62 = vsel %vm5579_vm7, 1.0, %v12453_v45  ;;  %v5321_v1 = vpop.f32.mrf.mxu0 }
 0x21e   : > { %v4695_v47 = vrot.slane %v4694_v42, 2  ;;  %v4703_v8 = vadd.f32 %v4702_v0, %v4701_v48  ;;  %v5356_v40 = vmul.f32 %v12185_v12, %v5319_v2  ;;  %vm5228_vm5 = vcmp.eq.s32.totalorder %v7697_v25, %v12089_v49  ;;  %v5673_v29 = vpop.f32.mrf.mxu1 }
 0x21f   : > { %v5041_v39 = vrot.slane %v5040_v17, 2  ;;  %v5049_v32 = vadd.f32 %v5048_v61, %v5047_v20  ;;  %v5708_v35 = vmul.f32 %v12200_v44, %v5671_v34  ;;  %vm5580_vm10 = vcmp.eq.s32.totalorder %v7697_v25, %v12092_v60  ;;  %v5325_v37 = vpop.f32.mrf.mxu0 }
 0x220   : > { %v4696_v9 = vadd.f32 %v4695_v47, %v4694_v42  ;;  %v4704_v63 = vrot.slane %v4703_v8, 2  ;;  %v5707_v57 = vmul.f32 %v12167_v41, %v5669_v52  ;;  %v5357_v53 = vmul.f32 %v12203_v11, %v5321_v1  ;;  %v5677_v30 = vpop.f32.mrf.mxu1 }
 0x221   : > { %v5042_v13 = vadd.f32 %v5041_v39, %v5040_v17  ;;  %v5050_v54 = vrot.slane %v5049_v32, 2  ;;  %v5709_v33 = vmul.f32 %v12209_v62, %v5673_v29  ;;  %v12221_v24 = vsel %vm5228_vm5, 1.0, %v12453_v45  ;;  %v5327_v59 = vpop.f32.mrf.mxu0 }
 0x222   : > { %v4697_v7 = vrot.slane %v4696_v9, 1  ;;  %v4705_v5 = vadd.f32 %v4704_v63, %v4703_v8  ;;  %v5362_v4 = vadd.f32 %v5356_v40, %v5354_v14  ;;  %v12224_v15 = vsel %vm5580_vm10, 1.0, %v12453_v45  ;;  %v5679_v48 = vpop.f32.mrf.mxu1 }
 0x223   : > { %v5043_v55 = vrot.slane %v5042_v13, 1  ;;  %v5051_v50 = vadd.f32 %v5050_v54, %v5049_v32  ;;  %v5714_v22 = vadd.f32 %v5708_v35, %v5706_v27  ;;  %v5371_v58 = vadd.f32 %v5357_v53, %v5355_v36  ;;  %v5329_v42 = vpop.f32.mrf.mxu0 }
 0x224   : > { %v4698_v46 = vadd.f32 %v4697_v7, %v4696_v9  ;;  %v4706_v3 = vrot.slane %v4705_v5, 1  ;;  %v5358_v23 = vmul.f32 %v12221_v24, %v5325_v37  ;;  %vm5229_vm11 = vcmp.eq.s32.totalorder %v7697_v25, %v12105_v56  ;;  %v5681_v52 = vpop.f32.mrf.mxu1 }
 0x225   : > { %v5044_v31 = vadd.f32 %v5043_v55, %v5042_v13  ;;  %v5052_v38 = vrot.slane %v5051_v50, 1  ;;  %v5723_v20 = vadd.f32 %v5709_v33, %v5707_v57  ;;  %v12230_v28 = vsel %vm5229_vm11, 1.0, %v12453_v45 }
 0x226   : > { %v4708_v0 = vsel %vm501_vm9, %v12174_v16, %v4698_v46  ;;  %v4707_v14 = vadd.f32 %v4706_v3, %v4705_v5  ;;  %v5710_v27 = vmul.f32 %v12224_v15, %v5677_v30  ;;  %vm5581_vm2 = vcmp.eq.s32.totalorder %v7697_v25, %v12135_v51  ;;  %v5331_v16 = vpop.f32.mrf.mxu0  ;;  %v5683_v40 = vpop.f32.mrf.mxu1 }
 0x227   : > { %4710 = vst [vmem:[%s11506_s14 + $0x30] sm:$0x3] %v4708_v0  ;;  %v5054_v17 = vsel %vm501_vm9, %v12178_v43, %v5044_v31  ;;  %v5053_v61 = vadd.f32 %v5052_v38, %v5051_v50  ;;  %v12241_v36 = vsel %vm5581_vm2, 1.0, %v12453_v45  ;;  %vm5230_vm4 = vcmp.eq.s32.totalorder %v7700_v26, %v12089_v49 }
 0x228   : > { %v5058_v2 = vrot.slane %v5054_v17, 6  ;;  %v4709_v47 = vsel %vm501_vm9, %v12192_v21, %v4707_v14  ;;  %v5359_v25 = vmul.f32 %v12230_v28, %v5327_v59  ;;  %v5711_v8 = vmul.f32 %v12241_v36, %v5679_v48  ;;  %v5335_v49 = vpop.f32.mrf.mxu0  ;;  %v5687_v1 = vpop.f32.mrf.mxu1 }
 0x229   : > { %4711 = vst [vmem:[%s11506_s14 + $0x38] sm:$0x3] %v4709_v47  ;;  %v5055_v43 = vsel %vm501_vm9, %v12195_v19, %v5053_v61  ;;  %v7103_v34 = vsel %vm5230_vm4, 1.0, %v12453_v45  ;;  %vm5582_vm0 = vcmp.eq.s32.totalorder %v7700_v26, %v12092_v60  ;;  %vm5231_vm3 = vcmp.eq.s32.totalorder %v7700_v26, %v12105_v56 }
 0x22a   : > { %5062 = vst [vmem:[%s11506_s14 + $0x30] sm:$0xc] %v5058_v2  ;;  %v5059_v21 = vrot.slane %v5055_v43, 6  ;;  %v5363_v39 = vadd.f32 %v5362_v4, %v5358_v23  ;;  %v5360_v32 = vmul.f32 %v7103_v34, %v5329_v42  ;;  %v7189_v35 = vsel %vm5582_vm0, 1.0, %v12453_v45  ;;  %v5337_v57 = vpop.f32.mrf.mxu0  ;;  %v5689_v13 = vpop.f32.mrf.mxu1 }
 0x22b   : > { %v5715_v9 = vadd.f32 %v5714_v22, %v5710_v27  ;;  %v5712_v63 = vmul.f32 %v7189_v35, %v5681_v52  ;;  %v7104_v19 = vsel %vm5231_vm3, 1.0, %v12453_v45  ;;  %vm5583_vm13 = vcmp.eq.s32.totalorder %v7700_v26, %v12135_v51 }
 0x22c   : > { %5063 = vst [vmem:[%s11506_s14 + $0x38] sm:$0xc] %v5059_v21  ;;  %v5372_v60 = vadd.f32 %v5371_v58, %v5359_v25  ;;  %v5364_v53 = vadd.f32 %v5363_v39, %v5360_v32  ;;  %v5361_v56 = vmul.f32 %v7104_v19, %v5331_v16  ;;  %v7190_v29 = vsel %vm5583_vm13, 1.0, %v12453_v45  ;;  %v5339_v7 = vpop.f32.mrf.mxu0  ;;  %v5691_v4 = vpop.f32.mrf.mxu1 }
 0x22d   : > { %v5724_v54 = vadd.f32 %v5723_v20, %v5711_v8  ;;  %v5716_v33 = vadd.f32 %v5715_v9, %v5712_v63  ;;  %v5713_v37 = vmul.f32 %v7190_v29, %v5683_v40  ;;  %v5382_v22 = vmul.f32 %v12185_v12, %v5339_v7 }
 0x22e   : > { %v5373_v5 = vadd.f32 %v5372_v60, %v5361_v56  ;;  %v5341_v55 = vpop.f32.mrf.mxu0  ;;  %v5365_v50 = vrot.slane %v5364_v53, 4  ;;  %v5693_v26 = vpop.f32.mrf.mxu1  ;;  %v5734_v58 = vmul.f32 %v12200_v44, %v5691_v4  ;;  %v5380_v45 = vmul.f32 %v12142_v18, %v5335_v49 }
 0x22f   : > { %v5725_v30 = vadd.f32 %v5724_v54, %v5713_v37  ;;  %v5717_v51 = vrot.slane %v5716_v33, 4  ;;  %v5383_v3 = vmul.f32 %v12203_v11, %v5341_v55  ;;  %v5732_v38 = vmul.f32 %v12152_v10, %v5687_v1 }
 0x230   : > { %v5345_v59 = vpop.f32.mrf.mxu0  ;;  %v5374_v46 = vrot.slane %v5373_v5, 4  ;;  %v5697_v48 = vpop.f32.mrf.mxu1  ;;  %v5735_v20 = vmul.f32 %v12209_v62, %v5693_v26  ;;  %v5366_v0 = vadd.f32 %v5365_v50, %v5364_v53  ;;  %v5381_v44 = vmul.f32 %v12157_v6, %v5337_v57 }
 0x231   : > { %v5384_v23 = vmul.f32 %v12221_v24, %v5345_v59  ;;  %v5726_v31 = vrot.slane %v5725_v30, 4  ;;  %v5736_v12 = vmul.f32 %v12224_v15, %v5697_v48  ;;  %v5388_v14 = vadd.f32 %v5382_v22, %v5380_v45 }
 0x232   : > { %v5347_v42 = vpop.f32.mrf.mxu0  ;;  %v5699_v18 = vpop.f32.mrf.mxu1  ;;  %v5718_v52 = vadd.f32 %v5717_v51, %v5716_v33  ;;  %v5733_v11 = vmul.f32 %v12167_v41, %v5689_v13  ;;  %v5740_v24 = vadd.f32 %v5734_v58, %v5732_v38  ;;  %v5375_v10 = vadd.f32 %v5374_v46, %v5373_v5 }
 0x233   : > { %v5385_v27 = vmul.f32 %v12230_v28, %v5347_v42  ;;  %v5737_v17 = vmul.f32 %v12241_v36, %v5699_v18  ;;  %v5397_v16 = vadd.f32 %v5383_v3, %v5381_v44  ;;  %v5389_v62 = vadd.f32 %v5388_v14, %v5384_v23 }
 0x234   : > { %v5349_v61 = vpop.f32.mrf.mxu0  ;;  %v5701_v15 = vpop.f32.mrf.mxu1  ;;  %v5727_v47 = vadd.f32 %v5726_v31, %v5725_v30  ;;  %v5749_v25 = vadd.f32 %v5735_v20, %v5733_v11  ;;  %v5741_v8 = vadd.f32 %v5740_v24, %v5736_v12  ;;  %v5367_v43 = vrot.slane %v5366_v0, 2 }
 0x235   : > { %v5386_v2 = vmul.f32 %v7103_v34, %v5349_v61  ;;  %v5738_v6 = vmul.f32 %v7189_v35, %v5701_v15  ;;  %v5398_v28 = vadd.f32 %v5397_v16, %v5385_v27  ;;  %v5719_v41 = vrot.slane %v5718_v52, 2  ;;  %v5792_v15 = vld [vmem:[%s11506_s14 + $0x8] sm:$0xff] (%p7432_p4) }
 0x236   : > { %v5351_v40 = vpop.f32.mrf.mxu0  ;;  %v5703_v39 = vpop.f32.mrf.mxu1  ;;  %v5750_v32 = vadd.f32 %v5749_v25, %v5737_v17  ;;  %v5376_v9 = vrot.slane %v5375_v10, 2  ;;  %v5728_v60 = vrot.slane %v5727_v47, 2  ;;  %v5368_v56 = vadd.f32 %v5367_v43, %v5366_v0  ;;  %v5796_v25 = vld [vmem:[%s11506_s14 + $0x18] sm:$0xff] (%p7432_p4)  ;;  %5793 = vst [vmem:[%s5777_s24 + $0x8] sm:$0xff] (%p7432_p4), %v5792_v15 }
 0x237   : > { %v5390_v49 = vadd.f32 %v5389_v62, %v5386_v2  ;;  %v5387_v21 = vmul.f32 %v7104_v19, %v5351_v40  ;;  %v5742_v1 = vadd.f32 %v5741_v8, %v5738_v6  ;;  %v5739_v36 = vmul.f32 %v7190_v29, %v5703_v39  ;;  %v5790_v2 = vld [vmem:[%s11506_s14] sm:$0xff] (%p7432_p4)  ;;  %v5800_v6 = vld [vmem:[%s11506_s14 + $0x28] sm:$0xff] (%p7432_p4)  ;;  %5797 = vst [vmem:[%s5777_s24 + $0x28] sm:$0xff] (%p7432_p4), %v5796_v25 }
 0x238   : > { %v5720_v35 = vadd.f32 %v5719_v41, %v5718_v52  ;;  %v5377_v7 = vadd.f32 %v5376_v9, %v5375_v10  ;;  %v5729_v4 = vadd.f32 %v5728_v60, %v5727_v47  ;;  %v5369_v50 = vrot.slane %v5368_v56, 1  ;;  %v5794_v47 = vld [vmem:[%s11506_s14 + $0x10] sm:$0xff] (%p7432_p4)  ;;  %v5798_v8 = vld [vmem:[%s11506_s14 + $0x20] sm:$0xff] (%p7432_p4)  ;;  %5791 = vst [vmem:[%s5777_s24] sm:$0xff] (%p7432_p4), %v5790_v2  ;;  %5801 = vst [vmem:[%s5777_s24 + $0x48] sm:$0xff] (%p7432_p4), %v5800_v6 }
 0x239   : > { %v5391_v63 = vrot.slane %v5390_v49, 4  ;;  %v5399_v57 = vadd.f32 %v5398_v28, %v5387_v21  ;;  %v5743_v34 = vrot.slane %v5742_v1, 4  ;;  %v5751_v53 = vadd.f32 %v5750_v32, %v5739_v36  ;;  %5795 = vst [vmem:[%s5777_s24 + $0x20] sm:$0xff] (%p7432_p4), %v5794_v47  ;;  %5799 = vst [vmem:[%s5777_s24 + $0x40] sm:$0xff] (%p7432_p4), %v5798_v8 }
 0x23a   : > { %v5721_v26 = vrot.slane %v5720_v35, 1  ;;  %v5378_v59 = vrot.slane %v5377_v7, 1  ;;  %v5730_v3 = vrot.slane %v5729_v4, 1  ;;  %v5370_v31 = vadd.f32 %v5369_v50, %v5368_v56 }
 0x23b   : > { %v5392_v13 = vadd.f32 %v5391_v63, %v5390_v49  ;;  %v5400_v54 = vrot.slane %v5399_v57, 4  ;;  %v5744_v33 = vadd.f32 %v5743_v34, %v5742_v1  ;;  %v5752_v37 = vrot.slane %v5751_v53, 4 }
 0x23c   : > { %v5722_v12 = vadd.f32 %v5721_v26, %v5720_v35  ;;  %v5379_v44 = vadd.f32 %v5378_v59, %v5377_v7  ;;  %v5731_v18 = vadd.f32 %v5730_v3, %v5729_v4 }
 0x23d   : > { %v5393_v5 = vrot.slane %v5392_v13, 2  ;;  %v5401_v19 = vadd.f32 %v5400_v54, %v5399_v57  ;;  %v5745_v30 = vrot.slane %v5744_v33, 2  ;;  %v5753_v55 = vadd.f32 %v5752_v37, %v5751_v53 }
 0x23f   : > { %v5394_v29 = vadd.f32 %v5393_v5, %v5392_v13  ;;  %v5402_v22 = vrot.slane %v5401_v19, 2  ;;  %v5746_v51 = vadd.f32 %v5745_v30, %v5744_v33  ;;  %v5754_v58 = vrot.slane %v5753_v55, 2 }
 0x241   : > { %v5395_v46 = vrot.slane %v5394_v29, 1  ;;  %v5403_v45 = vadd.f32 %v5402_v22, %v5401_v19  ;;  %v5747_v23 = vrot.slane %v5746_v51, 1  ;;  %v5755_v48 = vadd.f32 %v5754_v58, %v5753_v55 }
 0x243   : > { %v5396_v38 = vadd.f32 %v5395_v46, %v5394_v29  ;;  %v5404_v20 = vrot.slane %v5403_v45, 1  ;;  %v5748_v42 = vadd.f32 %v5747_v23, %v5746_v51  ;;  %v5756_v0 = vrot.slane %v5755_v48, 1 }
 0x245   : > { %v5406_v14 = vsel %vm501_vm9, %v5370_v31, %v5396_v38  ;;  %v5405_v27 = vadd.f32 %v5404_v20, %v5403_v45  ;;  %v5758_v11 = vsel %vm501_vm9, %v5722_v12, %v5748_v42  ;;  %v5757_v24 = vadd.f32 %v5756_v0, %v5755_v48 }
 0x246   : > { %v5410_v52 = vrot.slane %v5406_v14, 4  ;;  %v5762_v17 = vrot.slane %v5758_v11, 2  ;;  %5774 = sbr.rel (!%p7432_p4) target bundleno = 595 (0x253), region = 32 }
 0x247   : > { %v5407_v61 = vsel %vm501_vm9, %v5379_v44, %v5405_v27  ;;  %v5759_v16 = vsel %vm501_vm9, %v5731_v18, %v5757_v24 }
 0x248   : > { %5414 = vst [vmem:[%s11506_s14 + $0x30] sm:$0x30] %v5410_v52  ;;  %v5411_v10 = vrot.slane %v5407_v61, 4  ;;  %5766 = vst [vmem:[%s11506_s14 + $0x30] sm:$0xc0] %v5762_v17  ;;  %v5763_v62 = vrot.slane %v5759_v16, 2 }
 0x24a   : > { %5415 = vst [vmem:[%s11506_s14 + $0x38] sm:$0x30] %v5411_v10  ;;  %5767 = vst [vmem:[%s11506_s14 + $0x38] sm:$0xc0] %v5763_v62 }
 0x24f   : > { %v5802_v40 = vld [vmem:[%s11506_s14 + $0x30] sm:$0xff] }
 0x250   : > { %5803 = vst [vmem:[%s5777_s24 + $0x60] sm:$0xff] %v5802_v40 }
 0x251   : > { %v5804_v43 = vld [vmem:[%s11506_s14 + $0x38] sm:$0xff] }
 0x252   : > { %5805 = vst [vmem:[%s5777_s24 + $0x68] sm:$0xff] %v5804_v43 }
 0x253 PF: > { %p9_p8 = scmp.ge.s32.totalorder %s7422_s13, 4   ;;  %s12694_s9 = smov %s7383_s10 }
 0x254   : > { %s12695_s10 = smov %s7430_s16  ;;  %s12696_s11 = smov %s7422_s13 }
 0x255   :  { %11 = sbr.rel (!%p9_p8) target bundleno = 2 (0x2), region = 96 }

</bundles_post_ra>
